<compile_context>
chip_gen: v5e
topology: v5e:2x2
jax: 0.10.0
libtpu: 0.0.40
codegen_flags: <defaults>
</compile_context>

<pallas_src>
import jax
import jax.numpy as jnp
import numpy as np
from jax.experimental import pallas as pl
from jax.experimental.pallas import tpu as pltpu

_EPS = 1e-5
_NEG = float(np.finfo(np.float32).min)  # max-pool padding value


# ----------------------------------------------------------------------------
# Fused Inception kernel (one image per grid step)
# ----------------------------------------------------------------------------
def _make_kernel(H, W, C, C1, C3R, C3, C5R, C5, CP):
    HW = H * W
    O1 = C1
    O2 = C1 + C3
    O3 = C1 + C3 + C5
    COUT = C1 + C3 + C5 + CP

    def kernel(x_ref, xpad_ref,
               w1_ref, b1_ref,
               w2r_ref, b2r_ref, w3_ref, b3_ref,
               w3r_ref, b3r_ref, w5_ref, b5_ref,
               w4_ref, b4_ref,
               o_ref,
               pad3_ref, pad5_ref):
        xm = x_ref[...]                                          # (HW, C)

        # ---- branch 1: 1x1 conv (BN scale folded) + shift + ReLU -----------
        y1 = jnp.dot(xm, w1_ref[...], preferred_element_type=jnp.float32)
        o_ref[:, 0:O1] = jnp.maximum(y1 + b1_ref[...], 0.0)

        # ---- branch 2: 1x1 reduce + ReLU, then 3x3 conv (pad=1) + ReLU -----
        r2 = jnp.maximum(
            jnp.dot(xm, w2r_ref[...], preferred_element_type=jnp.float32)
            + b2r_ref[...], 0.0)                                 # (HW, C3R)
        pad3_ref[...] = jnp.zeros(pad3_ref.shape, pad3_ref.dtype)
        pad3_ref[1:H + 1, 1:W + 1, :] = r2.reshape(H, W, C3R)
        acc3 = jnp.zeros((HW, C3), jnp.float32)
        for dy in range(3):
            for dx in range(3):
                win = pad3_ref[dy:dy + H, dx:dx + W, :].reshape(HW, C3R)
                acc3 = acc3 + jnp.dot(win, w3_ref[dy * 3 + dx],
                                      preferred_element_type=jnp.float32)
        o_ref[:, O1:O2] = jnp.maximum(acc3 + b3_ref[...], 0.0)

        # ---- branch 3: 1x1 reduce + ReLU, then 5x5 conv (pad=2) + ReLU -----
        r3 = jnp.maximum(
            jnp.dot(xm, w3r_ref[...], preferred_element_type=jnp.float32)
            + b3r_ref[...], 0.0)                                 # (HW, C5R)
        pad5_ref[...] = jnp.zeros(pad5_ref.shape, pad5_ref.dtype)
        pad5_ref[2:H + 2, 2:W + 2, :] = r3.reshape(H, W, C5R)
        acc5 = jnp.zeros((HW, C5), jnp.float32)
        for dy in range(5):
            for dx in range(5):
                win = pad5_ref[dy:dy + H, dx:dx + W, :].reshape(HW, C5R)
                acc5 = acc5 + jnp.dot(win, w5_ref[dy * 5 + dx],
                                      preferred_element_type=jnp.float32)
        o_ref[:, O2:O3] = jnp.maximum(acc5 + b5_ref[...], 0.0)

        # ---- branch 4: 3x3/s1/p1 max-pool, then 1x1 conv + ReLU ------------
        mp = xpad_ref[0:H, 0:W, :]
        for dy in range(3):
            for dx in range(3):
                if dy == 0 and dx == 0:
                    continue
                mp = jnp.maximum(mp, xpad_ref[dy:dy + H, dx:dx + W, :])
        y4 = jnp.dot(mp.reshape(HW, C), w4_ref[...],
                     preferred_element_type=jnp.float32)
        o_ref[:, O3:COUT] = jnp.maximum(y4 + b4_ref[...], 0.0)

    return kernel


def _full_spec(arr):
    nd = arr.ndim
    return pl.BlockSpec(arr.shape, lambda n, _nd=nd: (0,) * _nd)


# ----------------------------------------------------------------------------
# Wrapper
# ----------------------------------------------------------------------------
@jax.jit
def inception_forward(x, params):
    """x: (N, C, H, W) float32 (NCHW like PyTorch). Returns (N, Cout, H, W)."""
    N, C, H, W = x.shape
    w1, b1 = params["w1"], params["b1"]
    w2r, b2r, w3, b3 = params["w2r"], params["b2r"], params["w3"], params["b3"]
    w3r, b3r, w5, b5 = params["w3r"], params["b3r"], params["w5"], params["b5"]
    w4, b4 = params["w4"], params["b4"]
    C1, C3R, C3 = w1.shape[1], w2r.shape[1], w3.shape[2]
    C5R, C5, CP = w3r.shape[1], w5.shape[2], w4.shape[1]
    COUT = C1 + C3 + C5 + CP
    HW = H * W

    # Layout glue (XLA): NCHW -> NHWC pixel slab + padded copy for the pool.
    x_nhwc = jnp.transpose(x, (0, 2, 3, 1))
    x_flat = x_nhwc.reshape(N, HW, C)
    x_pad = jnp.pad(x_nhwc, ((0, 0), (1, 1), (1, 1), (0, 0)),
                    constant_values=_NEG)

    kernel = _make_kernel(H, W, C, C1, C3R, C3, C5R, C5, CP)
    weights = (w1, b1, w2r, b2r, w3, b3, w3r, b3r, w5, b5, w4, b4)

    flops = 2 * N * HW * (C * (C1 + C3R + C5R + CP)
                          + 9 * C3R * C3 + 25 * C5R * C5)
    weight_bytes = sum(int(np.prod(p.shape)) * 4 for p in weights)
    bytes_accessed = 4 * (x_flat.size + x_pad.size + N * HW * COUT) + weight_bytes

    out = pl.pallas_call(
        kernel,
        out_shape=jax.ShapeDtypeStruct((N, HW, COUT), jnp.float32),
        grid=(N,),
        in_specs=[
            pl.BlockSpec((None, HW, C), lambda n: (n, 0, 0)),
            pl.BlockSpec((None, H + 2, W + 2, C), lambda n: (n, 0, 0, 0)),
        ] + [_full_spec(p) for p in weights],
        out_specs=pl.BlockSpec((None, HW, COUT), lambda n: (n, 0, 0)),
        scratch_shapes=[
            pltpu.VMEM((H + 2, W + 2, C3R), jnp.float32),   # padded 3x3 input
            pltpu.VMEM((H + 4, W + 4, C5R), jnp.float32),   # padded 5x5 input
        ],
        compiler_params=pltpu.CompilerParams(
            dimension_semantics=("parallel",)),
        cost_estimate=pl.CostEstimate(flops=flops, transcendentals=0,
                                      bytes_accessed=bytes_accessed),
    )(x_flat, x_pad, *weights)

    return jnp.transpose(out.reshape(N, H, W, COUT), (0, 3, 1, 2))


# ----------------------------------------------------------------------------
# Parameters: raw (PyTorch-like) + BN folding for the kernel
# ----------------------------------------------------------------------------
def make_raw_params(key, C, C1, C3R, C3, C5R, C5, CP):
    def conv_init(k, o, i, ksz):
        fan_in = i * ksz * ksz
        return jax.random.normal(k, (o, i, ksz, ksz), jnp.float32) / np.sqrt(fan_in)

    def bn_init(k, o):
        k1, k2, k3, k4 = jax.random.split(k, 4)
        gamma = 1.0 + 0.1 * jax.random.normal(k1, (o,), jnp.float32)
        beta = 0.1 * jax.random.normal(k2, (o,), jnp.float32)
        mean = 0.1 * jax.random.normal(k3, (o,), jnp.float32)
        var = jax.random.uniform(k4, (o,), jnp.float32, 0.5, 1.5)
        return gamma, beta, mean, var

    def make_unit(k, o, i, ksz):
        kw_, kbn = jax.random.split(k)
        return (conv_init(kw_, o, i, ksz),) + bn_init(kbn, o)

    kb1, kb2a, kb2b, kb3a, kb3b, kb4 = jax.random.split(key, 6)
    return {
        "b1": make_unit(kb1, C1, C, 1),
        "b2_reduce": make_unit(kb2a, C3R, C, 1),
        "b2_conv": make_unit(kb2b, C3, C3R, 3),
        "b3_reduce": make_unit(kb3a, C5R, C, 1),
        "b3_conv": make_unit(kb3b, C5, C5R, 5),
        "b4_proj": make_unit(kb4, CP, C, 1),
    }


def _fold_1x1(unit):
    w, gamma, beta, mean, var = unit
    scale = gamma / jnp.sqrt(var + _EPS)
    shift = beta - mean * scale
    wf = (w[:, :, 0, 0] * scale[:, None]).T                # (Cin, Cout)
    return wf, shift.reshape(1, -1)


def _fold_kxk(unit, k):
    w, gamma, beta, mean, var = unit
    scale = gamma / jnp.sqrt(var + _EPS)
    shift = beta - mean * scale
    wf = w * scale[:, None, None, None]                    # (O, I, k, k)
    taps = jnp.transpose(wf, (2, 3, 1, 0)).reshape(k * k, w.shape[1], w.shape[0])
    return taps, shift.reshape(1, -1)                      # (k*k, Cin, Cout)


def fold_params(raw):
    w1, b1 = _fold_1x1(raw["b1"])
    w2r, b2r = _fold_1x1(raw["b2_reduce"])
    w3, b3 = _fold_kxk(raw["b2_conv"], 3)
    w3r, b3r = _fold_1x1(raw["b3_reduce"])
    w5, b5 = _fold_kxk(raw["b3_conv"], 5)
    w4, b4 = _fold_1x1(raw["b4_proj"])
    return dict(w1=w1, b1=b1, w2r=w2r, b2r=b2r, w3=w3, b3=b3,
                w3r=w3r, b3r=b3r, w5=w5, b5=b5, w4=w4, b4=b4)


# ----------------------------------------------------------------------------
# Pure-JAX reference (eval-mode Conv+BN+ReLU branches, maxpool, concat)
# ----------------------------------------------------------------------------
def _conv_bn_relu_ref(x, unit, padding):
    w, gamma, beta, mean, var = unit
    y = jax.lax.conv_general_dilated(
        x, w, window_strides=(1, 1),
        padding=[(padding, padding), (padding, padding)],
        dimension_numbers=("NCHW", "OIHW", "NCHW"))
    scale = (gamma / jnp.sqrt(var + _EPS))[None, :, None, None]
    shift = beta[None, :, None, None] - mean[None, :, None, None] * scale
    return jnp.maximum(y * scale + shift, 0.0)


def _reference(x, raw):
    b1 = _conv_bn_relu_ref(x, raw["b1"], 0)
    b2 = _conv_bn_relu_ref(_conv_bn_relu_ref(x, raw["b2_reduce"], 0),
                           raw["b2_conv"], 1)
    b3 = _conv_bn_relu_ref(_conv_bn_relu_ref(x, raw["b3_reduce"], 0),
                           raw["b3_conv"], 2)
    mp = jax.lax.reduce_window(x, -jnp.inf, jax.lax.max,
                               (1, 1, 3, 3), (1, 1, 1, 1),
                               [(0, 0), (0, 0), (1, 1), (1, 1)])
    b4 = _conv_bn_relu_ref(mp, raw["b4_proj"], 0)
    return jnp.concatenate([b1, b2, b3, b4], axis=1)


if __name__ == "__main__":
    key = jax.random.PRNGKey(0)
    kx, kp = jax.random.split(key)

    # Small Inception block: in=16 -> (1x1=16, 3x3red=16->3x3=32,
    # 5x5red=8->5x5=16, pool_proj=16); output channels = 80.
    N, C, H, W = 2, 16, 16, 16
    C1, C3R, C3, C5R, C5, CP = 16, 16, 32, 8, 16, 16

    x = jax.random.normal(kx, (N, C, H, W), jnp.float32)
    raw = make_raw_params(kp, C, C1, C3R, C3, C5R, C5, CP)
    params = fold_params(raw)

    out = inception_forward(x, params)
    out = jax.block_until_ready(out)
    assert out.shape == (N, C1 + C3 + C5 + CP, H, W), out.shape

    ref = _reference(x, raw)
    np.testing.assert_allclose(np.asarray(out), np.asarray(ref),
                               rtol=2e-4, atol=2e-4)

    # TODO(synk): optionally cast weights to bf16 for HBM-DMA savings on
    # v5e/v6e/v7x once the reference tolerance is loosened accordingly.
    print("KERNEL_OK")
</pallas_src>

<mosaic_0001>
module attributes {stable_mosaic.version = 11 : i64} {
  func.func @kernel(%arg0: i32, %arg1: memref<1x256x16xf32, #tpu.memory_space<vmem>>, %arg2: memref<1x18x18x16xf32, #tpu.memory_space<vmem>>, %arg3: memref<16x16xf32, #tpu.memory_space<vmem>>, %arg4: memref<1x16xf32, #tpu.memory_space<vmem>>, %arg5: memref<16x16xf32, #tpu.memory_space<vmem>>, %arg6: memref<1x16xf32, #tpu.memory_space<vmem>>, %arg7: memref<9x16x32xf32, #tpu.memory_space<vmem>>, %arg8: memref<1x32xf32, #tpu.memory_space<vmem>>, %arg9: memref<16x8xf32, #tpu.memory_space<vmem>>, %arg10: memref<1x8xf32, #tpu.memory_space<vmem>>, %arg11: memref<25x8x16xf32, #tpu.memory_space<vmem>>, %arg12: memref<1x16xf32, #tpu.memory_space<vmem>>, %arg13: memref<16x16xf32, #tpu.memory_space<vmem>>, %arg14: memref<1x16xf32, #tpu.memory_space<vmem>>, %arg15: memref<1x256x80xf32, #tpu.memory_space<vmem>>, %arg16: memref<18x18x16xf32, #tpu.memory_space<vmem>>, %arg17: memref<20x20x8xf32, #tpu.memory_space<vmem>>) attributes {dimension_semantics = [#tpu.dimension_semantics<parallel>], iteration_bounds = array<i64: 2>, scalar_prefetch = 0 : i64, scratch_operands = 2 : i64, tpu.core_type = #tpu.core_type<tc>, window_params = [{transform_indices = @transform_0, window_bounds = array<i64: 1, 256, 16>}, {transform_indices = @transform_1, window_bounds = array<i64: 1, 18, 18, 16>}, {pipeline_mode = #tpu.pipeline_mode<synchronous>, transform_indices = @transform_2, window_bounds = array<i64: 16, 16>}, {pipeline_mode = #tpu.pipeline_mode<synchronous>, transform_indices = @transform_3, window_bounds = array<i64: 1, 16>}, {pipeline_mode = #tpu.pipeline_mode<synchronous>, transform_indices = @transform_4, window_bounds = array<i64: 16, 16>}, {pipeline_mode = #tpu.pipeline_mode<synchronous>, transform_indices = @transform_5, window_bounds = array<i64: 1, 16>}, {pipeline_mode = #tpu.pipeline_mode<synchronous>, transform_indices = @transform_6, window_bounds = array<i64: 9, 16, 32>}, {pipeline_mode = #tpu.pipeline_mode<synchronous>, transform_indices = @transform_7, window_bounds = array<i64: 1, 32>}, {pipeline_mode = #tpu.pipeline_mode<synchronous>, transform_indices = @transform_8, window_bounds = array<i64: 16, 8>}, {pipeline_mode = #tpu.pipeline_mode<synchronous>, transform_indices = @transform_9, window_bounds = array<i64: 1, 8>}, {pipeline_mode = #tpu.pipeline_mode<synchronous>, transform_indices = @transform_10, window_bounds = array<i64: 25, 8, 16>}, {pipeline_mode = #tpu.pipeline_mode<synchronous>, transform_indices = @transform_11, window_bounds = array<i64: 1, 16>}, {pipeline_mode = #tpu.pipeline_mode<synchronous>, transform_indices = @transform_12, window_bounds = array<i64: 16, 16>}, {pipeline_mode = #tpu.pipeline_mode<synchronous>, transform_indices = @transform_13, window_bounds = array<i64: 1, 16>}, {transform_indices = @transform_14, window_bounds = array<i64: 1, 256, 80>}]} {
    %c0 = arith.constant 0 : index
    %c0_0 = arith.constant 0 : index
    %c0_1 = arith.constant 0 : index
    %0 = vector.load %arg1[%c0, %c0_0, %c0_1] : memref<1x256x16xf32, #tpu.memory_space<vmem>>, vector<1x256x16xf32>
    %1 = vector.shape_cast %0 : vector<1x256x16xf32> to vector<256x16xf32>
    %c0_2 = arith.constant 0 : index
    %c0_3 = arith.constant 0 : index
    %2 = vector.load %arg3[%c0_2, %c0_3] : memref<16x16xf32, #tpu.memory_space<vmem>>, vector<16x16xf32>
    %cst = arith.constant dense<0.000000e+00> : vector<256x16xf32>
    %3 = tpu.matmul %1, %2, %cst {dimension_numbers = #tpu.dot_dimension_numbers<[1], [0], [0], [1], [0, 0, 1, 1], [], []>} : vector<256x16xf32>, vector<16x16xf32>, vector<256x16xf32> -> vector<256x16xf32>
    %c0_4 = arith.constant 0 : index
    %c0_5 = arith.constant 0 : index
    %4 = vector.load %arg4[%c0_4, %c0_5] : memref<1x16xf32, #tpu.memory_space<vmem>>, vector<1x16xf32>
    %5 = vector.broadcast %4 : vector<1x16xf32> to vector<256x16xf32>
    %6 = arith.addf %3, %5 : vector<256x16xf32>
    %cst_6 = arith.constant 0.000000e+00 : f32
    %7 = vector.broadcast %cst_6 : f32 to vector<256x16xf32>
    %8 = arith.maximumf %6, %7 : vector<256x16xf32>
    %c0_7 = arith.constant 0 : index
    %c0_8 = arith.constant 0 : index
    %c0_9 = arith.constant 0 : index
    %9 = vector.load %arg15[%c0_7, %c0_8, %c0_9] : memref<1x256x80xf32, #tpu.memory_space<vmem>>, vector<1x256x16xf32>
    %10 = vector.shape_cast %9 : vector<1x256x16xf32> to vector<256x16xf32>
    %11 = vector.shape_cast %8 : vector<256x16xf32> to vector<1x256x16xf32>
    tpu.vector_store %arg15[%c0_7, %c0_8, %c0_9], %11 {strides = array<i32>} : memref<1x256x80xf32, #tpu.memory_space<vmem>>, vector<1x256x16xf32>,
    %c0_10 = arith.constant 0 : index
    %c0_11 = arith.constant 0 : index
    %12 = vector.load %arg5[%c0_10, %c0_11] : memref<16x16xf32, #tpu.memory_space<vmem>>, vector<16x16xf32>
    %cst_12 = arith.constant dense<0.000000e+00> : vector<256x16xf32>
    %13 = tpu.matmul %1, %12, %cst_12 {dimension_numbers = #tpu.dot_dimension_numbers<[1], [0], [0], [1], [0, 0, 1, 1], [], []>} : vector<256x16xf32>, vector<16x16xf32>, vector<256x16xf32> -> vector<256x16xf32>
    %c0_13 = arith.constant 0 : index
    %c0_14 = arith.constant 0 : index
    %14 = vector.load %arg6[%c0_13, %c0_14] : memref<1x16xf32, #tpu.memory_space<vmem>>, vector<1x16xf32>
    %15 = vector.broadcast %14 : vector<1x16xf32> to vector<256x16xf32>
    %16 = arith.addf %13, %15 : vector<256x16xf32>
    %cst_15 = arith.constant 0.000000e+00 : f32
    %17 = vector.broadcast %cst_15 : f32 to vector<256x16xf32>
    %18 = arith.maximumf %16, %17 : vector<256x16xf32>
    %cst_16 = arith.constant 0.000000e+00 : f32
    %19 = vector.broadcast %cst_16 : f32 to vector<18x18x16xf32>
    %c0_17 = arith.constant 0 : index
    %c0_18 = arith.constant 0 : index
    %c0_19 = arith.constant 0 : index
    %20 = vector.load %arg16[%c0_17, %c0_18, %c0_19] : memref<18x18x16xf32, #tpu.memory_space<vmem>>, vector<18x18x16xf32>
    tpu.vector_store %arg16[%c0_17, %c0_18, %c0_19], %19 {strides = array<i32>} : memref<18x18x16xf32, #tpu.memory_space<vmem>>, vector<18x18x16xf32>,
    %21 = vector.shape_cast %18 : vector<256x16xf32> to vector<16x16x16xf32>
    %c1 = arith.constant 1 : index
    %c1_20 = arith.constant 1 : index
    %c0_21 = arith.constant 0 : index
    %22 = vector.load %arg16[%c1, %c1_20, %c0_21] : memref<18x18x16xf32, #tpu.memory_space<vmem>>, vector<16x16x16xf32>
    tpu.vector_store %arg16[%c1, %c1_20, %c0_21], %21 {strides = array<i32>} : memref<18x18x16xf32, #tpu.memory_space<vmem>>, vector<16x16x16xf32>,
    %cst_22 = arith.constant 0.000000e+00 : f32
    %23 = vector.broadcast %cst_22 : f32 to vector<256x32xf32>
    %c0_23 = arith.constant 0 : index
    %c0_24 = arith.constant 0 : index
    %c0_25 = arith.constant 0 : index
    %24 = vector.load %arg16[%c0_23, %c0_24, %c0_25] : memref<18x18x16xf32, #tpu.memory_space<vmem>>, vector<16x16x16xf32>
    %25 = vector.shape_cast %24 : vector<16x16x16xf32> to vector<256x16xf32>
    %c0_26 = arith.constant 0 : index
    %c0_27 = arith.constant 0 : index
    %c0_28 = arith.constant 0 : index
    %26 = vector.load %arg7[%c0_26, %c0_27, %c0_28] : memref<9x16x32xf32, #tpu.memory_space<vmem>>, vector<1x16x32xf32>
    %27 = vector.shape_cast %26 : vector<1x16x32xf32> to vector<16x32xf32>
    %cst_29 = arith.constant dense<0.000000e+00> : vector<256x32xf32>
    %28 = tpu.matmul %25, %27, %cst_29 {dimension_numbers = #tpu.dot_dimension_numbers<[1], [0], [0], [1], [0, 0, 1, 1], [], []>} : vector<256x16xf32>, vector<16x32xf32>, vector<256x32xf32> -> vector<256x32xf32>
    %29 = arith.addf %23, %28 : vector<256x32xf32>
    %c0_30 = arith.constant 0 : index
    %c1_31 = arith.constant 1 : index
    %c0_32 = arith.constant 0 : index
    %30 = vector.load %arg16[%c0_30, %c1_31, %c0_32] : memref<18x18x16xf32, #tpu.memory_space<vmem>>, vector<16x16x16xf32>
    %31 = vector.shape_cast %30 : vector<16x16x16xf32> to vector<256x16xf32>
    %c1_33 = arith.constant 1 : index
    %c0_34 = arith.constant 0 : index
    %c0_35 = arith.constant 0 : index
    %32 = vector.load %arg7[%c1_33, %c0_34, %c0_35] : memref<9x16x32xf32, #tpu.memory_space<vmem>>, vector<1x16x32xf32>
    %33 = vector.shape_cast %32 : vector<1x16x32xf32> to vector<16x32xf32>
    %cst_36 = arith.constant dense<0.000000e+00> : vector<256x32xf32>
    %34 = tpu.matmul %31, %33, %cst_36 {dimension_numbers = #tpu.dot_dimension_numbers<[1], [0], [0], [1], [0, 0, 1, 1], [], []>} : vector<256x16xf32>, vector<16x32xf32>, vector<256x32xf32> -> vector<256x32xf32>
    %35 = arith.addf %29, %34 : vector<256x32xf32>
    %c0_37 = arith.constant 0 : index
    %c2 = arith.constant 2 : index
    %c0_38 = arith.constant 0 : index
    %36 = vector.load %arg16[%c0_37, %c2, %c0_38] : memref<18x18x16xf32, #tpu.memory_space<vmem>>, vector<16x16x16xf32>
    %37 = vector.shape_cast %36 : vector<16x16x16xf32> to vector<256x16xf32>
    %c2_39 = arith.constant 2 : index
    %c0_40 = arith.constant 0 : index
    %c0_41 = arith.constant 0 : index
    %38 = vector.load %arg7[%c2_39, %c0_40, %c0_41] : memref<9x16x32xf32, #tpu.memory_space<vmem>>, vector<1x16x32xf32>
    %39 = vector.shape_cast %38 : vector<1x16x32xf32> to vector<16x32xf32>
    %cst_42 = arith.constant dense<0.000000e+00> : vector<256x32xf32>
    %40 = tpu.matmul %37, %39, %cst_42 {dimension_numbers = #tpu.dot_dimension_numbers<[1], [0], [0], [1], [0, 0, 1, 1], [], []>} : vector<256x16xf32>, vector<16x32xf32>, vector<256x32xf32> -> vector<256x32xf32>
    %41 = arith.addf %35, %40 : vector<256x32xf32>
    %c1_43 = arith.constant 1 : index
    %c0_44 = arith.constant 0 : index
    %c0_45 = arith.constant 0 : index
    %42 = vector.load %arg16[%c1_43, %c0_44, %c0_45] : memref<18x18x16xf32, #tpu.memory_space<vmem>>, vector<16x16x16xf32>
    %43 = vector.shape_cast %42 : vector<16x16x16xf32> to vector<256x16xf32>
    %c3 = arith.constant 3 : index
    %c0_46 = arith.constant 0 : index
    %c0_47 = arith.constant 0 : index
    %44 = vector.load %arg7[%c3, %c0_46, %c0_47] : memref<9x16x32xf32, #tpu.memory_space<vmem>>, vector<1x16x32xf32>
    %45 = vector.shape_cast %44 : vector<1x16x32xf32> to vector<16x32xf32>
    %cst_48 = arith.constant dense<0.000000e+00> : vector<256x32xf32>
    %46 = tpu.matmul %43, %45, %cst_48 {dimension_numbers = #tpu.dot_dimension_numbers<[1], [0], [0], [1], [0, 0, 1, 1], [], []>} : vector<256x16xf32>, vector<16x32xf32>, vector<256x32xf32> -> vector<256x32xf32>
    %47 = arith.addf %41, %46 : vector<256x32xf32>
    %c1_49 = arith.constant 1 : index
    %c1_50 = arith.constant 1 : index
    %c0_51 = arith.constant 0 : index
    %48 = vector.load %arg16[%c1_49, %c1_50, %c0_51] : memref<18x18x16xf32, #tpu.memory_space<vmem>>, vector<16x16x16xf32>
    %49 = vector.shape_cast %48 : vector<16x16x16xf32> to vector<256x16xf32>
    %c4 = arith.constant 4 : index
    %c0_52 = arith.constant 0 : index
    %c0_53 = arith.constant 0 : index
    %50 = vector.load %arg7[%c4, %c0_52, %c0_53] : memref<9x16x32xf32, #tpu.memory_space<vmem>>, vector<1x16x32xf32>
    %51 = vector.shape_cast %50 : vector<1x16x32xf32> to vector<16x32xf32>
    %cst_54 = arith.constant dense<0.000000e+00> : vector<256x32xf32>
    %52 = tpu.matmul %49, %51, %cst_54 {dimension_numbers = #tpu.dot_dimension_numbers<[1], [0], [0], [1], [0, 0, 1, 1], [], []>} : vector<256x16xf32>, vector<16x32xf32>, vector<256x32xf32> -> vector<256x32xf32>
    %53 = arith.addf %47, %52 : vector<256x32xf32>
    %c1_55 = arith.constant 1 : index
    %c2_56 = arith.constant 2 : index
    %c0_57 = arith.constant 0 : index
    %54 = vector.load %arg16[%c1_55, %c2_56, %c0_57] : memref<18x18x16xf32, #tpu.memory_space<vmem>>, vector<16x16x16xf32>
    %55 = vector.shape_cast %54 : vector<16x16x16xf32> to vector<256x16xf32>
    %c5 = arith.constant 5 : index
    %c0_58 = arith.constant 0 : index
    %c0_59 = arith.constant 0 : index
    %56 = vector.load %arg7[%c5, %c0_58, %c0_59] : memref<9x16x32xf32, #tpu.memory_space<vmem>>, vector<1x16x32xf32>
    %57 = vector.shape_cast %56 : vector<1x16x32xf32> to vector<16x32xf32>
    %cst_60 = arith.constant dense<0.000000e+00> : vector<256x32xf32>
    %58 = tpu.matmul %55, %57, %cst_60 {dimension_numbers = #tpu.dot_dimension_numbers<[1], [0], [0], [1], [0, 0, 1, 1], [], []>} : vector<256x16xf32>, vector<16x32xf32>, vector<256x32xf32> -> vector<256x32xf32>
    %59 = arith.addf %53, %58 : vector<256x32xf32>
    %c2_61 = arith.constant 2 : index
    %c0_62 = arith.constant 0 : index
    %c0_63 = arith.constant 0 : index
    %60 = vector.load %arg16[%c2_61, %c0_62, %c0_63] : memref<18x18x16xf32, #tpu.memory_space<vmem>>, vector<16x16x16xf32>
    %61 = vector.shape_cast %60 : vector<16x16x16xf32> to vector<256x16xf32>
    %c6 = arith.constant 6 : index
    %c0_64 = arith.constant 0 : index
    %c0_65 = arith.constant 0 : index
    %62 = vector.load %arg7[%c6, %c0_64, %c0_65] : memref<9x16x32xf32, #tpu.memory_space<vmem>>, vector<1x16x32xf32>
    %63 = vector.shape_cast %62 : vector<1x16x32xf32> to vector<16x32xf32>
    %cst_66 = arith.constant dense<0.000000e+00> : vector<256x32xf32>
    %64 = tpu.matmul %61, %63, %cst_66 {dimension_numbers = #tpu.dot_dimension_numbers<[1], [0], [0], [1], [0, 0, 1, 1], [], []>} : vector<256x16xf32>, vector<16x32xf32>, vector<256x32xf32> -> vector<256x32xf32>
    %65 = arith.addf %59, %64 : vector<256x32xf32>
    %c2_67 = arith.constant 2 : index
    %c1_68 = arith.constant 1 : index
    %c0_69 = arith.constant 0 : index
    %66 = vector.load %arg16[%c2_67, %c1_68, %c0_69] : memref<18x18x16xf32, #tpu.memory_space<vmem>>, vector<16x16x16xf32>
    %67 = vector.shape_cast %66 : vector<16x16x16xf32> to vector<256x16xf32>
    %c7 = arith.constant 7 : index
    %c0_70 = arith.constant 0 : index
    %c0_71 = arith.constant 0 : index
    %68 = vector.load %arg7[%c7, %c0_70, %c0_71] : memref<9x16x32xf32, #tpu.memory_space<vmem>>, vector<1x16x32xf32>
    %69 = vector.shape_cast %68 : vector<1x16x32xf32> to vector<16x32xf32>
    %cst_72 = arith.constant dense<0.000000e+00> : vector<256x32xf32>
    %70 = tpu.matmul %67, %69, %cst_72 {dimension_numbers = #tpu.dot_dimension_numbers<[1], [0], [0], [1], [0, 0, 1, 1], [], []>} : vector<256x16xf32>, vector<16x32xf32>, vector<256x32xf32> -> vector<256x32xf32>
    %71 = arith.addf %65, %70 : vector<256x32xf32>
    %c2_73 = arith.constant 2 : index
    %c2_74 = arith.constant 2 : index
    %c0_75 = arith.constant 0 : index
    %72 = vector.load %arg16[%c2_73, %c2_74, %c0_75] : memref<18x18x16xf32, #tpu.memory_space<vmem>>, vector<16x16x16xf32>
    %73 = vector.shape_cast %72 : vector<16x16x16xf32> to vector<256x16xf32>
    %c8 = arith.constant 8 : index
    %c0_76 = arith.constant 0 : index
    %c0_77 = arith.constant 0 : index
    %74 = vector.load %arg7[%c8, %c0_76, %c0_77] : memref<9x16x32xf32, #tpu.memory_space<vmem>>, vector<1x16x32xf32>
    %75 = vector.shape_cast %74 : vector<1x16x32xf32> to vector<16x32xf32>
    %cst_78 = arith.constant dense<0.000000e+00> : vector<256x32xf32>
    %76 = tpu.matmul %73, %75, %cst_78 {dimension_numbers = #tpu.dot_dimension_numbers<[1], [0], [0], [1], [0, 0, 1, 1], [], []>} : vector<256x16xf32>, vector<16x32xf32>, vector<256x32xf32> -> vector<256x32xf32>
    %77 = arith.addf %71, %76 : vector<256x32xf32>
    %c0_79 = arith.constant 0 : index
    %c0_80 = arith.constant 0 : index
    %78 = vector.load %arg8[%c0_79, %c0_80] : memref<1x32xf32, #tpu.memory_space<vmem>>, vector<1x32xf32>
    %79 = vector.broadcast %78 : vector<1x32xf32> to vector<256x32xf32>
    %80 = arith.addf %77, %79 : vector<256x32xf32>
    %cst_81 = arith.constant 0.000000e+00 : f32
    %81 = vector.broadcast %cst_81 : f32 to vector<256x32xf32>
    %82 = arith.maximumf %80, %81 : vector<256x32xf32>
    %c0_82 = arith.constant 0 : index
    %c0_83 = arith.constant 0 : index
    %c16 = arith.constant 16 : index
    %83 = vector.load %arg15[%c0_82, %c0_83, %c16] : memref<1x256x80xf32, #tpu.memory_space<vmem>>, vector<1x256x32xf32>
    %84 = vector.shape_cast %83 : vector<1x256x32xf32> to vector<256x32xf32>
    %85 = vector.shape_cast %82 : vector<256x32xf32> to vector<1x256x32xf32>
    tpu.vector_store %arg15[%c0_82, %c0_83, %c16], %85 {strides = array<i32>} : memref<1x256x80xf32, #tpu.memory_space<vmem>>, vector<1x256x32xf32>,
    %c0_84 = arith.constant 0 : index
    %c0_85 = arith.constant 0 : index
    %86 = vector.load %arg9[%c0_84, %c0_85] : memref<16x8xf32, #tpu.memory_space<vmem>>, vector<16x8xf32>
    %cst_86 = arith.constant dense<0.000000e+00> : vector<256x8xf32>
    %87 = tpu.matmul %1, %86, %cst_86 {dimension_numbers = #tpu.dot_dimension_numbers<[1], [0], [0], [1], [0, 0, 1, 1], [], []>} : vector<256x16xf32>, vector<16x8xf32>, vector<256x8xf32> -> vector<256x8xf32>
    %c0_87 = arith.constant 0 : index
    %c0_88 = arith.constant 0 : index
    %88 = vector.load %arg10[%c0_87, %c0_88] : memref<1x8xf32, #tpu.memory_space<vmem>>, vector<1x8xf32>
    %89 = vector.broadcast %88 : vector<1x8xf32> to vector<256x8xf32>
    %90 = arith.addf %87, %89 : vector<256x8xf32>
    %cst_89 = arith.constant 0.000000e+00 : f32
    %91 = vector.broadcast %cst_89 : f32 to vector<256x8xf32>
    %92 = arith.maximumf %90, %91 : vector<256x8xf32>
    %cst_90 = arith.constant 0.000000e+00 : f32
    %93 = vector.broadcast %cst_90 : f32 to vector<20x20x8xf32>
    %c0_91 = arith.constant 0 : index
    %c0_92 = arith.constant 0 : index
    %c0_93 = arith.constant 0 : index
    %94 = vector.load %arg17[%c0_91, %c0_92, %c0_93] : memref<20x20x8xf32, #tpu.memory_space<vmem>>, vector<20x20x8xf32>
    tpu.vector_store %arg17[%c0_91, %c0_92, %c0_93], %93 {strides = array<i32>} : memref<20x20x8xf32, #tpu.memory_space<vmem>>, vector<20x20x8xf32>,
    %95 = vector.shape_cast %92 : vector<256x8xf32> to vector<16x16x8xf32>
    %c2_94 = arith.constant 2 : index
    %c2_95 = arith.constant 2 : index
    %c0_96 = arith.constant 0 : index
    %96 = vector.load %arg17[%c2_94, %c2_95, %c0_96] : memref<20x20x8xf32, #tpu.memory_space<vmem>>, vector<16x16x8xf32>
    tpu.vector_store %arg17[%c2_94, %c2_95, %c0_96], %95 {strides = array<i32>} : memref<20x20x8xf32, #tpu.memory_space<vmem>>, vector<16x16x8xf32>,
    %cst_97 = arith.constant 0.000000e+00 : f32
    %97 = vector.broadcast %cst_97 : f32 to vector<256x16xf32>
    %c0_98 = arith.constant 0 : index
    %c0_99 = arith.constant 0 : index
    %c0_100 = arith.constant 0 : index
    %98 = vector.load %arg17[%c0_98, %c0_99, %c0_100] : memref<20x20x8xf32, #tpu.memory_space<vmem>>, vector<16x16x8xf32>
    %99 = vector.shape_cast %98 : vector<16x16x8xf32> to vector<256x8xf32>
    %c0_101 = arith.constant 0 : index
    %c0_102 = arith.constant 0 : index
    %c0_103 = arith.constant 0 : index
    %100 = vector.load %arg11[%c0_101, %c0_102, %c0_103] : memref<25x8x16xf32, #tpu.memory_space<vmem>>, vector<1x8x16xf32>
    %101 = vector.shape_cast %100 : vector<1x8x16xf32> to vector<8x16xf32>
    %cst_104 = arith.constant dense<0.000000e+00> : vector<256x16xf32>
    %102 = tpu.matmul %99, %101, %cst_104 {dimension_numbers = #tpu.dot_dimension_numbers<[1], [0], [0], [1], [0, 0, 1, 1], [], []>} : vector<256x8xf32>, vector<8x16xf32>, vector<256x16xf32> -> vector<256x16xf32>
    %103 = arith.addf %97, %102 : vector<256x16xf32>
    %c0_105 = arith.constant 0 : index
    %c1_106 = arith.constant 1 : index
    %c0_107 = arith.constant 0 : index
    %104 = vector.load %arg17[%c0_105, %c1_106, %c0_107] : memref<20x20x8xf32, #tpu.memory_space<vmem>>, vector<16x16x8xf32>
    %105 = vector.shape_cast %104 : vector<16x16x8xf32> to vector<256x8xf32>
    %c1_108 = arith.constant 1 : index
    %c0_109 = arith.constant 0 : index
    %c0_110 = arith.constant 0 : index
    %106 = vector.load %arg11[%c1_108, %c0_109, %c0_110] : memref<25x8x16xf32, #tpu.memory_space<vmem>>, vector<1x8x16xf32>
    %107 = vector.shape_cast %106 : vector<1x8x16xf32> to vector<8x16xf32>
    %cst_111 = arith.constant dense<0.000000e+00> : vector<256x16xf32>
    %108 = tpu.matmul %105, %107, %cst_111 {dimension_numbers = #tpu.dot_dimension_numbers<[1], [0], [0], [1], [0, 0, 1, 1], [], []>} : vector<256x8xf32>, vector<8x16xf32>, vector<256x16xf32> -> vector<256x16xf32>
    %109 = arith.addf %103, %108 : vector<256x16xf32>
    %c0_112 = arith.constant 0 : index
    %c2_113 = arith.constant 2 : index
    %c0_114 = arith.constant 0 : index
    %110 = vector.load %arg17[%c0_112, %c2_113, %c0_114] : memref<20x20x8xf32, #tpu.memory_space<vmem>>, vector<16x16x8xf32>
    %111 = vector.shape_cast %110 : vector<16x16x8xf32> to vector<256x8xf32>
    %c2_115 = arith.constant 2 : index
    %c0_116 = arith.constant 0 : index
    %c0_117 = arith.constant 0 : index
    %112 = vector.load %arg11[%c2_115, %c0_116, %c0_117] : memref<25x8x16xf32, #tpu.memory_space<vmem>>, vector<1x8x16xf32>
    %113 = vector.shape_cast %112 : vector<1x8x16xf32> to vector<8x16xf32>
    %cst_118 = arith.constant dense<0.000000e+00> : vector<256x16xf32>
    %114 = tpu.matmul %111, %113, %cst_118 {dimension_numbers = #tpu.dot_dimension_numbers<[1], [0], [0], [1], [0, 0, 1, 1], [], []>} : vector<256x8xf32>, vector<8x16xf32>, vector<256x16xf32> -> vector<256x16xf32>
    %115 = arith.addf %109, %114 : vector<256x16xf32>
    %c0_119 = arith.constant 0 : index
    %c3_120 = arith.constant 3 : index
    %c0_121 = arith.constant 0 : index
    %116 = vector.load %arg17[%c0_119, %c3_120, %c0_121] : memref<20x20x8xf32, #tpu.memory_space<vmem>>, vector<16x16x8xf32>
    %117 = vector.shape_cast %116 : vector<16x16x8xf32> to vector<256x8xf32>
    %c3_122 = arith.constant 3 : index
    %c0_123 = arith.constant 0 : index
    %c0_124 = arith.constant 0 : index
    %118 = vector.load %arg11[%c3_122, %c0_123, %c0_124] : memref<25x8x16xf32, #tpu.memory_space<vmem>>, vector<1x8x16xf32>
    %119 = vector.shape_cast %118 : vector<1x8x16xf32> to vector<8x16xf32>
    %cst_125 = arith.constant dense<0.000000e+00> : vector<256x16xf32>
    %120 = tpu.matmul %117, %119, %cst_125 {dimension_numbers = #tpu.dot_dimension_numbers<[1], [0], [0], [1], [0, 0, 1, 1], [], []>} : vector<256x8xf32>, vector<8x16xf32>, vector<256x16xf32> -> vector<256x16xf32>
    %121 = arith.addf %115, %120 : vector<256x16xf32>
    %c0_126 = arith.constant 0 : index
    %c4_127 = arith.constant 4 : index
    %c0_128 = arith.constant 0 : index
    %122 = vector.load %arg17[%c0_126, %c4_127, %c0_128] : memref<20x20x8xf32, #tpu.memory_space<vmem>>, vector<16x16x8xf32>
    %123 = vector.shape_cast %122 : vector<16x16x8xf32> to vector<256x8xf32>
    %c4_129 = arith.constant 4 : index
    %c0_130 = arith.constant 0 : index
    %c0_131 = arith.constant 0 : index
    %124 = vector.load %arg11[%c4_129, %c0_130, %c0_131] : memref<25x8x16xf32, #tpu.memory_space<vmem>>, vector<1x8x16xf32>
    %125 = vector.shape_cast %124 : vector<1x8x16xf32> to vector<8x16xf32>
    %cst_132 = arith.constant dense<0.000000e+00> : vector<256x16xf32>
    %126 = tpu.matmul %123, %125, %cst_132 {dimension_numbers = #tpu.dot_dimension_numbers<[1], [0], [0], [1], [0, 0, 1, 1], [], []>} : vector<256x8xf32>, vector<8x16xf32>, vector<256x16xf32> -> vector<256x16xf32>
    %127 = arith.addf %121, %126 : vector<256x16xf32>
    %c1_133 = arith.constant 1 : index
    %c0_134 = arith.constant 0 : index
    %c0_135 = arith.constant 0 : index
    %128 = vector.load %arg17[%c1_133, %c0_134, %c0_135] : memref<20x20x8xf32, #tpu.memory_space<vmem>>, vector<16x16x8xf32>
    %129 = vector.shape_cast %128 : vector<16x16x8xf32> to vector<256x8xf32>
    %c5_136 = arith.constant 5 : index
    %c0_137 = arith.constant 0 : index
    %c0_138 = arith.constant 0 : index
    %130 = vector.load %arg11[%c5_136, %c0_137, %c0_138] : memref<25x8x16xf32, #tpu.memory_space<vmem>>, vector<1x8x16xf32>
    %131 = vector.shape_cast %130 : vector<1x8x16xf32> to vector<8x16xf32>
    %cst_139 = arith.constant dense<0.000000e+00> : vector<256x16xf32>
    %132 = tpu.matmul %129, %131, %cst_139 {dimension_numbers = #tpu.dot_dimension_numbers<[1], [0], [0], [1], [0, 0, 1, 1], [], []>} : vector<256x8xf32>, vector<8x16xf32>, vector<256x16xf32> -> vector<256x16xf32>
    %133 = arith.addf %127, %132 : vector<256x16xf32>
    %c1_140 = arith.constant 1 : index
    %c1_141 = arith.constant 1 : index
    %c0_142 = arith.constant 0 : index
    %134 = vector.load %arg17[%c1_140, %c1_141, %c0_142] : memref<20x20x8xf32, #tpu.memory_space<vmem>>, vector<16x16x8xf32>
    %135 = vector.shape_cast %134 : vector<16x16x8xf32> to vector<256x8xf32>
    %c6_143 = arith.constant 6 : index
    %c0_144 = arith.constant 0 : index
    %c0_145 = arith.constant 0 : index
    %136 = vector.load %arg11[%c6_143, %c0_144, %c0_145] : memref<25x8x16xf32, #tpu.memory_space<vmem>>, vector<1x8x16xf32>
    %137 = vector.shape_cast %136 : vector<1x8x16xf32> to vector<8x16xf32>
    %cst_146 = arith.constant dense<0.000000e+00> : vector<256x16xf32>
    %138 = tpu.matmul %135, %137, %cst_146 {dimension_numbers = #tpu.dot_dimension_numbers<[1], [0], [0], [1], [0, 0, 1, 1], [], []>} : vector<256x8xf32>, vector<8x16xf32>, vector<256x16xf32> -> vector<256x16xf32>
    %139 = arith.addf %133, %138 : vector<256x16xf32>
    %c1_147 = arith.constant 1 : index
    %c2_148 = arith.constant 2 : index
    %c0_149 = arith.constant 0 : index
    %140 = vector.load %arg17[%c1_147, %c2_148, %c0_149] : memref<20x20x8xf32, #tpu.memory_space<vmem>>, vector<16x16x8xf32>
    %141 = vector.shape_cast %140 : vector<16x16x8xf32> to vector<256x8xf32>
    %c7_150 = arith.constant 7 : index
    %c0_151 = arith.constant 0 : index
    %c0_152 = arith.constant 0 : index
    %142 = vector.load %arg11[%c7_150, %c0_151, %c0_152] : memref<25x8x16xf32, #tpu.memory_space<vmem>>, vector<1x8x16xf32>
    %143 = vector.shape_cast %142 : vector<1x8x16xf32> to vector<8x16xf32>
    %cst_153 = arith.constant dense<0.000000e+00> : vector<256x16xf32>
    %144 = tpu.matmul %141, %143, %cst_153 {dimension_numbers = #tpu.dot_dimension_numbers<[1], [0], [0], [1], [0, 0, 1, 1], [], []>} : vector<256x8xf32>, vector<8x16xf32>, vector<256x16xf32> -> vector<256x16xf32>
    %145 = arith.addf %139, %144 : vector<256x16xf32>
    %c1_154 = arith.constant 1 : index
    %c3_155 = arith.constant 3 : index
    %c0_156 = arith.constant 0 : index
    %146 = vector.load %arg17[%c1_154, %c3_155, %c0_156] : memref<20x20x8xf32, #tpu.memory_space<vmem>>, vector<16x16x8xf32>
    %147 = vector.shape_cast %146 : vector<16x16x8xf32> to vector<256x8xf32>
    %c8_157 = arith.constant 8 : index
    %c0_158 = arith.constant 0 : index
    %c0_159 = arith.constant 0 : index
    %148 = vector.load %arg11[%c8_157, %c0_158, %c0_159] : memref<25x8x16xf32, #tpu.memory_space<vmem>>, vector<1x8x16xf32>
    %149 = vector.shape_cast %148 : vector<1x8x16xf32> to vector<8x16xf32>
    %cst_160 = arith.constant dense<0.000000e+00> : vector<256x16xf32>
    %150 = tpu.matmul %147, %149, %cst_160 {dimension_numbers = #tpu.dot_dimension_numbers<[1], [0], [0], [1], [0, 0, 1, 1], [], []>} : vector<256x8xf32>, vector<8x16xf32>, vector<256x16xf32> -> vector<256x16xf32>
    %151 = arith.addf %145, %150 : vector<256x16xf32>
    %c1_161 = arith.constant 1 : index
    %c4_162 = arith.constant 4 : index
    %c0_163 = arith.constant 0 : index
    %152 = vector.load %arg17[%c1_161, %c4_162, %c0_163] : memref<20x20x8xf32, #tpu.memory_space<vmem>>, vector<16x16x8xf32>
    %153 = vector.shape_cast %152 : vector<16x16x8xf32> to vector<256x8xf32>
    %c9 = arith.constant 9 : index
    %c0_164 = arith.constant 0 : index
    %c0_165 = arith.constant 0 : index
    %154 = vector.load %arg11[%c9, %c0_164, %c0_165] : memref<25x8x16xf32, #tpu.memory_space<vmem>>, vector<1x8x16xf32>
    %155 = vector.shape_cast %154 : vector<1x8x16xf32> to vector<8x16xf32>
    %cst_166 = arith.constant dense<0.000000e+00> : vector<256x16xf32>
    %156 = tpu.matmul %153, %155, %cst_166 {dimension_numbers = #tpu.dot_dimension_numbers<[1], [0], [0], [1], [0, 0, 1, 1], [], []>} : vector<256x8xf32>, vector<8x16xf32>, vector<256x16xf32> -> vector<256x16xf32>
    %157 = arith.addf %151, %156 : vector<256x16xf32>
    %c2_167 = arith.constant 2 : index
    %c0_168 = arith.constant 0 : index
    %c0_169 = arith.constant 0 : index
    %158 = vector.load %arg17[%c2_167, %c0_168, %c0_169] : memref<20x20x8xf32, #tpu.memory_space<vmem>>, vector<16x16x8xf32>
    %159 = vector.shape_cast %158 : vector<16x16x8xf32> to vector<256x8xf32>
    %c10 = arith.constant 10 : index
    %c0_170 = arith.constant 0 : index
    %c0_171 = arith.constant 0 : index
    %160 = vector.load %arg11[%c10, %c0_170, %c0_171] : memref<25x8x16xf32, #tpu.memory_space<vmem>>, vector<1x8x16xf32>
    %161 = vector.shape_cast %160 : vector<1x8x16xf32> to vector<8x16xf32>
    %cst_172 = arith.constant dense<0.000000e+00> : vector<256x16xf32>
    %162 = tpu.matmul %159, %161, %cst_172 {dimension_numbers = #tpu.dot_dimension_numbers<[1], [0], [0], [1], [0, 0, 1, 1], [], []>} : vector<256x8xf32>, vector<8x16xf32>, vector<256x16xf32> -> vector<256x16xf32>
    %163 = arith.addf %157, %162 : vector<256x16xf32>
    %c2_173 = arith.constant 2 : index
    %c1_174 = arith.constant 1 : index
    %c0_175 = arith.constant 0 : index
    %164 = vector.load %arg17[%c2_173, %c1_174, %c0_175] : memref<20x20x8xf32, #tpu.memory_space<vmem>>, vector<16x16x8xf32>
    %165 = vector.shape_cast %164 : vector<16x16x8xf32> to vector<256x8xf32>
    %c11 = arith.constant 11 : index
    %c0_176 = arith.constant 0 : index
    %c0_177 = arith.constant 0 : index
    %166 = vector.load %arg11[%c11, %c0_176, %c0_177] : memref<25x8x16xf32, #tpu.memory_space<vmem>>, vector<1x8x16xf32>
    %167 = vector.shape_cast %166 : vector<1x8x16xf32> to vector<8x16xf32>
    %cst_178 = arith.constant dense<0.000000e+00> : vector<256x16xf32>
    %168 = tpu.matmul %165, %167, %cst_178 {dimension_numbers = #tpu.dot_dimension_numbers<[1], [0], [0], [1], [0, 0, 1, 1], [], []>} : vector<256x8xf32>, vector<8x16xf32>, vector<256x16xf32> -> vector<256x16xf32>
    %169 = arith.addf %163, %168 : vector<256x16xf32>
    %c2_179 = arith.constant 2 : index
    %c2_180 = arith.constant 2 : index
    %c0_181 = arith.constant 0 : index
    %170 = vector.load %arg17[%c2_179, %c2_180, %c0_181] : memref<20x20x8xf32, #tpu.memory_space<vmem>>, vector<16x16x8xf32>
    %171 = vector.shape_cast %170 : vector<16x16x8xf32> to vector<256x8xf32>
    %c12 = arith.constant 12 : index
    %c0_182 = arith.constant 0 : index
    %c0_183 = arith.constant 0 : index
    %172 = vector.load %arg11[%c12, %c0_182, %c0_183] : memref<25x8x16xf32, #tpu.memory_space<vmem>>, vector<1x8x16xf32>
    %173 = vector.shape_cast %172 : vector<1x8x16xf32> to vector<8x16xf32>
    %cst_184 = arith.constant dense<0.000000e+00> : vector<256x16xf32>
    %174 = tpu.matmul %171, %173, %cst_184 {dimension_numbers = #tpu.dot_dimension_numbers<[1], [0], [0], [1], [0, 0, 1, 1], [], []>} : vector<256x8xf32>, vector<8x16xf32>, vector<256x16xf32> -> vector<256x16xf32>
    %175 = arith.addf %169, %174 : vector<256x16xf32>
    %c2_185 = arith.constant 2 : index
    %c3_186 = arith.constant 3 : index
    %c0_187 = arith.constant 0 : index
    %176 = vector.load %arg17[%c2_185, %c3_186, %c0_187] : memref<20x20x8xf32, #tpu.memory_space<vmem>>, vector<16x16x8xf32>
    %177 = vector.shape_cast %176 : vector<16x16x8xf32> to vector<256x8xf32>
    %c13 = arith.constant 13 : index
    %c0_188 = arith.constant 0 : index
    %c0_189 = arith.constant 0 : index
    %178 = vector.load %arg11[%c13, %c0_188, %c0_189] : memref<25x8x16xf32, #tpu.memory_space<vmem>>, vector<1x8x16xf32>
    %179 = vector.shape_cast %178 : vector<1x8x16xf32> to vector<8x16xf32>
    %cst_190 = arith.constant dense<0.000000e+00> : vector<256x16xf32>
    %180 = tpu.matmul %177, %179, %cst_190 {dimension_numbers = #tpu.dot_dimension_numbers<[1], [0], [0], [1], [0, 0, 1, 1], [], []>} : vector<256x8xf32>, vector<8x16xf32>, vector<256x16xf32> -> vector<256x16xf32>
    %181 = arith.addf %175, %180 : vector<256x16xf32>
    %c2_191 = arith.constant 2 : index
    %c4_192 = arith.constant 4 : index
    %c0_193 = arith.constant 0 : index
    %182 = vector.load %arg17[%c2_191, %c4_192, %c0_193] : memref<20x20x8xf32, #tpu.memory_space<vmem>>, vector<16x16x8xf32>
    %183 = vector.shape_cast %182 : vector<16x16x8xf32> to vector<256x8xf32>
    %c14 = arith.constant 14 : index
    %c0_194 = arith.constant 0 : index
    %c0_195 = arith.constant 0 : index
    %184 = vector.load %arg11[%c14, %c0_194, %c0_195] : memref<25x8x16xf32, #tpu.memory_space<vmem>>, vector<1x8x16xf32>
    %185 = vector.shape_cast %184 : vector<1x8x16xf32> to vector<8x16xf32>
    %cst_196 = arith.constant dense<0.000000e+00> : vector<256x16xf32>
    %186 = tpu.matmul %183, %185, %cst_196 {dimension_numbers = #tpu.dot_dimension_numbers<[1], [0], [0], [1], [0, 0, 1, 1], [], []>} : vector<256x8xf32>, vector<8x16xf32>, vector<256x16xf32> -> vector<256x16xf32>
    %187 = arith.addf %181, %186 : vector<256x16xf32>
    %c3_197 = arith.constant 3 : index
    %c0_198 = arith.constant 0 : index
    %c0_199 = arith.constant 0 : index
    %188 = vector.load %arg17[%c3_197, %c0_198, %c0_199] : memref<20x20x8xf32, #tpu.memory_space<vmem>>, vector<16x16x8xf32>
    %189 = vector.shape_cast %188 : vector<16x16x8xf32> to vector<256x8xf32>
    %c15 = arith.constant 15 : index
    %c0_200 = arith.constant 0 : index
    %c0_201 = arith.constant 0 : index
    %190 = vector.load %arg11[%c15, %c0_200, %c0_201] : memref<25x8x16xf32, #tpu.memory_space<vmem>>, vector<1x8x16xf32>
    %191 = vector.shape_cast %190 : vector<1x8x16xf32> to vector<8x16xf32>
    %cst_202 = arith.constant dense<0.000000e+00> : vector<256x16xf32>
    %192 = tpu.matmul %189, %191, %cst_202 {dimension_numbers = #tpu.dot_dimension_numbers<[1], [0], [0], [1], [0, 0, 1, 1], [], []>} : vector<256x8xf32>, vector<8x16xf32>, vector<256x16xf32> -> vector<256x16xf32>
    %193 = arith.addf %187, %192 : vector<256x16xf32>
    %c3_203 = arith.constant 3 : index
    %c1_204 = arith.constant 1 : index
    %c0_205 = arith.constant 0 : index
    %194 = vector.load %arg17[%c3_203, %c1_204, %c0_205] : memref<20x20x8xf32, #tpu.memory_space<vmem>>, vector<16x16x8xf32>
    %195 = vector.shape_cast %194 : vector<16x16x8xf32> to vector<256x8xf32>
    %c16_206 = arith.constant 16 : index
    %c0_207 = arith.constant 0 : index
    %c0_208 = arith.constant 0 : index
    %196 = vector.load %arg11[%c16_206, %c0_207, %c0_208] : memref<25x8x16xf32, #tpu.memory_space<vmem>>, vector<1x8x16xf32>
    %197 = vector.shape_cast %196 : vector<1x8x16xf32> to vector<8x16xf32>
    %cst_209 = arith.constant dense<0.000000e+00> : vector<256x16xf32>
    %198 = tpu.matmul %195, %197, %cst_209 {dimension_numbers = #tpu.dot_dimension_numbers<[1], [0], [0], [1], [0, 0, 1, 1], [], []>} : vector<256x8xf32>, vector<8x16xf32>, vector<256x16xf32> -> vector<256x16xf32>
    %199 = arith.addf %193, %198 : vector<256x16xf32>
    %c3_210 = arith.constant 3 : index
    %c2_211 = arith.constant 2 : index
    %c0_212 = arith.constant 0 : index
    %200 = vector.load %arg17[%c3_210, %c2_211, %c0_212] : memref<20x20x8xf32, #tpu.memory_space<vmem>>, vector<16x16x8xf32>
    %201 = vector.shape_cast %200 : vector<16x16x8xf32> to vector<256x8xf32>
    %c17 = arith.constant 17 : index
    %c0_213 = arith.constant 0 : index
    %c0_214 = arith.constant 0 : index
    %202 = vector.load %arg11[%c17, %c0_213, %c0_214] : memref<25x8x16xf32, #tpu.memory_space<vmem>>, vector<1x8x16xf32>
    %203 = vector.shape_cast %202 : vector<1x8x16xf32> to vector<8x16xf32>
    %cst_215 = arith.constant dense<0.000000e+00> : vector<256x16xf32>
    %204 = tpu.matmul %201, %203, %cst_215 {dimension_numbers = #tpu.dot_dimension_numbers<[1], [0], [0], [1], [0, 0, 1, 1], [], []>} : vector<256x8xf32>, vector<8x16xf32>, vector<256x16xf32> -> vector<256x16xf32>
    %205 = arith.addf %199, %204 : vector<256x16xf32>
    %c3_216 = arith.constant 3 : index
    %c3_217 = arith.constant 3 : index
    %c0_218 = arith.constant 0 : index
    %206 = vector.load %arg17[%c3_216, %c3_217, %c0_218] : memref<20x20x8xf32, #tpu.memory_space<vmem>>, vector<16x16x8xf32>
    %207 = vector.shape_cast %206 : vector<16x16x8xf32> to vector<256x8xf32>
    %c18 = arith.constant 18 : index
    %c0_219 = arith.constant 0 : index
    %c0_220 = arith.constant 0 : index
    %208 = vector.load %arg11[%c18, %c0_219, %c0_220] : memref<25x8x16xf32, #tpu.memory_space<vmem>>, vector<1x8x16xf32>
    %209 = vector.shape_cast %208 : vector<1x8x16xf32> to vector<8x16xf32>
    %cst_221 = arith.constant dense<0.000000e+00> : vector<256x16xf32>
    %210 = tpu.matmul %207, %209, %cst_221 {dimension_numbers = #tpu.dot_dimension_numbers<[1], [0], [0], [1], [0, 0, 1, 1], [], []>} : vector<256x8xf32>, vector<8x16xf32>, vector<256x16xf32> -> vector<256x16xf32>
    %211 = arith.addf %205, %210 : vector<256x16xf32>
    %c3_222 = arith.constant 3 : index
    %c4_223 = arith.constant 4 : index
    %c0_224 = arith.constant 0 : index
    %212 = vector.load %arg17[%c3_222, %c4_223, %c0_224] : memref<20x20x8xf32, #tpu.memory_space<vmem>>, vector<16x16x8xf32>
    %213 = vector.shape_cast %212 : vector<16x16x8xf32> to vector<256x8xf32>
    %c19 = arith.constant 19 : index
    %c0_225 = arith.constant 0 : index
    %c0_226 = arith.constant 0 : index
    %214 = vector.load %arg11[%c19, %c0_225, %c0_226] : memref<25x8x16xf32, #tpu.memory_space<vmem>>, vector<1x8x16xf32>
    %215 = vector.shape_cast %214 : vector<1x8x16xf32> to vector<8x16xf32>
    %cst_227 = arith.constant dense<0.000000e+00> : vector<256x16xf32>
    %216 = tpu.matmul %213, %215, %cst_227 {dimension_numbers = #tpu.dot_dimension_numbers<[1], [0], [0], [1], [0, 0, 1, 1], [], []>} : vector<256x8xf32>, vector<8x16xf32>, vector<256x16xf32> -> vector<256x16xf32>
    %217 = arith.addf %211, %216 : vector<256x16xf32>
    %c4_228 = arith.constant 4 : index
    %c0_229 = arith.constant 0 : index
    %c0_230 = arith.constant 0 : index
    %218 = vector.load %arg17[%c4_228, %c0_229, %c0_230] : memref<20x20x8xf32, #tpu.memory_space<vmem>>, vector<16x16x8xf32>
    %219 = vector.shape_cast %218 : vector<16x16x8xf32> to vector<256x8xf32>
    %c20 = arith.constant 20 : index
    %c0_231 = arith.constant 0 : index
    %c0_232 = arith.constant 0 : index
    %220 = vector.load %arg11[%c20, %c0_231, %c0_232] : memref<25x8x16xf32, #tpu.memory_space<vmem>>, vector<1x8x16xf32>
    %221 = vector.shape_cast %220 : vector<1x8x16xf32> to vector<8x16xf32>
    %cst_233 = arith.constant dense<0.000000e+00> : vector<256x16xf32>
    %222 = tpu.matmul %219, %221, %cst_233 {dimension_numbers = #tpu.dot_dimension_numbers<[1], [0], [0], [1], [0, 0, 1, 1], [], []>} : vector<256x8xf32>, vector<8x16xf32>, vector<256x16xf32> -> vector<256x16xf32>
    %223 = arith.addf %217, %222 : vector<256x16xf32>
    %c4_234 = arith.constant 4 : index
    %c1_235 = arith.constant 1 : index
    %c0_236 = arith.constant 0 : index
    %224 = vector.load %arg17[%c4_234, %c1_235, %c0_236] : memref<20x20x8xf32, #tpu.memory_space<vmem>>, vector<16x16x8xf32>
    %225 = vector.shape_cast %224 : vector<16x16x8xf32> to vector<256x8xf32>
    %c21 = arith.constant 21 : index
    %c0_237 = arith.constant 0 : index
    %c0_238 = arith.constant 0 : index
    %226 = vector.load %arg11[%c21, %c0_237, %c0_238] : memref<25x8x16xf32, #tpu.memory_space<vmem>>, vector<1x8x16xf32>
    %227 = vector.shape_cast %226 : vector<1x8x16xf32> to vector<8x16xf32>
    %cst_239 = arith.constant dense<0.000000e+00> : vector<256x16xf32>
    %228 = tpu.matmul %225, %227, %cst_239 {dimension_numbers = #tpu.dot_dimension_numbers<[1], [0], [0], [1], [0, 0, 1, 1], [], []>} : vector<256x8xf32>, vector<8x16xf32>, vector<256x16xf32> -> vector<256x16xf32>
    %229 = arith.addf %223, %228 : vector<256x16xf32>
    %c4_240 = arith.constant 4 : index
    %c2_241 = arith.constant 2 : index
    %c0_242 = arith.constant 0 : index
    %230 = vector.load %arg17[%c4_240, %c2_241, %c0_242] : memref<20x20x8xf32, #tpu.memory_space<vmem>>, vector<16x16x8xf32>
    %231 = vector.shape_cast %230 : vector<16x16x8xf32> to vector<256x8xf32>
    %c22 = arith.constant 22 : index
    %c0_243 = arith.constant 0 : index
    %c0_244 = arith.constant 0 : index
    %232 = vector.load %arg11[%c22, %c0_243, %c0_244] : memref<25x8x16xf32, #tpu.memory_space<vmem>>, vector<1x8x16xf32>
    %233 = vector.shape_cast %232 : vector<1x8x16xf32> to vector<8x16xf32>
    %cst_245 = arith.constant dense<0.000000e+00> : vector<256x16xf32>
    %234 = tpu.matmul %231, %233, %cst_245 {dimension_numbers = #tpu.dot_dimension_numbers<[1], [0], [0], [1], [0, 0, 1, 1], [], []>} : vector<256x8xf32>, vector<8x16xf32>, vector<256x16xf32> -> vector<256x16xf32>
    %235 = arith.addf %229, %234 : vector<256x16xf32>
    %c4_246 = arith.constant 4 : index
    %c3_247 = arith.constant 3 : index
    %c0_248 = arith.constant 0 : index
    %236 = vector.load %arg17[%c4_246, %c3_247, %c0_248] : memref<20x20x8xf32, #tpu.memory_space<vmem>>, vector<16x16x8xf32>
    %237 = vector.shape_cast %236 : vector<16x16x8xf32> to vector<256x8xf32>
    %c23 = arith.constant 23 : index
    %c0_249 = arith.constant 0 : index
    %c0_250 = arith.constant 0 : index
    %238 = vector.load %arg11[%c23, %c0_249, %c0_250] : memref<25x8x16xf32, #tpu.memory_space<vmem>>, vector<1x8x16xf32>
    %239 = vector.shape_cast %238 : vector<1x8x16xf32> to vector<8x16xf32>
    %cst_251 = arith.constant dense<0.000000e+00> : vector<256x16xf32>
    %240 = tpu.matmul %237, %239, %cst_251 {dimension_numbers = #tpu.dot_dimension_numbers<[1], [0], [0], [1], [0, 0, 1, 1], [], []>} : vector<256x8xf32>, vector<8x16xf32>, vector<256x16xf32> -> vector<256x16xf32>
    %241 = arith.addf %235, %240 : vector<256x16xf32>
    %c4_252 = arith.constant 4 : index
    %c4_253 = arith.constant 4 : index
    %c0_254 = arith.constant 0 : index
    %242 = vector.load %arg17[%c4_252, %c4_253, %c0_254] : memref<20x20x8xf32, #tpu.memory_space<vmem>>, vector<16x16x8xf32>
    %243 = vector.shape_cast %242 : vector<16x16x8xf32> to vector<256x8xf32>
    %c24 = arith.constant 24 : index
    %c0_255 = arith.constant 0 : index
    %c0_256 = arith.constant 0 : index
    %244 = vector.load %arg11[%c24, %c0_255, %c0_256] : memref<25x8x16xf32, #tpu.memory_space<vmem>>, vector<1x8x16xf32>
    %245 = vector.shape_cast %244 : vector<1x8x16xf32> to vector<8x16xf32>
    %cst_257 = arith.constant dense<0.000000e+00> : vector<256x16xf32>
    %246 = tpu.matmul %243, %245, %cst_257 {dimension_numbers = #tpu.dot_dimension_numbers<[1], [0], [0], [1], [0, 0, 1, 1], [], []>} : vector<256x8xf32>, vector<8x16xf32>, vector<256x16xf32> -> vector<256x16xf32>
    %247 = arith.addf %241, %246 : vector<256x16xf32>
    %c0_258 = arith.constant 0 : index
    %c0_259 = arith.constant 0 : index
    %248 = vector.load %arg12[%c0_258, %c0_259] : memref<1x16xf32, #tpu.memory_space<vmem>>, vector<1x16xf32>
    %249 = vector.broadcast %248 : vector<1x16xf32> to vector<256x16xf32>
    %250 = arith.addf %247, %249 : vector<256x16xf32>
    %cst_260 = arith.constant 0.000000e+00 : f32
    %251 = vector.broadcast %cst_260 : f32 to vector<256x16xf32>
    %252 = arith.maximumf %250, %251 : vector<256x16xf32>
    %c0_261 = arith.constant 0 : index
    %c0_262 = arith.constant 0 : index
    %c48 = arith.constant 48 : index
    %253 = vector.load %arg15[%c0_261, %c0_262, %c48] : memref<1x256x80xf32, #tpu.memory_space<vmem>>, vector<1x256x16xf32>
    %254 = vector.shape_cast %253 : vector<1x256x16xf32> to vector<256x16xf32>
    %255 = vector.shape_cast %252 : vector<256x16xf32> to vector<1x256x16xf32>
    tpu.vector_store %arg15[%c0_261, %c0_262, %c48], %255 {strides = array<i32>} : memref<1x256x80xf32, #tpu.memory_space<vmem>>, vector<1x256x16xf32>,
    %c0_263 = arith.constant 0 : index
    %c0_264 = arith.constant 0 : index
    %c0_265 = arith.constant 0 : index
    %c0_266 = arith.constant 0 : index
    %256 = vector.load %arg2[%c0_263, %c0_264, %c0_265, %c0_266] : memref<1x18x18x16xf32, #tpu.memory_space<vmem>>, vector<1x16x16x16xf32>
    %257 = vector.shape_cast %256 : vector<1x16x16x16xf32> to vector<16x16x16xf32>
    %c0_267 = arith.constant 0 : index
    %c0_268 = arith.constant 0 : index
    %c1_269 = arith.constant 1 : index
    %c0_270 = arith.constant 0 : index
    %258 = vector.load %arg2[%c0_267, %c0_268, %c1_269, %c0_270] : memref<1x18x18x16xf32, #tpu.memory_space<vmem>>, vector<1x16x16x16xf32>
    %259 = vector.shape_cast %258 : vector<1x16x16x16xf32> to vector<16x16x16xf32>
    %260 = arith.maximumf %257, %259 : vector<16x16x16xf32>
    %c0_271 = arith.constant 0 : index
    %c0_272 = arith.constant 0 : index
    %c2_273 = arith.constant 2 : index
    %c0_274 = arith.constant 0 : index
    %261 = vector.load %arg2[%c0_271, %c0_272, %c2_273, %c0_274] : memref<1x18x18x16xf32, #tpu.memory_space<vmem>>, vector<1x16x16x16xf32>
    %262 = vector.shape_cast %261 : vector<1x16x16x16xf32> to vector<16x16x16xf32>
    %263 = arith.maximumf %260, %262 : vector<16x16x16xf32>
    %c0_275 = arith.constant 0 : index
    %c1_276 = arith.constant 1 : index
    %c0_277 = arith.constant 0 : index
    %c0_278 = arith.constant 0 : index
    %264 = vector.load %arg2[%c0_275, %c1_276, %c0_277, %c0_278] : memref<1x18x18x16xf32, #tpu.memory_space<vmem>>, vector<1x16x16x16xf32>
    %265 = vector.shape_cast %264 : vector<1x16x16x16xf32> to vector<16x16x16xf32>
    %266 = arith.maximumf %263, %265 : vector<16x16x16xf32>
    %c0_279 = arith.constant 0 : index
    %c1_280 = arith.constant 1 : index
    %c1_281 = arith.constant 1 : index
    %c0_282 = arith.constant 0 : index
    %267 = vector.load %arg2[%c0_279, %c1_280, %c1_281, %c0_282] : memref<1x18x18x16xf32, #tpu.memory_space<vmem>>, vector<1x16x16x16xf32>
    %268 = vector.shape_cast %267 : vector<1x16x16x16xf32> to vector<16x16x16xf32>
    %269 = arith.maximumf %266, %268 : vector<16x16x16xf32>
    %c0_283 = arith.constant 0 : index
    %c1_284 = arith.constant 1 : index
    %c2_285 = arith.constant 2 : index
    %c0_286 = arith.constant 0 : index
    %270 = vector.load %arg2[%c0_283, %c1_284, %c2_285, %c0_286] : memref<1x18x18x16xf32, #tpu.memory_space<vmem>>, vector<1x16x16x16xf32>
    %271 = vector.shape_cast %270 : vector<1x16x16x16xf32> to vector<16x16x16xf32>
    %272 = arith.maximumf %269, %271 : vector<16x16x16xf32>
    %c0_287 = arith.constant 0 : index
    %c2_288 = arith.constant 2 : index
    %c0_289 = arith.constant 0 : index
    %c0_290 = arith.constant 0 : index
    %273 = vector.load %arg2[%c0_287, %c2_288, %c0_289, %c0_290] : memref<1x18x18x16xf32, #tpu.memory_space<vmem>>, vector<1x16x16x16xf32>
    %274 = vector.shape_cast %273 : vector<1x16x16x16xf32> to vector<16x16x16xf32>
    %275 = arith.maximumf %272, %274 : vector<16x16x16xf32>
    %c0_291 = arith.constant 0 : index
    %c2_292 = arith.constant 2 : index
    %c1_293 = arith.constant 1 : index
    %c0_294 = arith.constant 0 : index
    %276 = vector.load %arg2[%c0_291, %c2_292, %c1_293, %c0_294] : memref<1x18x18x16xf32, #tpu.memory_space<vmem>>, vector<1x16x16x16xf32>
    %277 = vector.shape_cast %276 : vector<1x16x16x16xf32> to vector<16x16x16xf32>
    %278 = arith.maximumf %275, %277 : vector<16x16x16xf32>
    %c0_295 = arith.constant 0 : index
    %c2_296 = arith.constant 2 : index
    %c2_297 = arith.constant 2 : index
    %c0_298 = arith.constant 0 : index
    %279 = vector.load %arg2[%c0_295, %c2_296, %c2_297, %c0_298] : memref<1x18x18x16xf32, #tpu.memory_space<vmem>>, vector<1x16x16x16xf32>
    %280 = vector.shape_cast %279 : vector<1x16x16x16xf32> to vector<16x16x16xf32>
    %281 = arith.maximumf %278, %280 : vector<16x16x16xf32>
    %282 = vector.shape_cast %281 : vector<16x16x16xf32> to vector<256x16xf32>
    %c0_299 = arith.constant 0 : index
    %c0_300 = arith.constant 0 : index
    %283 = vector.load %arg13[%c0_299, %c0_300] : memref<16x16xf32, #tpu.memory_space<vmem>>, vector<16x16xf32>
    %cst_301 = arith.constant dense<0.000000e+00> : vector<256x16xf32>
    %284 = tpu.matmul %282, %283, %cst_301 {dimension_numbers = #tpu.dot_dimension_numbers<[1], [0], [0], [1], [0, 0, 1, 1], [], []>} : vector<256x16xf32>, vector<16x16xf32>, vector<256x16xf32> -> vector<256x16xf32>
    %c0_302 = arith.constant 0 : index
    %c0_303 = arith.constant 0 : index
    %285 = vector.load %arg14[%c0_302, %c0_303] : memref<1x16xf32, #tpu.memory_space<vmem>>, vector<1x16xf32>
    %286 = vector.broadcast %285 : vector<1x16xf32> to vector<256x16xf32>
    %287 = arith.addf %284, %286 : vector<256x16xf32>
    %cst_304 = arith.constant 0.000000e+00 : f32
    %288 = vector.broadcast %cst_304 : f32 to vector<256x16xf32>
    %289 = arith.maximumf %287, %288 : vector<256x16xf32>
    %c0_305 = arith.constant 0 : index
    %c0_306 = arith.constant 0 : index
    %c64 = arith.constant 64 : index
    %290 = vector.load %arg15[%c0_305, %c0_306, %c64] : memref<1x256x80xf32, #tpu.memory_space<vmem>>, vector<1x256x16xf32>
    %291 = vector.shape_cast %290 : vector<1x256x16xf32> to vector<256x16xf32>
    %292 = vector.shape_cast %289 : vector<256x16xf32> to vector<1x256x16xf32>
    tpu.vector_store %arg15[%c0_305, %c0_306, %c64], %292 {strides = array<i32>} : memref<1x256x80xf32, #tpu.memory_space<vmem>>, vector<1x256x16xf32>,
    return
  }
  func.func @transform_0(%arg0: i32) -> (i32, i32, i32) {
    %c0_i32 = arith.constant 0 : i32
    %c0_i32_0 = arith.constant 0 : i32
    %c0_i32_1 = arith.constant 0 : i32
    return %arg0, %c0_i32, %c0_i32_0 : i32, i32, i32
  }
  func.func @transform_1(%arg0: i32) -> (i32, i32, i32, i32) {
    %c0_i32 = arith.constant 0 : i32
    %c0_i32_0 = arith.constant 0 : i32
    %c0_i32_1 = arith.constant 0 : i32
    %c0_i32_2 = arith.constant 0 : i32
    return %arg0, %c0_i32, %c0_i32_0, %c0_i32_1 : i32, i32, i32, i32
  }
  func.func @transform_2(%arg0: i32) -> (i32, i32) {
    %c0_i32 = arith.constant 0 : i32
    %c0_i32_0 = arith.constant 0 : i32
    %c0_i32_1 = arith.constant 0 : i32
    return %c0_i32, %c0_i32_0 : i32, i32
  }
  func.func @transform_3(%arg0: i32) -> (i32, i32) {
    %c0_i32 = arith.constant 0 : i32
    %c0_i32_0 = arith.constant 0 : i32
    %c0_i32_1 = arith.constant 0 : i32
    return %c0_i32, %c0_i32_0 : i32, i32
  }
  func.func @transform_4(%arg0: i32) -> (i32, i32) {
    %c0_i32 = arith.constant 0 : i32
    %c0_i32_0 = arith.constant 0 : i32
    %c0_i32_1 = arith.constant 0 : i32
    return %c0_i32, %c0_i32_0 : i32, i32
  }
  func.func @transform_5(%arg0: i32) -> (i32, i32) {
    %c0_i32 = arith.constant 0 : i32
    %c0_i32_0 = arith.constant 0 : i32
    %c0_i32_1 = arith.constant 0 : i32
    return %c0_i32, %c0_i32_0 : i32, i32
  }
  func.func @transform_6(%arg0: i32) -> (i32, i32, i32) {
    %c0_i32 = arith.constant 0 : i32
    %c0_i32_0 = arith.constant 0 : i32
    %c0_i32_1 = arith.constant 0 : i32
    %c0_i32_2 = arith.constant 0 : i32
    return %c0_i32, %c0_i32_0, %c0_i32_1 : i32, i32, i32
  }
  func.func @transform_7(%arg0: i32) -> (i32, i32) {
    %c0_i32 = arith.constant 0 : i32
    %c0_i32_0 = arith.constant 0 : i32
    %c0_i32_1 = arith.constant 0 : i32
    return %c0_i32, %c0_i32_0 : i32, i32
  }
  func.func @transform_8(%arg0: i32) -> (i32, i32) {
    %c0_i32 = arith.constant 0 : i32
    %c0_i32_0 = arith.constant 0 : i32
    %c0_i32_1 = arith.constant 0 : i32
    return %c0_i32, %c0_i32_0 : i32, i32
  }
  func.func @transform_9(%arg0: i32) -> (i32, i32) {
    %c0_i32 = arith.constant 0 : i32
    %c0_i32_0 = arith.constant 0 : i32
    %c0_i32_1 = arith.constant 0 : i32
    return %c0_i32, %c0_i32_0 : i32, i32
  }
  func.func @transform_10(%arg0: i32) -> (i32, i32, i32) {
    %c0_i32 = arith.constant 0 : i32
    %c0_i32_0 = arith.constant 0 : i32
    %c0_i32_1 = arith.constant 0 : i32
    %c0_i32_2 = arith.constant 0 : i32
    return %c0_i32, %c0_i32_0, %c0_i32_1 : i32, i32, i32
  }
  func.func @transform_11(%arg0: i32) -> (i32, i32) {
    %c0_i32 = arith.constant 0 : i32
    %c0_i32_0 = arith.constant 0 : i32
    %c0_i32_1 = arith.constant 0 : i32
    return %c0_i32, %c0_i32_0 : i32, i32
  }
  func.func @transform_12(%arg0: i32) -> (i32, i32) {
    %c0_i32 = arith.constant 0 : i32
    %c0_i32_0 = arith.constant 0 : i32
    %c0_i32_1 = arith.constant 0 : i32
    return %c0_i32, %c0_i32_0 : i32, i32
  }
  func.func @transform_13(%arg0: i32) -> (i32, i32) {
    %c0_i32 = arith.constant 0 : i32
    %c0_i32_0 = arith.constant 0 : i32
    %c0_i32_1 = arith.constant 0 : i32
    return %c0_i32, %c0_i32_0 : i32, i32
  }
  func.func @transform_14(%arg0: i32) -> (i32, i32, i32) {
    %c0_i32 = arith.constant 0 : i32
    %c0_i32_0 = arith.constant 0 : i32
    %c0_i32_1 = arith.constant 0 : i32
    return %arg0, %c0_i32, %c0_i32_0 : i32, i32, i32
  }
}

</mosaic_0001>

<bundles_post_ra>
// kernel: inception_forward.1
= control target key start
LH: loop header
LB: loop body
LE: loop exit
PB: predicated region body
PF: predicated region fallthrough
CT: control target
= control target key end

     0   :  { %s19429_s0 = inlined_call_operand.vmem [shape: f32[2,256,16], index: 0, kind: input, shape index: {}]   ;;  %s19430_s1 = inlined_call_operand.vmem [shape: f32[2,18,18,16], index: 1, kind: input, shape index: {}]   ;;  %s19431_s2 = inlined_call_operand.vmem [shape: f32[16,16], index: 2, kind: input, shape index: {}]   ;;  %s19432_s3 = inlined_call_operand.vmem [shape: f32[1,16], index: 3, kind: input, shape index: {}]   ;;  %s19433_s4 = inlined_call_operand.vmem [shape: f32[16,16], index: 4, kind: input, shape index: {}]   ;;  %s19434_s5 = inlined_call_operand.vmem [shape: f32[1,16], index: 5, kind: input, shape index: {}]   ;;  %s19435_s6 = inlined_call_operand.vmem [shape: f32[9,16,32], index: 6, kind: input, shape index: {}]   ;;  %s19436_s7 = inlined_call_operand.vmem [shape: f32[1,32], index: 7, kind: input, shape index: {}]   ;;  %s19437_s8 = inlined_call_operand.vmem [shape: f32[16,8], index: 8, kind: input, shape index: {}]   ;;  %s19438_s9 = inlined_call_operand.vmem [shape: f32[1,8], index: 9, kind: input, shape index: {}]   ;;  %s19439_s10 = inlined_call_operand.vmem [shape: f32[25,8,16], index: 10, kind: input, shape index: {}]   ;;  %s19440_s11 = inlined_call_operand.vmem [shape: f32[1,16], index: 11, kind: input, shape index: {}]   ;;  %s19441_s12 = inlined_call_operand.vmem [shape: f32[16,16], index: 12, kind: input, shape index: {}]   ;;  %s19442_s13 = inlined_call_operand.vmem [shape: f32[1,16], index: 13, kind: input, shape index: {}]   ;;  %s19443_s14 = inlined_call_operand.hbm [shape: f32[2,256,80], index: 14, kind: output, shape index: {}]  }
   0x1   :  { %19645 = sst [smem:[#allocation71_spill]] %s19429_s0 }
   0x2   :  { %19646 = sst [smem:[#allocation72_spill]] %s19430_s1 }
   0x3   :  { %19 = vsyncpa [#allocation5], 0 }
   0x4   :  { %21 = vsyncpa [#allocation5 + $0x1], 0  ;;  %s13723_s29 = smov 0   ;;  %s13725_s30 = smov 0  }
   0x5   :  { %s13727_s15 = smov 0   ;;  %s13729_s16 = smov 0  }
   0x6 LB: > { %19647 = sst [smem:[#allocation7_spill]] %s13636_s15  ;;  %s13744_s17 = sadd.s32 4294967295, %s13640_s16   ;;  %s13640_s16 = sphi %s13729_s16, %s20144_s16   ;;  %s13636_s15 = sphi %s13727_s15, %s20141_s15   ;;  %s13632_s30 = sphi %s13725_s30, %s20143_s30   ;;  %s13628_s29 = sphi %s13723_s29, %s20142_s29  }
   0x7   : > { %s12018_s18 = sadd.s32 4294967294, %s13640_s16   ;;  %s13748_s19 = sadd.s32 1, %s13640_s16  }
   0x8   : > { %s338_s20 = sadd.s32 1, %s13636_s15  ;;  %s335_s21 = ssub.s32 %s13640_s16, %s13748_s19 }
   0x9   : > { %p348_p0 = scmp.ne.s32.totalorder %s13636_s15, %s13632_s30  ;;  %p336_p1 = scmp.eq.s32.totalorder %s335_s21, 0 }
   0xa   : > { %p349_p2 = scmp.eq.s32.totalorder %s13744_s17, 1  ;;  %p354_p3 = scmp.ne.s32.totalorder %s13632_s30, %s13628_s29 }
   0xb   : > { %p355_p4 = scmp.eq.s32.totalorder %s12018_s18, 1  ;;  %p12021_p7 = scmp.ge.s32.totalorder %s13640_s16, 1 }
   0xc   : > { %s13759_s22 = scalar_select %p336_p1, %s13636_s15, %s338_s20  }
   0xd   : > { %p13761_p5 = por %p349_p2, %p348_p0  ;;  %p13765_p6 = por %p355_p4, %p354_p3 }
   0xe   : > { %19648 = sst [smem:[#allocation8_spill]] %s13759_s22  ;;  %p425_p8 = scmp.lt.s32.totalorder %s13640_s16, 3 }
  0x10   : > { %p426_p9 = pnand %p12021_p7, %p425_p8 }
  0x12   : > { %429 = sbr.rel (%p426_p9) target bundleno = 2833 (0xb11), region = 76 }
  0x17   : > { %v519_v0 = vld [vmem:[%s19431_s2 + $0x8] sm:$0xff]  ;;  %v518_v2 = vld [vmem:[%s19431_s2] sm:$0xff]  ;;  %p476_p10 = scmp.lt.s32.totalorder %s13744_s17, 1  ;;  %vm524_vm0 = vcmask 130048   ;;  %s19651_s0 = sld [smem:[#allocation71_spill]]  ;;  %v12091_v24 = vld [vmem:[%s19435_s6 + $0x18] sm:$0xff] }
  0x18   : > { %v799_v1 = vld [vmem:[%s19433_s4 + $0x8] sm:$0xff]  ;;  %13481 = vmatpush.msra.mxu2 %v519_v0  ;;  %v798_v3 = vld [vmem:[%s19433_s4] sm:$0xff]  ;;  %635 = vmatpush.msra.mxu0 %v519_v0  ;;  %v19445_v32 = vmov 0.0   ;;  %v12090_v35 = vld [vmem:[%s19435_s6 + $0x10] sm:$0xff]  ;;  %vm951_vm1 = vcmask 123904   ;;  %vm3837_vm2 = vcmask 64512  }
  0x19   : > { %818 = vmatpush.msra.mxu1 %v799_v1  ;;  %13483 = vmatpush.msra.mxu3 %v799_v1  ;;  %s13785_s25 = scalar_select %p476_p10, %s13744_s17, 1  ;;  %v1070_v4 = vld [vmem:[%s19435_s6 + $0x8] sm:$0xff]  ;;  %v1069_v15 = vld [vmem:[%s19435_s6] sm:$0xff]  ;;  %953 = vst.msk [vmem:[#allocation2 + $0x18] sm:$0xff] %vm524_vm0, %v19445_v32  ;;  %v12259_v37 = vld [vmem:[%s19435_s6 + $0x58] sm:$0xff]  ;;  %vm3840_vm3 = vcmask 60416  }
  0x1a   : > { %13482 = vmatpush.msra.mxu2 %v518_v2  ;;  %636 = vmatpush.msra.mxu0 %v518_v2  ;;  %v12157_v29 = vld [vmem:[%s19435_s6 + $0x28] sm:$0xff]  ;;  %954 = vst.msk [vmem:[#allocation2 + $0x20] sm:$0xff] %vm524_vm0, %v19445_v32  ;;  %v12156_v36 = vld [vmem:[%s19435_s6 + $0x20] sm:$0xff]  ;;  %v12191_v38 = vld [vmem:[%s19435_s6 + $0x38] sm:$0xff]  ;;  %s13643_s18 = smov 16   ;;  %vm3653_vm4 = vcmask 392320  }
  0x1b   : > { %819 = vmatpush.msra.mxu1 %v798_v3  ;;  %13484 = vmatpush.msra.mxu3 %v798_v3  ;;  %s13479_s27 = sshll.u32 %s13785_s25, 8  ;;  %949 = vst.msk [vmem:[#allocation2] sm:$0xff] %vm524_vm0, %v19445_v32  ;;  %v12190_v41 = vld [vmem:[%s19435_s6 + $0x30] sm:$0xff]  ;;  %v13985_v46 = vld [vmem:[%s19434_s5] ss:$0 sm:$0xff]  ;;  %s20120_s1 = sld [smem:[#allocation72_spill]] }
  0x1c   : > { %1216 = vmatpush.msrb.mxu2 %v12091_v24  ;;  %1669 = vmatpush.msrb.mxu0 %v12157_v29  ;;  %950 = vst.msk [vmem:[#allocation2 + $0x8] sm:$0xff] %vm524_vm0, %v19445_v32  ;;  %v13997_v48 = vld [vmem:[%s19432_s3] ss:$0 sm:$0xff]  ;;  %vm10941_vm5 = vcmask 523648   ;;  %vm11895_vm6 = vcmask 654848  }
  0x1d   : > { %s13794_s22 = scalar_lea.vmem %s19651_s0, %s13479_s27  ;;  %1425 = vmatpush.msrb.mxu3 %v1070_v4  ;;  %956 = vst.msk [vmem:[#allocation2 + $0x30] sm:$0xff] %vm524_vm0, %v19445_v32  ;;  %1945 = vmatpush.msrb.mxu1 %v12191_v38  ;;  %s473_s27 = sand.u32 1, %s13632_s30  }
  0x1e   : > { %v502_v5 = vld [vmem:[%s13794_s22 + $0x80] sm:$0xff]  ;;  %v503_v7 = vld [vmem:[%s13794_s22 + $0x88] sm:$0xff]  ;;  %v504_v9 = vld [vmem:[%s13794_s22 + $0x90] sm:$0xff]  ;;  %957 = vst.msk [vmem:[#allocation2 + $0x38] sm:$0xff] %vm524_vm0, %v19445_v32  ;;  %1217 = vmatpush.msrb.mxu2 %v12090_v35  ;;  %1670 = vmatpush.msrb.mxu0 %v12156_v36  ;;  %s12022_s15 = sshll.u32 %s473_s27, 8 }
  0x1f   : > { %v486_v6 = vld [vmem:[%s13794_s22] sm:$0xff]  ;;  %12042 = vmatmul.msk.f32.vlgmr.msra.gmra.mxu2 %vm524_vm0, %v502_v5  ;;  %12074 = vmatmul.msk.f32.vlgmr.msra.gmra.mxu3 %vm524_vm0, %v502_v5  ;;  %v487_v8 = vld [vmem:[%s13794_s22 + $0x8] sm:$0xff]  ;;  %v488_v10 = vld [vmem:[%s13794_s22 + $0x10] sm:$0xff]  ;;  %959 = vst.msk [vmem:[#allocation2 + $0x48] sm:$0xff] %vm524_vm0, %v19445_v32  ;;  %s14017_s20 = scalar_lea.vmem [#allocation4], %s12022_s15  ;;  %s13644_s15 = smov 64  }
  0x20   : > { %12058 = vmatmul.msk.f32.vlgmr.msra.gmra.mxu1 %vm524_vm0, %v486_v6  ;;  %12026 = vmatmul.msk.f32.vlgmr.msra.gmra.mxu0 %vm524_vm0, %v486_v6  ;;  %v505_v11 = vld [vmem:[%s13794_s22 + $0x98] sm:$0xff]  ;;  %v506_v13 = vld [vmem:[%s13794_s22 + $0xa0] sm:$0xff]  ;;  %v507_v16 = vld [vmem:[%s13794_s22 + $0xa8] sm:$0xff]  ;;  %960 = vst.msk [vmem:[#allocation2 + $0x50] sm:$0xff] %vm524_vm0, %v19445_v32 }
  0x21   : > { %v489_v12 = vld [vmem:[%s13794_s22 + $0x18] sm:$0xff]  ;;  %v490_v14 = vld [vmem:[%s13794_s22 + $0x20] sm:$0xff]  ;;  %1426 = vmatpush.msrb.mxu3 %v1069_v15  ;;  %v491_v17 = vld [vmem:[%s13794_s22 + $0x28] sm:$0xff]  ;;  %962 = vst.msk [vmem:[#allocation2 + $0x60] sm:$0xff] %vm524_vm0, %v19445_v32  ;;  %1946 = vmatpush.msrb.mxu1 %v12190_v41 }
  0x22   : > { %v508_v18 = vld [vmem:[%s13794_s22 + $0xb0] sm:$0xff]  ;;  %v509_v20 = vld [vmem:[%s13794_s22 + $0xb8] sm:$0xff]  ;;  %v510_v22 = vld [vmem:[%s13794_s22 + $0xc0] sm:$0xff]  ;;  %963 = vst.msk [vmem:[#allocation2 + $0x68] sm:$0xff] %vm524_vm0, %v19445_v32 }
  0x23   : > { %v492_v19 = vld [vmem:[%s13794_s22 + $0x30] sm:$0xff]  ;;  %v493_v21 = vld [vmem:[%s13794_s22 + $0x38] sm:$0xff]  ;;  %v494_v23 = vld [vmem:[%s13794_s22 + $0x40] sm:$0xff]  ;;  %965 = vst.msk [vmem:[#allocation2 + $0x78] sm:$0xff] %vm524_vm0, %v19445_v32  ;;  %2497 = vmatpush.msra.mxu3 %v12259_v37 }
  0x24   : > { %v511_v25 = vld [vmem:[%s13794_s22 + $0xc8] sm:$0xff]  ;;  %v512_v27 = vld [vmem:[%s13794_s22 + $0xd0] sm:$0xff]  ;;  %v513_v30 = vld [vmem:[%s13794_s22 + $0xd8] sm:$0xff]  ;;  %966 = vst.msk [vmem:[#allocation2 + $0x80] sm:$0xff] %vm524_vm0, %v19445_v32 }
  0x25   : > { %v495_v26 = vld [vmem:[%s13794_s22 + $0x48] sm:$0xff]  ;;  %v496_v28 = vld [vmem:[%s13794_s22 + $0x50] sm:$0xff]  ;;  %v497_v31 = vld [vmem:[%s13794_s22 + $0x58] sm:$0xff]  ;;  %968 = vst.msk [vmem:[#allocation2 + $0x90] sm:$0xff] %vm524_vm0, %v19445_v32 }
  0x26   : > { %v514_v33 = vld [vmem:[%s13794_s22 + $0xe0] sm:$0xff]  ;;  %v515_v39 = vld [vmem:[%s13794_s22 + $0xe8] sm:$0xff]  ;;  %969 = vst.msk [vmem:[#allocation2 + $0x98] sm:$0xff] %vm524_vm0, %v19445_v32  ;;  %v516_v42 = vld [vmem:[%s13794_s22 + $0xf0] sm:$0xff] }
  0x27   : > { %12043 = vmatmul.msk.f32.gmra.mxu2 %vm524_vm0, %v503_v7  ;;  %12075 = vmatmul.msk.f32.gmra.mxu3 %vm524_vm0, %v503_v7  ;;  %v498_v34 = vld [vmem:[%s13794_s22 + $0x60] sm:$0xff]  ;;  %v499_v40 = vld [vmem:[%s13794_s22 + $0x68] sm:$0xff]  ;;  %971 = vst.msk [vmem:[#allocation2 + $0xa8] sm:$0xff] %vm524_vm0, %v19445_v32  ;;  %v500_v43 = vld [vmem:[%s13794_s22 + $0x70] sm:$0xff] }
  0x28   : > { %12059 = vmatmul.msk.f32.gmra.mxu1 %vm524_vm0, %v487_v8  ;;  %12027 = vmatmul.msk.f32.gmra.mxu0 %vm524_vm0, %v487_v8  ;;  %972 = vst.msk [vmem:[#allocation2 + $0xb0] sm:$0xff] %vm524_vm0, %v19445_v32  ;;  %v517_v44 = vld [vmem:[%s13794_s22 + $0xf8] sm:$0xff]  ;;  %v1071_v49 = vld [vmem:[#allocation2 + $0x1] sm:$0xff] }
  0x29   : > { %974 = vst.msk [vmem:[#allocation2 + $0xc0] sm:$0xff] %vm524_vm0, %v19445_v32  ;;  %v501_v45 = vld [vmem:[%s13794_s22 + $0x78] sm:$0xff]  ;;  %v1037_v52 = vld [vmem:[#allocation2] sm:$0xff]  ;;  %v1038_v2 = vld [vmem:[#allocation2 + $0x8] sm:$0xff] }
  0x2a   : > { %975 = vst.msk [vmem:[#allocation2 + $0xc8] sm:$0xff] %vm524_vm0, %v19445_v32  ;;  %v1524_v53 = vld [vmem:[#allocation2 + $0x2] sm:$0xff] }
  0x2b   : > { %977 = vst.msk [vmem:[#allocation2 + $0xd8] sm:$0xff] %vm524_vm0, %v19445_v32 }
  0x2c   : > { %978 = vst.msk [vmem:[#allocation2 + $0xe0] sm:$0xff] %vm524_vm0, %v19445_v32 }
  0x2d   : > { %980 = vst.msk [vmem:[#allocation2 + $0xf0] sm:$0xff] %vm524_vm0, %v19445_v32 }
  0x2e   : > { %981 = vst.msk [vmem:[#allocation2 + $0xf8] sm:$0xff] %vm524_vm0, %v19445_v32 }
  0x2f   : > { %12044 = vmatmul.msk.f32.gmra.mxu2 %vm524_vm0, %v504_v9  ;;  %12076 = vmatmul.msk.f32.gmra.mxu3 %vm524_vm0, %v504_v9  ;;  %983 = vst.msk [vmem:[#allocation2 + $0x108] sm:$0xff] %vm524_vm0, %v19445_v32 }
  0x30   : > { %12060 = vmatmul.msk.f32.gmra.mxu1 %vm524_vm0, %v488_v10  ;;  %12028 = vmatmul.msk.f32.gmra.mxu0 %vm524_vm0, %v488_v10  ;;  %984 = vst.msk [vmem:[#allocation2 + $0x110] sm:$0xff] %vm524_vm0, %v19445_v32 }
  0x31   : > { %986 = vst.msk [vmem:[#allocation2 + $0x120] sm:$0xff] %vm524_vm0, %v19445_v32 }
  0x32   : > { %987 = vst.msk [vmem:[#allocation2 + $0x128] sm:$0xff] %vm524_vm0, %v19445_v32 }
  0x33   : > { %989 = vst.msk [vmem:[#allocation2 + $0x138] sm:$0xff] %vm524_vm0, %v19445_v32 }
  0x34   : > { %990 = vst.msk [vmem:[#allocation2 + $0x140] sm:$0xff] %vm524_vm0, %v19445_v32 }
  0x35   : > { %992 = vst.msk [vmem:[#allocation2 + $0x150] sm:$0xff] %vm524_vm0, %v19445_v32 }
  0x36   : > { %993 = vst.msk [vmem:[#allocation2 + $0x158] sm:$0xff] %vm524_vm0, %v19445_v32 }
  0x37   : > { %12045 = vmatmul.msk.f32.gmra.mxu2 %vm524_vm0, %v505_v11  ;;  %12077 = vmatmul.msk.f32.gmra.mxu3 %vm524_vm0, %v505_v11  ;;  %995 = vst.msk [vmem:[#allocation2 + $0x168] sm:$0xff] %vm524_vm0, %v19445_v32 }
  0x38   : > { %12061 = vmatmul.msk.f32.gmra.mxu1 %vm524_vm0, %v489_v12  ;;  %12029 = vmatmul.msk.f32.gmra.mxu0 %vm524_vm0, %v489_v12  ;;  %996 = vst.msk [vmem:[#allocation2 + $0x170] sm:$0xff] %vm524_vm0, %v19445_v32 }
  0x39   : > { %998 = vst.msk [vmem:[#allocation2 + $0x180] sm:$0xff] %vm524_vm0, %v19445_v32 }
  0x3a   : > { %999 = vst.msk [vmem:[#allocation2 + $0x188] sm:$0xff] %vm524_vm0, %v19445_v32 }
  0x3b   : > { %1001 = vst.msk [vmem:[#allocation2 + $0x198] sm:$0xff] %vm524_vm0, %v19445_v32 }
  0x3c   : > { %1002 = vst.msk [vmem:[#allocation2 + $0x1a0] sm:$0xff] %vm524_vm0, %v19445_v32 }
  0x3d   : > { %955 = vst.msk [vmem:[#allocation2 + $0x28] sm:$0x3] %vm951_vm1, %v19445_v32 }
  0x3e   : > { %952 = vst.msk [vmem:[#allocation2 + $0x10] sm:$0x3] %vm951_vm1, %v19445_v32 }
  0x3f   : > { %12046 = vmatmul.msk.f32.gmra.mxu2 %vm524_vm0, %v506_v13  ;;  %12078 = vmatmul.msk.f32.gmra.mxu3 %vm524_vm0, %v506_v13  ;;  %958 = vst.msk [vmem:[#allocation2 + $0x40] sm:$0x3] %vm951_vm1, %v19445_v32 }
  0x40   : > { %12062 = vmatmul.msk.f32.gmra.mxu1 %vm524_vm0, %v490_v14  ;;  %12030 = vmatmul.msk.f32.gmra.mxu0 %vm524_vm0, %v490_v14  ;;  %961 = vst.msk [vmem:[#allocation2 + $0x58] sm:$0x3] %vm951_vm1, %v19445_v32 }
  0x41   : > { %964 = vst.msk [vmem:[#allocation2 + $0x70] sm:$0x3] %vm951_vm1, %v19445_v32 }
  0x42   : > { %967 = vst.msk [vmem:[#allocation2 + $0x88] sm:$0x3] %vm951_vm1, %v19445_v32 }
  0x43   : > { %970 = vst.msk [vmem:[#allocation2 + $0xa0] sm:$0x3] %vm951_vm1, %v19445_v32 }
  0x44   : > { %973 = vst.msk [vmem:[#allocation2 + $0xb8] sm:$0x3] %vm951_vm1, %v19445_v32 }
  0x45   : > { %v1072_v62 = vld [vmem:[#allocation2 + $0x9] sm:$0xff]  ;;  %976 = vst.msk [vmem:[#allocation2 + $0xd0] sm:$0x3] %vm951_vm1, %v19445_v32 }
  0x46   : > { %v1525_v3 = vld [vmem:[#allocation2 + $0xa] sm:$0xff]  ;;  %979 = vst.msk [vmem:[#allocation2 + $0xe8] sm:$0x3] %vm951_vm1, %v19445_v32 }
  0x47   : > { %12047 = vmatmul.msk.f32.gmra.mxu2 %vm524_vm0, %v507_v16  ;;  %12079 = vmatmul.msk.f32.gmra.mxu3 %vm524_vm0, %v507_v16  ;;  %982 = vst.msk [vmem:[#allocation2 + $0x100] sm:$0x3] %vm951_vm1, %v19445_v32 }
  0x48   : > { %12063 = vmatmul.msk.f32.gmra.mxu1 %vm524_vm0, %v491_v17  ;;  %12031 = vmatmul.msk.f32.gmra.mxu0 %vm524_vm0, %v491_v17  ;;  %985 = vst.msk [vmem:[#allocation2 + $0x118] sm:$0x3] %vm951_vm1, %v19445_v32 }
  0x49   : > { %988 = vst.msk [vmem:[#allocation2 + $0x130] sm:$0x3] %vm951_vm1, %v19445_v32 }
  0x4a   : > { %991 = vst.msk [vmem:[#allocation2 + $0x148] sm:$0x3] %vm951_vm1, %v19445_v32 }
  0x4b   : > { %994 = vst.msk [vmem:[#allocation2 + $0x160] sm:$0x3] %vm951_vm1, %v19445_v32 }
  0x4c   : > { %997 = vst.msk [vmem:[#allocation2 + $0x178] sm:$0x3] %vm951_vm1, %v19445_v32 }
  0x4d   : > { %1000 = vst.msk [vmem:[#allocation2 + $0x190] sm:$0x3] %vm951_vm1, %v19445_v32 }
  0x4e   : > { %1003 = vst.msk [vmem:[#allocation2 + $0x1a8] sm:$0x3] %vm951_vm1, %v19445_v32 }
  0x4f   : > { %12048 = vmatmul.msk.f32.gmra.mxu2 %vm524_vm0, %v508_v18  ;;  %12080 = vmatmul.msk.f32.gmra.mxu3 %vm524_vm0, %v508_v18 }
  0x50   : > { %12064 = vmatmul.msk.f32.gmra.mxu1 %vm524_vm0, %v492_v19  ;;  %12032 = vmatmul.msk.f32.gmra.mxu0 %vm524_vm0, %v492_v19 }
  0x57   : > { %12049 = vmatmul.msk.f32.gmra.mxu2 %vm524_vm0, %v509_v20  ;;  %12081 = vmatmul.msk.f32.gmra.mxu3 %vm524_vm0, %v509_v20 }
  0x58   : > { %12065 = vmatmul.msk.f32.gmra.mxu1 %vm524_vm0, %v493_v21  ;;  %12033 = vmatmul.msk.f32.gmra.mxu0 %vm524_vm0, %v493_v21 }
  0x5f   : > { %12050 = vmatmul.msk.f32.gmra.mxu2 %vm524_vm0, %v510_v22  ;;  %12082 = vmatmul.msk.f32.gmra.mxu3 %vm524_vm0, %v510_v22 }
  0x60   : > { %12066 = vmatmul.msk.f32.gmra.mxu1 %vm524_vm0, %v494_v23  ;;  %12034 = vmatmul.msk.f32.gmra.mxu0 %vm524_vm0, %v494_v23 }
  0x67   : > { %12051 = vmatmul.msk.f32.gmra.mxu2 %vm524_vm0, %v511_v25  ;;  %12083 = vmatmul.msk.f32.gmra.mxu3 %vm524_vm0, %v511_v25 }
  0x68   : > { %12067 = vmatmul.msk.f32.gmra.mxu1 %vm524_vm0, %v495_v26  ;;  %12035 = vmatmul.msk.f32.gmra.mxu0 %vm524_vm0, %v495_v26 }
  0x6f   : > { %12052 = vmatmul.msk.f32.gmra.mxu2 %vm524_vm0, %v512_v27  ;;  %12084 = vmatmul.msk.f32.gmra.mxu3 %vm524_vm0, %v512_v27 }
  0x70   : > { %12068 = vmatmul.msk.f32.gmra.mxu1 %vm524_vm0, %v496_v28  ;;  %12036 = vmatmul.msk.f32.gmra.mxu0 %vm524_vm0, %v496_v28 }
  0x77   : > { %12053 = vmatmul.msk.f32.gmra.mxu2 %vm524_vm0, %v513_v30  ;;  %12085 = vmatmul.msk.f32.gmra.mxu3 %vm524_vm0, %v513_v30 }
  0x78   : > { %12069 = vmatmul.msk.f32.gmra.mxu1 %vm524_vm0, %v497_v31  ;;  %12037 = vmatmul.msk.f32.gmra.mxu0 %vm524_vm0, %v497_v31 }
  0x7f   : > { %12054 = vmatmul.msk.f32.gmra.mxu2 %vm524_vm0, %v514_v33  ;;  %12086 = vmatmul.msk.f32.gmra.mxu3 %vm524_vm0, %v514_v33 }
  0x80   : > { %12070 = vmatmul.msk.f32.gmra.mxu1 %vm524_vm0, %v498_v34  ;;  %12038 = vmatmul.msk.f32.gmra.mxu0 %vm524_vm0, %v498_v34 }
  0x87   : > { %12055 = vmatmul.msk.f32.gmra.mxu2 %vm524_vm0, %v515_v39  ;;  %12087 = vmatmul.msk.f32.gmra.mxu3 %vm524_vm0, %v515_v39 }
  0x88   : > { %12071 = vmatmul.msk.f32.gmra.mxu1 %vm524_vm0, %v499_v40  ;;  %12039 = vmatmul.msk.f32.gmra.mxu0 %vm524_vm0, %v499_v40 }
  0x8f   : > { %12056 = vmatmul.msk.f32.gmra.mxu2 %vm524_vm0, %v516_v42  ;;  %12088 = vmatmul.msk.f32.gmra.mxu3 %vm524_vm0, %v516_v42 }
  0x90   : > { %12072 = vmatmul.msk.f32.gmra.mxu1 %vm524_vm0, %v500_v43  ;;  %12040 = vmatmul.msk.f32.gmra.mxu0 %vm524_vm0, %v500_v43 }
  0x97   : > { %12057 = vmatmul.msk.f32.gmra.mxu2 %vm524_vm0, %v517_v44  ;;  %12089 = vmatmul.msk.f32.gmra.mxu3 %vm524_vm0, %v517_v44 }
  0x98   : > { %12073 = vmatmul.msk.f32.gmra.mxu1 %vm524_vm0, %v501_v45  ;;  %12041 = vmatmul.msk.f32.gmra.mxu0 %vm524_vm0, %v501_v45 }
  0x9d   : > { %v821_v47 = vpop.f32.mrf.mxu1  ;;  %v638_v51 = vpop.f32.mrf.mxu0 }
  0x9e   : > { %v822_v50 = vadd.f32 %v13985_v46, %v821_v47  ;;  %v639_v54 = vadd.f32 %v13997_v48, %v638_v51 }
  0x9f   : > { %12092 = vmatmul.msk.f32.vlgmr.msrb.gmra.mxu2 %vm524_vm0, %v1071_v49  ;;  %12124 = vmatmul.msk.f32.vlgmr.msrb.gmra.mxu3 %vm524_vm0, %v1037_v52 }
  0xa0   : > { %v917_v55 = vmax.f32 %v822_v50, 0.0  ;;  %v734_v56 = vmax.f32 %v639_v54, 0.0  ;;  %12158 = vmatmul.msk.f32.vlgmr.msrb.gmra.mxu0 %vm524_vm0, %v1524_v53 }
  0xa2   : > { %1005 = vst.msk [vmem:[#allocation2 + $0x19] sm:$0xff] %vm524_vm0, %v917_v55  ;;  %v686_v57 = vpop.f32.mrf.mxu2  ;;  %v869_v59 = vpop.f32.mrf.mxu3 }
  0xa3   : > { %766 = vst.msk [vmem:[%s14017_s20] sm:$0xff] %vm524_vm0, %v734_v56  ;;  %v687_v58 = vadd.f32 %v13997_v48, %v686_v57  ;;  %v870_v60 = vadd.f32 %v13985_v46, %v869_v59 }
  0xa5   : > { %v824_v61 = vpop.f32.mrf.mxu1  ;;  %v750_v63 = vmax.f32 %v687_v58, 0.0  ;;  %v641_v1 = vpop.f32.mrf.mxu0  ;;  %v933_v4 = vmax.f32 %v870_v60, 0.0 }
  0xa6   : > { %v825_v0 = vadd.f32 %v13985_v46, %v824_v61  ;;  %v642_v8 = vadd.f32 %v13997_v48, %v641_v1 }
  0xa7   : > { %782 = vst.msk [vmem:[%s14017_s20 + $0x80] sm:$0xff] %vm524_vm0, %v750_v63  ;;  %12093 = vmatmul.msk.f32.gmra.mxu2 %vm524_vm0, %v1072_v62  ;;  %12125 = vmatmul.msk.f32.gmra.mxu3 %vm524_vm0, %v1038_v2 }
  0xa8   : > { %v918_v5 = vmax.f32 %v825_v0, 0.0  ;;  %1021 = vst.msk [vmem:[#allocation2 + $0xd9] sm:$0xff] %vm524_vm0, %v933_v4  ;;  %12159 = vmatmul.msk.f32.gmra.mxu0 %vm524_vm0, %v1525_v3  ;;  %v735_v16 = vmax.f32 %v642_v8, 0.0 }
  0xa9   : > { %v1800_v6 = vld [vmem:[#allocation2 + $0x18] sm:$0xff] }
  0xaa   : > { %1006 = vst.msk [vmem:[#allocation2 + $0x21] sm:$0xff] %vm524_vm0, %v918_v5  ;;  %12192 = vmatmul.msk.f32.vlgmr.msrb.gmra.mxu1 %vm524_vm0, %v1800_v6  ;;  %v689_v7 = vpop.f32.mrf.mxu2  ;;  %v872_v9 = vpop.f32.mrf.mxu3  ;;  %v1073_v12 = vld [vmem:[#allocation2 + $0x19] sm:$0xff] }
  0xab   : > { %v690_v10 = vadd.f32 %v13997_v48, %v689_v7  ;;  %v873_v13 = vadd.f32 %v13985_v46, %v872_v9  ;;  %767 = vst.msk [vmem:[%s14017_s20 + $0x8] sm:$0xff] %vm524_vm0, %v735_v16 }
  0xad   : > { %v827_v11 = vpop.f32.mrf.mxu1  ;;  %v644_v14 = vpop.f32.mrf.mxu0  ;;  %v751_v18 = vmax.f32 %v690_v10, 0.0  ;;  %v934_v21 = vmax.f32 %v873_v13, 0.0 }
  0xae   : > { %v828_v15 = vadd.f32 %v13985_v46, %v827_v11  ;;  %v645_v17 = vadd.f32 %v13997_v48, %v644_v14 }
  0xaf   : > { %12094 = vmatmul.msk.f32.gmra.mxu2 %vm524_vm0, %v1073_v12  ;;  %12126 = vmatmul.msk.f32.gmra.mxu3 %vm524_vm0, %v1800_v6  ;;  %783 = vst.msk [vmem:[%s14017_s20 + $0x88] sm:$0xff] %vm524_vm0, %v751_v18 }
  0xb0   : > { %v919_v22 = vmax.f32 %v828_v15, 0.0  ;;  %v736_v24 = vmax.f32 %v645_v17, 0.0  ;;  %1022 = vst.msk [vmem:[#allocation2 + $0xe1] sm:$0xff] %vm524_vm0, %v934_v21 }
  0xb1   : > { %v1526_v19 = vld [vmem:[#allocation2 + $0x1a] sm:$0xff]  ;;  %v1527_v38 = vld [vmem:[#allocation2 + $0x22] sm:$0xff] }
  0xb2   : > { %v1801_v20 = vld [vmem:[#allocation2 + $0x20] sm:$0xff]  ;;  %12160 = vmatmul.msk.f32.gmra.mxu0 %vm524_vm0, %v1526_v19  ;;  %v692_v23 = vpop.f32.mrf.mxu2  ;;  %v875_v26 = vpop.f32.mrf.mxu3  ;;  %1007 = vst.msk [vmem:[#allocation2 + $0x31] sm:$0xff] %vm524_vm0, %v919_v22 }
  0xb3   : > { %12193 = vmatmul.msk.f32.gmra.mxu1 %vm524_vm0, %v1801_v20  ;;  %v693_v25 = vadd.f32 %v13997_v48, %v692_v23  ;;  %v876_v27 = vadd.f32 %v13985_v46, %v875_v26  ;;  %v1074_v29 = vld [vmem:[#allocation2 + $0x21] sm:$0xff]  ;;  %768 = vst.msk [vmem:[%s14017_s20 + $0x10] sm:$0xff] %vm524_vm0, %v736_v24 }
  0xb5   : > { %v830_v28 = vpop.f32.mrf.mxu1  ;;  %v752_v30 = vmax.f32 %v693_v25, 0.0  ;;  %v647_v33 = vpop.f32.mrf.mxu0  ;;  %v935_v34 = vmax.f32 %v876_v27, 0.0 }
  0xb6   : > { %v831_v31 = vadd.f32 %v13985_v46, %v830_v28  ;;  %v648_v35 = vadd.f32 %v13997_v48, %v647_v33 }
  0xb7   : > { %12095 = vmatmul.msk.f32.gmra.mxu2 %vm524_vm0, %v1074_v29  ;;  %784 = vst.msk [vmem:[%s14017_s20 + $0x90] sm:$0xff] %vm524_vm0, %v752_v30  ;;  %12127 = vmatmul.msk.f32.gmra.mxu3 %vm524_vm0, %v1801_v20 }
  0xb8   : > { %v920_v36 = vmax.f32 %v831_v31, 0.0  ;;  %v737_v37 = vmax.f32 %v648_v35, 0.0  ;;  %1023 = vst.msk [vmem:[#allocation2 + $0xf1] sm:$0xff] %vm524_vm0, %v935_v34 }
  0xb9   : > { %v1802_v44 = vld [vmem:[#allocation2 + $0x30] sm:$0xff] }
  0xba   : > { %12161 = vmatmul.msk.f32.gmra.mxu0 %vm524_vm0, %v1527_v38  ;;  %1008 = vst.msk [vmem:[#allocation2 + $0x39] sm:$0xff] %vm524_vm0, %v920_v36  ;;  %v695_v39 = vpop.f32.mrf.mxu2  ;;  %v878_v41 = vpop.f32.mrf.mxu3  ;;  %v1075_v50 = vld [vmem:[#allocation2 + $0x31] sm:$0xff] }
  0xbb   : > { %769 = vst.msk [vmem:[%s14017_s20 + $0x18] sm:$0xff] %vm524_vm0, %v737_v37  ;;  %v696_v40 = vadd.f32 %v13997_v48, %v695_v39  ;;  %v879_v42 = vadd.f32 %v13985_v46, %v878_v41  ;;  %12194 = vmatmul.msk.f32.gmra.mxu1 %vm524_vm0, %v1802_v44 }
  0xbd   : > { %v833_v43 = vpop.f32.mrf.mxu1  ;;  %v753_v45 = vmax.f32 %v696_v40, 0.0  ;;  %v650_v49 = vpop.f32.mrf.mxu0  ;;  %v936_v51 = vmax.f32 %v879_v42, 0.0 }
  0xbe   : > { %v834_v47 = vadd.f32 %v13985_v46, %v833_v43  ;;  %v651_v52 = vadd.f32 %v13997_v48, %v650_v49 }
  0xbf   : > { %785 = vst.msk [vmem:[%s14017_s20 + $0x98] sm:$0xff] %vm524_vm0, %v753_v45  ;;  %12096 = vmatmul.msk.f32.gmra.mxu2 %vm524_vm0, %v1075_v50  ;;  %12128 = vmatmul.msk.f32.gmra.mxu3 %vm524_vm0, %v1802_v44 }
  0xc0   : > { %v921_v53 = vmax.f32 %v834_v47, 0.0  ;;  %1024 = vst.msk [vmem:[#allocation2 + $0xf9] sm:$0xff] %vm524_vm0, %v936_v51  ;;  %v738_v54 = vmax.f32 %v651_v52, 0.0 }
  0xc1   : > { %v1528_v55 = vld [vmem:[#allocation2 + $0x32] sm:$0xff]  ;;  %v1529_v6 = vld [vmem:[#allocation2 + $0x3a] sm:$0xff] }
  0xc2   : > { %1009 = vst.msk [vmem:[#allocation2 + $0x49] sm:$0xff] %vm524_vm0, %v921_v53  ;;  %12162 = vmatmul.msk.f32.gmra.mxu0 %vm524_vm0, %v1528_v55  ;;  %v698_v56 = vpop.f32.mrf.mxu2  ;;  %v1803_v57 = vld [vmem:[#allocation2 + $0x38] sm:$0xff]  ;;  %v881_v59 = vpop.f32.mrf.mxu3 }
  0xc3   : > { %770 = vst.msk [vmem:[%s14017_s20 + $0x20] sm:$0xff] %vm524_vm0, %v738_v54  ;;  %v699_v58 = vadd.f32 %v13997_v48, %v698_v56  ;;  %v882_v60 = vadd.f32 %v13985_v46, %v881_v59  ;;  %v1076_v62 = vld [vmem:[#allocation2 + $0x39] sm:$0xff]  ;;  %12195 = vmatmul.msk.f32.gmra.mxu1 %vm524_vm0, %v1803_v57 }
  0xc5   : > { %v836_v61 = vpop.f32.mrf.mxu1  ;;  %v754_v63 = vmax.f32 %v699_v58, 0.0  ;;  %v653_v1 = vpop.f32.mrf.mxu0  ;;  %v937_v2 = vmax.f32 %v882_v60, 0.0 }
  0xc6   : > { %v837_v0 = vadd.f32 %v13985_v46, %v836_v61  ;;  %v654_v3 = vadd.f32 %v13997_v48, %v653_v1 }
  0xc7   : > { %786 = vst.msk [vmem:[%s14017_s20 + $0xa0] sm:$0xff] %vm524_vm0, %v754_v63  ;;  %12097 = vmatmul.msk.f32.gmra.mxu2 %vm524_vm0, %v1076_v62  ;;  %12129 = vmatmul.msk.f32.gmra.mxu3 %vm524_vm0, %v1803_v57 }
  0xc8   : > { %v922_v4 = vmax.f32 %v837_v0, 0.0  ;;  %1025 = vst.msk [vmem:[#allocation2 + $0x109] sm:$0xff] %vm524_vm0, %v937_v2  ;;  %v739_v5 = vmax.f32 %v654_v3, 0.0 }
  0xc9   : > { %v1804_v8 = vld [vmem:[#allocation2 + $0x48] sm:$0xff] }
  0xca   : > { %1010 = vst.msk [vmem:[#allocation2 + $0x51] sm:$0xff] %vm524_vm0, %v922_v4  ;;  %12163 = vmatmul.msk.f32.gmra.mxu0 %vm524_vm0, %v1529_v6  ;;  %v701_v7 = vpop.f32.mrf.mxu2  ;;  %v884_v10 = vpop.f32.mrf.mxu3  ;;  %v1077_v13 = vld [vmem:[#allocation2 + $0x49] sm:$0xff] }
  0xcb   : > { %771 = vst.msk [vmem:[%s14017_s20 + $0x28] sm:$0xff] %vm524_vm0, %v739_v5  ;;  %v702_v9 = vadd.f32 %v13997_v48, %v701_v7  ;;  %v885_v11 = vadd.f32 %v13985_v46, %v884_v10  ;;  %12196 = vmatmul.msk.f32.gmra.mxu1 %vm524_vm0, %v1804_v8  ;;  %v12225_v6 = vld [vmem:[%s19435_s6 + $0x48] sm:$0xff] }
  0xcc   : > { %2221 = vmatpush.msra.mxu2 %v12225_v6 }
  0xcd   : > { %v839_v12 = vpop.f32.mrf.mxu1  ;;  %v755_v14 = vmax.f32 %v702_v9, 0.0  ;;  %v656_v16 = vpop.f32.mrf.mxu0  ;;  %v938_v17 = vmax.f32 %v885_v11, 0.0 }
  0xce   : > { %v840_v15 = vadd.f32 %v13985_v46, %v839_v12  ;;  %v657_v18 = vadd.f32 %v13997_v48, %v656_v16 }
  0xcf   : > { %787 = vst.msk [vmem:[%s14017_s20 + $0xa8] sm:$0xff] %vm524_vm0, %v755_v14  ;;  %12098 = vmatmul.msk.f32.gmra.mxu2 %vm524_vm0, %v1077_v13  ;;  %12130 = vmatmul.msk.f32.gmra.mxu3 %vm524_vm0, %v1804_v8 }
  0xd0   : > { %v923_v19 = vmax.f32 %v840_v15, 0.0  ;;  %1026 = vst.msk [vmem:[#allocation2 + $0x111] sm:$0xff] %vm524_vm0, %v938_v17  ;;  %v740_v20 = vmax.f32 %v657_v18, 0.0 }
  0xd1   : > { %v1530_v21 = vld [vmem:[#allocation2 + $0x4a] sm:$0xff]  ;;  %v1531_v37 = vld [vmem:[#allocation2 + $0x52] sm:$0xff] }
  0xd2   : > { %1011 = vst.msk [vmem:[#allocation2 + $0x61] sm:$0xff] %vm524_vm0, %v923_v19  ;;  %12164 = vmatmul.msk.f32.gmra.mxu0 %vm524_vm0, %v1530_v21  ;;  %v704_v22 = vpop.f32.mrf.mxu2  ;;  %v1805_v23 = vld [vmem:[#allocation2 + $0x50] sm:$0xff]  ;;  %v887_v25 = vpop.f32.mrf.mxu3 }
  0xd3   : > { %772 = vst.msk [vmem:[%s14017_s20 + $0x30] sm:$0xff] %vm524_vm0, %v740_v20  ;;  %v705_v24 = vadd.f32 %v13997_v48, %v704_v22  ;;  %v888_v26 = vadd.f32 %v13985_v46, %v887_v25  ;;  %v1078_v28 = vld [vmem:[#allocation2 + $0x51] sm:$0xff]  ;;  %12197 = vmatmul.msk.f32.gmra.mxu1 %vm524_vm0, %v1805_v23 }
  0xd5   : > { %v842_v27 = vpop.f32.mrf.mxu1  ;;  %v756_v29 = vmax.f32 %v705_v24, 0.0  ;;  %v659_v31 = vpop.f32.mrf.mxu0  ;;  %v939_v33 = vmax.f32 %v888_v26, 0.0 }
  0xd6   : > { %v843_v30 = vadd.f32 %v13985_v46, %v842_v27  ;;  %v660_v34 = vadd.f32 %v13997_v48, %v659_v31 }
  0xd7   : > { %788 = vst.msk [vmem:[%s14017_s20 + $0xb0] sm:$0xff] %vm524_vm0, %v756_v29  ;;  %12099 = vmatmul.msk.f32.gmra.mxu2 %vm524_vm0, %v1078_v28  ;;  %12131 = vmatmul.msk.f32.gmra.mxu3 %vm524_vm0, %v1805_v23  ;;  %v12293_v23 = vld [vmem:[%s19435_s6 + $0x68] sm:$0xff] }
  0xd8   : > { %v924_v35 = vmax.f32 %v843_v30, 0.0  ;;  %1027 = vst.msk [vmem:[#allocation2 + $0x121] sm:$0xff] %vm524_vm0, %v939_v33  ;;  %v741_v36 = vmax.f32 %v660_v34, 0.0  ;;  %2774 = vmatpush.msra.mxu0 %v12293_v23 }
  0xd9   : > { %v1806_v39 = vld [vmem:[#allocation2 + $0x60] sm:$0xff] }
  0xda   : > { %1012 = vst.msk [vmem:[#allocation2 + $0x69] sm:$0xff] %vm524_vm0, %v924_v35  ;;  %12165 = vmatmul.msk.f32.gmra.mxu0 %vm524_vm0, %v1531_v37  ;;  %v707_v38 = vpop.f32.mrf.mxu2  ;;  %v890_v41 = vpop.f32.mrf.mxu3  ;;  %v1079_v44 = vld [vmem:[#allocation2 + $0x61] sm:$0xff] }
  0xdb   : > { %773 = vst.msk [vmem:[%s14017_s20 + $0x38] sm:$0xff] %vm524_vm0, %v741_v36  ;;  %v708_v40 = vadd.f32 %v13997_v48, %v707_v38  ;;  %v891_v42 = vadd.f32 %v13985_v46, %v890_v41  ;;  %12198 = vmatmul.msk.f32.gmra.mxu1 %vm524_vm0, %v1806_v39 }
  0xdd   : > { %v845_v43 = vpop.f32.mrf.mxu1  ;;  %v757_v45 = vmax.f32 %v708_v40, 0.0  ;;  %v662_v49 = vpop.f32.mrf.mxu0  ;;  %v940_v50 = vmax.f32 %v891_v42, 0.0 }
  0xde   : > { %v846_v47 = vadd.f32 %v13985_v46, %v845_v43  ;;  %v663_v51 = vadd.f32 %v13997_v48, %v662_v49 }
  0xdf   : > { %789 = vst.msk [vmem:[%s14017_s20 + $0xb8] sm:$0xff] %vm524_vm0, %v757_v45  ;;  %12100 = vmatmul.msk.f32.gmra.mxu2 %vm524_vm0, %v1079_v44  ;;  %12132 = vmatmul.msk.f32.gmra.mxu3 %vm524_vm0, %v1806_v39 }
  0xe0   : > { %v925_v52 = vmax.f32 %v846_v47, 0.0  ;;  %1028 = vst.msk [vmem:[#allocation2 + $0x129] sm:$0xff] %vm524_vm0, %v940_v50  ;;  %v742_v53 = vmax.f32 %v663_v51, 0.0 }
  0xe1   : > { %v1532_v54 = vld [vmem:[#allocation2 + $0x62] sm:$0xff]  ;;  %v1533_v5 = vld [vmem:[#allocation2 + $0x6a] sm:$0xff] }
  0xe2   : > { %1013 = vst.msk [vmem:[#allocation2 + $0x79] sm:$0xff] %vm524_vm0, %v925_v52  ;;  %12166 = vmatmul.msk.f32.gmra.mxu0 %vm524_vm0, %v1532_v54  ;;  %v710_v55 = vpop.f32.mrf.mxu2  ;;  %v1807_v56 = vld [vmem:[#allocation2 + $0x68] sm:$0xff]  ;;  %v893_v58 = vpop.f32.mrf.mxu3 }
  0xe3   : > { %774 = vst.msk [vmem:[%s14017_s20 + $0x40] sm:$0xff] %vm524_vm0, %v742_v53  ;;  %v711_v57 = vadd.f32 %v13997_v48, %v710_v55  ;;  %v894_v59 = vadd.f32 %v13985_v46, %v893_v58  ;;  %v1080_v61 = vld [vmem:[#allocation2 + $0x69] sm:$0xff]  ;;  %12199 = vmatmul.msk.f32.gmra.mxu1 %vm524_vm0, %v1807_v56 }
  0xe5   : > { %v848_v60 = vpop.f32.mrf.mxu1  ;;  %v758_v62 = vmax.f32 %v711_v57, 0.0  ;;  %v665_v0 = vpop.f32.mrf.mxu0  ;;  %v941_v1 = vmax.f32 %v894_v59, 0.0 }
  0xe6   : > { %v849_v63 = vadd.f32 %v13985_v46, %v848_v60  ;;  %v666_v2 = vadd.f32 %v13997_v48, %v665_v0 }
  0xe7   : > { %790 = vst.msk [vmem:[%s14017_s20 + $0xc0] sm:$0xff] %vm524_vm0, %v758_v62  ;;  %12101 = vmatmul.msk.f32.gmra.mxu2 %vm524_vm0, %v1080_v61  ;;  %12133 = vmatmul.msk.f32.gmra.mxu3 %vm524_vm0, %v1807_v56  ;;  %v12258_v56 = vld [vmem:[%s19435_s6 + $0x50] sm:$0xff] }
  0xe8   : > { %v926_v3 = vmax.f32 %v849_v63, 0.0  ;;  %1029 = vst.msk [vmem:[#allocation2 + $0x139] sm:$0xff] %vm524_vm0, %v941_v1  ;;  %v743_v4 = vmax.f32 %v666_v2, 0.0  ;;  %2498 = vmatpush.msra.mxu3 %v12258_v56 }
  0xe9   : > { %v14175_v8 = vld [vmem:[#allocation2 + $0x78] sm:$0xff] }
  0xea   : > { %1014 = vst.msk [vmem:[#allocation2 + $0x81] sm:$0xff] %vm524_vm0, %v926_v3  ;;  %12167 = vmatmul.msk.f32.gmra.mxu0 %vm524_vm0, %v1533_v5  ;;  %v713_v7 = vpop.f32.mrf.mxu2  ;;  %v896_v10 = vpop.f32.mrf.mxu3  ;;  %v14179_v13 = vld [vmem:[#allocation2 + $0x79] sm:$0xff] }
  0xeb   : > { %775 = vst.msk [vmem:[%s14017_s20 + $0x48] sm:$0xff] %vm524_vm0, %v743_v4  ;;  %v714_v9 = vadd.f32 %v13997_v48, %v713_v7  ;;  %v897_v11 = vadd.f32 %v13985_v46, %v896_v10  ;;  %12200 = vmatmul.msk.f32.gmra.mxu1 %vm524_vm0, %v14175_v8  ;;  %v12327_v5 = vld [vmem:[%s19435_s6 + $0x78] sm:$0xff] }
  0xec   : > { %3050 = vmatpush.msra.mxu1 %v12327_v5 }
  0xed   : > { %v851_v12 = vpop.f32.mrf.mxu1  ;;  %v759_v14 = vmax.f32 %v714_v9, 0.0  ;;  %v668_v16 = vpop.f32.mrf.mxu0  ;;  %v942_v17 = vmax.f32 %v897_v11, 0.0 }
  0xee   : > { %v852_v15 = vadd.f32 %v13985_v46, %v851_v12  ;;  %v669_v18 = vadd.f32 %v13997_v48, %v668_v16 }
  0xef   : > { %791 = vst.msk [vmem:[%s14017_s20 + $0xc8] sm:$0xff] %vm524_vm0, %v759_v14  ;;  %12102 = vmatmul.msk.f32.gmra.mxu2 %vm524_vm0, %v14179_v13  ;;  %12134 = vmatmul.msk.f32.gmra.mxu3 %vm524_vm0, %v14175_v8 }
  0xf0   : > { %v927_v19 = vmax.f32 %v852_v15, 0.0  ;;  %1030 = vst.msk [vmem:[#allocation2 + $0x141] sm:$0xff] %vm524_vm0, %v942_v17  ;;  %v744_v20 = vmax.f32 %v669_v18, 0.0 }
  0xf1   : > { %v14192_v21 = vld [vmem:[#allocation2 + $0x7a] sm:$0xff]  ;;  %v14220_v38 = vld [vmem:[#allocation2 + $0x82] sm:$0xff] }
  0xf2   : > { %1015 = vst.msk [vmem:[#allocation2 + $0x91] sm:$0xff] %vm524_vm0, %v927_v19  ;;  %12168 = vmatmul.msk.f32.gmra.mxu0 %vm524_vm0, %v14192_v21  ;;  %v716_v22 = vpop.f32.mrf.mxu2  ;;  %v14202_v24 = vld [vmem:[#allocation2 + $0x80] sm:$0xff]  ;;  %v899_v26 = vpop.f32.mrf.mxu3 }
  0xf3   : > { %776 = vst.msk [vmem:[%s14017_s20 + $0x50] sm:$0xff] %vm524_vm0, %v744_v20  ;;  %v717_v25 = vadd.f32 %v13997_v48, %v716_v22  ;;  %v900_v27 = vadd.f32 %v13985_v46, %v899_v26  ;;  %v14206_v29 = vld [vmem:[#allocation2 + $0x81] sm:$0xff]  ;;  %12201 = vmatmul.msk.f32.gmra.mxu1 %vm524_vm0, %v14202_v24 }
  0xf5   : > { %v854_v28 = vpop.f32.mrf.mxu1  ;;  %v760_v30 = vmax.f32 %v717_v25, 0.0  ;;  %v671_v33 = vpop.f32.mrf.mxu0  ;;  %v943_v34 = vmax.f32 %v900_v27, 0.0 }
  0xf6   : > { %v855_v31 = vadd.f32 %v13985_v46, %v854_v28  ;;  %v672_v35 = vadd.f32 %v13997_v48, %v671_v33 }
  0xf7   : > { %792 = vst.msk [vmem:[%s14017_s20 + $0xd0] sm:$0xff] %vm524_vm0, %v760_v30  ;;  %12103 = vmatmul.msk.f32.gmra.mxu2 %vm524_vm0, %v14206_v29  ;;  %12135 = vmatmul.msk.f32.gmra.mxu3 %vm524_vm0, %v14202_v24 }
  0xf8   : > { %v928_v36 = vmax.f32 %v855_v31, 0.0  ;;  %1031 = vst.msk [vmem:[#allocation2 + $0x151] sm:$0xff] %vm524_vm0, %v943_v34  ;;  %v745_v37 = vmax.f32 %v672_v35, 0.0 }
  0xf9   : > { %v14226_v40 = vld [vmem:[#allocation2 + $0x90] sm:$0xff] }
  0xfa   : > { %1016 = vst.msk [vmem:[#allocation2 + $0x99] sm:$0xff] %vm524_vm0, %v928_v36  ;;  %12169 = vmatmul.msk.f32.gmra.mxu0 %vm524_vm0, %v14220_v38  ;;  %v719_v39 = vpop.f32.mrf.mxu2  ;;  %v902_v42 = vpop.f32.mrf.mxu3  ;;  %v14230_v45 = vld [vmem:[#allocation2 + $0x91] sm:$0xff] }
  0xfb   : > { %777 = vst.msk [vmem:[%s14017_s20 + $0x58] sm:$0xff] %vm524_vm0, %v745_v37  ;;  %v720_v41 = vadd.f32 %v13997_v48, %v719_v39  ;;  %v903_v43 = vadd.f32 %v13985_v46, %v902_v42  ;;  %12202 = vmatmul.msk.f32.gmra.mxu1 %vm524_vm0, %v14226_v40 }
  0xfd   : > { %v857_v44 = vpop.f32.mrf.mxu1  ;;  %v761_v47 = vmax.f32 %v720_v41, 0.0  ;;  %v674_v50 = vpop.f32.mrf.mxu0  ;;  %v944_v51 = vmax.f32 %v903_v43, 0.0 }
  0xfe   : > { %v858_v49 = vadd.f32 %v13985_v46, %v857_v44  ;;  %v675_v52 = vadd.f32 %v13997_v48, %v674_v50 }
  0xff   : > { %793 = vst.msk [vmem:[%s14017_s20 + $0xd8] sm:$0xff] %vm524_vm0, %v761_v47  ;;  %12104 = vmatmul.msk.f32.gmra.mxu2 %vm524_vm0, %v14230_v45  ;;  %12136 = vmatmul.msk.f32.gmra.mxu3 %vm524_vm0, %v14226_v40 }
 0x100   : > { %v929_v53 = vmax.f32 %v858_v49, 0.0  ;;  %1032 = vst.msk [vmem:[#allocation2 + $0x159] sm:$0xff] %vm524_vm0, %v944_v51  ;;  %v746_v54 = vmax.f32 %v675_v52, 0.0 }
 0x101   : > { %v14243_v55 = vld [vmem:[#allocation2 + $0x92] sm:$0xff]  ;;  %v14274_v9 = vld [vmem:[#allocation2 + $0x9a] sm:$0xff] }
 0x102   : > { %1017 = vst.msk [vmem:[#allocation2 + $0xa9] sm:$0xff] %vm524_vm0, %v929_v53  ;;  %12170 = vmatmul.msk.f32.gmra.mxu0 %vm524_vm0, %v14243_v55  ;;  %v722_v57 = vpop.f32.mrf.mxu2  ;;  %v14253_v58 = vld [vmem:[#allocation2 + $0x98] sm:$0xff]  ;;  %v905_v60 = vpop.f32.mrf.mxu3 }
 0x103   : > { %778 = vst.msk [vmem:[%s14017_s20 + $0x60] sm:$0xff] %vm524_vm0, %v746_v54  ;;  %v723_v59 = vadd.f32 %v13997_v48, %v722_v57  ;;  %v906_v61 = vadd.f32 %v13985_v46, %v905_v60  ;;  %v14257_v63 = vld [vmem:[#allocation2 + $0x99] sm:$0xff]  ;;  %12203 = vmatmul.msk.f32.gmra.mxu1 %vm524_vm0, %v14253_v58 }
 0x105   : > { %v860_v62 = vpop.f32.mrf.mxu1  ;;  %v762_v0 = vmax.f32 %v723_v59, 0.0  ;;  %v677_v2 = vpop.f32.mrf.mxu0  ;;  %v945_v3 = vmax.f32 %v906_v61, 0.0 }
 0x106   : > { %v861_v1 = vadd.f32 %v13985_v46, %v860_v62  ;;  %v678_v4 = vadd.f32 %v13997_v48, %v677_v2 }
 0x107   : > { %794 = vst.msk [vmem:[%s14017_s20 + $0xe0] sm:$0xff] %vm524_vm0, %v762_v0  ;;  %12105 = vmatmul.msk.f32.gmra.mxu2 %vm524_vm0, %v14257_v63  ;;  %12137 = vmatmul.msk.f32.gmra.mxu3 %vm524_vm0, %v14253_v58 }
 0x108   : > { %v930_v6 = vmax.f32 %v861_v1, 0.0  ;;  %1033 = vst.msk [vmem:[#allocation2 + $0x169] sm:$0xff] %vm524_vm0, %v945_v3  ;;  %v747_v7 = vmax.f32 %v678_v4, 0.0 }
 0x109   : > { %v14280_v11 = vld [vmem:[#allocation2 + $0xa8] sm:$0xff] }
 0x10a   : > { %1018 = vst.msk [vmem:[#allocation2 + $0xb1] sm:$0xff] %vm524_vm0, %v930_v6  ;;  %12171 = vmatmul.msk.f32.gmra.mxu0 %vm524_vm0, %v14274_v9  ;;  %v725_v10 = vpop.f32.mrf.mxu2  ;;  %v908_v14 = vpop.f32.mrf.mxu3  ;;  %v14284_v17 = vld [vmem:[#allocation2 + $0xa9] sm:$0xff] }
 0x10b   : > { %779 = vst.msk [vmem:[%s14017_s20 + $0x68] sm:$0xff] %vm524_vm0, %v747_v7  ;;  %v726_v12 = vadd.f32 %v13997_v48, %v725_v10  ;;  %v909_v15 = vadd.f32 %v13985_v46, %v908_v14  ;;  %12204 = vmatmul.msk.f32.gmra.mxu1 %vm524_vm0, %v14280_v11 }
 0x10d   : > { %v863_v16 = vpop.f32.mrf.mxu1  ;;  %v763_v18 = vmax.f32 %v726_v12, 0.0  ;;  %v680_v20 = vpop.f32.mrf.mxu0  ;;  %v946_v22 = vmax.f32 %v909_v15, 0.0  ;;  %v14365_v12 = vld [vmem:[#allocation2 + $0xd8] sm:$0xff] }
 0x10e   : > { %v864_v19 = vadd.f32 %v13985_v46, %v863_v16  ;;  %v681_v23 = vadd.f32 %v13997_v48, %v680_v20  ;;  %v14371_v16 = vld [vmem:[#allocation2 + $0xd9] sm:$0xff] }
 0x10f   : > { %795 = vst.msk [vmem:[%s14017_s20 + $0xe8] sm:$0xff] %vm524_vm0, %v763_v18  ;;  %12106 = vmatmul.msk.f32.gmra.mxu2 %vm524_vm0, %v14284_v17  ;;  %12138 = vmatmul.msk.f32.gmra.mxu3 %vm524_vm0, %v14280_v11 }
 0x110   : > { %v931_v25 = vmax.f32 %v864_v19, 0.0  ;;  %1034 = vst.msk [vmem:[#allocation2 + $0x171] sm:$0xff] %vm524_vm0, %v946_v22  ;;  %v748_v26 = vmax.f32 %v681_v23, 0.0  ;;  %v14379_v19 = vld [vmem:[#allocation2 + $0xda] sm:$0xff] }
 0x111   : > { %v14297_v27 = vld [vmem:[#allocation2 + $0xaa] sm:$0xff]  ;;  %v14322_v49 = vld [vmem:[#allocation2 + $0xb2] sm:$0xff] }
 0x112   : > { %1019 = vst.msk [vmem:[#allocation2 + $0xc1] sm:$0xff] %vm524_vm0, %v931_v25  ;;  %12172 = vmatmul.msk.f32.gmra.mxu0 %vm524_vm0, %v14297_v27  ;;  %v728_v28 = vpop.f32.mrf.mxu2  ;;  %v14304_v30 = vld [vmem:[#allocation2 + $0xb0] sm:$0xff]  ;;  %v911_v33 = vpop.f32.mrf.mxu3  ;;  %v14383_v25 = vld [vmem:[#allocation2 + $0xe0] sm:$0xff] }
 0x113   : > { %780 = vst.msk [vmem:[%s14017_s20 + $0x70] sm:$0xff] %vm524_vm0, %v748_v26  ;;  %v729_v31 = vadd.f32 %v13997_v48, %v728_v28  ;;  %v912_v34 = vadd.f32 %v13985_v46, %v911_v33  ;;  %v14308_v36 = vld [vmem:[#allocation2 + $0xb1] sm:$0xff]  ;;  %12205 = vmatmul.msk.f32.gmra.mxu1 %vm524_vm0, %v14304_v30  ;;  %v14395_v33 = vld [vmem:[#allocation2 + $0xe2] sm:$0xff] }
 0x115   : > { %v866_v35 = vpop.f32.mrf.mxu1  ;;  %v764_v37 = vmax.f32 %v729_v31, 0.0  ;;  %v683_v41 = vpop.f32.mrf.mxu0  ;;  %v947_v42 = vmax.f32 %v912_v34, 0.0  ;;  %v14389_v31 = vld [vmem:[#allocation2 + $0xe1] sm:$0xff] }
 0x116   : > { %v867_v39 = vadd.f32 %v13985_v46, %v866_v35  ;;  %v684_v43 = vadd.f32 %v13997_v48, %v683_v41  ;;  %v14401_v41 = vld [vmem:[#allocation2 + $0xf0] sm:$0xff] }
 0x117   : > { %796 = vst.msk [vmem:[%s14017_s20 + $0xf0] sm:$0xff] %vm524_vm0, %v764_v37  ;;  %12107 = vmatmul.msk.f32.gmra.mxu2 %vm524_vm0, %v14308_v36  ;;  %12139 = vmatmul.msk.f32.gmra.mxu3 %vm524_vm0, %v14304_v30 }
 0x118   : > { %v932_v44 = vmax.f32 %v867_v39, 0.0  ;;  %1035 = vst.msk [vmem:[#allocation2 + $0x181] sm:$0xff] %vm524_vm0, %v947_v42  ;;  %v749_v47 = vmax.f32 %v684_v43, 0.0  ;;  %v14407_v43 = vld [vmem:[#allocation2 + $0xf1] sm:$0xff] }
 0x119   : > { %v14328_v51 = vld [vmem:[#allocation2 + $0xc0] sm:$0xff] }
 0x11a   : > { %1020 = vst.msk [vmem:[#allocation2 + $0xc9] sm:$0xff] %vm524_vm0, %v932_v44  ;;  %12173 = vmatmul.msk.f32.gmra.mxu0 %vm524_vm0, %v14322_v49  ;;  %v731_v50 = vpop.f32.mrf.mxu2  ;;  %v914_v53 = vpop.f32.mrf.mxu3  ;;  %v14332_v56 = vld [vmem:[#allocation2 + $0xc1] sm:$0xff] }
 0x11b   : > { %781 = vst.msk [vmem:[%s14017_s20 + $0x78] sm:$0xff] %vm524_vm0, %v749_v47  ;;  %v732_v52 = vadd.f32 %v13997_v48, %v731_v50  ;;  %v915_v54 = vadd.f32 %v13985_v46, %v914_v53  ;;  %12206 = vmatmul.msk.f32.gmra.mxu1 %vm524_vm0, %v14328_v51  ;;  %v14413_v47 = vld [vmem:[#allocation2 + $0xf2] sm:$0xff] }
 0x11d   : > { %v765_v57 = vmax.f32 %v732_v52, 0.0  ;;  %v1672_v59 = vpop.f32.mrf.mxu0  ;;  %v948_v60 = vmax.f32 %v915_v54, 0.0 }
 0x11f   : > { %797 = vst.msk [vmem:[%s14017_s20 + $0xf8] sm:$0xff] %vm524_vm0, %v765_v57  ;;  %12108 = vmatmul.msk.f32.gmra.mxu2 %vm524_vm0, %v14332_v56  ;;  %12140 = vmatmul.msk.f32.gmra.mxu3 %vm524_vm0, %v14328_v51  ;;  %v14419_v57 = vld [vmem:[#allocation2 + $0xf8] sm:$0xff] }
 0x120   : > { %1036 = vst.msk [vmem:[#allocation2 + $0x189] sm:$0xff] %vm524_vm0, %v948_v60  ;;  %v14425_v60 = vld [vmem:[#allocation2 + $0xf9] sm:$0xff] }
 0x121   : > { %v14343_v48 = vld [vmem:[#allocation2 + $0xc2] sm:$0xff]  ;;  %v14361_v5 = vld [vmem:[#allocation2 + $0xca] sm:$0xff] }
 0x122   : > { %12174 = vmatmul.msk.f32.gmra.mxu0 %vm524_vm0, %v14343_v48  ;;  %v1219_v46 = vpop.f32.mrf.mxu2  ;;  %v14347_v61 = vld [vmem:[#allocation2 + $0xc8] sm:$0xff]  ;;  %v1428_v62 = vpop.f32.mrf.mxu3 }
 0x123   : > { %v1429_v0 = vadd.f32 %v1428_v62, %v1219_v46  ;;  %v14349_v1 = vld [vmem:[#allocation2 + $0xc9] sm:$0xff]  ;;  %12207 = vmatmul.msk.f32.gmra.mxu1 %vm524_vm0, %v14347_v61  ;;  %v14431_v62 = vld [vmem:[#allocation2 + $0xfa] sm:$0xff] }
 0x125   : > { %v1675_v2 = vpop.f32.mrf.mxu0  ;;  %v14353_v3 = vadd.f32 %v1672_v59, %v1429_v0 }
 0x127   : > { %v14355_v4 = vpop.f32.mrf.mxu1  ;;  %12109 = vmatmul.msk.f32.gmra.mxu2 %vm524_vm0, %v14349_v1  ;;  %12141 = vmatmul.msk.f32.gmra.mxu3 %vm524_vm0, %v14347_v61 }
 0x12a   : > { %12175 = vmatmul.msk.f32.gmra.mxu0 %vm524_vm0, %v14361_v5  ;;  %v1222_v6 = vpop.f32.mrf.mxu2  ;;  %v1431_v7 = vpop.f32.mrf.mxu3 }
 0x12b   : > { %v1432_v10 = vadd.f32 %v1431_v7, %v1222_v6  ;;  %12208 = vmatmul.msk.f32.gmra.mxu1 %vm524_vm0, %v14365_v12 }
 0x12d   : > { %v14369_v15 = vadd.f32 %v1675_v2, %v1432_v10  ;;  %v14437_v10 = vld [vmem:[#allocation2 + $0x108] sm:$0xff] }
 0x12f   : > { %v1678_v14 = vpop.f32.mrf.mxu0  ;;  %12110 = vmatmul.msk.f32.gmra.mxu2 %vm524_vm0, %v14371_v16  ;;  %12142 = vmatmul.msk.f32.gmra.mxu3 %vm524_vm0, %v14365_v12 }
 0x130   : > { %v14377_v18 = vpop.f32.mrf.mxu1 }
 0x132   : > { %12176 = vmatmul.msk.f32.gmra.mxu0 %vm524_vm0, %v14379_v19  ;;  %v1225_v20 = vpop.f32.mrf.mxu2  ;;  %v1434_v22 = vpop.f32.mrf.mxu3 }
 0x133   : > { %v1435_v23 = vadd.f32 %v1434_v22, %v1225_v20  ;;  %12209 = vmatmul.msk.f32.gmra.mxu1 %vm524_vm0, %v14383_v25  ;;  %v14443_v20 = vld [vmem:[#allocation2 + $0x109] sm:$0xff] }
 0x135   : > { %v14387_v28 = vadd.f32 %v1678_v14, %v1435_v23  ;;  %v14449_v23 = vld [vmem:[#allocation2 + $0x10a] sm:$0xff] }
 0x137   : > { %v1681_v26 = vpop.f32.mrf.mxu0  ;;  %12111 = vmatmul.msk.f32.gmra.mxu2 %vm524_vm0, %v14389_v31  ;;  %12143 = vmatmul.msk.f32.gmra.mxu3 %vm524_vm0, %v14383_v25 }
 0x138   : > { %v14399_v35 = vpop.f32.mrf.mxu1 }
 0x13a   : > { %12177 = vmatmul.msk.f32.gmra.mxu0 %vm524_vm0, %v14395_v33  ;;  %v1228_v34 = vpop.f32.mrf.mxu2  ;;  %v1437_v37 = vpop.f32.mrf.mxu3 }
 0x13b   : > { %v1438_v39 = vadd.f32 %v1437_v37, %v1228_v34  ;;  %12210 = vmatmul.msk.f32.gmra.mxu1 %vm524_vm0, %v14401_v41 }
 0x13d   : > { %v14405_v42 = vadd.f32 %v1681_v26, %v1438_v39 }
 0x13f   : > { %v1684_v44 = vpop.f32.mrf.mxu0  ;;  %12112 = vmatmul.msk.f32.gmra.mxu2 %vm524_vm0, %v14407_v43  ;;  %12144 = vmatmul.msk.f32.gmra.mxu3 %vm524_vm0, %v14401_v41 }
 0x140   : > { %v14417_v52 = vpop.f32.mrf.mxu1 }
 0x142   : > { %12178 = vmatmul.msk.f32.gmra.mxu0 %vm524_vm0, %v14413_v47  ;;  %v1231_v50 = vpop.f32.mrf.mxu2  ;;  %v1440_v53 = vpop.f32.mrf.mxu3 }
 0x143   : > { %v1441_v54 = vadd.f32 %v1440_v53, %v1231_v50  ;;  %12211 = vmatmul.msk.f32.gmra.mxu1 %vm524_vm0, %v14419_v57  ;;  %v14461_v53 = vld [vmem:[#allocation2 + $0x111] sm:$0xff] }
 0x144   : > { %19655 = vst [vmem:[#allocation12_spill] sm:$0xff] %v14461_v53 }
 0x145   : > { %v14423_v59 = vadd.f32 %v1684_v44, %v1441_v54  ;;  %v14455_v44 = vld [vmem:[#allocation2 + $0x110] sm:$0xff] }
 0x147   : > { %v1687_v46 = vpop.f32.mrf.mxu0  ;;  %12113 = vmatmul.msk.f32.gmra.mxu2 %vm524_vm0, %v14425_v60  ;;  %12145 = vmatmul.msk.f32.gmra.mxu3 %vm524_vm0, %v14419_v57 }
 0x148   : > { %v14435_v2 = vpop.f32.mrf.mxu1 }
 0x14a   : > { %12179 = vmatmul.msk.f32.gmra.mxu0 %vm524_vm0, %v14431_v62  ;;  %v1234_v0 = vpop.f32.mrf.mxu2  ;;  %v1443_v6 = vpop.f32.mrf.mxu3 }
 0x14b   : > { %v1444_v7 = vadd.f32 %v1443_v6, %v1234_v0  ;;  %12212 = vmatmul.msk.f32.gmra.mxu1 %vm524_vm0, %v14437_v10 }
 0x14d   : > { %v14441_v14 = vadd.f32 %v1687_v46, %v1444_v7  ;;  %v14467_v46 = vld [vmem:[#allocation2 + $0x112] sm:$0xff] }
 0x14e   : > { %19656 = vst [vmem:[#allocation13_spill] sm:$0xff] %v14467_v46 }
 0x14f   : > { %19652 = vst [vmem:[#allocation9_spill] sm:$0xff] %v14441_v14  ;;  %v1690_v22 = vpop.f32.mrf.mxu0  ;;  %12114 = vmatmul.msk.f32.gmra.mxu2 %vm524_vm0, %v14443_v20  ;;  %12146 = vmatmul.msk.f32.gmra.mxu3 %vm524_vm0, %v14437_v10 }
 0x150   : > { %v14453_v34 = vpop.f32.mrf.mxu1 }
 0x151   : > { %19653 = vst [vmem:[#allocation10_spill] sm:$0xff] %v14453_v34  ;;  %v12224_v34 = vld [vmem:[%s19435_s6 + $0x40] sm:$0xff] }
 0x152   : > { %12180 = vmatmul.msk.f32.gmra.mxu0 %vm524_vm0, %v14449_v23  ;;  %v1237_v26 = vpop.f32.mrf.mxu2  ;;  %v1446_v37 = vpop.f32.mrf.mxu3  ;;  %2222 = vmatpush.msra.mxu2 %v12224_v34 }
 0x153   : > { %v1447_v39 = vadd.f32 %v1446_v37, %v1237_v26  ;;  %12213 = vmatmul.msk.f32.gmra.mxu1 %vm524_vm0, %v14455_v44  ;;  %v14473_v26 = vld [vmem:[#allocation2 + $0x120] sm:$0xff] }
 0x155   : > { %v14459_v50 = vadd.f32 %v1690_v22, %v1447_v39  ;;  %v14479_v39 = vld [vmem:[#allocation2 + $0x121] sm:$0xff] }
 0x156   : > { %19659 = vst [vmem:[#allocation16_spill] sm:$0xff] %v14479_v39 }
 0x157   : > { %19654 = vst [vmem:[#allocation11_spill] sm:$0xff] %v14459_v50  ;;  %v1693_v54 = vpop.f32.mrf.mxu0  ;;  %12115 = vmatmul.msk.f32.gmra.mxu2 %vm524_vm0, %v14461_v53  ;;  %12147 = vmatmul.msk.f32.gmra.mxu3 %vm524_vm0, %v14455_v44  ;;  %v14485_v50 = vld [vmem:[#allocation2 + $0x122] sm:$0xff] }
 0x158   : > { %v14471_v6 = vpop.f32.mrf.mxu1  ;;  %19660 = vst [vmem:[#allocation17_spill] sm:$0xff] %v14485_v50  ;;  %v14640_v53 = vld [vmem:[#allocation2 + $0x188] sm:$0xff] }
 0x159   : > { %19657 = vst [vmem:[#allocation14_spill] sm:$0xff] %v14471_v6 }
 0x15a   : > { %12181 = vmatmul.msk.f32.gmra.mxu0 %vm524_vm0, %v14467_v46  ;;  %v1240_v0 = vpop.f32.mrf.mxu2  ;;  %v1449_v7 = vpop.f32.mrf.mxu3 }
 0x15b   : > { %v1450_v22 = vadd.f32 %v1449_v7, %v1240_v0  ;;  %12214 = vmatmul.msk.f32.gmra.mxu1 %vm524_vm0, %v14473_v26 }
 0x15d   : > { %v14477_v37 = vadd.f32 %v1693_v54, %v1450_v22  ;;  %v14491_v22 = vld [vmem:[#allocation2 + $0x128] sm:$0xff] }
 0x15e   : > { %19662 = vst [vmem:[#allocation19_spill] sm:$0xff] %v14491_v22 }
 0x15f   : > { %19658 = vst [vmem:[#allocation15_spill] sm:$0xff] %v14477_v37  ;;  %v1696_v32 = vpop.f32.mrf.mxu0  ;;  %12116 = vmatmul.msk.f32.gmra.mxu2 %vm524_vm0, %v14479_v39  ;;  %12148 = vmatmul.msk.f32.gmra.mxu3 %vm524_vm0, %v14473_v26  ;;  %v14497_v39 = vld [vmem:[#allocation2 + $0x129] sm:$0xff] }
 0x160   : > { %v14489_v7 = vpop.f32.mrf.mxu1  ;;  %19664 = vst [vmem:[#allocation21_spill] sm:$0xff] %v14497_v39 }
 0x161   : > { %19661 = vst [vmem:[#allocation18_spill] sm:$0xff] %v14489_v7  ;;  %v14512_v7 = vld [vmem:[#allocation2 + $0x138] sm:$0xff] }
 0x162   : > { %12182 = vmatmul.msk.f32.gmra.mxu0 %vm524_vm0, %v14485_v50  ;;  %v1243_v0 = vpop.f32.mrf.mxu2  ;;  %v1452_v6 = vpop.f32.mrf.mxu3  ;;  %19667 = vst [vmem:[#allocation24_spill] sm:$0xff] %v14512_v7  ;;  %v14518_v50 = vld [vmem:[#allocation2 + $0x139] sm:$0xff] }
 0x163   : > { %v1453_v54 = vadd.f32 %v1452_v6, %v1243_v0  ;;  %12215 = vmatmul.msk.f32.gmra.mxu1 %vm524_vm0, %v14491_v22  ;;  %v14506_v6 = vld [vmem:[#allocation2 + $0x12a] sm:$0xff]  ;;  %19669 = vst [vmem:[#allocation26_spill] sm:$0xff] %v14518_v50 }
 0x164   : > { %19665 = vst [vmem:[#allocation22_spill] sm:$0xff] %v14506_v6 }
 0x165   : > { %v14495_v37 = vadd.f32 %v1696_v32, %v1453_v54 }
 0x167   : > { %19663 = vst [vmem:[#allocation20_spill] sm:$0xff] %v14495_v37  ;;  %v1699_v14 = vpop.f32.mrf.mxu0  ;;  %12117 = vmatmul.msk.f32.gmra.mxu2 %vm524_vm0, %v14497_v39  ;;  %12149 = vmatmul.msk.f32.gmra.mxu3 %vm524_vm0, %v14491_v22 }
 0x168   : > { %v14510_v0 = vpop.f32.mrf.mxu1 }
 0x169   : > { %19666 = vst [vmem:[#allocation23_spill] sm:$0xff] %v14510_v0 }
 0x16a   : > { %12183 = vmatmul.msk.f32.gmra.mxu0 %vm524_vm0, %v14506_v6  ;;  %v1246_v32 = vpop.f32.mrf.mxu2  ;;  %v1455_v54 = vpop.f32.mrf.mxu3  ;;  %v14524_v6 = vld [vmem:[#allocation2 + $0x13a] sm:$0xff] }
 0x16b   : > { %v1456_v37 = vadd.f32 %v1455_v54, %v1246_v32  ;;  %12216 = vmatmul.msk.f32.gmra.mxu1 %vm524_vm0, %v14512_v7  ;;  %19670 = vst [vmem:[#allocation27_spill] sm:$0xff] %v14524_v6 }
 0x16d   : > { %v14516_v39 = vadd.f32 %v1699_v14, %v1456_v37  ;;  %v12292_v37 = vld [vmem:[%s19435_s6 + $0x60] sm:$0xff] }
 0x16e   : > { %2775 = vmatpush.msra.mxu0 %v12292_v37 }
 0x16f   : > { %19668 = vst [vmem:[#allocation25_spill] sm:$0xff] %v14516_v39  ;;  %v1702_v34 = vpop.f32.mrf.mxu0  ;;  %12118 = vmatmul.msk.f32.gmra.mxu2 %vm524_vm0, %v14518_v50  ;;  %12150 = vmatmul.msk.f32.gmra.mxu3 %vm524_vm0, %v14512_v7  ;;  %v14533_v39 = vld [vmem:[#allocation2 + $0x140] sm:$0xff] }
 0x170   : > { %v14528_v54 = vpop.f32.mrf.mxu1  ;;  %19672 = vst [vmem:[#allocation29_spill] sm:$0xff] %v14533_v39  ;;  %v14539_v7 = vld [vmem:[#allocation2 + $0x141] sm:$0xff] }
 0x171   : > { %19671 = vst [vmem:[#allocation28_spill] sm:$0xff] %v14528_v54 }
 0x172   : > { %12184 = vmatmul.msk.f32.gmra.mxu0 %vm524_vm0, %v14524_v6  ;;  %v1249_v32 = vpop.f32.mrf.mxu2  ;;  %v1458_v0 = vpop.f32.mrf.mxu3  ;;  %19674 = vst [vmem:[#allocation31_spill] sm:$0xff] %v14539_v7 }
 0x173   : > { %v1459_v14 = vadd.f32 %v1458_v0, %v1249_v32  ;;  %12217 = vmatmul.msk.f32.gmra.mxu1 %vm524_vm0, %v14533_v39  ;;  %v14545_v0 = vld [vmem:[#allocation2 + $0x142] sm:$0xff] }
 0x174   : > { %19675 = vst [vmem:[#allocation32_spill] sm:$0xff] %v14545_v0 }
 0x175   : > { %v14537_v50 = vadd.f32 %v1702_v34, %v1459_v14  ;;  %v14551_v14 = vld [vmem:[#allocation2 + $0x150] sm:$0xff] }
 0x176   : > { %19677 = vst [vmem:[#allocation34_spill] sm:$0xff] %v14551_v14 }
 0x177   : > { %19673 = vst [vmem:[#allocation30_spill] sm:$0xff] %v14537_v50  ;;  %v1705_v6 = vpop.f32.mrf.mxu0  ;;  %12119 = vmatmul.msk.f32.gmra.mxu2 %vm524_vm0, %v14539_v7  ;;  %12151 = vmatmul.msk.f32.gmra.mxu3 %vm524_vm0, %v14533_v39  ;;  %v14557_v7 = vld [vmem:[#allocation2 + $0x151] sm:$0xff] }
 0x178   : > { %v14549_v37 = vpop.f32.mrf.mxu1  ;;  %19679 = vst [vmem:[#allocation36_spill] sm:$0xff] %v14557_v7 }
 0x179   : > { %19676 = vst [vmem:[#allocation33_spill] sm:$0xff] %v14549_v37 }
 0x17a   : > { %12185 = vmatmul.msk.f32.gmra.mxu0 %vm524_vm0, %v14545_v0  ;;  %v1252_v32 = vpop.f32.mrf.mxu2  ;;  %v1461_v54 = vpop.f32.mrf.mxu3  ;;  %v14563_v0 = vld [vmem:[#allocation2 + $0x152] sm:$0xff] }
 0x17b   : > { %v1462_v34 = vadd.f32 %v1461_v54, %v1252_v32  ;;  %12218 = vmatmul.msk.f32.gmra.mxu1 %vm524_vm0, %v14551_v14  ;;  %19680 = vst [vmem:[#allocation37_spill] sm:$0xff] %v14563_v0 }
 0x17d   : > { %v14555_v50 = vadd.f32 %v1705_v6, %v1462_v34  ;;  %v3687_v34 = vld [vmem:[%s19437_s8 + $0x8] sm:$0xff] }
 0x17e   : > { %3706 = vmatpush.msrb.mxu3 %v3687_v34 }
 0x17f   : > { %19678 = vst [vmem:[#allocation35_spill] sm:$0xff] %v14555_v50  ;;  %v1708_v39 = vpop.f32.mrf.mxu0  ;;  %12120 = vmatmul.msk.f32.gmra.mxu2 %vm524_vm0, %v14557_v7  ;;  %12152 = vmatmul.msk.f32.gmra.mxu3 %vm524_vm0, %v14551_v14  ;;  %v14572_v50 = vld [vmem:[#allocation2 + $0x158] sm:$0xff] }
 0x180   : > { %v14567_v32 = vpop.f32.mrf.mxu1  ;;  %19682 = vst [vmem:[#allocation39_spill] sm:$0xff] %v14572_v50  ;;  %v14578_v14 = vld [vmem:[#allocation2 + $0x159] sm:$0xff] }
 0x181   : > { %19681 = vst [vmem:[#allocation38_spill] sm:$0xff] %v14567_v32  ;;  %v12326_v32 = vld [vmem:[%s19435_s6 + $0x70] sm:$0xff] }
 0x182   : > { %12186 = vmatmul.msk.f32.gmra.mxu0 %vm524_vm0, %v14563_v0  ;;  %v1255_v54 = vpop.f32.mrf.mxu2  ;;  %v1464_v37 = vpop.f32.mrf.mxu3  ;;  %19684 = vst [vmem:[#allocation41_spill] sm:$0xff] %v14578_v14  ;;  %3051 = vmatpush.msra.mxu1 %v12326_v32  ;;  %v14599_v32 = vld [vmem:[#allocation2 + $0x169] sm:$0xff] }
 0x183   : > { %v1465_v6 = vadd.f32 %v1464_v37, %v1255_v54  ;;  %12219 = vmatmul.msk.f32.gmra.mxu1 %vm524_vm0, %v14572_v50  ;;  %v14587_v37 = vld [vmem:[#allocation2 + $0x15a] sm:$0xff]  ;;  %19689 = vst [vmem:[#allocation46_spill] sm:$0xff] %v14599_v32 }
 0x184   : > { %19685 = vst [vmem:[#allocation42_spill] sm:$0xff] %v14587_v37 }
 0x185   : > { %v14576_v7 = vadd.f32 %v1708_v39, %v1465_v6 }
 0x187   : > { %19683 = vst [vmem:[#allocation40_spill] sm:$0xff] %v14576_v7  ;;  %v1711_v0 = vpop.f32.mrf.mxu0  ;;  %12121 = vmatmul.msk.f32.gmra.mxu2 %vm524_vm0, %v14578_v14  ;;  %12153 = vmatmul.msk.f32.gmra.mxu3 %vm524_vm0, %v14572_v50  ;;  %v14593_v7 = vld [vmem:[#allocation2 + $0x168] sm:$0xff] }
 0x188   : > { %v14591_v54 = vpop.f32.mrf.mxu1  ;;  %19687 = vst [vmem:[#allocation44_spill] sm:$0xff] %v14593_v7 }
 0x189   : > { %19686 = vst [vmem:[#allocation43_spill] sm:$0xff] %v14591_v54 }
 0x18a   : > { %12187 = vmatmul.msk.f32.gmra.mxu0 %vm524_vm0, %v14587_v37  ;;  %v1258_v39 = vpop.f32.mrf.mxu2  ;;  %v1467_v6 = vpop.f32.mrf.mxu3  ;;  %v14605_v37 = vld [vmem:[#allocation2 + $0x16a] sm:$0xff] }
 0x18b   : > { %v1468_v34 = vadd.f32 %v1467_v6, %v1258_v39  ;;  %12220 = vmatmul.msk.f32.gmra.mxu1 %vm524_vm0, %v14593_v7  ;;  %19690 = vst [vmem:[#allocation47_spill] sm:$0xff] %v14605_v37 }
 0x18d   : > { %v14597_v14 = vadd.f32 %v1711_v0, %v1468_v34  ;;  %v14611_v34 = vld [vmem:[#allocation2 + $0x170] sm:$0xff] }
 0x18e   : > { %19692 = vst [vmem:[#allocation49_spill] sm:$0xff] %v14611_v34 }
 0x18f   : > { %19688 = vst [vmem:[#allocation45_spill] sm:$0xff] %v14597_v14  ;;  %v1714_v50 = vpop.f32.mrf.mxu0  ;;  %12122 = vmatmul.msk.f32.gmra.mxu2 %vm524_vm0, %v14599_v32  ;;  %12154 = vmatmul.msk.f32.gmra.mxu3 %vm524_vm0, %v14593_v7  ;;  %v14617_v32 = vld [vmem:[#allocation2 + $0x171] sm:$0xff] }
 0x190   : > { %v14609_v6 = vpop.f32.mrf.mxu1  ;;  %19694 = vst [vmem:[#allocation51_spill] sm:$0xff] %v14617_v32 }
 0x191   : > { %19691 = vst [vmem:[#allocation48_spill] sm:$0xff] %v14609_v6 }
 0x192   : > { %12188 = vmatmul.msk.f32.gmra.mxu0 %vm524_vm0, %v14605_v37  ;;  %v1261_v39 = vpop.f32.mrf.mxu2  ;;  %v1470_v54 = vpop.f32.mrf.mxu3  ;;  %v14623_v37 = vld [vmem:[#allocation2 + $0x172] sm:$0xff] }
 0x193   : > { %v1471_v0 = vadd.f32 %v1470_v54, %v1261_v39  ;;  %12221 = vmatmul.msk.f32.gmra.mxu1 %vm524_vm0, %v14611_v34  ;;  %19695 = vst [vmem:[#allocation52_spill] sm:$0xff] %v14623_v37 }
 0x195   : > { %v14615_v14 = vadd.f32 %v1714_v50, %v1471_v0  ;;  %v14629_v0 = vld [vmem:[#allocation2 + $0x180] sm:$0xff] }
 0x196   : > { %19697 = vst [vmem:[#allocation54_spill] sm:$0xff] %v14629_v0 }
 0x197   : > { %19693 = vst [vmem:[#allocation50_spill] sm:$0xff] %v14615_v14  ;;  %v1717_v7 = vpop.f32.mrf.mxu0  ;;  %12123 = vmatmul.msk.f32.gmra.mxu2 %vm524_vm0, %v14617_v32  ;;  %12155 = vmatmul.msk.f32.gmra.mxu3 %vm524_vm0, %v14611_v34  ;;  %v2076_v32 = vld [vmem:[#allocation2 + $0x19] sm:$0xff] }
 0x198   : > { %v14627_v39 = vpop.f32.mrf.mxu1  ;;  %v2352_v34 = vld [vmem:[#allocation2 + $0x1a] sm:$0xff] }
 0x199   : > { %19696 = vst [vmem:[#allocation53_spill] sm:$0xff] %v14627_v39 }
 0x19a   : > { %12189 = vmatmul.msk.f32.gmra.mxu0 %vm524_vm0, %v14623_v37  ;;  %v1264_v54 = vpop.f32.mrf.mxu2  ;;  %v1473_v6 = vpop.f32.mrf.mxu3  ;;  %v2629_v37 = vld [vmem:[#allocation2 + $0x30] sm:$0xff] }
 0x19b   : > { %v1474_v50 = vadd.f32 %v1473_v6, %v1264_v54  ;;  %12222 = vmatmul.msk.f32.gmra.mxu1 %vm524_vm0, %v14629_v0  ;;  %v2905_v0 = vld [vmem:[#allocation2 + $0x31] sm:$0xff] }
 0x19d   : > { %v14633_v14 = vadd.f32 %v1717_v7, %v1474_v50  ;;  %v2077_v50 = vld [vmem:[#allocation2 + $0x21] sm:$0xff] }
 0x19f   : > { %19698 = vst [vmem:[#allocation55_spill] sm:$0xff] %v14633_v14  ;;  %v1720_v22 = vpop.f32.mrf.mxu0  ;;  %12226 = vmatmul.msk.f32.vlgmr.msra.gmra.mxu2 %vm524_vm0, %v2076_v32  ;;  %12260 = vmatmul.msk.f32.vlgmr.msra.gmra.mxu3 %vm524_vm0, %v2352_v34  ;;  %v2353_v34 = vld [vmem:[#allocation2 + $0x22] sm:$0xff] }
 0x1a0   : > { %v14638_v46 = vpop.f32.mrf.mxu1 }
 0x1a1   : > { %19699 = vst [vmem:[#allocation56_spill] sm:$0xff] %v14638_v46 }
 0x1a2   : > { %12294 = vmatmul.msk.f32.vlgmr.msra.gmra.mxu0 %vm524_vm0, %v2629_v37  ;;  %v1267_v39 = vpop.f32.mrf.mxu2  ;;  %v1476_v6 = vpop.f32.mrf.mxu3  ;;  %v2630_v37 = vld [vmem:[#allocation2 + $0x38] sm:$0xff] }
 0x1a3   : > { %v1477_v54 = vadd.f32 %v1476_v6, %v1267_v39  ;;  %12223 = vmatmul.msk.f32.gmra.mxu1 %vm524_vm0, %v14640_v53 }
 0x1a5   : > { %v14644_v7 = vadd.f32 %v1720_v22, %v1477_v54 }
 0x1a7   : > { %19700 = vst [vmem:[#allocation57_spill] sm:$0xff] %v14644_v7  ;;  %v1723_v32 = vpop.f32.mrf.mxu0  ;;  %12227 = vmatmul.msk.f32.gmra.mxu2 %vm524_vm0, %v2077_v50  ;;  %12261 = vmatmul.msk.f32.gmra.mxu3 %vm524_vm0, %v2353_v34  ;;  %v14655_v50 = vld [vmem:[#allocation2 + $0x32] sm:$0xff]  ;;  %v2631_v34 = vld [vmem:[#allocation2 + $0x48] sm:$0xff] }
 0x1a8   : > { %v14649_v39 = vpop.f32.mrf.mxu1  ;;  %19703 = vst [vmem:[#allocation60_spill] sm:$0xff] %v14655_v50 }
 0x1a9   : > { %19701 = vst [vmem:[#allocation58_spill] sm:$0xff] %v14649_v39 }
 0x1aa   : > { %12295 = vmatmul.msk.f32.gmra.mxu0 %vm524_vm0, %v2630_v37  ;;  %v1270_v46 = vpop.f32.mrf.mxu2  ;;  %v1479_v14 = vpop.f32.mrf.mxu3 }
 0x1ab   : > { %v1480_v6 = vadd.f32 %v1479_v14, %v1270_v46  ;;  %12328 = vmatmul.msk.f32.vlgmr.msra.gmra.mxu1 %vm524_vm0, %v2905_v0  ;;  %v2906_v46 = vld [vmem:[#allocation2 + $0x39] sm:$0xff] }
 0x1ad   : > { %v14652_v22 = vadd.f32 %v1723_v32, %v1480_v6 }
 0x1af   : > { %19702 = vst [vmem:[#allocation59_spill] sm:$0xff] %v14652_v22  ;;  %v1726_v54 = vpop.f32.mrf.mxu0  ;;  %12228 = vmatmul.msk.f32.gmra.mxu2 %vm524_vm0, %v2905_v0  ;;  %12262 = vmatmul.msk.f32.gmra.mxu3 %vm524_vm0, %v14655_v50  ;;  %v14666_v0 = vld [vmem:[#allocation2 + $0x3a] sm:$0xff]  ;;  %v2632_v22 = vld [vmem:[#allocation2 + $0x50] sm:$0xff] }
 0x1b0   : > { %v14660_v14 = vpop.f32.mrf.mxu1  ;;  %19706 = vst [vmem:[#allocation63_spill] sm:$0xff] %v14666_v0  ;;  %v2907_v50 = vld [vmem:[#allocation2 + $0x49] sm:$0xff] }
 0x1b1   : > { %19704 = vst [vmem:[#allocation61_spill] sm:$0xff] %v14660_v14 }
 0x1b2   : > { %12296 = vmatmul.msk.f32.gmra.mxu0 %vm524_vm0, %v2631_v34  ;;  %v1273_v37 = vpop.f32.mrf.mxu2  ;;  %v1482_v7 = vpop.f32.mrf.mxu3 }
 0x1b3   : > { %v1483_v39 = vadd.f32 %v1482_v7, %v1273_v37  ;;  %12329 = vmatmul.msk.f32.gmra.mxu1 %vm524_vm0, %v2906_v46 }
 0x1b5   : > { %v14663_v32 = vadd.f32 %v1726_v54, %v1483_v39  ;;  %v14675_v54 = vld [vmem:[#allocation2 + $0x4a] sm:$0xff] }
 0x1b6   : > { %19708 = vst [vmem:[#allocation65_spill] sm:$0xff] %v14675_v54 }
 0x1b7   : > { %19705 = vst [vmem:[#allocation62_spill] sm:$0xff] %v14663_v32  ;;  %v1729_v6 = vpop.f32.mrf.mxu0  ;;  %12229 = vmatmul.msk.f32.gmra.mxu2 %vm524_vm0, %v2906_v46  ;;  %12263 = vmatmul.msk.f32.gmra.mxu3 %vm524_vm0, %v14666_v0  ;;  %v2633_v32 = vld [vmem:[#allocation2 + $0x60] sm:$0xff]  ;;  %v2908_v0 = vld [vmem:[#allocation2 + $0x51] sm:$0xff] }
 0x1b8   : > { %v14677_v46 = vpop.f32.mrf.mxu1 }
 0x1b9   : > { %19709 = vst [vmem:[#allocation66_spill] sm:$0xff] %v14677_v46 }
 0x1ba   : > { %12297 = vmatmul.msk.f32.gmra.mxu0 %vm524_vm0, %v2632_v22  ;;  %v1276_v34 = vpop.f32.mrf.mxu2  ;;  %v1485_v7 = vpop.f32.mrf.mxu3 }
 0x1bb   : > { %v1486_v37 = vadd.f32 %v1485_v7, %v1276_v34  ;;  %12330 = vmatmul.msk.f32.gmra.mxu1 %vm524_vm0, %v2907_v50 }
 0x1bd   : > { %v14672_v14 = vadd.f32 %v1729_v6, %v1486_v37 }
 0x1bf   : > { %19707 = vst [vmem:[#allocation64_spill] sm:$0xff] %v14672_v14  ;;  %v1732_v39 = vpop.f32.mrf.mxu0  ;;  %12230 = vmatmul.msk.f32.gmra.mxu2 %vm524_vm0, %v2907_v50  ;;  %12264 = vmatmul.msk.f32.gmra.mxu3 %vm524_vm0, %v14675_v54  ;;  %v14686_v50 = vld [vmem:[#allocation2 + $0x52] sm:$0xff]  ;;  %v2634_v14 = vld [vmem:[#allocation2 + $0x68] sm:$0xff] }
 0x1c0   : > { %v14690_v46 = vpop.f32.mrf.mxu1  ;;  %v2909_v54 = vld [vmem:[#allocation2 + $0x61] sm:$0xff] }
 0x1c1   : > { %19711 = vst [vmem:[#allocation68_spill] sm:$0xff] %v14690_v46 }
 0x1c2   : > { %12298 = vmatmul.msk.f32.gmra.mxu0 %vm524_vm0, %v2633_v32  ;;  %v1279_v22 = vpop.f32.mrf.mxu2  ;;  %v1488_v34 = vpop.f32.mrf.mxu3 }
 0x1c3   : > { %v1489_v7 = vadd.f32 %v1488_v34, %v1279_v22  ;;  %12331 = vmatmul.msk.f32.gmra.mxu1 %vm524_vm0, %v2908_v0 }
 0x1c5   : > { %v14683_v6 = vadd.f32 %v1732_v39, %v1489_v7 }
 0x1c7   : > { %19710 = vst [vmem:[#allocation67_spill] sm:$0xff] %v14683_v6  ;;  %v1735_v37 = vpop.f32.mrf.mxu0  ;;  %12231 = vmatmul.msk.f32.gmra.mxu2 %vm524_vm0, %v2908_v0  ;;  %12265 = vmatmul.msk.f32.gmra.mxu3 %vm524_vm0, %v14686_v50  ;;  %v14697_v0 = vld [vmem:[#allocation2 + $0x62] sm:$0xff] }
 0x1c8   : > { %v14703_v46 = vpop.f32.mrf.mxu1 }
 0x1c9   : > { %19713 = vst [vmem:[#allocation70_spill] sm:$0xff] %v14703_v46 }
 0x1ca   : > { %12299 = vmatmul.msk.f32.gmra.mxu0 %vm524_vm0, %v2634_v14  ;;  %v1282_v32 = vpop.f32.mrf.mxu2  ;;  %v1491_v22 = vpop.f32.mrf.mxu3 }
 0x1cb   : > { %v1492_v34 = vadd.f32 %v1491_v22, %v1282_v32  ;;  %12332 = vmatmul.msk.f32.gmra.mxu1 %vm524_vm0, %v2909_v54  ;;  %v2910_v22 = vld [vmem:[#allocation2 + $0x69] sm:$0xff] }
 0x1cd   : > { %v14694_v39 = vadd.f32 %v1735_v37, %v1492_v34 }
 0x1cf   : > { %19712 = vst [vmem:[#allocation69_spill] sm:$0xff] %v14694_v39  ;;  %v1738_v7 = vpop.f32.mrf.mxu0  ;;  %12232 = vmatmul.msk.f32.gmra.mxu2 %vm524_vm0, %v2909_v54  ;;  %12266 = vmatmul.msk.f32.gmra.mxu3 %vm524_vm0, %v14697_v0  ;;  %v14709_v54 = vld [vmem:[#allocation2 + $0x6a] sm:$0xff] }
 0x1d2   : > { %12300 = vmatmul.msk.f32.gmra.mxu0 %vm524_vm0, %v14175_v8  ;;  %v1285_v14 = vpop.f32.mrf.mxu2  ;;  %v1494_v6 = vpop.f32.mrf.mxu3 }
 0x1d3   : > { %v1495_v32 = vadd.f32 %v1494_v6, %v1285_v14  ;;  %12333 = vmatmul.msk.f32.gmra.mxu1 %vm524_vm0, %v2910_v22  ;;  %v14715_v6 = vpop.f32.mrf.mxu1  ;;  %v2084_v14 = vld [vmem:[#allocation2 + $0x79] sm:$0xff] }
 0x1d5   : > { %v14706_v37 = vadd.f32 %v1738_v7, %v1495_v32 }
 0x1d7   : > { %v1741_v34 = vpop.f32.mrf.mxu0  ;;  %12233 = vmatmul.msk.f32.gmra.mxu2 %vm524_vm0, %v2910_v22  ;;  %12267 = vmatmul.msk.f32.gmra.mxu3 %vm524_vm0, %v14709_v54 }
 0x1da   : > { %12301 = vmatmul.msk.f32.gmra.mxu0 %vm524_vm0, %v14202_v24  ;;  %v1288_v8 = vpop.f32.mrf.mxu2  ;;  %v1497_v39 = vpop.f32.mrf.mxu3 }
 0x1db   : > { %v1498_v46 = vadd.f32 %v1497_v39, %v1288_v8  ;;  %12334 = vmatmul.msk.f32.gmra.mxu1 %vm524_vm0, %v14179_v13  ;;  %v12361_v13 = vld [vmem:[%s19435_s6 + $0x88] sm:$0xff] }
 0x1dc   : > { %3326 = vmatpush.msrb.mxu2 %v12361_v13 }
 0x1dd   : > { %v14719_v7 = vadd.f32 %v1741_v34, %v1498_v46 }
 0x1df   : > { %v1744_v32 = vpop.f32.mrf.mxu0  ;;  %12234 = vmatmul.msk.f32.gmra.mxu2 %vm524_vm0, %v2084_v14  ;;  %12268 = vmatmul.msk.f32.gmra.mxu3 %vm524_vm0, %v14192_v21  ;;  %v14735_v21 = vpop.f32.mrf.mxu1 }
 0x1e2   : > { %12302 = vmatmul.msk.f32.gmra.mxu0 %vm524_vm0, %v14226_v40  ;;  %v1291_v24 = vpop.f32.mrf.mxu2  ;;  %v1500_v22 = vpop.f32.mrf.mxu3 }
 0x1e3   : > { %v1501_v39 = vadd.f32 %v1500_v22, %v1291_v24  ;;  %12335 = vmatmul.msk.f32.gmra.mxu1 %vm524_vm0, %v14206_v29 }
 0x1e5   : > { %v14728_v8 = vadd.f32 %v1744_v32, %v1501_v39  ;;  %v12426_v39 = vld [vmem:[%s19439_s10 + $0x8] sm:$0xff] }
 0x1e6   : > { %4110 = vmatpush.msrb.mxu0 %v12426_v39 }
 0x1e7   : > { %v1747_v46 = vpop.f32.mrf.mxu0  ;;  %12235 = vmatmul.msk.f32.gmra.mxu2 %vm524_vm0, %v14206_v29  ;;  %12269 = vmatmul.msk.f32.gmra.mxu3 %vm524_vm0, %v14220_v38  ;;  %v14749_v29 = vpop.f32.mrf.mxu1 }
 0x1ea   : > { %12303 = vmatmul.msk.f32.gmra.mxu0 %vm524_vm0, %v14253_v58  ;;  %v1294_v40 = vpop.f32.mrf.mxu2  ;;  %v1503_v34 = vpop.f32.mrf.mxu3 }
 0x1eb   : > { %v1504_v14 = vadd.f32 %v1503_v34, %v1294_v40  ;;  %12336 = vmatmul.msk.f32.gmra.mxu1 %vm524_vm0, %v14230_v45 }
 0x1ed   : > { %v14743_v32 = vadd.f32 %v1747_v46, %v1504_v14 }
 0x1ef   : > { %v1750_v24 = vpop.f32.mrf.mxu0  ;;  %12236 = vmatmul.msk.f32.gmra.mxu2 %vm524_vm0, %v14230_v45  ;;  %12270 = vmatmul.msk.f32.gmra.mxu3 %vm524_vm0, %v14243_v55  ;;  %v14766_v46 = vpop.f32.mrf.mxu1 }
 0x1f2   : > { %12304 = vmatmul.msk.f32.gmra.mxu0 %vm524_vm0, %v14280_v11  ;;  %v1297_v38 = vpop.f32.mrf.mxu2  ;;  %v1506_v58 = vpop.f32.mrf.mxu3 }
 0x1f3   : > { %v1507_v22 = vadd.f32 %v1506_v58, %v1297_v38  ;;  %12337 = vmatmul.msk.f32.gmra.mxu1 %vm524_vm0, %v14257_v63 }
 0x1f5   : > { %v14758_v45 = vadd.f32 %v1750_v24, %v1507_v22  ;;  %v3686_v24 = vld [vmem:[%s19437_s8] sm:$0xff] }
 0x1f6   : > { %3707 = vmatpush.msrb.mxu3 %v3686_v24 }
 0x1f7   : > { %v1753_v13 = vpop.f32.mrf.mxu0  ;;  %12237 = vmatmul.msk.f32.gmra.mxu2 %vm524_vm0, %v14257_v63  ;;  %12271 = vmatmul.msk.f32.gmra.mxu3 %vm524_vm0, %v14274_v9  ;;  %v14781_v38 = vpop.f32.mrf.mxu1 }
 0x1fa   : > { %12305 = vmatmul.msk.f32.gmra.mxu0 %vm524_vm0, %v14304_v30  ;;  %v1300_v55 = vpop.f32.mrf.mxu2  ;;  %v1509_v11 = vpop.f32.mrf.mxu3 }
 0x1fb   : > { %v1510_v40 = vadd.f32 %v1509_v11, %v1300_v55  ;;  %12338 = vmatmul.msk.f32.gmra.mxu1 %vm524_vm0, %v14284_v17 }
 0x1fd   : > { %v14770_v34 = vadd.f32 %v1753_v13, %v1510_v40 }
 0x1ff   : > { %v1756_v14 = vpop.f32.mrf.mxu0  ;;  %12238 = vmatmul.msk.f32.gmra.mxu2 %vm524_vm0, %v14284_v17  ;;  %12272 = vmatmul.msk.f32.gmra.mxu3 %vm524_vm0, %v14297_v27  ;;  %v3964_v27 = vld [vmem:[%s19439_s10] sm:$0xff] }
 0x200   : > { %4319 = vmatpush.msrb.mxu1 %v3964_v27 }
 0x202   : > { %12306 = vmatmul.msk.f32.gmra.mxu0 %vm524_vm0, %v14328_v51  ;;  %v1303_v63 = vpop.f32.mrf.mxu2  ;;  %v1512_v9 = vpop.f32.mrf.mxu3 }
 0x203   : > { %v1513_v30 = vadd.f32 %v1512_v9, %v1303_v63  ;;  %12339 = vmatmul.msk.f32.gmra.mxu1 %vm524_vm0, %v14308_v36 }
 0x205   : > { %v14785_v17 = vadd.f32 %v1756_v14, %v1513_v30 }
 0x207   : > { %v1759_v51 = vpop.f32.mrf.mxu0  ;;  %12239 = vmatmul.msk.f32.gmra.mxu2 %vm524_vm0, %v14308_v36  ;;  %12273 = vmatmul.msk.f32.gmra.mxu3 %vm524_vm0, %v14322_v49  ;;  %v14802_v36 = vpop.f32.mrf.mxu1 }
 0x20a   : > { %12307 = vmatmul.msk.f32.gmra.mxu0 %vm524_vm0, %v14347_v61  ;;  %v1306_v58 = vpop.f32.mrf.mxu2  ;;  %v1515_v22 = vpop.f32.mrf.mxu3 }
 0x20b   : > { %v1516_v39 = vadd.f32 %v1515_v22, %v1306_v58  ;;  %12340 = vmatmul.msk.f32.gmra.mxu1 %vm524_vm0, %v14332_v56 }
 0x20d   : > { %v14798_v13 = vadd.f32 %v1759_v51, %v1516_v39 }
 0x20f   : > { %v1762_v55 = vpop.f32.mrf.mxu0  ;;  %12240 = vmatmul.msk.f32.gmra.mxu2 %vm524_vm0, %v14332_v56  ;;  %12274 = vmatmul.msk.f32.gmra.mxu3 %vm524_vm0, %v14343_v48  ;;  %v14816_v56 = vpop.f32.mrf.mxu1 }
 0x212   : > { %12308 = vmatmul.msk.f32.gmra.mxu0 %vm524_vm0, %v14365_v12  ;;  %v1309_v49 = vpop.f32.mrf.mxu2  ;;  %v1518_v61 = vpop.f32.mrf.mxu3 }
 0x213   : > { %v1519_v11 = vadd.f32 %v1518_v61, %v1309_v49  ;;  %12341 = vmatmul.msk.f32.gmra.mxu1 %vm524_vm0, %v14349_v1 }
 0x215   : > { %v14810_v40 = vadd.f32 %v1762_v55, %v1519_v11 }
 0x217   : > { %v1765_v14 = vpop.f32.mrf.mxu0  ;;  %12241 = vmatmul.msk.f32.gmra.mxu2 %vm524_vm0, %v14349_v1  ;;  %12275 = vmatmul.msk.f32.gmra.mxu3 %vm524_vm0, %v14361_v5  ;;  %v2044_v1 = vadd.f32 %v14355_v4, %v14353_v3  ;;  %v14832_v27 = vpop.f32.mrf.mxu1  ;;  %v2045_v3 = vadd.f32 %v14377_v18, %v14369_v15  ;;  %v2046_v15 = vadd.f32 %v14399_v35, %v14387_v28 }
 0x218   : > { %v2047_v28 = vadd.f32 %v14417_v52, %v14405_v42  ;;  %v2048_v42 = vadd.f32 %v14435_v2, %v14423_v59  ;;  %v19716_v59 = vld [vmem:[#allocation9_spill] sm:$0xff]  ;;  %v19717_v2 = vld [vmem:[#allocation10_spill] sm:$0xff] }
 0x21a   : > { %12309 = vmatmul.msk.f32.gmra.mxu0 %vm524_vm0, %v14383_v25  ;;  %v1312_v48 = vpop.f32.mrf.mxu2  ;;  %v1521_v12 = vpop.f32.mrf.mxu3 }
 0x21b   : > { %v1522_v63 = vadd.f32 %v1521_v12, %v1312_v48  ;;  %12342 = vmatmul.msk.f32.gmra.mxu1 %vm524_vm0, %v14371_v16 }
 0x21d   : > { %v14822_v9 = vadd.f32 %v1765_v14, %v1522_v63 }
 0x21f   : > { %v2777_v30 = vpop.f32.mrf.mxu0  ;;  %12242 = vmatmul.msk.f32.gmra.mxu2 %vm524_vm0, %v14371_v16  ;;  %12276 = vmatmul.msk.f32.gmra.mxu3 %vm524_vm0, %v14379_v19  ;;  %v14846_v39 = vpop.f32.mrf.mxu1 }
 0x222   : > { %12310 = vmatmul.msk.f32.gmra.mxu0 %vm524_vm0, %v14401_v41  ;;  %v2224_v5 = vpop.f32.mrf.mxu2  ;;  %v2500_v24 = vpop.f32.mrf.mxu3 }
 0x223   : > { %v2320_v25 = vadd.f32 %v2224_v5, %v2044_v1  ;;  %12343 = vmatmul.msk.f32.gmra.mxu1 %vm524_vm0, %v14389_v31  ;;  %v2049_v1 = vadd.f32 %v19717_v2, %v19716_v59  ;;  %v19729_v2 = vld [vmem:[#allocation26_spill] sm:$0xff] }
 0x225   : > { %v2596_v51 = vadd.f32 %v2500_v24, %v2320_v25 }
 0x227   : > { %v2780_v58 = vpop.f32.mrf.mxu0  ;;  %v14836_v16 = vadd.f32 %v2777_v30, %v2596_v51  ;;  %12243 = vmatmul.msk.f32.gmra.mxu2 %vm524_vm0, %v14389_v31  ;;  %12277 = vmatmul.msk.f32.gmra.mxu3 %vm524_vm0, %v14395_v33  ;;  %v19714_v30 = vld [vmem:[#allocation12_spill] sm:$0xff] }
 0x22a   : > { %12311 = vmatmul.msk.f32.gmra.mxu0 %vm524_vm0, %v14419_v57  ;;  %v2227_v4 = vpop.f32.mrf.mxu2  ;;  %v2503_v41 = vpop.f32.mrf.mxu3 }
 0x22b   : > { %v2321_v19 = vadd.f32 %v2227_v4, %v2045_v3  ;;  %12344 = vmatmul.msk.f32.gmra.mxu1 %vm524_vm0, %v14407_v43  ;;  %v19719_v4 = vld [vmem:[#allocation16_spill] sm:$0xff] }
 0x22d   : > { %v2597_v22 = vadd.f32 %v2503_v41, %v2321_v19  ;;  %v19720_v41 = vld [vmem:[#allocation17_spill] sm:$0xff] }
 0x22f   : > { %v2783_v55 = vpop.f32.mrf.mxu0  ;;  %v14850_v31 = vadd.f32 %v2780_v58, %v2597_v22  ;;  %12244 = vmatmul.msk.f32.gmra.mxu2 %vm524_vm0, %v14407_v43  ;;  %12278 = vmatmul.msk.f32.gmra.mxu3 %vm524_vm0, %v14413_v47  ;;  %v14866_v43 = vpop.f32.mrf.mxu1  ;;  %v19721_v22 = vld [vmem:[#allocation11_spill] sm:$0xff] }
 0x232   : > { %12312 = vmatmul.msk.f32.gmra.mxu0 %vm524_vm0, %v14437_v10  ;;  %v2230_v18 = vpop.f32.mrf.mxu2  ;;  %v2506_v57 = vpop.f32.mrf.mxu3 }
 0x233   : > { %v2322_v33 = vadd.f32 %v2230_v18, %v2046_v15  ;;  %12345 = vmatmul.msk.f32.gmra.mxu1 %vm524_vm0, %v14425_v60  ;;  %v19723_v18 = vld [vmem:[#allocation24_spill] sm:$0xff] }
 0x235   : > { %v2598_v49 = vadd.f32 %v2506_v57, %v2322_v33 }
 0x237   : > { %v2786_v61 = vpop.f32.mrf.mxu0  ;;  %v14862_v11 = vadd.f32 %v2783_v55, %v2598_v49  ;;  %12245 = vmatmul.msk.f32.gmra.mxu2 %vm524_vm0, %v14425_v60  ;;  %12279 = vmatmul.msk.f32.gmra.mxu3 %vm524_vm0, %v14431_v62  ;;  %v14884_v52 = vpop.f32.mrf.mxu1  ;;  %v19722_v55 = vld [vmem:[#allocation14_spill] sm:$0xff] }
 0x238   : > { %v2050_v15 = vadd.f32 %v19722_v55, %v19721_v22 }
 0x23a   : > { %12313 = vmatmul.msk.f32.gmra.mxu0 %vm524_vm0, %v14455_v44  ;;  %v2233_v35 = vpop.f32.mrf.mxu2  ;;  %v2509_v10 = vpop.f32.mrf.mxu3 }
 0x23b   : > { %v2323_v47 = vadd.f32 %v2233_v35, %v2047_v28  ;;  %12346 = vmatmul.msk.f32.gmra.mxu1 %vm524_vm0, %v14443_v20 }
 0x23d   : > { %v2599_v14 = vadd.f32 %v2509_v10, %v2323_v47  ;;  %v19724_v47 = vld [vmem:[#allocation21_spill] sm:$0xff] }
 0x23f   : > { %v14876_v48 = vadd.f32 %v2786_v61, %v2599_v14  ;;  %12246 = vmatmul.msk.f32.gmra.mxu2 %vm524_vm0, %v14443_v20  ;;  %v2789_v60 = vpop.f32.mrf.mxu0  ;;  %12280 = vmatmul.msk.f32.gmra.mxu3 %vm524_vm0, %v14449_v23  ;;  %v19715_v23 = vld [vmem:[#allocation13_spill] sm:$0xff]  ;;  %v14900_v58 = vpop.f32.mrf.mxu1  ;;  %v19725_v14 = vld [vmem:[#allocation22_spill] sm:$0xff] }
 0x242   : > { %12314 = vmatmul.msk.f32.gmra.mxu0 %vm524_vm0, %v14473_v26  ;;  %v2236_v62 = vpop.f32.mrf.mxu2  ;;  %v2512_v12 = vpop.f32.mrf.mxu3  ;;  %v19718_v26 = vld [vmem:[#allocation19_spill] sm:$0xff] }
 0x243   : > { %v2324_v44 = vadd.f32 %v2236_v62, %v2048_v42  ;;  %12347 = vmatmul.msk.f32.gmra.mxu1 %vm524_vm0, %v19714_v30  ;;  %v19727_v42 = vld [vmem:[#allocation18_spill] sm:$0xff] }
 0x245   : > { %v2600_v63 = vadd.f32 %v2512_v12, %v2324_v44  ;;  %v19728_v44 = vld [vmem:[#allocation29_spill] sm:$0xff] }
 0x247   : > { %v14890_v20 = vadd.f32 %v2789_v60, %v2600_v63  ;;  %12247 = vmatmul.msk.f32.gmra.mxu2 %vm524_vm0, %v19714_v30  ;;  %12281 = vmatmul.msk.f32.gmra.mxu3 %vm524_vm0, %v19715_v23  ;;  %v2792_v5 = vpop.f32.mrf.mxu0  ;;  %v14914_v35 = vpop.f32.mrf.mxu1  ;;  %v19726_v60 = vld [vmem:[#allocation15_spill] sm:$0xff] }
 0x248   : > { %v2051_v62 = vadd.f32 %v19727_v42, %v19726_v60 }
 0x24a   : > { %12315 = vmatmul.msk.f32.gmra.mxu0 %vm524_vm0, %v19718_v26  ;;  %v2239_v25 = vpop.f32.mrf.mxu2  ;;  %v2515_v51 = vpop.f32.mrf.mxu3  ;;  %v19730_v26 = vld [vmem:[#allocation27_spill] sm:$0xff] }
 0x24b   : > { %v2325_v24 = vadd.f32 %v2239_v25, %v2049_v1  ;;  %12348 = vmatmul.msk.f32.gmra.mxu1 %vm524_vm0, %v19719_v4  ;;  %v19731_v25 = vld [vmem:[#allocation20_spill] sm:$0xff] }
 0x24d   : > { %v2601_v3 = vadd.f32 %v2515_v51, %v2325_v24  ;;  %v19732_v24 = vld [vmem:[#allocation23_spill] sm:$0xff] }
 0x24e   : > { %v2052_v51 = vadd.f32 %v19732_v24, %v19731_v25 }
 0x24f   : > { %v14904_v19 = vadd.f32 %v2792_v5, %v2601_v3  ;;  %12248 = vmatmul.msk.f32.gmra.mxu2 %vm524_vm0, %v19719_v4  ;;  %12282 = vmatmul.msk.f32.gmra.mxu3 %vm524_vm0, %v19720_v41  ;;  %v2795_v61 = vpop.f32.mrf.mxu0  ;;  %v14934_v5 = vpop.f32.mrf.mxu1  ;;  %v19733_v3 = vld [vmem:[#allocation34_spill] sm:$0xff] }
 0x252   : > { %12316 = vmatmul.msk.f32.gmra.mxu0 %vm524_vm0, %v19723_v18  ;;  %v2242_v33 = vpop.f32.mrf.mxu2  ;;  %v2518_v49 = vpop.f32.mrf.mxu3  ;;  %v12360_v18 = vld [vmem:[%s19435_s6 + $0x80] sm:$0xff] }
 0x253   : > { %v2326_v57 = vadd.f32 %v2242_v33, %v2050_v15  ;;  %12349 = vmatmul.msk.f32.gmra.mxu1 %vm524_vm0, %v19724_v47  ;;  %v19734_v15 = vld [vmem:[#allocation31_spill] sm:$0xff]  ;;  %v19735_v33 = vld [vmem:[#allocation32_spill] sm:$0xff]  ;;  %3327 = vmatpush.msrb.mxu2 %v12360_v18  ;;  %v19748_v18 = vld [vmem:[#allocation49_spill] sm:$0xff] }
 0x255   : > { %v2602_v28 = vadd.f32 %v2518_v49, %v2326_v57  ;;  %v19736_v57 = vld [vmem:[#allocation25_spill] sm:$0xff]  ;;  %v19737_v49 = vld [vmem:[#allocation28_spill] sm:$0xff] }
 0x257   : > { %v14918_v10 = vadd.f32 %v2795_v61, %v2602_v28  ;;  %12249 = vmatmul.msk.f32.gmra.mxu2 %vm524_vm0, %v19724_v47  ;;  %12283 = vmatmul.msk.f32.gmra.mxu3 %vm524_vm0, %v19725_v14  ;;  %v2798_v59 = vpop.f32.mrf.mxu0  ;;  %v2053_v61 = vadd.f32 %v19737_v49, %v19736_v57  ;;  %v14955_v28 = vpop.f32.mrf.mxu1  ;;  %v19738_v47 = vld [vmem:[#allocation39_spill] sm:$0xff] }
 0x25a   : > { %12317 = vmatmul.msk.f32.gmra.mxu0 %vm524_vm0, %v19728_v44  ;;  %v2245_v12 = vpop.f32.mrf.mxu2  ;;  %v2521_v30 = vpop.f32.mrf.mxu3  ;;  %v19739_v44 = vld [vmem:[#allocation36_spill] sm:$0xff] }
 0x25b   : > { %v2327_v63 = vadd.f32 %v2245_v12, %v2051_v62  ;;  %12350 = vmatmul.msk.f32.gmra.mxu1 %vm524_vm0, %v19729_v2  ;;  %v19740_v12 = vld [vmem:[#allocation37_spill] sm:$0xff] }
 0x25d   : > { %v2603_v23 = vadd.f32 %v2521_v30, %v2327_v63  ;;  %v19741_v63 = vld [vmem:[#allocation30_spill] sm:$0xff]  ;;  %v19742_v30 = vld [vmem:[#allocation33_spill] sm:$0xff] }
 0x25f   : > { %v14930_v1 = vadd.f32 %v2798_v59, %v2603_v23  ;;  %12250 = vmatmul.msk.f32.gmra.mxu2 %vm524_vm0, %v19729_v2  ;;  %12284 = vmatmul.msk.f32.gmra.mxu3 %vm524_vm0, %v19730_v26  ;;  %v2054_v23 = vadd.f32 %v19742_v30, %v19741_v63  ;;  %v19743_v59 = vld [vmem:[#allocation44_spill] sm:$0xff]  ;;  %v14971_v24 = vpop.f32.mrf.mxu1  ;;  %v19753_v63 = vld [vmem:[#allocation54_spill] sm:$0xff] }
 0x262   : > { %12318 = vmatmul.msk.f32.gmra.mxu0 %vm524_vm0, %v19733_v3  ;;  %v2248_v4 = vpop.f32.mrf.mxu2  ;;  %v2524_v22 = vpop.f32.mrf.mxu3  ;;  %v19744_v3 = vld [vmem:[#allocation41_spill] sm:$0xff] }
 0x263   : > { %v2328_v41 = vadd.f32 %v2248_v4, %v2052_v51  ;;  %12351 = vmatmul.msk.f32.gmra.mxu1 %vm524_vm0, %v19734_v15  ;;  %v19745_v4 = vld [vmem:[#allocation42_spill] sm:$0xff] }
 0x265   : > { %v14942_v55 = vadd.f32 %v2524_v22, %v2328_v41  ;;  %v19746_v41 = vld [vmem:[#allocation35_spill] sm:$0xff]  ;;  %v19747_v22 = vld [vmem:[#allocation38_spill] sm:$0xff] }
 0x267   : > { %12251 = vmatmul.msk.f32.gmra.mxu2 %vm524_vm0, %v19734_v15  ;;  %12285 = vmatmul.msk.f32.gmra.mxu3 %vm524_vm0, %v19735_v33  ;;  %v2055_v15 = vadd.f32 %v19747_v22, %v19746_v41  ;;  %v19758_v41 = vld [vmem:[#allocation48_spill] sm:$0xff] }
 0x26a   : > { %12319 = vmatmul.msk.f32.gmra.mxu0 %vm524_vm0, %v19738_v47  ;;  %v2251_v14 = vpop.f32.mrf.mxu2  ;;  %v2527_v42 = vpop.f32.mrf.mxu3 }
 0x26b   : > { %v2329_v60 = vadd.f32 %v2251_v14, %v2053_v61  ;;  %12352 = vmatmul.msk.f32.gmra.mxu1 %vm524_vm0, %v19739_v44  ;;  %v14987_v47 = vpop.f32.mrf.mxu1  ;;  %v19749_v14 = vld [vmem:[#allocation46_spill] sm:$0xff] }
 0x26d   : > { %v14959_v62 = vadd.f32 %v2527_v42, %v2329_v60  ;;  %v19750_v60 = vld [vmem:[#allocation47_spill] sm:$0xff]  ;;  %v19751_v42 = vld [vmem:[#allocation40_spill] sm:$0xff] }
 0x26f   : > { %12252 = vmatmul.msk.f32.gmra.mxu2 %vm524_vm0, %v19739_v44  ;;  %12286 = vmatmul.msk.f32.gmra.mxu3 %vm524_vm0, %v19740_v12  ;;  %v19752_v44 = vld [vmem:[#allocation43_spill] sm:$0xff] }
 0x270   : > { %v2056_v12 = vadd.f32 %v19752_v44, %v19751_v42  ;;  %v19761_v42 = vld [vmem:[#allocation50_spill] sm:$0xff]  ;;  %v19762_v44 = vld [vmem:[#allocation53_spill] sm:$0xff] }
 0x272   : > { %12320 = vmatmul.msk.f32.gmra.mxu0 %vm524_vm0, %v19743_v59  ;;  %v2254_v2 = vpop.f32.mrf.mxu2  ;;  %v2530_v25 = vpop.f32.mrf.mxu3 }
 0x273   : > { %v2330_v26 = vadd.f32 %v2254_v2, %v2054_v23  ;;  %12353 = vmatmul.msk.f32.gmra.mxu1 %vm524_vm0, %v19744_v3 }
 0x275   : > { %v14973_v51 = vadd.f32 %v2530_v25, %v2330_v26  ;;  %v19755_v26 = vld [vmem:[#allocation51_spill] sm:$0xff]  ;;  %v15005_v25 = vpop.f32.mrf.mxu1 }
 0x277   : > { %12253 = vmatmul.msk.f32.gmra.mxu2 %vm524_vm0, %v19744_v3  ;;  %12287 = vmatmul.msk.f32.gmra.mxu3 %vm524_vm0, %v19745_v4  ;;  %v19756_v3 = vld [vmem:[#allocation52_spill] sm:$0xff]  ;;  %v19757_v4 = vld [vmem:[#allocation45_spill] sm:$0xff] }
 0x278   : > { %v2057_v22 = vadd.f32 %v19758_v41, %v19757_v4  ;;  %v2660_v4 = vld [vmem:[#allocation2 + $0x1a0] sm:$0xff] }
 0x279   : > { %v19765_v41 = vld [vmem:[#allocation55_spill] sm:$0xff] }
 0x27a   : > { %12321 = vmatmul.msk.f32.gmra.mxu0 %vm524_vm0, %v19748_v18  ;;  %v2257_v33 = vpop.f32.mrf.mxu2  ;;  %v2533_v49 = vpop.f32.mrf.mxu3 }
 0x27b   : > { %v2331_v57 = vadd.f32 %v2257_v33, %v2055_v15  ;;  %12354 = vmatmul.msk.f32.gmra.mxu1 %vm524_vm0, %v19749_v14 }
 0x27d   : > { %v14985_v61 = vadd.f32 %v2533_v49, %v2331_v57  ;;  %v2933_v57 = vld [vmem:[#allocation2 + $0x181] sm:$0xff] }
 0x27f   : > { %12254 = vmatmul.msk.f32.gmra.mxu2 %vm524_vm0, %v19749_v14  ;;  %12288 = vmatmul.msk.f32.gmra.mxu3 %vm524_vm0, %v19750_v60  ;;  %v15017_v14 = vld [vmem:[#allocation2 + $0x182] sm:$0xff]  ;;  %v2659_v60 = vld [vmem:[#allocation2 + $0x198] sm:$0xff] }
 0x280   : > { %19760 = vst [vmem:[#allocation9_spill] sm:$0xff] %v15017_v14 }
 0x282   : > { %12322 = vmatmul.msk.f32.gmra.mxu0 %vm524_vm0, %v19753_v63  ;;  %v2260_v30 = vpop.f32.mrf.mxu2  ;;  %v2536_v59 = vpop.f32.mrf.mxu3 }
 0x283   : > { %v2332_v23 = vadd.f32 %v2260_v30, %v2056_v12  ;;  %12355 = vmatmul.msk.f32.gmra.mxu1 %vm524_vm0, %v19755_v26  ;;  %v2058_v12 = vadd.f32 %v19762_v44, %v19761_v42 }
 0x285   : > { %v14999_v2 = vadd.f32 %v2536_v59, %v2332_v23  ;;  %v2934_v59 = vld [vmem:[#allocation2 + $0x189] sm:$0xff] }
 0x287   : > { %19754 = vst [vmem:[#allocation12_spill] sm:$0xff] %v14999_v2  ;;  %12255 = vmatmul.msk.f32.gmra.mxu2 %vm524_vm0, %v19755_v26  ;;  %12289 = vmatmul.msk.f32.gmra.mxu3 %vm524_vm0, %v19756_v3  ;;  %v15030_v3 = vld [vmem:[#allocation2 + $0x18a] sm:$0xff] }
 0x288   : > { %19764 = vst [vmem:[#allocation19_spill] sm:$0xff] %v15030_v3 }
 0x28a   : > { %12323 = vmatmul.msk.f32.gmra.mxu0 %vm524_vm0, %v14640_v53  ;;  %v2263_v15 = vpop.f32.mrf.mxu2  ;;  %v2539_v33 = vpop.f32.mrf.mxu3 }
 0x28b   : > { %v2333_v18 = vadd.f32 %v2263_v15, %v2057_v22  ;;  %12356 = vmatmul.msk.f32.gmra.mxu1 %vm524_vm0, %v2933_v57  ;;  %v15023_v53 = vpop.f32.mrf.mxu1  ;;  %v19766_v22 = vld [vmem:[#allocation56_spill] sm:$0xff] }
 0x28c   : > { %v2059_v15 = vadd.f32 %v19766_v22, %v19765_v41 }
 0x28d   : > { %v15013_v49 = vadd.f32 %v2539_v33, %v2333_v18 }
 0x28f   : > { %19759 = vst [vmem:[#allocation13_spill] sm:$0xff] %v15013_v49  ;;  %12256 = vmatmul.msk.f32.gmra.mxu2 %vm524_vm0, %v2933_v57  ;;  %12290 = vmatmul.msk.f32.gmra.mxu3 %vm524_vm0, %v15017_v14 }
 0x292   : > { %v2266_v63 = vpop.f32.mrf.mxu2  ;;  %12324 = vmatmul.msk.f32.gmra.mxu0 %vm524_vm0, %v2659_v60  ;;  %v2542_v23 = vpop.f32.mrf.mxu3  ;;  %v2935_v60 = vld [vmem:[#allocation2 + $0x199] sm:$0xff] }
 0x293   : > { %v2334_v30 = vadd.f32 %v2266_v63, %v2058_v12  ;;  %12357 = vmatmul.msk.f32.gmra.mxu1 %vm524_vm0, %v2934_v59  ;;  %v15037_v42 = vpop.f32.mrf.mxu1  ;;  %v19768_v12 = vld [vmem:[#allocation60_spill] sm:$0xff]  ;;  %v13537_v63 = vld [vmem:[%s13794_s22] sm:$0xff] }
 0x295   : > { %v15026_v26 = vadd.f32 %v2542_v23, %v2334_v30  ;;  %v19769_v30 = vld [vmem:[#allocation57_spill] sm:$0xff]  ;;  %v19770_v23 = vld [vmem:[#allocation58_spill] sm:$0xff] }
 0x297   : > { %19763 = vst [vmem:[#allocation10_spill] sm:$0xff] %v15026_v26  ;;  %12257 = vmatmul.msk.f32.gmra.mxu2 %vm524_vm0, %v2934_v59  ;;  %12291 = vmatmul.msk.f32.gmra.mxu3 %vm524_vm0, %v15030_v3  ;;  %v2060_v59 = vadd.f32 %v19770_v23, %v19769_v30  ;;  %v19774_v30 = vld [vmem:[#allocation61_spill] sm:$0xff] }
 0x29a   : > { %v2269_v18 = vpop.f32.mrf.mxu2  ;;  %12325 = vmatmul.msk.f32.gmra.mxu0 %vm524_vm0, %v2660_v4  ;;  %v2545_v57 = vpop.f32.mrf.mxu3 }
 0x29b   : > { %v2335_v33 = vadd.f32 %v2269_v18, %v2059_v15  ;;  %12358 = vmatmul.msk.f32.gmra.mxu1 %vm524_vm0, %v2935_v60  ;;  %v2936_v15 = vld [vmem:[#allocation2 + $0x1a1] sm:$0xff]  ;;  %v15048_v18 = vpop.f32.mrf.mxu0 }
 0x29c   : > { %v19772_v60 = vld [vmem:[#allocation63_spill] sm:$0xff] }
 0x29d   : > { %v15039_v44 = vadd.f32 %v2545_v57, %v2335_v33  ;;  %v15052_v57 = vpop.f32.mrf.mxu1 }
 0x29f   : > { %19767 = vst [vmem:[#allocation16_spill] sm:$0xff] %v15039_v44  ;;  %12362 = vmatmul.msk.f32.vlgmr.msrb.gmra.mxu2 %vm524_vm0, %v19768_v12  ;;  %12394 = vmatmul.msk.f32.vlgmr.msrb.gmra.mxu3 %vm524_vm0, %v13537_v63  ;;  %v13538_v12 = vld [vmem:[%s13794_s22 + $0x8] sm:$0xff]  ;;  %v19773_v63 = vld [vmem:[#allocation59_spill] sm:$0xff] }
 0x2a0   : > { %v2061_v23 = vadd.f32 %v19774_v30, %v19773_v63 }
 0x2a2   : > { %v2272_v4 = vpop.f32.mrf.mxu2  ;;  %v2548_v22 = vpop.f32.mrf.mxu3 }
 0x2a3   : > { %v2336_v41 = vadd.f32 %v2272_v4, %v2060_v59  ;;  %12359 = vmatmul.msk.f32.gmra.mxu1 %vm524_vm0, %v2936_v15 }
 0x2a5   : > { %v15050_v33 = vadd.f32 %v2548_v22, %v2336_v41  ;;  %v15063_v41 = vpop.f32.mrf.mxu0  ;;  %v19776_v22 = vld [vmem:[#allocation65_spill] sm:$0xff]  ;;  %v15067_v15 = vpop.f32.mrf.mxu1 }
 0x2a7   : > { %19771 = vst [vmem:[#allocation17_spill] sm:$0xff] %v15050_v33  ;;  %12363 = vmatmul.msk.f32.gmra.mxu2 %vm524_vm0, %v19772_v60  ;;  %12395 = vmatmul.msk.f32.gmra.mxu3 %vm524_vm0, %v13538_v12  ;;  %v13539_v60 = vld [vmem:[%s13794_s22 + $0x10] sm:$0xff]  ;;  %v19777_v12 = vld [vmem:[#allocation62_spill] sm:$0xff] }
 0x2a8   : > { %v19778_v33 = vld [vmem:[#allocation66_spill] sm:$0xff] }
 0x2a9   : > { %v2062_v3 = vadd.f32 %v19778_v33, %v19777_v12 }
 0x2aa   : > { %v2275_v59 = vpop.f32.mrf.mxu2  ;;  %v2551_v44 = vpop.f32.mrf.mxu3 }
 0x2ab   : > { %v2337_v4 = vadd.f32 %v2275_v59, %v2061_v23 }
 0x2ad   : > { %v15061_v26 = vadd.f32 %v2551_v44, %v2337_v4  ;;  %v13540_v44 = vld [vmem:[%s13794_s22 + $0x18] sm:$0xff]  ;;  %v19780_v4 = vld [vmem:[#allocation64_spill] sm:$0xff]  ;;  %v15081_v49 = vpop.f32.mrf.mxu0 }
 0x2af   : > { %19775 = vst [vmem:[#allocation11_spill] sm:$0xff] %v15061_v26  ;;  %12364 = vmatmul.msk.f32.gmra.mxu2 %vm524_vm0, %v19776_v22  ;;  %12396 = vmatmul.msk.f32.gmra.mxu3 %vm524_vm0, %v13539_v60  ;;  %v19781_v22 = vld [vmem:[#allocation68_spill] sm:$0xff]  ;;  %v15083_v60 = vpop.f32.mrf.mxu1 }
 0x2b0   : > { %v2063_v26 = vadd.f32 %v19781_v22, %v19780_v4 }
 0x2b2   : > { %v2278_v63 = vpop.f32.mrf.mxu2  ;;  %v2554_v23 = vpop.f32.mrf.mxu3 }
 0x2b3   : > { %v2338_v30 = vadd.f32 %v2278_v63, %v2062_v3 }
 0x2b5   : > { %v15073_v59 = vadd.f32 %v2554_v23, %v2338_v30  ;;  %v19782_v30 = vld [vmem:[#allocation67_spill] sm:$0xff]  ;;  %v19783_v23 = vld [vmem:[#allocation70_spill] sm:$0xff]  ;;  %v15093_v22 = vpop.f32.mrf.mxu0 }
 0x2b7   : > { %19779 = vst [vmem:[#allocation14_spill] sm:$0xff] %v15073_v59  ;;  %12365 = vmatmul.msk.f32.gmra.mxu2 %vm524_vm0, %v14686_v50  ;;  %12397 = vmatmul.msk.f32.gmra.mxu3 %vm524_vm0, %v13540_v44  ;;  %v13541_v50 = vld [vmem:[%s13794_s22 + $0x20] sm:$0xff]  ;;  %v2064_v44 = vadd.f32 %v19783_v23, %v19782_v30  ;;  %v15095_v2 = vpop.f32.mrf.mxu1 }
 0x2ba   : > { %v2281_v33 = vpop.f32.mrf.mxu2  ;;  %v2557_v3 = vpop.f32.mrf.mxu3 }
 0x2bb   : > { %v2339_v12 = vadd.f32 %v2281_v33, %v2063_v26  ;;  %v19784_v33 = vld [vmem:[#allocation69_spill] sm:$0xff] }
 0x2bd   : > { %v15085_v63 = vadd.f32 %v2557_v3, %v2339_v12  ;;  %v2065_v12 = vadd.f32 %v14715_v6, %v19784_v33  ;;  %v15105_v23 = vpop.f32.mrf.mxu0 }
 0x2bf   : > { %12366 = vmatmul.msk.f32.gmra.mxu2 %vm524_vm0, %v14697_v0  ;;  %12398 = vmatmul.msk.f32.gmra.mxu3 %vm524_vm0, %v13541_v50  ;;  %v13542_v0 = vld [vmem:[%s13794_s22 + $0x28] sm:$0xff] }
 0x2c2   : > { %v2284_v4 = vpop.f32.mrf.mxu2  ;;  %v2560_v14 = vpop.f32.mrf.mxu3 }
 0x2c3   : > { %v2340_v59 = vadd.f32 %v2284_v4, %v2064_v44  ;;  %v15109_v4 = vpop.f32.mrf.mxu1 }
 0x2c5   : > { %v15097_v26 = vadd.f32 %v2560_v14, %v2340_v59  ;;  %v3187_v14 = vld [vmem:[#allocation2 + $0x7a] sm:$0xff]  ;;  %v2066_v59 = vadd.f32 %v14735_v21, %v14706_v37 }
 0x2c7   : > { %12367 = vmatmul.msk.f32.gmra.mxu2 %vm524_vm0, %v14709_v54  ;;  %12399 = vmatmul.msk.f32.gmra.mxu3 %vm524_vm0, %v13542_v0  ;;  %v13543_v54 = vld [vmem:[%s13794_s22 + $0x30] sm:$0xff] }
 0x2ca   : > { %v2287_v3 = vpop.f32.mrf.mxu2  ;;  %v2563_v30 = vpop.f32.mrf.mxu3 }
 0x2cb   : > { %v2341_v50 = vadd.f32 %v2287_v3, %v2065_v12  ;;  %v3188_v3 = vld [vmem:[#allocation2 + $0x82] sm:$0xff] }
 0x2cd   : > { %v15107_v44 = vadd.f32 %v2563_v30, %v2341_v50  ;;  %v15118_v50 = vpop.f32.mrf.mxu0  ;;  %v15121_v30 = vpop.f32.mrf.mxu1 }
 0x2cf   : > { %12368 = vmatmul.msk.f32.gmra.mxu2 %vm524_vm0, %v3187_v14  ;;  %12400 = vmatmul.msk.f32.gmra.mxu3 %vm524_vm0, %v13543_v54  ;;  %v13544_v14 = vld [vmem:[%s13794_s22 + $0x38] sm:$0xff]  ;;  %v2067_v54 = vadd.f32 %v14749_v29, %v14719_v7 }
 0x2d2   : > { %v2290_v6 = vpop.f32.mrf.mxu2  ;;  %v2566_v33 = vpop.f32.mrf.mxu3 }
 0x2d3   : > { %v2342_v0 = vadd.f32 %v2290_v6, %v2066_v59 }
 0x2d5   : > { %v15116_v12 = vadd.f32 %v2566_v33, %v2342_v0  ;;  %v3189_v0 = vld [vmem:[#allocation2 + $0x92] sm:$0xff]  ;;  %v13545_v33 = vld [vmem:[%s13794_s22 + $0x40] sm:$0xff] }
 0x2d7   : > { %19785 = vst [vmem:[#allocation24_spill] sm:$0xff] %v15116_v12  ;;  %12369 = vmatmul.msk.f32.gmra.mxu2 %vm524_vm0, %v3188_v3  ;;  %12401 = vmatmul.msk.f32.gmra.mxu3 %vm524_vm0, %v13544_v14  ;;  %v2068_v3 = vadd.f32 %v14766_v46, %v14728_v8  ;;  %v15134_v12 = vpop.f32.mrf.mxu0  ;;  %v15136_v14 = vpop.f32.mrf.mxu1  ;;  %v2069_v8 = vadd.f32 %v14781_v38, %v14743_v32  ;;  %v13547_v32 = vld [vmem:[%s13794_s22 + $0x50] sm:$0xff] }
 0x2d8   : > { %v2070_v38 = vadd.f32 %v14802_v36, %v14758_v45  ;;  %v3192_v36 = vld [vmem:[#allocation2 + $0xb2] sm:$0xff] }
 0x2da   : > { %v2293_v37 = vpop.f32.mrf.mxu2  ;;  %v2569_v59 = vpop.f32.mrf.mxu3 }
 0x2db   : > { %v2343_v21 = vadd.f32 %v2293_v37, %v2067_v54 }
 0x2dd   : > { %v15127_v6 = vadd.f32 %v2569_v59, %v2343_v21  ;;  %v12491_v21 = vld [vmem:[%s19439_s10 + $0x10] sm:$0xff]  ;;  %v3190_v59 = vld [vmem:[#allocation2 + $0x9a] sm:$0xff] }
 0x2de   : > { %4562 = vmatpush.msra.mxu2 %v12491_v21 }
 0x2df   : > { %12370 = vmatmul.msk.f32.gmra.mxu2 %vm524_vm0, %v3189_v0  ;;  %12402 = vmatmul.msk.f32.gmra.mxu3 %vm524_vm0, %v13545_v33  ;;  %v13546_v0 = vld [vmem:[%s13794_s22 + $0x48] sm:$0xff]  ;;  %v15148_v33 = vpop.f32.mrf.mxu0 }
 0x2e2   : > { %v2296_v7 = vpop.f32.mrf.mxu2  ;;  %v2572_v54 = vpop.f32.mrf.mxu3 }
 0x2e3   : > { %v2344_v29 = vadd.f32 %v2296_v7, %v2068_v3 }
 0x2e5   : > { %v15138_v37 = vadd.f32 %v2572_v54, %v2344_v29  ;;  %v15150_v29 = vpop.f32.mrf.mxu1  ;;  %v12524_v54 = vld [vmem:[%s19439_s10 + $0x18] sm:$0xff] }
 0x2e6   : > { %4837 = vmatpush.msra.mxu3 %v12524_v54 }
 0x2e7   : > { %19786 = vst [vmem:[#allocation21_spill] sm:$0xff] %v15138_v37  ;;  %12371 = vmatmul.msk.f32.gmra.mxu2 %vm524_vm0, %v3190_v59  ;;  %12403 = vmatmul.msk.f32.gmra.mxu3 %vm524_vm0, %v13546_v0  ;;  %v3191_v59 = vld [vmem:[#allocation2 + $0xaa] sm:$0xff]  ;;  %v19788_v0 = vmov 0.0   ;;  %v3201_v37 = vld [vmem:[#allocation2 + $0x122] sm:$0xff] }
 0x2e8   : > { %3838 = vst.msk [vmem:[#allocation3] sm:$0xff] %vm3837_vm2, %v19788_v0 }
 0x2e9   : > { %3839 = vst.msk [vmem:[#allocation3 + $0x8] sm:$0xff] %vm3837_vm2, %v19788_v0 }
 0x2ea   : > { %v2299_v46 = vpop.f32.mrf.mxu2  ;;  %v2575_v7 = vpop.f32.mrf.mxu3  ;;  %3842 = vst.msk [vmem:[#allocation3 + $0x18] sm:$0xff] %vm3837_vm2, %v19788_v0 }
 0x2eb   : > { %v2345_v3 = vadd.f32 %v2299_v46, %v2069_v8  ;;  %3843 = vst.msk [vmem:[#allocation3 + $0x20] sm:$0xff] %vm3837_vm2, %v19788_v0 }
 0x2ec   : > { %3845 = vst.msk [vmem:[#allocation3 + $0x30] sm:$0xff] %vm3837_vm2, %v19788_v0 }
 0x2ed   : > { %v15155_v21 = vadd.f32 %v2575_v7, %v2345_v3  ;;  %3846 = vst.msk [vmem:[#allocation3 + $0x38] sm:$0xff] %vm3837_vm2, %v19788_v0  ;;  %v15174_v7 = vpop.f32.mrf.mxu0  ;;  %v15180_v45 = vpop.f32.mrf.mxu1 }
 0x2ee   : > { %3848 = vst.msk [vmem:[#allocation3 + $0x48] sm:$0xff] %vm3837_vm2, %v19788_v0 }
 0x2ef   : > { %19787 = vst [vmem:[#allocation22_spill] sm:$0xff] %v15155_v21  ;;  %12372 = vmatmul.msk.f32.gmra.mxu2 %vm524_vm0, %v3191_v59  ;;  %12404 = vmatmul.msk.f32.gmra.mxu3 %vm524_vm0, %v13547_v32  ;;  %v3932_v59 = vld [vmem:[#allocation3] sm:$0xff]  ;;  %v12557_v32 = vld [vmem:[%s19439_s10 + $0x20] sm:$0xff] }
 0x2f0   : > { %3849 = vst.msk [vmem:[#allocation3 + $0x50] sm:$0xff] %vm3837_vm2, %v19788_v0  ;;  %12459 = vmatmul.msk.f32.vlgmr.msrb.gmra.mxu1 %vm3837_vm2, %v3932_v59  ;;  %5112 = vmatpush.msra.mxu0 %v12557_v32  ;;  %v3933_v32 = vld [vmem:[#allocation3 + $0x8] sm:$0xff]  ;;  %v3199_v21 = vld [vmem:[#allocation2 + $0x10a] sm:$0xff] }
 0x2f1   : > { %3851 = vst.msk [vmem:[#allocation3 + $0x60] sm:$0xff] %vm3837_vm2, %v19788_v0 }
 0x2f2   : > { %v2302_v8 = vpop.f32.mrf.mxu2  ;;  %v2578_v3 = vpop.f32.mrf.mxu3  ;;  %3852 = vst.msk [vmem:[#allocation3 + $0x68] sm:$0xff] %vm3837_vm2, %v19788_v0 }
 0x2f3   : > { %v2346_v46 = vadd.f32 %v2302_v8, %v2070_v38  ;;  %v3965_v38 = vld [vmem:[#allocation3 + $0x1] sm:$0xff]  ;;  %3854 = vst.msk [vmem:[#allocation3 + $0x78] sm:$0xff] %vm3837_vm2, %v19788_v0 }
 0x2f4   : > { %v13548_v8 = vld [vmem:[%s13794_s22 + $0x58] sm:$0xff]  ;;  %12427 = vmatmul.msk.f32.vlgmr.msrb.gmra.mxu0 %vm3837_vm2, %v3965_v38  ;;  %3855 = vst.msk [vmem:[#allocation3 + $0x80] sm:$0xff] %vm3837_vm2, %v19788_v0 }
 0x2f5   : > { %v15176_v54 = vadd.f32 %v2578_v3, %v2346_v46  ;;  %v2071_v46 = vadd.f32 %v14816_v56, %v14770_v34  ;;  %3857 = vst.msk [vmem:[#allocation3 + $0x90] sm:$0xff] %vm3837_vm2, %v19788_v0  ;;  %v3193_v34 = vld [vmem:[#allocation2 + $0xc2] sm:$0xff]  ;;  %v15212_v56 = vpop.f32.mrf.mxu0 }
 0x2f6   : > { %3858 = vst.msk [vmem:[#allocation3 + $0x98] sm:$0xff] %vm3837_vm2, %v19788_v0 }
 0x2f7   : > { %19789 = vst [vmem:[#allocation15_spill] sm:$0xff] %v15176_v54  ;;  %12373 = vmatmul.msk.f32.gmra.mxu2 %vm524_vm0, %v3192_v36  ;;  %12405 = vmatmul.msk.f32.gmra.mxu3 %vm524_vm0, %v13548_v8  ;;  %v15217_v8 = vpop.f32.mrf.mxu1  ;;  %v3150_v54 = vadd.f32 %v14914_v35, %v14850_v31 }
 0x2f8   : > { %3860 = vst.msk [vmem:[#allocation3 + $0xa8] sm:$0xff] %vm3837_vm2, %v19788_v0  ;;  %12460 = vmatmul.msk.f32.gmra.mxu1 %vm3837_vm2, %v3933_v32 }
 0x2f9   : > { %3861 = vst.msk [vmem:[#allocation3 + $0xb0] sm:$0xff] %vm3837_vm2, %v19788_v0 }
 0x2fa   : > { %v2305_v3 = vpop.f32.mrf.mxu2  ;;  %v2581_v59 = vpop.f32.mrf.mxu3  ;;  %3863 = vst.msk [vmem:[#allocation3 + $0xc0] sm:$0xff] %vm3837_vm2, %v19788_v0 }
 0x2fb   : > { %v2347_v36 = vadd.f32 %v2305_v3, %v2071_v46  ;;  %v13549_v46 = vld [vmem:[%s13794_s22 + $0x60] sm:$0xff]  ;;  %3864 = vst.msk [vmem:[#allocation3 + $0xc8] sm:$0xff] %vm3837_vm2, %v19788_v0  ;;  %v2072_v3 = vadd.f32 %v14832_v27, %v14785_v17  ;;  %v3194_v17 = vld [vmem:[#allocation2 + $0xca] sm:$0xff] }
 0x2fc   : > { %3866 = vst.msk [vmem:[#allocation3 + $0xd8] sm:$0xff] %vm3837_vm2, %v19788_v0  ;;  %v3934_v27 = vld [vmem:[#allocation3 + $0x18] sm:$0xff] }
 0x2fd   : > { %v15206_v38 = vadd.f32 %v2581_v59, %v2347_v36  ;;  %3867 = vst.msk [vmem:[#allocation3 + $0xe0] sm:$0xff] %vm3837_vm2, %v19788_v0 }
 0x2fe   : > { %3869 = vst.msk [vmem:[#allocation3 + $0xf0] sm:$0xff] %vm3837_vm2, %v19788_v0 }
 0x2ff   : > { %19790 = vst [vmem:[#allocation18_spill] sm:$0xff] %v15206_v38  ;;  %12374 = vmatmul.msk.f32.gmra.mxu2 %vm524_vm0, %v3193_v34  ;;  %12406 = vmatmul.msk.f32.gmra.mxu3 %vm524_vm0, %v13549_v46  ;;  %v13550_v46 = vld [vmem:[%s13794_s22 + $0x68] sm:$0xff] }
 0x300   : > { %3870 = vst.msk [vmem:[#allocation3 + $0xf8] sm:$0xff] %vm3837_vm2, %v19788_v0  ;;  %12461 = vmatmul.msk.f32.gmra.mxu1 %vm3837_vm2, %v3934_v27 }
 0x301   : > { %3872 = vst.msk [vmem:[#allocation3 + $0x108] sm:$0xff] %vm3837_vm2, %v19788_v0 }
 0x302   : > { %v2308_v36 = vpop.f32.mrf.mxu2  ;;  %v2584_v34 = vpop.f32.mrf.mxu3  ;;  %3873 = vst.msk [vmem:[#allocation3 + $0x110] sm:$0xff] %vm3837_vm2, %v19788_v0 }
 0x303   : > { %v2348_v59 = vadd.f32 %v2308_v36, %v2072_v3  ;;  %3875 = vst.msk [vmem:[#allocation3 + $0x120] sm:$0xff] %vm3837_vm2, %v19788_v0  ;;  %v2073_v3 = vadd.f32 %v14846_v39, %v14798_v13  ;;  %v15250_v36 = vpop.f32.mrf.mxu0  ;;  %v3195_v39 = vld [vmem:[#allocation2 + $0xda] sm:$0xff] }
 0x304   : > { %3876 = vst.msk [vmem:[#allocation3 + $0x128] sm:$0xff] %vm3837_vm2, %v19788_v0 }
 0x305   : > { %v15234_v32 = vadd.f32 %v2584_v34, %v2348_v59  ;;  %3878 = vst.msk [vmem:[#allocation3 + $0x138] sm:$0xff] %vm3837_vm2, %v19788_v0  ;;  %v15254_v59 = vpop.f32.mrf.mxu1 }
 0x306   : > { %3879 = vst.msk [vmem:[#allocation3 + $0x140] sm:$0xff] %vm3837_vm2, %v19788_v0 }
 0x307   : > { %19791 = vst [vmem:[#allocation29_spill] sm:$0xff] %v15234_v32  ;;  %12375 = vmatmul.msk.f32.gmra.mxu2 %vm524_vm0, %v3194_v17  ;;  %12407 = vmatmul.msk.f32.gmra.mxu3 %vm524_vm0, %v13550_v46  ;;  %v12590_v17 = vld [vmem:[%s19439_s10 + $0x28] sm:$0xff]  ;;  %v3198_v32 = vld [vmem:[#allocation2 + $0xfa] sm:$0xff] }
 0x308   : > { %3881 = vst.msk [vmem:[#allocation3 + $0x150] sm:$0xff] %vm3837_vm2, %v19788_v0  ;;  %5388 = vmatpush.msra.mxu1 %v12590_v17  ;;  %v2074_v17 = vadd.f32 %v14866_v43, %v14810_v40  ;;  %v3196_v43 = vld [vmem:[#allocation2 + $0xe2] sm:$0xff] }
 0x309   : > { %3882 = vst.msk [vmem:[#allocation3 + $0x158] sm:$0xff] %vm3837_vm2, %v19788_v0 }
 0x30a   : > { %v2311_v34 = vpop.f32.mrf.mxu2  ;;  %v2587_v46 = vpop.f32.mrf.mxu3  ;;  %3884 = vst.msk [vmem:[#allocation3 + $0x168] sm:$0xff] %vm3837_vm2, %v19788_v0 }
 0x30b   : > { %v2349_v27 = vadd.f32 %v2311_v34, %v2073_v3  ;;  %3885 = vst.msk [vmem:[#allocation3 + $0x170] sm:$0xff] %vm3837_vm2, %v19788_v0  ;;  %v3935_v3 = vld [vmem:[#allocation3 + $0x20] sm:$0xff] }
 0x30c   : > { %3887 = vst.msk [vmem:[#allocation3 + $0x180] sm:$0xff] %vm3837_vm2, %v19788_v0  ;;  %v13551_v34 = vld [vmem:[%s13794_s22 + $0x70] sm:$0xff]  ;;  %12462 = vmatmul.msk.f32.gmra.mxu1 %vm3837_vm2, %v3935_v3  ;;  %v13552_v3 = vld [vmem:[%s13794_s22 + $0x78] sm:$0xff] }
 0x30d   : > { %v15265_v13 = vadd.f32 %v2587_v46, %v2349_v27  ;;  %3888 = vst.msk [vmem:[#allocation3 + $0x188] sm:$0xff] %vm3837_vm2, %v19788_v0  ;;  %v15285_v46 = vpop.f32.mrf.mxu0 }
 0x30e   : > { %3890 = vst.msk [vmem:[#allocation3 + $0x198] sm:$0xff] %vm3837_vm2, %v19788_v0 }
 0x30f   : > { %19792 = vst [vmem:[#allocation26_spill] sm:$0xff] %v15265_v13  ;;  %12376 = vmatmul.msk.f32.gmra.mxu2 %vm524_vm0, %v3195_v39  ;;  %12408 = vmatmul.msk.f32.gmra.mxu3 %vm524_vm0, %v13551_v34  ;;  %v15289_v13 = vpop.f32.mrf.mxu1 }
 0x310   : > { %3891 = vst.msk [vmem:[#allocation3 + $0x1a0] sm:$0xff] %vm3837_vm2, %v19788_v0 }
 0x311   : > { %3893 = vst.msk [vmem:[#allocation3 + $0x1b0] sm:$0xff] %vm3837_vm2, %v19788_v0 }
 0x312   : > { %v2314_v27 = vpop.f32.mrf.mxu2  ;;  %v2590_v34 = vpop.f32.mrf.mxu3  ;;  %3894 = vst.msk [vmem:[#allocation3 + $0x1b8] sm:$0xff] %vm3837_vm2, %v19788_v0 }
 0x313   : > { %v2350_v39 = vadd.f32 %v2314_v27, %v2074_v17  ;;  %3896 = vst.msk [vmem:[#allocation3 + $0x1c8] sm:$0xff] %vm3837_vm2, %v19788_v0  ;;  %v2075_v17 = vadd.f32 %v14884_v52, %v14822_v9 }
 0x314   : > { %3897 = vst.msk [vmem:[#allocation3 + $0x1d0] sm:$0xff] %vm3837_vm2, %v19788_v0 }
 0x315   : > { %v15295_v40 = vadd.f32 %v2590_v34, %v2350_v39  ;;  %3841 = vst.msk [vmem:[#allocation3 + $0x10] sm:$0xf] %vm3840_vm3, %v19788_v0 }
 0x316   : > { %3844 = vst.msk [vmem:[#allocation3 + $0x28] sm:$0xf] %vm3840_vm3, %v19788_v0 }
 0x317   : > { %19793 = vst [vmem:[#allocation27_spill] sm:$0xff] %v15295_v40  ;;  %12377 = vmatmul.msk.f32.gmra.mxu2 %vm524_vm0, %v3196_v43  ;;  %12409 = vmatmul.msk.f32.gmra.mxu3 %vm524_vm0, %v13552_v3  ;;  %v15316_v43 = vpop.f32.mrf.mxu0  ;;  %v15322_v52 = vpop.f32.mrf.mxu1  ;;  %v3197_v40 = vld [vmem:[#allocation2 + $0xf2] sm:$0xff] }
 0x318   : > { %3847 = vst.msk [vmem:[#allocation3 + $0x40] sm:$0xf] %vm3840_vm3, %v19788_v0 }
 0x319   : > { %3850 = vst.msk [vmem:[#allocation3 + $0x58] sm:$0xf] %vm3840_vm3, %v19788_v0 }
 0x31a   : > { %v2317_v27 = vpop.f32.mrf.mxu2  ;;  %3853 = vst.msk [vmem:[#allocation3 + $0x70] sm:$0xf] %vm3840_vm3, %v19788_v0  ;;  %v2593_v34 = vpop.f32.mrf.mxu3 }
 0x31b   : > { %v2351_v39 = vadd.f32 %v2317_v27, %v2075_v17  ;;  %3856 = vst.msk [vmem:[#allocation3 + $0x88] sm:$0xf] %vm3840_vm3, %v19788_v0  ;;  %v13553_v17 = vld [vmem:[%s13794_s22 + $0x80] sm:$0xff] }
 0x31c   : > { %3859 = vst.msk [vmem:[#allocation3 + $0xa0] sm:$0xf] %vm3840_vm3, %v19788_v0  ;;  %v3966_v3 = vld [vmem:[#allocation3 + $0x9] sm:$0xff] }
 0x31d   : > { %v15320_v9 = vadd.f32 %v2593_v34, %v2351_v39  ;;  %3862 = vst.msk [vmem:[#allocation3 + $0xb8] sm:$0xf] %vm3840_vm3, %v19788_v0  ;;  %12428 = vmatmul.msk.f32.gmra.mxu0 %vm3837_vm2, %v3966_v3  ;;  %v15337_v27 = vld [vmem:[%s19438_s9] ss:$0 sm:$0xff]  ;;  %v3149_v39 = vadd.f32 %v14900_v58, %v14836_v16  ;;  %v3967_v16 = vld [vmem:[#allocation3 + $0x19] sm:$0xff] }
 0x31e   : > { %3865 = vst.msk [vmem:[#allocation3 + $0xd0] sm:$0xf] %vm3840_vm3, %v19788_v0 }
 0x31f   : > { %19794 = vst [vmem:[#allocation20_spill] sm:$0xff] %v15320_v9  ;;  %12378 = vmatmul.msk.f32.gmra.mxu2 %vm524_vm0, %v3197_v40  ;;  %12410 = vmatmul.msk.f32.gmra.mxu3 %vm524_vm0, %v13553_v17  ;;  %v15346_v40 = vld [vmem:[%s19436_s7] ss:$0 sm:$0xff]  ;;  %v15360_v38 = vpop.f32.mrf.mxu0 }
 0x320   : > { %3868 = vst.msk [vmem:[#allocation3 + $0xe8] sm:$0xf] %vm3840_vm3, %v19788_v0 }
 0x321   : > { %3871 = vst.msk [vmem:[#allocation3 + $0x100] sm:$0xf] %vm3840_vm3, %v19788_v0 }
 0x322   : > { %3874 = vst.msk [vmem:[#allocation3 + $0x118] sm:$0xf] %vm3840_vm3, %v19788_v0  ;;  %v3329_v34 = vpop.f32.mrf.mxu2  ;;  %v3709_v17 = vpop.f32.mrf.mxu3 }
 0x323   : > { %3877 = vst.msk [vmem:[#allocation3 + $0x130] sm:$0xf] %vm3840_vm3, %v19788_v0  ;;  %v3425_v3 = vadd.f32 %v3329_v34, %v3149_v39  ;;  %v3710_v58 = vadd.f32 %v15337_v27, %v3709_v17  ;;  %v15366_v17 = vpop.f32.mrf.mxu1 }
 0x324   : > { %3880 = vst.msk [vmem:[#allocation3 + $0x148] sm:$0xf] %vm3840_vm3, %v19788_v0 }
 0x325   : > { %3883 = vst.msk [vmem:[#allocation3 + $0x160] sm:$0xf] %vm3840_vm3, %v19788_v0  ;;  %v3461_v9 = vadd.f32 %v15346_v40, %v3425_v3  ;;  %12429 = vmatmul.msk.f32.gmra.mxu0 %vm3837_vm2, %v3967_v16  ;;  %v3805_v39 = vmax.f32 %v3710_v58, 0.0  ;;  %v13554_v3 = vld [vmem:[%s13794_s22 + $0x88] sm:$0xff]  ;;  %v3968_v58 = vld [vmem:[#allocation3 + $0x21] sm:$0xff] }
 0x326   : > { %3886 = vst.msk [vmem:[#allocation3 + $0x178] sm:$0xf] %vm3840_vm3, %v19788_v0 }
 0x327   : > { %3889 = vst.msk [vmem:[#allocation3 + $0x190] sm:$0xf] %vm3840_vm3, %v19788_v0  ;;  %12379 = vmatmul.msk.f32.gmra.mxu2 %vm524_vm0, %v3198_v32  ;;  %v3493_v34 = vmax.f32 %v3461_v9, 0.0  ;;  %12411 = vmatmul.msk.f32.gmra.mxu3 %vm524_vm0, %v13554_v3 }
 0x328   : > { %3892 = vst.msk [vmem:[#allocation3 + $0x1a8] sm:$0xf] %vm3840_vm3, %v19788_v0 }
 0x329   : > { %3895 = vst.msk [vmem:[#allocation3 + $0x1c0] sm:$0xf] %vm3840_vm3, %v19788_v0  ;;  %3557 = vrot.lane.b32.xlu0 %v3493_v34, %s13643_s18 }
 0x32a   : > { %3898 = vst.msk [vmem:[#allocation3 + $0x1d8] sm:$0xf] %vm3840_vm3, %v19788_v0  ;;  %v3332_v32 = vpop.f32.mrf.mxu2  ;;  %v3712_v16 = vpop.f32.mrf.mxu3  ;;  %v13555_v0 = vld [vmem:[%s13794_s22 + $0x90] sm:$0xff] }
 0x32b   : > { %3900 = vst.msk [vmem:[#allocation3 + $0x32] sm:$0xff] %vm3837_vm2, %v3805_v39  ;;  %v3426_v9 = vadd.f32 %v3332_v32, %v3150_v54  ;;  %v3713_v3 = vadd.f32 %v15337_v27, %v3712_v16  ;;  %v3151_v54 = vadd.f32 %v14934_v5, %v14862_v11  ;;  %v15389_v39 = vpop.f32.mrf.mxu0  ;;  %v15392_v32 = vpop.f32.mrf.mxu1  ;;  %v3200_v11 = vld [vmem:[#allocation2 + $0x112] sm:$0xff] }
 0x32d   : > { %v3462_v31 = vadd.f32 %v15346_v40, %v3426_v9  ;;  %v3806_v35 = vmax.f32 %v3713_v3, 0.0  ;;  %12430 = vmatmul.msk.f32.gmra.mxu0 %vm3837_vm2, %v3968_v58 }
 0x32f   : > { %12380 = vmatmul.msk.f32.gmra.mxu2 %vm524_vm0, %v3199_v21  ;;  %v3494_v34 = vmax.f32 %v3462_v31, 0.0  ;;  %3901 = vst.msk [vmem:[#allocation3 + $0x3a] sm:$0xff] %vm3837_vm2, %v3806_v35  ;;  %12412 = vmatmul.msk.f32.gmra.mxu3 %vm524_vm0, %v13555_v0 }
 0x331   : > { %3559 = vrot.lane.b32.xlu0 %v3494_v34, %s13643_s18  ;;  %v13556_v34 = vld [vmem:[%s13794_s22 + $0x98] sm:$0xff] }
 0x332   : > { %v3936_v9 = vld [vmem:[#allocation3 + $0x30] sm:$0xff]  ;;  %v3335_v16 = vpop.f32.mrf.mxu2  ;;  %v3715_v58 = vpop.f32.mrf.mxu3 }
 0x333   : > { %12463 = vmatmul.msk.f32.gmra.mxu1 %vm3837_vm2, %v3936_v9  ;;  %v3427_v21 = vadd.f32 %v3335_v16, %v3151_v54  ;;  %v3969_v3 = vld [vmem:[#allocation3 + $0x31] sm:$0xff]  ;;  %v3716_v31 = vadd.f32 %v15337_v27, %v3715_v58  ;;  %v3152_v54 = vadd.f32 %v14955_v28, %v14876_v48 }
 0x334   : > { %v13557_v28 = vld [vmem:[%s13794_s22 + $0xa0] sm:$0xff] }
 0x335   : > { %v3463_v35 = vadd.f32 %v15346_v40, %v3427_v21  ;;  %v3807_v0 = vmax.f32 %v3716_v31, 0.0  ;;  %12431 = vmatmul.msk.f32.gmra.mxu0 %vm3837_vm2, %v3969_v3  ;;  %v15405_v21 = vpop.f32.mrf.mxu0  ;;  %v15408_v31 = vpop.f32.mrf.mxu1 }
 0x336   : > { %v3937_v9 = vld [vmem:[#allocation3 + $0x38] sm:$0xff] }
 0x337   : > { %12381 = vmatmul.msk.f32.gmra.mxu2 %vm524_vm0, %v3200_v11  ;;  %v3495_v5 = vmax.f32 %v3463_v35, 0.0  ;;  %3902 = vst.msk [vmem:[#allocation3 + $0x4a] sm:$0xff] %vm3837_vm2, %v3807_v0  ;;  %12413 = vmatmul.msk.f32.gmra.mxu3 %vm524_vm0, %v13556_v34  ;;  %v3970_v35 = vld [vmem:[#allocation3 + $0x39] sm:$0xff] }
 0x339   : > { %3561 = vrot.lane.b32.xlu1 %v3495_v5, %s13643_s18 }
 0x33a   : > { %v3338_v16 = vpop.f32.mrf.mxu2  ;;  %v3718_v3 = vpop.f32.mrf.mxu3 }
 0x33b   : > { %12464 = vmatmul.msk.f32.gmra.mxu1 %vm3837_vm2, %v3937_v9  ;;  %v3428_v58 = vadd.f32 %v3338_v16, %v3152_v54  ;;  %v3719_v0 = vadd.f32 %v15337_v27, %v3718_v3  ;;  %v3153_v9 = vadd.f32 %v14971_v24, %v14890_v20  ;;  %v13558_v24 = vld [vmem:[%s13794_s22 + $0xa8] sm:$0xff] }
 0x33d   : > { %v3464_v11 = vadd.f32 %v15346_v40, %v3428_v58  ;;  %v3808_v34 = vmax.f32 %v3719_v0, 0.0  ;;  %12432 = vmatmul.msk.f32.gmra.mxu0 %vm3837_vm2, %v3970_v35  ;;  %v15422_v35 = vpop.f32.mrf.mxu0 }
 0x33e   : > { %v3938_v5 = vld [vmem:[#allocation3 + $0x48] sm:$0xff] }
 0x33f   : > { %12382 = vmatmul.msk.f32.gmra.mxu2 %vm524_vm0, %v3201_v37  ;;  %v3496_v48 = vmax.f32 %v3464_v11, 0.0  ;;  %3903 = vst.msk [vmem:[#allocation3 + $0x52] sm:$0xff] %vm3837_vm2, %v3808_v34  ;;  %12414 = vmatmul.msk.f32.gmra.mxu3 %vm524_vm0, %v13557_v28  ;;  %v3971_v3 = vld [vmem:[#allocation3 + $0x49] sm:$0xff]  ;;  %v15425_v11 = vpop.f32.mrf.mxu1  ;;  %v3202_v28 = vld [vmem:[#allocation2 + $0x12a] sm:$0xff] }
 0x341   : > { %3563 = vrot.lane.b32.xlu1 %v3496_v48, %s13643_s18 }
 0x342   : > { %v3341_v54 = vpop.f32.mrf.mxu2  ;;  %v3721_v58 = vpop.f32.mrf.mxu3 }
 0x343   : > { %12465 = vmatmul.msk.f32.gmra.mxu1 %vm3837_vm2, %v3938_v5  ;;  %v3429_v16 = vadd.f32 %v3341_v54, %v3153_v9  ;;  %v3722_v37 = vadd.f32 %v15337_v27, %v3721_v58  ;;  %v3154_v5 = vadd.f32 %v14987_v47, %v14904_v19 }
 0x345   : > { %v3465_v0 = vadd.f32 %v15346_v40, %v3429_v16  ;;  %v3809_v34 = vmax.f32 %v3722_v37, 0.0  ;;  %12433 = vmatmul.msk.f32.gmra.mxu0 %vm3837_vm2, %v3971_v3 }
 0x346   : > { %v3939_v48 = vld [vmem:[#allocation3 + $0x50] sm:$0xff] }
 0x347   : > { %12383 = vmatmul.msk.f32.gmra.mxu2 %vm524_vm0, %v3202_v28  ;;  %v3497_v20 = vmax.f32 %v3465_v0, 0.0  ;;  %3904 = vst.msk [vmem:[#allocation3 + $0x62] sm:$0xff] %vm3837_vm2, %v3809_v34  ;;  %12415 = vmatmul.msk.f32.gmra.mxu3 %vm524_vm0, %v13558_v24  ;;  %v3972_v58 = vld [vmem:[#allocation3 + $0x51] sm:$0xff]  ;;  %v15438_v28 = vpop.f32.mrf.mxu0  ;;  %v15442_v47 = vpop.f32.mrf.mxu1 }
 0x348   : > { %v3203_v34 = vld [vmem:[#allocation2 + $0x13a] sm:$0xff] }
 0x349   : > { %3565 = vrot.lane.b32.xlu2 %v3497_v20, %s13643_s18  ;;  %v13559_v20 = vld [vmem:[%s13794_s22 + $0xb0] sm:$0xff] }
 0x34a   : > { %v3344_v9 = vpop.f32.mrf.mxu2  ;;  %v3724_v16 = vpop.f32.mrf.mxu3 }
 0x34b   : > { %12466 = vmatmul.msk.f32.gmra.mxu1 %vm3837_vm2, %v3939_v48  ;;  %v3430_v54 = vadd.f32 %v3344_v9, %v3154_v5  ;;  %v3725_v3 = vadd.f32 %v15337_v27, %v3724_v16  ;;  %v3155_v48 = vadd.f32 %v15005_v25, %v14918_v10  ;;  %v13560_v10 = vld [vmem:[%s13794_s22 + $0xb8] sm:$0xff] }
 0x34d   : > { %v3466_v37 = vadd.f32 %v15346_v40, %v3430_v54  ;;  %v3810_v0 = vmax.f32 %v3725_v3, 0.0  ;;  %12434 = vmatmul.msk.f32.gmra.mxu0 %vm3837_vm2, %v3972_v58 }
 0x34e   : > { %v3940_v24 = vld [vmem:[#allocation3 + $0x60] sm:$0xff] }
 0x34f   : > { %12384 = vmatmul.msk.f32.gmra.mxu2 %vm524_vm0, %v3203_v34  ;;  %v3498_v19 = vmax.f32 %v3466_v37, 0.0  ;;  %3905 = vst.msk [vmem:[#allocation3 + $0x6a] sm:$0xff] %vm3837_vm2, %v3810_v0  ;;  %12416 = vmatmul.msk.f32.gmra.mxu3 %vm524_vm0, %v13559_v20  ;;  %v3973_v16 = vld [vmem:[#allocation3 + $0x61] sm:$0xff]  ;;  %v3204_v0 = vld [vmem:[#allocation2 + $0x142] sm:$0xff]  ;;  %v15460_v20 = vpop.f32.mrf.mxu0 }
 0x351   : > { %3567 = vrot.lane.b32.xlu2 %v3498_v19, %s13643_s18  ;;  %v3156_v19 = vadd.f32 %v15023_v53, %v14930_v1 }
 0x352   : > { %v3347_v5 = vpop.f32.mrf.mxu2  ;;  %v3727_v54 = vpop.f32.mrf.mxu3 }
 0x353   : > { %12467 = vmatmul.msk.f32.gmra.mxu1 %vm3837_vm2, %v3940_v24  ;;  %v3431_v9 = vadd.f32 %v3347_v5, %v3155_v48  ;;  %v3728_v58 = vadd.f32 %v15337_v27, %v3727_v54  ;;  %v15463_v24 = vpop.f32.mrf.mxu1 }
 0x355   : > { %v3467_v3 = vadd.f32 %v15346_v40, %v3431_v9  ;;  %v3811_v37 = vmax.f32 %v3728_v58, 0.0  ;;  %12435 = vmatmul.msk.f32.gmra.mxu0 %vm3837_vm2, %v3973_v16  ;;  %v2881_v58 = vadd.f32 %v15048_v18, %v14942_v55 }
 0x356   : > { %v3941_v25 = vld [vmem:[#allocation3 + $0x68] sm:$0xff] }
 0x357   : > { %12385 = vmatmul.msk.f32.gmra.mxu2 %vm524_vm0, %v3204_v0  ;;  %v3499_v34 = vmax.f32 %v3467_v3, 0.0  ;;  %3906 = vst.msk [vmem:[#allocation3 + $0x7a] sm:$0xff] %vm3837_vm2, %v3811_v37  ;;  %12417 = vmatmul.msk.f32.gmra.mxu3 %vm524_vm0, %v13560_v10  ;;  %v3974_v54 = vld [vmem:[#allocation3 + $0x69] sm:$0xff]  ;;  %v3157_v10 = vadd.f32 %v15037_v42, %v2881_v58  ;;  %v15477_v18 = vpop.f32.mrf.mxu0 }
 0x358   : > { %v3205_v3 = vld [vmem:[#allocation2 + $0x152] sm:$0xff]  ;;  %v13561_v0 = vld [vmem:[%s13794_s22 + $0xc0] sm:$0xff] }
 0x359   : > { %3569 = vrot.lane.b32.xlu0 %v3499_v34, %s13643_s18  ;;  %v3206_v58 = vld [vmem:[#allocation2 + $0x15a] sm:$0xff] }
 0x35a   : > { %v3350_v48 = vpop.f32.mrf.mxu2  ;;  %v3730_v9 = vpop.f32.mrf.mxu3 }
 0x35b   : > { %12468 = vmatmul.msk.f32.gmra.mxu1 %vm3837_vm2, %v3941_v25  ;;  %v3432_v5 = vadd.f32 %v3350_v48, %v3156_v19  ;;  %v3731_v16 = vadd.f32 %v15337_v27, %v3730_v9  ;;  %v15480_v48 = vpop.f32.mrf.mxu1 }
 0x35d   : > { %v3468_v1 = vadd.f32 %v15346_v40, %v3432_v5  ;;  %v3812_v53 = vmax.f32 %v3731_v16, 0.0  ;;  %12436 = vmatmul.msk.f32.gmra.mxu0 %vm3837_vm2, %v3974_v54  ;;  %v2882_v54 = vadd.f32 %v15063_v41, %v14959_v62 }
 0x35e   : > { %v3942_v34 = vld [vmem:[#allocation3 + $0x78] sm:$0xff] }
 0x35f   : > { %12386 = vmatmul.msk.f32.gmra.mxu2 %vm524_vm0, %v3205_v3  ;;  %v3500_v37 = vmax.f32 %v3468_v1, 0.0  ;;  %3907 = vst.msk [vmem:[#allocation3 + $0x82] sm:$0xff] %vm3837_vm2, %v3812_v53  ;;  %12418 = vmatmul.msk.f32.gmra.mxu3 %vm524_vm0, %v13561_v0  ;;  %v3975_v5 = vld [vmem:[#allocation3 + $0x79] sm:$0xff] }
 0x360   : > { %v13562_v53 = vld [vmem:[%s13794_s22 + $0xc8] sm:$0xff] }
 0x361   : > { %3571 = vrot.lane.b32.xlu1 %v3500_v37, %s13643_s18  ;;  %v3158_v37 = vadd.f32 %v15052_v57, %v2882_v54 }
 0x362   : > { %v3353_v55 = vpop.f32.mrf.mxu2  ;;  %v3733_v19 = vpop.f32.mrf.mxu3 }
 0x363   : > { %12469 = vmatmul.msk.f32.gmra.mxu1 %vm3837_vm2, %v3942_v34  ;;  %v3433_v25 = vadd.f32 %v3353_v55, %v3157_v10  ;;  %v3734_v9 = vadd.f32 %v15337_v27, %v3733_v19  ;;  %v2883_v55 = vadd.f32 %v15081_v49, %v14973_v51 }
 0x365   : > { %v3469_v42 = vadd.f32 %v15346_v40, %v3433_v25  ;;  %v3813_v16 = vmax.f32 %v3734_v9, 0.0  ;;  %12437 = vmatmul.msk.f32.gmra.mxu0 %vm3837_vm2, %v3975_v5  ;;  %v15497_v25 = vpop.f32.mrf.mxu0  ;;  %v15500_v5 = vpop.f32.mrf.mxu1  ;;  %v3207_v9 = vld [vmem:[#allocation2 + $0x16a] sm:$0xff]  ;;  %v3159_v51 = vadd.f32 %v15067_v15, %v2883_v55  ;;  %v3208_v15 = vld [vmem:[#allocation2 + $0x172] sm:$0xff] }
 0x366   : > { %v3943_v3 = vld [vmem:[#allocation3 + $0x80] sm:$0xff]  ;;  %v13564_v55 = vld [vmem:[%s13794_s22 + $0xd8] sm:$0xff] }
 0x367   : > { %12387 = vmatmul.msk.f32.gmra.mxu2 %vm524_vm0, %v3206_v58  ;;  %v3501_v1 = vmax.f32 %v3469_v42, 0.0  ;;  %3908 = vst.msk [vmem:[#allocation3 + $0x92] sm:$0xff] %vm3837_vm2, %v3813_v16  ;;  %12419 = vmatmul.msk.f32.gmra.mxu3 %vm524_vm0, %v13562_v53  ;;  %v3976_v34 = vld [vmem:[#allocation3 + $0x81] sm:$0xff] }
 0x368   : > { %v13563_v42 = vld [vmem:[%s13794_s22 + $0xd0] sm:$0xff] }
 0x369   : > { %3573 = vrot.lane.b32.xlu2 %v3501_v1, %s13643_s18 }
 0x36a   : > { %v3356_v62 = vpop.f32.mrf.mxu2  ;;  %v3736_v0 = vpop.f32.mrf.mxu3 }
 0x36b   : > { %12470 = vmatmul.msk.f32.gmra.mxu1 %vm3837_vm2, %v3943_v3  ;;  %v3434_v41 = vadd.f32 %v3356_v62, %v3158_v37  ;;  %v3737_v10 = vadd.f32 %v15337_v27, %v3736_v0  ;;  %v2884_v37 = vadd.f32 %v15093_v22, %v14985_v61 }
 0x36d   : > { %v3470_v19 = vadd.f32 %v15346_v40, %v3434_v41  ;;  %v3814_v57 = vmax.f32 %v3737_v10, 0.0  ;;  %12438 = vmatmul.msk.f32.gmra.mxu0 %vm3837_vm2, %v3976_v34  ;;  %v15514_v41 = vpop.f32.mrf.mxu1  ;;  %v15516_v34 = vpop.f32.mrf.mxu0  ;;  %v3160_v61 = vadd.f32 %v15083_v60, %v2884_v37  ;;  %v19796_v60 = vld [vmem:[#allocation9_spill] sm:$0xff]  ;;  %v13565_v37 = vld [vmem:[%s13794_s22 + $0xe0] sm:$0xff] }
 0x36e   : > { %v3944_v16 = vld [vmem:[#allocation3 + $0x90] sm:$0xff] }
 0x36f   : > { %12388 = vmatmul.msk.f32.gmra.mxu2 %vm524_vm0, %v3207_v9  ;;  %v3502_v54 = vmax.f32 %v3470_v19, 0.0  ;;  %3909 = vst.msk [vmem:[#allocation3 + $0x9a] sm:$0xff] %vm3837_vm2, %v3814_v57  ;;  %12420 = vmatmul.msk.f32.gmra.mxu3 %vm524_vm0, %v13563_v42  ;;  %v3977_v53 = vld [vmem:[#allocation3 + $0x91] sm:$0xff] }
 0x371   : > { %3575 = vrot.lane.b32.xlu0 %v3502_v54, %s13643_s18 }
 0x372   : > { %v3359_v49 = vpop.f32.mrf.mxu2  ;;  %v3739_v1 = vpop.f32.mrf.mxu3 }
 0x373   : > { %12471 = vmatmul.msk.f32.gmra.mxu1 %vm3837_vm2, %v3944_v16  ;;  %v3435_v58 = vadd.f32 %v3359_v49, %v3159_v51  ;;  %v3740_v3 = vadd.f32 %v15337_v27, %v3739_v1  ;;  %v19795_v16 = vld [vmem:[#allocation12_spill] sm:$0xff] }
 0x374   : > { %v2885_v51 = vadd.f32 %v15105_v23, %v19795_v16 }
 0x375   : > { %v3471_v62 = vadd.f32 %v15346_v40, %v3435_v58  ;;  %v3815_v0 = vmax.f32 %v3740_v3, 0.0  ;;  %12439 = vmatmul.msk.f32.gmra.mxu0 %vm3837_vm2, %v3977_v53  ;;  %v15530_v1 = vpop.f32.mrf.mxu0  ;;  %v15535_v3 = vpop.f32.mrf.mxu1 }
 0x376   : > { %v3945_v19 = vld [vmem:[#allocation3 + $0x98] sm:$0xff]  ;;  %v3161_v23 = vadd.f32 %v15095_v2, %v2885_v51 }
 0x377   : > { %12389 = vmatmul.msk.f32.gmra.mxu2 %vm524_vm0, %v3208_v15  ;;  %v3503_v10 = vmax.f32 %v3471_v62, 0.0  ;;  %3910 = vst.msk [vmem:[#allocation3 + $0xaa] sm:$0xff] %vm3837_vm2, %v3815_v0  ;;  %12421 = vmatmul.msk.f32.gmra.mxu3 %vm524_vm0, %v13564_v55  ;;  %v3978_v54 = vld [vmem:[#allocation3 + $0x99] sm:$0xff] }
 0x379   : > { %3577 = vrot.lane.b32.xlu1 %v3503_v10, %s13643_s18 }
 0x37a   : > { %v3362_v22 = vpop.f32.mrf.mxu2  ;;  %v3742_v9 = vpop.f32.mrf.mxu3 }
 0x37b   : > { %12472 = vmatmul.msk.f32.gmra.mxu1 %vm3837_vm2, %v3945_v19  ;;  %v3436_v57 = vadd.f32 %v3362_v22, %v3160_v61  ;;  %v3743_v42 = vadd.f32 %v15337_v27, %v3742_v9  ;;  %v19797_v61 = vld [vmem:[#allocation13_spill] sm:$0xff] }
 0x37c   : > { %v2886_v22 = vadd.f32 %v15118_v50, %v19797_v61 }
 0x37d   : > { %v3472_v49 = vadd.f32 %v15346_v40, %v3436_v57  ;;  %v3816_v58 = vmax.f32 %v3743_v42, 0.0  ;;  %12440 = vmatmul.msk.f32.gmra.mxu0 %vm3837_vm2, %v3978_v54  ;;  %v19798_v54 = vld [vmem:[#allocation19_spill] sm:$0xff]  ;;  %v13566_v42 = vld [vmem:[%s13794_s22 + $0xe8] sm:$0xff]  ;;  %v15553_v51 = vpop.f32.mrf.mxu1  ;;  %v15556_v50 = vpop.f32.mrf.mxu0 }
 0x37e   : > { %v3946_v62 = vld [vmem:[#allocation3 + $0xa8] sm:$0xff] }
 0x37f   : > { %12390 = vmatmul.msk.f32.gmra.mxu2 %vm524_vm0, %v19796_v60  ;;  %v3504_v53 = vmax.f32 %v3472_v49, 0.0  ;;  %3911 = vst.msk [vmem:[#allocation3 + $0xb2] sm:$0xff] %vm3837_vm2, %v3816_v58  ;;  %12422 = vmatmul.msk.f32.gmra.mxu3 %vm524_vm0, %v13565_v37  ;;  %v3979_v55 = vld [vmem:[#allocation3 + $0xa9] sm:$0xff]  ;;  %v3162_v49 = vadd.f32 %v15109_v4, %v2886_v22 }
 0x381   : > { %3579 = vrot.lane.b32.xlu2 %v3504_v53, %s13643_s18 }
 0x382   : > { %v3365_v0 = vpop.f32.mrf.mxu2  ;;  %v3745_v10 = vpop.f32.mrf.mxu3 }
 0x383   : > { %12473 = vmatmul.msk.f32.gmra.mxu1 %vm3837_vm2, %v3946_v62  ;;  %v3437_v15 = vadd.f32 %v3365_v0, %v3161_v23  ;;  %v3746_v19 = vadd.f32 %v15337_v27, %v3745_v10  ;;  %v3211_v23 = vld [vmem:[#allocation2 + $0x19a] sm:$0xff] }
 0x384   : > { %v19799_v0 = vld [vmem:[#allocation10_spill] sm:$0xff] }
 0x385   : > { %v3473_v57 = vadd.f32 %v15346_v40, %v3437_v15  ;;  %v3817_v9 = vmax.f32 %v3746_v19, 0.0  ;;  %12441 = vmatmul.msk.f32.gmra.mxu0 %vm3837_vm2, %v3979_v55  ;;  %v2887_v15 = vadd.f32 %v15134_v12, %v19799_v0  ;;  %v13567_v19 = vld [vmem:[%s13794_s22 + $0xf0] sm:$0xff] }
 0x386   : > { %v3947_v16 = vld [vmem:[#allocation3 + $0xb0] sm:$0xff] }
 0x387   : > { %12391 = vmatmul.msk.f32.gmra.mxu2 %vm524_vm0, %v19798_v54  ;;  %v3505_v2 = vmax.f32 %v3473_v57, 0.0  ;;  %3912 = vst.msk [vmem:[#allocation3 + $0xc2] sm:$0xff] %vm3837_vm2, %v3817_v9  ;;  %12423 = vmatmul.msk.f32.gmra.mxu3 %vm524_vm0, %v13566_v42  ;;  %v3980_v37 = vld [vmem:[#allocation3 + $0xb1] sm:$0xff]  ;;  %v3163_v22 = vadd.f32 %v15121_v30, %v2887_v15  ;;  %v15570_v57 = vpop.f32.mrf.mxu0  ;;  %v15573_v9 = vpop.f32.mrf.mxu1 }
 0x389   : > { %3581 = vrot.lane.b32.xlu0 %v3505_v2, %s13643_s18 }
 0x38a   : > { %v3368_v58 = vpop.f32.mrf.mxu2  ;;  %v3748_v53 = vpop.f32.mrf.mxu3 }
 0x38b   : > { %12474 = vmatmul.msk.f32.gmra.mxu1 %vm3837_vm2, %v3947_v16  ;;  %v3438_v60 = vadd.f32 %v3368_v58, %v3162_v49  ;;  %v3749_v62 = vadd.f32 %v15337_v27, %v3748_v53  ;;  %v3212_v49 = vld [vmem:[#allocation2 + $0x1a2] sm:$0xff] }
 0x38c   : > { %v19800_v58 = vld [vmem:[#allocation16_spill] sm:$0xff] }
 0x38d   : > { %v3474_v10 = vadd.f32 %v15346_v40, %v3438_v60  ;;  %v3818_v4 = vmax.f32 %v3749_v62, 0.0  ;;  %12442 = vmatmul.msk.f32.gmra.mxu0 %vm3837_vm2, %v3980_v37  ;;  %v2888_v60 = vadd.f32 %v15148_v33, %v19800_v58  ;;  %v13568_v62 = vld [vmem:[%s13794_s22 + $0xf8] sm:$0xff]  ;;  %s13485_s22 = smul.u32 432, %s13785_s25  ;;  %s11941_s25 = sshll.u32 %s14017_s20, 4  ;;  %s11942_s25 = int_to_ptr.vmem [resolvable:$true] %s11941_s25 }
 0x38e   : > { %v3948_v61 = vld [vmem:[#allocation3 + $0xc0] sm:$0xff] }
 0x38f   : > { %12392 = vmatmul.msk.f32.gmra.mxu2 %vm524_vm0, %v3211_v23  ;;  %v3506_v55 = vmax.f32 %v3474_v10, 0.0  ;;  %3913 = vst.msk [vmem:[#allocation3 + $0xca] sm:$0xff] %vm3837_vm2, %v3818_v4  ;;  %12424 = vmatmul.msk.f32.gmra.mxu3 %vm524_vm0, %v13567_v19  ;;  %v3981_v42 = vld [vmem:[#allocation3 + $0xc1] sm:$0xff]  ;;  %v3164_v0 = vadd.f32 %v15136_v14, %v2888_v60  ;;  %s18502_s21 = scalar_lea.vmem %s20120_s1, %s13485_s22  ;;  %s13480_s22 = sshll.u32 %s13744_s17, 8 }
 0x390   : > { %v19801_v14 = vld [vmem:[#allocation17_spill] sm:$0xff]  ;;  %s11929_s17 = scalar_lea.sflag [#allocation5], %s473_s27 }
 0x391   : > { %3583 = vrot.lane.b32.xlu1 %v3506_v55, %s13643_s18 }
 0x392   : > { %v3371_v12 = vpop.f32.mrf.mxu2  ;;  %v3751_v2 = vpop.f32.mrf.mxu3 }
 0x393   : > { %12475 = vmatmul.msk.f32.gmra.mxu1 %vm3837_vm2, %v3948_v61  ;;  %v3439_v54 = vadd.f32 %v3371_v12, %v3163_v22  ;;  %v3752_v16 = vadd.f32 %v15337_v27, %v3751_v2  ;;  %v15593_v22 = vpop.f32.mrf.mxu1  ;;  %v4417_v12 = vld [vmem:[#allocation3 + $0x2] sm:$0xff] }
 0x395   : > { %v3475_v30 = vadd.f32 %v15346_v40, %v3439_v54  ;;  %v3819_v53 = vmax.f32 %v3752_v16, 0.0  ;;  %12443 = vmatmul.msk.f32.gmra.mxu0 %vm3837_vm2, %v3981_v42  ;;  %v2889_v54 = vadd.f32 %v15174_v7, %v19801_v14  ;;  %v4692_v42 = vld [vmem:[#allocation3 + $0x3] sm:$0xff] }
 0x396   : > { %v3949_v23 = vld [vmem:[#allocation3 + $0xc8] sm:$0xff] }
 0x397   : > { %12393 = vmatmul.msk.f32.gmra.mxu2 %vm524_vm0, %v3212_v49  ;;  %v3507_v37 = vmax.f32 %v3475_v30, 0.0  ;;  %3914 = vst.msk [vmem:[#allocation3 + $0xda] sm:$0xff] %vm3837_vm2, %v3819_v53  ;;  %12425 = vmatmul.msk.f32.gmra.mxu3 %vm524_vm0, %v13568_v62  ;;  %v3982_v19 = vld [vmem:[#allocation3 + $0xc9] sm:$0xff]  ;;  %v3165_v60 = vadd.f32 %v15150_v29, %v2889_v54 }
 0x399   : > { %3585 = vrot.lane.b32.xlu2 %v3507_v37, %s13643_s18 }
 0x39a   : > { %v3374_v33 = vpop.f32.mrf.mxu2  ;;  %v3754_v10 = vpop.f32.mrf.mxu3 }
 0x39b   : > { %12476 = vmatmul.msk.f32.gmra.mxu1 %vm3837_vm2, %v3949_v23  ;;  %v3440_v15 = vadd.f32 %v3374_v33, %v3164_v0  ;;  %v3558_v4 = vpop.permute.xlu0 %3557  ;;  %v15588_v55 = vpop.f32.mrf.mxu0  ;;  %v3755_v61 = vadd.f32 %v15337_v27, %v3754_v10  ;;  %v19802_v10 = vld [vmem:[#allocation11_spill] sm:$0xff] }
 0x39c   : > { %3654 = vst.msk [vmem:[%s14017_s20] sm:$0xff] %vm3653_vm4, %v3558_v4  ;;  %v2890_v29 = vadd.f32 %v15212_v56, %v19802_v10 }
 0x39d   : > { %v3476_v2 = vadd.f32 %v15346_v40, %v3440_v15  ;;  %v3820_v16 = vmax.f32 %v3755_v61, 0.0  ;;  %12444 = vmatmul.msk.f32.gmra.mxu0 %vm3837_vm2, %v3982_v19  ;;  %v4418_v15 = vld [vmem:[#allocation3 + $0xa] sm:$0xff] }
 0x39e   : > { %v3950_v58 = vld [vmem:[#allocation3 + $0xd8] sm:$0xff]  ;;  %v4693_v19 = vld [vmem:[#allocation3 + $0xb] sm:$0xff]  ;;  %v3166_v56 = vadd.f32 %v15180_v45, %v2890_v29 }
 0x39f   : > { %12492 = vmatmul.msk.f32.vlgmr.msra.gmra.mxu2 %vm3837_vm2, %v4417_v12  ;;  %v3508_v49 = vmax.f32 %v3476_v2, 0.0  ;;  %3915 = vst.msk [vmem:[#allocation3 + $0xe2] sm:$0xff] %vm3837_vm2, %v3820_v16  ;;  %12525 = vmatmul.msk.f32.vlgmr.msra.gmra.mxu3 %vm3837_vm2, %v4692_v42  ;;  %v3983_v23 = vld [vmem:[#allocation3 + $0xd9] sm:$0xff]  ;;  %v15615_v12 = vpop.f32.mrf.mxu1 }
 0x3a1   : > { %3587 = vrot.lane.b32.xlu0 %v3508_v49, %s13643_s18 }
 0x3a2   : > { %v3377_v7 = vpop.f32.mrf.mxu2  ;;  %v3757_v53 = vpop.f32.mrf.mxu3 }
 0x3a3   : > { %12477 = vmatmul.msk.f32.gmra.mxu1 %vm3837_vm2, %v3950_v58  ;;  %v3441_v30 = vadd.f32 %v3377_v7, %v3165_v60  ;;  %v3560_v37 = vpop.permute.xlu0 %3559  ;;  %v15605_v62 = vpop.f32.mrf.mxu0  ;;  %v3758_v0 = vadd.f32 %v15337_v27, %v3757_v53  ;;  %v4419_v53 = vld [vmem:[#allocation3 + $0x1a] sm:$0xff] }
 0x3a4   : > { %3655 = vst.msk [vmem:[%s14017_s20 + $0x8] sm:$0xff] %vm3653_vm4, %v3560_v37  ;;  %v3566_v33 = vpop.permute.xlu2 %3565  ;;  %v19803_v37 = vld [vmem:[#allocation14_spill] sm:$0xff] }
 0x3a5   : > { %v3477_v4 = vadd.f32 %v15346_v40, %v3441_v30  ;;  %3658 = vst.msk [vmem:[%s14017_s20 + $0x20] sm:$0xff] %vm3653_vm4, %v3566_v33  ;;  %v3821_v61 = vmax.f32 %v3758_v0, 0.0  ;;  %12445 = vmatmul.msk.f32.gmra.mxu0 %vm3837_vm2, %v3983_v23  ;;  %v2891_v45 = vadd.f32 %v15250_v36, %v19803_v37  ;;  %v4694_v0 = vld [vmem:[#allocation3 + $0x1b] sm:$0xff] }
 0x3a6   : > { %v3951_v54 = vld [vmem:[#allocation3 + $0xe0] sm:$0xff] }
 0x3a7   : > { %12493 = vmatmul.msk.f32.gmra.mxu2 %vm3837_vm2, %v4418_v15  ;;  %v3509_v14 = vmax.f32 %v3477_v4, 0.0  ;;  %3916 = vst.msk [vmem:[#allocation3 + $0xf2] sm:$0xff] %vm3837_vm2, %v3821_v61  ;;  %12526 = vmatmul.msk.f32.gmra.mxu3 %vm3837_vm2, %v4693_v19  ;;  %v3984_v60 = vld [vmem:[#allocation3 + $0xe1] sm:$0xff]  ;;  %v3167_v36 = vadd.f32 %v15217_v8, %v2891_v45 }
 0x3a9   : > { %3589 = vrot.lane.b32.xlu1 %v3509_v14, %s13643_s18 }
 0x3aa   : > { %v3380_v2 = vpop.f32.mrf.mxu2  ;;  %v3760_v16 = vpop.f32.mrf.mxu3 }
 0x3ab   : > { %12478 = vmatmul.msk.f32.gmra.mxu1 %vm3837_vm2, %v3951_v54  ;;  %v3442_v42 = vadd.f32 %v3380_v2, %v3166_v56  ;;  %v3562_v49 = vpop.permute.xlu1 %3561  ;;  %v15624_v58 = vpop.f32.mrf.mxu0  ;;  %v3761_v7 = vadd.f32 %v15337_v27, %v3760_v16  ;;  %v2892_v16 = vadd.f32 %v15285_v46, %v15085_v63 }
 0x3ac   : > { %3656 = vst.msk [vmem:[%s14017_s20 + $0x10] sm:$0xff] %vm3653_vm4, %v3562_v49  ;;  %v3568_v30 = vpop.permute.xlu2 %3567  ;;  %v4695_v49 = vld [vmem:[#allocation3 + $0x23] sm:$0xff] }
 0x3ad   : > { %v3478_v23 = vadd.f32 %v15346_v40, %v3442_v42  ;;  %3659 = vst.msk [vmem:[%s14017_s20 + $0x28] sm:$0xff] %vm3653_vm4, %v3568_v30  ;;  %v3822_v33 = vmax.f32 %v3761_v7, 0.0  ;;  %12446 = vmatmul.msk.f32.gmra.mxu0 %vm3837_vm2, %v3984_v60  ;;  %v4420_v42 = vld [vmem:[#allocation3 + $0x22] sm:$0xff]  ;;  %v3168_v37 = vadd.f32 %v15254_v59, %v2892_v16  ;;  %v4696_v59 = vld [vmem:[#allocation3 + $0x33] sm:$0xff] }
 0x3ae   : > { %v3952_v29 = vld [vmem:[#allocation3 + $0xf0] sm:$0xff] }
 0x3af   : > { %12494 = vmatmul.msk.f32.gmra.mxu2 %vm3837_vm2, %v4419_v53  ;;  %v3510_v15 = vmax.f32 %v3478_v23, 0.0  ;;  %3917 = vst.msk [vmem:[#allocation3 + $0xfa] sm:$0xff] %vm3837_vm2, %v3822_v33  ;;  %12527 = vmatmul.msk.f32.gmra.mxu3 %vm3837_vm2, %v4694_v0  ;;  %v3985_v56 = vld [vmem:[#allocation3 + $0xf1] sm:$0xff] }
 0x3b0   : > { %v15637_v10 = vpop.f32.mrf.mxu1 }
 0x3b1   : > { %3591 = vrot.lane.b32.xlu2 %v3510_v15, %s13643_s18  ;;  %v2893_v15 = vadd.f32 %v15316_v43, %v15097_v26 }
 0x3b2   : > { %v3383_v4 = vpop.f32.mrf.mxu2  ;;  %v3763_v61 = vpop.f32.mrf.mxu3 }
 0x3b3   : > { %12479 = vmatmul.msk.f32.gmra.mxu1 %vm3837_vm2, %v3952_v29  ;;  %v3443_v19 = vadd.f32 %v3383_v4, %v3167_v36  ;;  %v3564_v14 = vpop.permute.xlu1 %3563  ;;  %v15643_v54 = vpop.f32.mrf.mxu0  ;;  %v3764_v2 = vadd.f32 %v15337_v27, %v3763_v61  ;;  %v4421_v4 = vld [vmem:[#allocation3 + $0x32] sm:$0xff]  ;;  %v3169_v26 = vadd.f32 %v15289_v13, %v2893_v15 }
 0x3b4   : > { %3657 = vst.msk [vmem:[%s14017_s20 + $0x18] sm:$0xff] %vm3653_vm4, %v3564_v14 }
 0x3b5   : > { %v3479_v8 = vadd.f32 %v15346_v40, %v3443_v19  ;;  %v3823_v60 = vmax.f32 %v3764_v2, 0.0  ;;  %12447 = vmatmul.msk.f32.gmra.mxu0 %vm3837_vm2, %v3985_v56 }
 0x3b6   : > { %v3953_v53 = vld [vmem:[#allocation3 + $0xf8] sm:$0xff] }
 0x3b7   : > { %12495 = vmatmul.msk.f32.gmra.mxu2 %vm3837_vm2, %v4420_v42  ;;  %v3511_v7 = vmax.f32 %v3479_v8, 0.0  ;;  %3918 = vst.msk [vmem:[#allocation3 + $0x10a] sm:$0xff] %vm3837_vm2, %v3823_v60  ;;  %12528 = vmatmul.msk.f32.gmra.mxu3 %vm3837_vm2, %v4695_v49  ;;  %v3986_v0 = vld [vmem:[#allocation3 + $0xf9] sm:$0xff]  ;;  %v2894_v60 = vadd.f32 %v15360_v38, %v15107_v44 }
 0x3b8   : > { %v15654_v30 = vpop.f32.mrf.mxu1 }
 0x3b9   : > { %3593 = vrot.lane.b32.xlu0 %v3511_v7, %s13643_s18  ;;  %v3170_v44 = vadd.f32 %v15322_v52, %v2894_v60 }
 0x3ba   : > { %v3386_v63 = vpop.f32.mrf.mxu2  ;;  %v3766_v45 = vpop.f32.mrf.mxu3 }
 0x3bb   : > { %12480 = vmatmul.msk.f32.gmra.mxu1 %vm3837_vm2, %v3953_v53  ;;  %v3444_v46 = vadd.f32 %v3386_v63, %v3168_v37  ;;  %v15660_v23 = vpop.f32.mrf.mxu0  ;;  %v3767_v33 = vadd.f32 %v15337_v27, %v3766_v45  ;;  %v4422_v53 = vld [vmem:[#allocation3 + $0x3a] sm:$0xff] }
 0x3bc   : > { %v4697_v37 = vld [vmem:[#allocation3 + $0x3b] sm:$0xff] }
 0x3bd   : > { %v3480_v29 = vadd.f32 %v15346_v40, %v3444_v46  ;;  %v3824_v36 = vmax.f32 %v3767_v33, 0.0  ;;  %12448 = vmatmul.msk.f32.gmra.mxu0 %vm3837_vm2, %v3986_v0 }
 0x3be   : > { %v3954_v14 = vld [vmem:[#allocation3 + $0x108] sm:$0xff] }
 0x3bf   : > { %12496 = vmatmul.msk.f32.gmra.mxu2 %vm3837_vm2, %v4421_v4  ;;  %v3512_v19 = vmax.f32 %v3480_v29, 0.0  ;;  %3919 = vst.msk [vmem:[#allocation3 + $0x112] sm:$0xff] %vm3837_vm2, %v3824_v36  ;;  %12529 = vmatmul.msk.f32.gmra.mxu3 %vm3837_vm2, %v4696_v59  ;;  %v3987_v8 = vld [vmem:[#allocation3 + $0x109] sm:$0xff]  ;;  %v19804_v59 = vld [vmem:[#allocation24_spill] sm:$0xff] }
 0x3c0   : > { %v15669_v61 = vpop.f32.mrf.mxu1 }
 0x3c1   : > { %3595 = vrot.lane.b32.xlu1 %v3512_v19, %s13643_s18  ;;  %v2895_v19 = vadd.f32 %v15389_v39, %v19804_v59 }
 0x3c2   : > { %v3389_v43 = vpop.f32.mrf.mxu2  ;;  %v3769_v2 = vpop.f32.mrf.mxu3 }
 0x3c3   : > { %12481 = vmatmul.msk.f32.gmra.mxu1 %vm3837_vm2, %v3954_v14  ;;  %v3445_v56 = vadd.f32 %v3389_v43, %v3169_v26  ;;  %v3574_v42 = vpop.permute.xlu2 %3573  ;;  %v15675_v16 = vpop.f32.mrf.mxu0  ;;  %v3770_v49 = vadd.f32 %v15337_v27, %v3769_v2  ;;  %v4423_v26 = vld [vmem:[#allocation3 + $0x4a] sm:$0xff]  ;;  %v3171_v39 = vadd.f32 %v15366_v17, %v2895_v19 }
 0x3c4   : > { %3662 = vst.msk [vmem:[%s14017_s20 + $0x40] sm:$0xff] %vm3653_vm4, %v3574_v42  ;;  %v4698_v43 = vld [vmem:[#allocation3 + $0x4b] sm:$0xff] }
 0x3c5   : > { %v3481_v13 = vadd.f32 %v15346_v40, %v3445_v56  ;;  %v3825_v7 = vmax.f32 %v3770_v49, 0.0  ;;  %12449 = vmatmul.msk.f32.gmra.mxu0 %vm3837_vm2, %v3987_v8 }
 0x3c6   : > { %v3955_v45 = vld [vmem:[#allocation3 + $0x110] sm:$0xff] }
 0x3c7   : > { %12497 = vmatmul.msk.f32.gmra.mxu2 %vm3837_vm2, %v4422_v53  ;;  %v3513_v63 = vmax.f32 %v3481_v13, 0.0  ;;  %3920 = vst.msk [vmem:[#allocation3 + $0x122] sm:$0xff] %vm3837_vm2, %v3825_v7  ;;  %12530 = vmatmul.msk.f32.gmra.mxu3 %vm3837_vm2, %v4697_v37  ;;  %v3988_v36 = vld [vmem:[#allocation3 + $0x111] sm:$0xff] }
 0x3c8   : > { %v15686_v46 = vpop.f32.mrf.mxu1 }
 0x3c9   : > { %3597 = vrot.lane.b32.xlu2 %v3513_v63, %s13643_s18  ;;  %v2896_v63 = vadd.f32 %v15405_v21, %v15127_v6 }
 0x3ca   : > { %v3392_v38 = vpop.f32.mrf.mxu2  ;;  %v3772_v33 = vpop.f32.mrf.mxu3 }
 0x3cb   : > { %12482 = vmatmul.msk.f32.gmra.mxu1 %vm3837_vm2, %v3955_v45  ;;  %v3446_v0 = vadd.f32 %v3392_v38, %v3170_v44  ;;  %v3570_v15 = vpop.permute.xlu0 %3569  ;;  %v15692_v29 = vpop.f32.mrf.mxu0  ;;  %v3773_v4 = vadd.f32 %v15337_v27, %v3772_v33  ;;  %v4424_v44 = vld [vmem:[#allocation3 + $0x52] sm:$0xff]  ;;  %v3172_v6 = vadd.f32 %v15392_v32, %v2896_v63 }
 0x3cc   : > { %3660 = vst.msk [vmem:[%s14017_s20 + $0x30] sm:$0xff] %vm3653_vm4, %v3570_v15  ;;  %v4699_v38 = vld [vmem:[#allocation3 + $0x53] sm:$0xff] }
 0x3cd   : > { %v3482_v52 = vadd.f32 %v15346_v40, %v3446_v0  ;;  %v3826_v14 = vmax.f32 %v3773_v4, 0.0  ;;  %12450 = vmatmul.msk.f32.gmra.mxu0 %vm3837_vm2, %v3988_v36 }
 0x3ce   : > { %v3956_v42 = vld [vmem:[#allocation3 + $0x120] sm:$0xff] }
 0x3cf   : > { %12498 = vmatmul.msk.f32.gmra.mxu2 %vm3837_vm2, %v4423_v26  ;;  %v3514_v56 = vmax.f32 %v3482_v52, 0.0  ;;  %3921 = vst.msk [vmem:[#allocation3 + $0x12a] sm:$0xff] %vm3837_vm2, %v3826_v14  ;;  %12531 = vmatmul.msk.f32.gmra.mxu3 %vm3837_vm2, %v4698_v43  ;;  %v3989_v53 = vld [vmem:[#allocation3 + $0x121] sm:$0xff] }
 0x3d0   : > { %v15703_v2 = vpop.f32.mrf.mxu1  ;;  %v19805_v26 = vld [vmem:[#allocation21_spill] sm:$0xff] }
 0x3d1   : > { %3599 = vrot.lane.b32.xlu0 %v3514_v56, %s13643_s18  ;;  %v2897_v43 = vadd.f32 %v15422_v35, %v19805_v26 }
 0x3d2   : > { %v3395_v8 = vpop.f32.mrf.mxu2  ;;  %v3775_v60 = vpop.f32.mrf.mxu3 }
 0x3d3   : > { %12483 = vmatmul.msk.f32.gmra.mxu1 %vm3837_vm2, %v3956_v42  ;;  %v3447_v49 = vadd.f32 %v3395_v8, %v3171_v39  ;;  %v3572_v13 = vpop.permute.xlu1 %3571  ;;  %v15709_v7 = vpop.f32.mrf.mxu0  ;;  %v3776_v37 = vadd.f32 %v15337_v27, %v3775_v60  ;;  %v4425_v42 = vld [vmem:[#allocation3 + $0x62] sm:$0xff]  ;;  %v3173_v35 = vadd.f32 %v15408_v31, %v2897_v43 }
 0x3d4   : > { %3661 = vst.msk [vmem:[%s14017_s20 + $0x38] sm:$0xff] %vm3653_vm4, %v3572_v13  ;;  %v4700_v39 = vld [vmem:[#allocation3 + $0x63] sm:$0xff] }
 0x3d5   : > { %v3483_v17 = vadd.f32 %v15346_v40, %v3447_v49  ;;  %v3827_v45 = vmax.f32 %v3776_v37, 0.0  ;;  %12451 = vmatmul.msk.f32.gmra.mxu0 %vm3837_vm2, %v3989_v53  ;;  %v19806_v31 = vld [vmem:[#allocation22_spill] sm:$0xff] }
 0x3d6   : > { %v3957_v15 = vld [vmem:[#allocation3 + $0x128] sm:$0xff] }
 0x3d7   : > { %12499 = vmatmul.msk.f32.gmra.mxu2 %vm3837_vm2, %v4424_v44  ;;  %v3515_v0 = vmax.f32 %v3483_v17, 0.0  ;;  %3922 = vst.msk [vmem:[#allocation3 + $0x13a] sm:$0xff] %vm3837_vm2, %v3827_v45  ;;  %12532 = vmatmul.msk.f32.gmra.mxu3 %vm3837_vm2, %v4699_v38  ;;  %v3990_v52 = vld [vmem:[#allocation3 + $0x129] sm:$0xff]  ;;  %v2898_v44 = vadd.f32 %v15438_v28, %v19806_v31 }
 0x3d8   : > { %v15720_v33 = vpop.f32.mrf.mxu1  ;;  %v15748_v17 = vld [vmem:[%s19438_s9] ss:$0 sm:$0xff] }
 0x3d9   : > { %3601 = vrot.lane.b32.xlu1 %v3515_v0, %s13643_s18  ;;  %v15758_v38 = vld [vmem:[%s19436_s7] ss:$0 sm:$0xff] }
 0x3da   : > { %v3398_v21 = vpop.f32.mrf.mxu2  ;;  %v3778_v4 = vpop.f32.mrf.mxu3 }
 0x3db   : > { %12484 = vmatmul.msk.f32.gmra.mxu1 %vm3837_vm2, %v3957_v15  ;;  %v3448_v36 = vadd.f32 %v3398_v21, %v3172_v6  ;;  %v3580_v59 = vpop.permute.xlu2 %3579  ;;  %v15726_v19 = vpop.f32.mrf.mxu0  ;;  %v3779_v14 = vadd.f32 %v15337_v27, %v3778_v4  ;;  %v4426_v6 = vld [vmem:[#allocation3 + $0x6a] sm:$0xff] }
 0x3dc   : > { %3665 = vst.msk [vmem:[%s14017_s20 + $0x58] sm:$0xff] %vm3653_vm4, %v3580_v59  ;;  %v4701_v21 = vld [vmem:[#allocation3 + $0x6b] sm:$0xff]  ;;  %v3174_v59 = vadd.f32 %v15425_v11, %v2898_v44 }
 0x3dd   : > { %v3484_v32 = vadd.f32 %v15346_v40, %v3448_v36  ;;  %v3828_v56 = vmax.f32 %v3779_v14, 0.0  ;;  %12452 = vmatmul.msk.f32.gmra.mxu0 %vm3837_vm2, %v3990_v52 }
 0x3de   : > { %v3958_v27 = vld [vmem:[#allocation3 + $0x138] sm:$0xff] }
 0x3df   : > { %12500 = vmatmul.msk.f32.gmra.mxu2 %vm3837_vm2, %v4425_v42  ;;  %v3516_v8 = vmax.f32 %v3484_v32, 0.0  ;;  %3923 = vst.msk [vmem:[#allocation3 + $0x142] sm:$0xff] %vm3837_vm2, %v3828_v56  ;;  %12533 = vmatmul.msk.f32.gmra.mxu3 %vm3837_vm2, %v4700_v39  ;;  %v3991_v63 = vld [vmem:[#allocation3 + $0x139] sm:$0xff]  ;;  %v19807_v39 = vld [vmem:[#allocation15_spill] sm:$0xff] }
 0x3e0   : > { %v15737_v49 = vpop.f32.mrf.mxu1 }
 0x3e1   : > { %3603 = vrot.lane.b32.xlu2 %v3516_v8, %s13643_s18  ;;  %v2899_v8 = vadd.f32 %v15460_v20, %v19807_v39 }
 0x3e2   : > { %v3401_v40 = vpop.f32.mrf.mxu2  ;;  %v3781_v13 = vpop.f32.mrf.mxu3 }
 0x3e3   : > { %12485 = vmatmul.msk.f32.gmra.mxu1 %vm3837_vm2, %v3958_v27  ;;  %v3449_v60 = vadd.f32 %v3401_v40, %v3173_v35  ;;  %v3576_v53 = vpop.permute.xlu0 %3575  ;;  %v15743_v37 = vpop.f32.mrf.mxu0  ;;  %v3782_v45 = vadd.f32 %v15748_v17, %v3781_v13  ;;  %v12623_v27 = vld [vmem:[%s19439_s10 + $0x30] sm:$0xff] }
 0x3e4   : > { %3663 = vst.msk [vmem:[%s14017_s20 + $0x48] sm:$0xff] %vm3653_vm4, %v3576_v53  ;;  %v4427_v40 = vld [vmem:[#allocation3 + $0x7a] sm:$0xff]  ;;  %5663 = vmatpush.msrb.mxu2 %v12623_v27  ;;  %v12656_v53 = vld [vmem:[%s19439_s10 + $0x38] sm:$0xff] }
 0x3e5   : > { %v3485_v0 = vadd.f32 %v15758_v38, %v3449_v60  ;;  %v3829_v15 = vmax.f32 %v3782_v45, 0.0  ;;  %12453 = vmatmul.msk.f32.gmra.mxu0 %vm3837_vm2, %v3991_v63  ;;  %v4702_v60 = vld [vmem:[#allocation3 + $0x7b] sm:$0xff]  ;;  %v3175_v45 = vadd.f32 %v15442_v47, %v2899_v8  ;;  %5938 = vmatpush.msrb.mxu3 %v12656_v53 }
 0x3e6   : > { %v3959_v28 = vld [vmem:[#allocation3 + $0x140] sm:$0xff] }
 0x3e7   : > { %12501 = vmatmul.msk.f32.gmra.mxu2 %vm3837_vm2, %v4426_v6  ;;  %v3517_v36 = vmax.f32 %v3485_v0, 0.0  ;;  %3924 = vst.msk [vmem:[#allocation3 + $0x152] sm:$0xff] %vm3837_vm2, %v3829_v15  ;;  %12534 = vmatmul.msk.f32.gmra.mxu3 %vm3837_vm2, %v4701_v21  ;;  %v3992_v56 = vld [vmem:[#allocation3 + $0x141] sm:$0xff] }
 0x3e8   : > { %v15764_v4 = vpop.f32.mrf.mxu1  ;;  %v19809_v53 = vld [vmem:[#allocation29_spill] sm:$0xff] }
 0x3e9   : > { %3605 = vrot.lane.b32.xlu0 %v3517_v36, %s13643_s18 }
 0x3ea   : > { %v3404_v52 = vpop.f32.mrf.mxu2  ;;  %v3784_v26 = vpop.f32.mrf.mxu3 }
 0x3eb   : > { %12486 = vmatmul.msk.f32.gmra.mxu1 %vm3837_vm2, %v3959_v28  ;;  %v3450_v14 = vadd.f32 %v3404_v52, %v3174_v59  ;;  %v3578_v43 = vpop.permute.xlu1 %3577  ;;  %v15770_v32 = vpop.f32.mrf.mxu0  ;;  %v3785_v42 = vadd.f32 %v15748_v17, %v3784_v26  ;;  %v19808_v28 = vld [vmem:[#allocation18_spill] sm:$0xff] }
 0x3ec   : > { %3664 = vst.msk [vmem:[%s14017_s20 + $0x50] sm:$0xff] %vm3653_vm4, %v3578_v43  ;;  %v2900_v59 = vadd.f32 %v15477_v18, %v19808_v28  ;;  %v4703_v26 = vld [vmem:[#allocation3 + $0x83] sm:$0xff]  ;;  %v12689_v18 = vld [vmem:[%s19439_s10 + $0x40] sm:$0xff] }
 0x3ed   : > { %v3486_v11 = vadd.f32 %v15758_v38, %v3450_v14  ;;  %v3830_v35 = vmax.f32 %v3785_v42, 0.0  ;;  %12454 = vmatmul.msk.f32.gmra.mxu0 %vm3837_vm2, %v3992_v56  ;;  %v4428_v14 = vld [vmem:[#allocation3 + $0x82] sm:$0xff] }
 0x3ee   : > { %v3960_v63 = vld [vmem:[#allocation3 + $0x150] sm:$0xff]  ;;  %v3176_v39 = vadd.f32 %v15463_v24, %v2900_v59  ;;  %6213 = vmatpush.msrb.mxu0 %v12689_v18 }
 0x3ef   : > { %12502 = vmatmul.msk.f32.gmra.mxu2 %vm3837_vm2, %v4427_v40  ;;  %v3518_v13 = vmax.f32 %v3486_v11, 0.0  ;;  %3925 = vst.msk [vmem:[#allocation3 + $0x15a] sm:$0xff] %vm3837_vm2, %v3830_v35  ;;  %12535 = vmatmul.msk.f32.gmra.mxu3 %vm3837_vm2, %v4702_v60  ;;  %v3993_v21 = vld [vmem:[#allocation3 + $0x151] sm:$0xff] }
 0x3f0   : > { %v15787_v20 = vpop.f32.mrf.mxu1 }
 0x3f1   : > { %3607 = vrot.lane.b32.xlu1 %v3518_v13, %s13643_s18 }
 0x3f2   : > { %v3407_v31 = vpop.f32.mrf.mxu2  ;;  %v3787_v0 = vpop.f32.mrf.mxu3 }
 0x3f3   : > { %12487 = vmatmul.msk.f32.gmra.mxu1 %vm3837_vm2, %v3960_v63  ;;  %v3451_v44 = vadd.f32 %v3407_v31, %v3175_v45  ;;  %v3586_v15 = vpop.permute.xlu2 %3585  ;;  %v15793_v6 = vpop.f32.mrf.mxu0  ;;  %v3788_v36 = vadd.f32 %v15748_v17, %v3787_v0  ;;  %v2901_v63 = vadd.f32 %v15497_v25, %v19809_v53  ;;  %v4429_v31 = vld [vmem:[#allocation3 + $0x92] sm:$0xff] }
 0x3f4   : > { %3668 = vst.msk [vmem:[%s14017_s20 + $0x70] sm:$0xff] %vm3653_vm4, %v3586_v15 }
 0x3f5   : > { %v3487_v47 = vadd.f32 %v15758_v38, %v3451_v44  ;;  %v3831_v52 = vmax.f32 %v3788_v36, 0.0  ;;  %12455 = vmatmul.msk.f32.gmra.mxu0 %vm3837_vm2, %v3993_v21  ;;  %v4704_v44 = vld [vmem:[#allocation3 + $0x93] sm:$0xff]  ;;  %v3177_v25 = vadd.f32 %v15480_v48, %v2901_v63 }
 0x3f6   : > { %v3961_v42 = vld [vmem:[#allocation3 + $0x158] sm:$0xff] }
 0x3f7   : > { %12503 = vmatmul.msk.f32.gmra.mxu2 %vm3837_vm2, %v4428_v14  ;;  %v3519_v43 = vmax.f32 %v3487_v47, 0.0  ;;  %3926 = vst.msk [vmem:[#allocation3 + $0x16a] sm:$0xff] %vm3837_vm2, %v3831_v52  ;;  %12536 = vmatmul.msk.f32.gmra.mxu3 %vm3837_vm2, %v4703_v26  ;;  %v3994_v60 = vld [vmem:[#allocation3 + $0x159] sm:$0xff] }
 0x3f8   : > { %v15804_v56 = vpop.f32.mrf.mxu1 }
 0x3f9   : > { %3609 = vrot.lane.b32.xlu2 %v3519_v43, %s13643_s18  ;;  %v19810_v43 = vld [vmem:[#allocation26_spill] sm:$0xff] }
 0x3fa   : > { %v3410_v8 = vpop.f32.mrf.mxu2  ;;  %v3790_v27 = vpop.f32.mrf.mxu3 }
 0x3fb   : > { %12488 = vmatmul.msk.f32.gmra.mxu1 %vm3837_vm2, %v3961_v42  ;;  %v3452_v11 = vadd.f32 %v3410_v8, %v3176_v39  ;;  %v3582_v35 = vpop.permute.xlu0 %3581  ;;  %v15813_v40 = vpop.f32.mrf.mxu0  ;;  %v3791_v13 = vadd.f32 %v15748_v17, %v3790_v27  ;;  %v2902_v42 = vadd.f32 %v15516_v34, %v19810_v43  ;;  %v4430_v39 = vld [vmem:[#allocation3 + $0x9a] sm:$0xff] }
 0x3fc   : > { %3666 = vst.msk [vmem:[%s14017_s20 + $0x60] sm:$0xff] %vm3653_vm4, %v3582_v35  ;;  %v4705_v8 = vld [vmem:[#allocation3 + $0x9b] sm:$0xff] }
 0x3fd   : > { %v3488_v24 = vadd.f32 %v15758_v38, %v3452_v11  ;;  %v3832_v45 = vmax.f32 %v3791_v13, 0.0  ;;  %12456 = vmatmul.msk.f32.gmra.mxu0 %vm3837_vm2, %v3994_v60  ;;  %v12722_v27 = vld [vmem:[%s19439_s10 + $0x48] sm:$0xff]  ;;  %v3178_v60 = vadd.f32 %v15500_v5, %v2902_v42 }
 0x3fe   : > { %v3962_v21 = vld [vmem:[#allocation3 + $0x168] sm:$0xff]  ;;  %6488 = vmatpush.msrb.mxu1 %v12722_v27 }
 0x3ff   : > { %12504 = vmatmul.msk.f32.gmra.mxu2 %vm3837_vm2, %v4429_v31  ;;  %v3520_v0 = vmax.f32 %v3488_v24, 0.0  ;;  %3927 = vst.msk [vmem:[#allocation3 + $0x172] sm:$0xff] %vm3837_vm2, %v3832_v45  ;;  %12537 = vmatmul.msk.f32.gmra.mxu3 %vm3837_vm2, %v4704_v44  ;;  %v3995_v14 = vld [vmem:[#allocation3 + $0x169] sm:$0xff] }
 0x400   : > { %v15824_v15 = vpop.f32.mrf.mxu1 }
 0x401   : > { %3611 = vrot.lane.b32.xlu0 %v3520_v0, %s13643_s18  ;;  %v19811_v0 = vld [vmem:[#allocation27_spill] sm:$0xff] }
 0x402   : > { %v3413_v36 = vpop.f32.mrf.mxu2  ;;  %v3793_v59 = vpop.f32.mrf.mxu3 }
 0x403   : > { %12489 = vmatmul.msk.f32.gmra.mxu1 %vm3837_vm2, %v3962_v21  ;;  %v3453_v28 = vadd.f32 %v3413_v36, %v3177_v25  ;;  %v3584_v47 = vpop.permute.xlu1 %3583  ;;  %v15830_v52 = vpop.f32.mrf.mxu0  ;;  %v3794_v26 = vadd.f32 %v15748_v17, %v3793_v59  ;;  %v2903_v21 = vadd.f32 %v15530_v1, %v19811_v0  ;;  %v4431_v36 = vld [vmem:[#allocation3 + $0xaa] sm:$0xff] }
 0x404   : > { %3667 = vst.msk [vmem:[%s14017_s20 + $0x68] sm:$0xff] %vm3653_vm4, %v3584_v47 }
 0x405   : > { %v3489_v48 = vadd.f32 %v15758_v38, %v3453_v28  ;;  %v3833_v18 = vmax.f32 %v3794_v26, 0.0  ;;  %12457 = vmatmul.msk.f32.gmra.mxu0 %vm3837_vm2, %v3995_v14  ;;  %v4706_v28 = vld [vmem:[#allocation3 + $0xab] sm:$0xff]  ;;  %v5243_v14 = vld [vmem:[#allocation3 + $0x18] sm:$0xff]  ;;  %v3179_v1 = vadd.f32 %v15514_v41, %v2903_v21 }
 0x406   : > { %v3963_v34 = vld [vmem:[#allocation3 + $0x170] sm:$0xff] }
 0x407   : > { %12505 = vmatmul.msk.f32.gmra.mxu2 %vm3837_vm2, %v4430_v39  ;;  %v3521_v11 = vmax.f32 %v3489_v48, 0.0  ;;  %3928 = vst.msk [vmem:[#allocation3 + $0x182] sm:$0xff] %vm3837_vm2, %v3833_v18  ;;  %12538 = vmatmul.msk.f32.gmra.mxu3 %vm3837_vm2, %v4705_v8  ;;  %v3996_v31 = vld [vmem:[#allocation3 + $0x171] sm:$0xff]  ;;  %v4967_v39 = vld [vmem:[#allocation3 + $0x4] sm:$0xff] }
 0x408   : > { %v15844_v35 = vpop.f32.mrf.mxu1 }
 0x409   : > { %3613 = vrot.lane.b32.xlu1 %v3521_v11, %s13643_s18  ;;  %v19812_v11 = vld [vmem:[#allocation20_spill] sm:$0xff] }
 0x40a   : > { %v3416_v13 = vpop.f32.mrf.mxu2  ;;  %v3796_v63 = vpop.f32.mrf.mxu3  ;;  %v2904_v27 = vadd.f32 %v15556_v50, %v19812_v11  ;;  %v15902_v11 = vld [vmem:[#allocation3 + $0x1c] sm:$0xff] }
 0x40b   : > { %12490 = vmatmul.msk.f32.gmra.mxu1 %vm3837_vm2, %v3963_v34  ;;  %v3454_v53 = vadd.f32 %v3416_v13, %v3178_v60  ;;  %v3592_v24 = vpop.permute.xlu2 %3591  ;;  %v15850_v45 = vpop.f32.mrf.mxu0  ;;  %v3797_v44 = vadd.f32 %v15748_v17, %v3796_v63  ;;  %v4432_v60 = vld [vmem:[#allocation3 + $0xb2] sm:$0xff] }
 0x40c   : > { %3671 = vst.msk [vmem:[%s14017_s20 + $0x88] sm:$0xff] %vm3653_vm4, %v3592_v24  ;;  %v4707_v13 = vld [vmem:[#allocation3 + $0xb3] sm:$0xff]  ;;  %v5244_v24 = vld [vmem:[#allocation3 + $0x20] sm:$0xff]  ;;  %v3180_v50 = vadd.f32 %v15535_v3, %v2904_v27 }
 0x40d   : > { %v3490_v5 = vadd.f32 %v15758_v38, %v3454_v53  ;;  %v3834_v25 = vmax.f32 %v3797_v44, 0.0  ;;  %12458 = vmatmul.msk.f32.gmra.mxu0 %vm3837_vm2, %v3996_v31  ;;  %v4708_v3 = vld [vmem:[#allocation3 + $0xc3] sm:$0xff] }
 0x40f   : > { %12506 = vmatmul.msk.f32.gmra.mxu2 %vm3837_vm2, %v4431_v36  ;;  %v3522_v59 = vmax.f32 %v3490_v5, 0.0  ;;  %3929 = vst.msk [vmem:[#allocation3 + $0x18a] sm:$0xff] %vm3837_vm2, %v3834_v25  ;;  %12539 = vmatmul.msk.f32.gmra.mxu3 %vm3837_vm2, %v4706_v28  ;;  %v4968_v25 = vld [vmem:[#allocation3 + $0xc] sm:$0xff] }
 0x410   : > { %v15861_v47 = vpop.f32.mrf.mxu1 }
 0x411   : > { %3615 = vrot.lane.b32.xlu2 %v3522_v59, %s13643_s18 }
 0x412   : > { %v3419_v26 = vpop.f32.mrf.mxu2  ;;  %v3799_v42 = vpop.f32.mrf.mxu3 }
 0x413   : > { %12591 = vmatmul.msk.f32.vlgmr.msra.gmra.mxu1 %vm3837_vm2, %v5243_v14  ;;  %v3455_v43 = vadd.f32 %v3419_v26, %v3179_v1  ;;  %v3588_v48 = vpop.permute.xlu0 %3587  ;;  %v15867_v18 = vpop.f32.mrf.mxu0  ;;  %v3800_v8 = vadd.f32 %v15748_v17, %v3799_v42  ;;  %v4433_v14 = vld [vmem:[#allocation3 + $0xc2] sm:$0xff] }
 0x414   : > { %3669 = vst.msk [vmem:[%s14017_s20 + $0x78] sm:$0xff] %vm3653_vm4, %v3588_v48 }
 0x415   : > { %v3491_v41 = vadd.f32 %v15758_v38, %v3455_v43  ;;  %v3835_v34 = vmax.f32 %v3800_v8, 0.0  ;;  %12558 = vmatmul.msk.f32.vlgmr.msra.gmra.mxu0 %vm3837_vm2, %v4967_v39 }
 0x417   : > { %12507 = vmatmul.msk.f32.gmra.mxu2 %vm3837_vm2, %v4432_v60  ;;  %v3523_v53 = vmax.f32 %v3491_v41, 0.0  ;;  %3930 = vst.msk [vmem:[#allocation3 + $0x19a] sm:$0xff] %vm3837_vm2, %v3835_v34  ;;  %12540 = vmatmul.msk.f32.gmra.mxu3 %vm3837_vm2, %v4707_v13  ;;  %v4434_v41 = vld [vmem:[#allocation3 + $0xca] sm:$0xff]  ;;  %v4325_v34 = vadd.f32 %v15573_v9, %v15588_v55  ;;  %v5246_v60 = vld [vmem:[#allocation3 + $0x38] sm:$0xff] }
 0x418   : > { %v15878_v63 = vpop.f32.mrf.mxu1  ;;  %v4710_v9 = vld [vmem:[#allocation3 + $0xdb] sm:$0xff] }
 0x419   : > { %3617 = vrot.lane.b32.xlu0 %v3523_v53, %s13643_s18 }
 0x41a   : > { %v3422_v31 = vpop.f32.mrf.mxu2  ;;  %v3802_v0 = vpop.f32.mrf.mxu3 }
 0x41b   : > { %12592 = vmatmul.msk.f32.gmra.mxu1 %vm3837_vm2, %v5244_v24  ;;  %v3456_v44 = vadd.f32 %v3422_v31, %v3180_v50  ;;  %v3590_v21 = vpop.permute.xlu1 %3589  ;;  %v15884_v5 = vpop.f32.mrf.mxu0  ;;  %v3803_v36 = vadd.f32 %v15748_v17, %v3802_v0  ;;  %v4322_v17 = vadd.f32 %v15553_v51, %v15570_v57  ;;  %v4709_v51 = vld [vmem:[#allocation3 + $0xcb] sm:$0xff] }
 0x41c   : > { %3670 = vst.msk [vmem:[%s14017_s20 + $0x80] sm:$0xff] %vm3653_vm4, %v3590_v21  ;;  %v4435_v21 = vld [vmem:[#allocation3 + $0xda] sm:$0xff] }
 0x41d   : > { %v3492_v28 = vadd.f32 %v15758_v38, %v3456_v44  ;;  %v3836_v59 = vmax.f32 %v3803_v36, 0.0  ;;  %12559 = vmatmul.msk.f32.gmra.mxu0 %vm3837_vm2, %v4968_v25  ;;  %v5245_v38 = vld [vmem:[#allocation3 + $0x30] sm:$0xff]  ;;  %v15919_v44 = vld [vmem:[#allocation3 + $0x24] sm:$0xff]  ;;  %v4328_v25 = vadd.f32 %v15593_v22, %v15605_v62 }
 0x41e   : > { %19813 = vst [vmem:[#allocation23_spill] sm:$0xff] %v15919_v44  ;;  %v5247_v36 = vld [vmem:[#allocation3 + $0x48] sm:$0xff] }
 0x41f   : > { %12508 = vmatmul.msk.f32.gmra.mxu2 %vm3837_vm2, %v4433_v14  ;;  %v3524_v1 = vmax.f32 %v3492_v28, 0.0  ;;  %3931 = vst.msk [vmem:[#allocation3 + $0x1a2] sm:$0xff] %vm3837_vm2, %v3836_v59  ;;  %12541 = vmatmul.msk.f32.gmra.mxu3 %vm3837_vm2, %v4708_v3  ;;  %v4711_v22 = vld [vmem:[#allocation3 + $0xe3] sm:$0xff] }
 0x420   : > { %v15893_v26 = vpop.f32.mrf.mxu1 }
 0x421   : > { %3619 = vrot.lane.b32.xlu1 %v3524_v1, %s13643_s18  ;;  %s13645_s18 = smov 48  }
 0x422   : > { %v4564_v43 = vpop.f32.mrf.mxu2  ;;  %v4839_v48 = vpop.f32.mrf.mxu3 }
 0x423   : > { %12593 = vmatmul.msk.f32.gmra.mxu1 %vm3837_vm2, %v5245_v38  ;;  %v4660_v42 = vadd.f32 %v4564_v43, %v4322_v17  ;;  %v3598_v39 = vpop.permute.xlu2 %3597  ;;  %v15900_v8 = vpop.f32.mrf.mxu0  ;;  %v15940_v38 = vld [vmem:[#allocation3 + $0x34] sm:$0xff]  ;;  %v4436_v43 = vld [vmem:[#allocation3 + $0xe2] sm:$0xff] }
 0x424   : > { %3674 = vst.msk [vmem:[%s14017_s20 + $0xa0] sm:$0xff] %vm3653_vm4, %v3598_v39 }
 0x425   : > { %v15906_v27 = vadd.f32 %v4839_v48, %v4660_v42  ;;  %12560 = vmatmul.msk.f32.gmra.mxu0 %vm3837_vm2, %v15902_v11  ;;  %19814 = vst [vmem:[#allocation34_spill] sm:$0xff] %v15940_v38  ;;  %v4331_v42 = vadd.f32 %v15615_v12, %v15624_v58  ;;  %v5248_v48 = vld [vmem:[#allocation3 + $0x50] sm:$0xff] }
 0x426   : > { %v4712_v12 = vld [vmem:[#allocation3 + $0xf3] sm:$0xff] }
 0x427   : > { %12509 = vmatmul.msk.f32.gmra.mxu2 %vm3837_vm2, %v4434_v41  ;;  %12542 = vmatmul.msk.f32.gmra.mxu3 %vm3837_vm2, %v4709_v51 }
 0x428   : > { %v15911_v57 = vpop.f32.mrf.mxu1 }
 0x42a   : > { %v4567_v13 = vpop.f32.mrf.mxu2  ;;  %v4842_v24 = vpop.f32.mrf.mxu3 }
 0x42b   : > { %12594 = vmatmul.msk.f32.gmra.mxu1 %vm3837_vm2, %v5246_v60  ;;  %v4661_v53 = vadd.f32 %v4567_v13, %v4325_v34  ;;  %v3594_v50 = vpop.permute.xlu0 %3593  ;;  %v15917_v31 = vpop.f32.mrf.mxu0 }
 0x42c   : > { %3672 = vst.msk [vmem:[%s14017_s20 + $0x90] sm:$0xff] %vm3653_vm4, %v3594_v50  ;;  %v4334_v50 = vadd.f32 %v15637_v10, %v15643_v54  ;;  %v4713_v10 = vld [vmem:[#allocation3 + $0xfb] sm:$0xff] }
 0x42d   : > { %v15923_v0 = vadd.f32 %v4842_v24, %v4661_v53  ;;  %12561 = vmatmul.msk.f32.gmra.mxu0 %vm3837_vm2, %v15919_v44  ;;  %v15957_v53 = vld [vmem:[#allocation3 + $0x3c] sm:$0xff]  ;;  %v4437_v24 = vld [vmem:[#allocation3 + $0xf2] sm:$0xff] }
 0x42e   : > { %19815 = vst [vmem:[#allocation31_spill] sm:$0xff] %v15957_v53 }
 0x42f   : > { %12510 = vmatmul.msk.f32.gmra.mxu2 %vm3837_vm2, %v4435_v21  ;;  %12543 = vmatmul.msk.f32.gmra.mxu3 %vm3837_vm2, %v4710_v9  ;;  %v5249_v21 = vld [vmem:[#allocation3 + $0x60] sm:$0xff] }
 0x430   : > { %v15928_v55 = vpop.f32.mrf.mxu1 }
 0x432   : > { %v4570_v28 = vpop.f32.mrf.mxu2  ;;  %v4845_v14 = vpop.f32.mrf.mxu3 }
 0x433   : > { %12595 = vmatmul.msk.f32.gmra.mxu1 %vm3837_vm2, %v5247_v36  ;;  %v4662_v59 = vadd.f32 %v4570_v28, %v4328_v25  ;;  %v3596_v3 = vpop.permute.xlu1 %3595  ;;  %v15934_v1 = vpop.f32.mrf.mxu0 }
 0x434   : > { %3673 = vst.msk [vmem:[%s14017_s20 + $0x98] sm:$0xff] %vm3653_vm4, %v3596_v3  ;;  %v15974_v3 = vld [vmem:[#allocation3 + $0x4c] sm:$0xff] }
 0x435   : > { %v15938_v17 = vadd.f32 %v4845_v14, %v4662_v59  ;;  %12562 = vmatmul.msk.f32.gmra.mxu0 %vm3837_vm2, %v15940_v38  ;;  %19816 = vst [vmem:[#allocation32_spill] sm:$0xff] %v15974_v3  ;;  %v16169_v38 = vld [vmem:[#allocation3 + $0xc4] sm:$0xff] }
 0x436   : > { %19836 = vst [vmem:[#allocation52_spill] sm:$0xff] %v16169_v38 }
 0x437   : > { %12511 = vmatmul.msk.f32.gmra.mxu2 %vm3837_vm2, %v4436_v43  ;;  %12544 = vmatmul.msk.f32.gmra.mxu3 %vm3837_vm2, %v4711_v22  ;;  %v15976_v43 = vld [vmem:[#allocation3 + $0xfa] sm:$0xff]  ;;  %v4337_v22 = vadd.f32 %v15654_v30, %v15660_v23  ;;  %v4714_v30 = vld [vmem:[#allocation3 + $0x10b] sm:$0xff] }
 0x438   : > { %v15945_v62 = vpop.f32.mrf.mxu1  ;;  %19817 = vst [vmem:[#allocation25_spill] sm:$0xff] %v15976_v43 }
 0x43a   : > { %v4573_v39 = vpop.f32.mrf.mxu2  ;;  %v4848_v51 = vpop.f32.mrf.mxu3 }
 0x43b   : > { %12596 = vmatmul.msk.f32.gmra.mxu1 %vm3837_vm2, %v5248_v48  ;;  %v4663_v41 = vadd.f32 %v4573_v39, %v4331_v42  ;;  %v3604_v34 = vpop.permute.xlu2 %3603  ;;  %v15951_v60 = vpop.f32.mrf.mxu0  ;;  %v5250_v42 = vld [vmem:[#allocation3 + $0x68] sm:$0xff] }
 0x43c   : > { %3677 = vst.msk [vmem:[%s14017_s20 + $0xb8] sm:$0xff] %vm3653_vm4, %v3604_v34 }
 0x43d   : > { %v15955_v13 = vadd.f32 %v4848_v51, %v4663_v41  ;;  %12563 = vmatmul.msk.f32.gmra.mxu0 %vm3837_vm2, %v15957_v53 }
 0x43f   : > { %12512 = vmatmul.msk.f32.gmra.mxu2 %vm3837_vm2, %v4437_v24  ;;  %12545 = vmatmul.msk.f32.gmra.mxu3 %vm3837_vm2, %v4712_v12  ;;  %v15994_v12 = vld [vmem:[#allocation3 + $0x54] sm:$0xff] }
 0x440   : > { %v15962_v58 = vpop.f32.mrf.mxu1  ;;  %19818 = vst [vmem:[#allocation28_spill] sm:$0xff] %v15994_v12 }
 0x442   : > { %v4576_v9 = vpop.f32.mrf.mxu2  ;;  %v4851_v36 = vpop.f32.mrf.mxu3 }
 0x443   : > { %12597 = vmatmul.msk.f32.gmra.mxu1 %vm3837_vm2, %v5249_v21  ;;  %v4664_v25 = vadd.f32 %v4576_v9, %v4334_v50  ;;  %v3600_v28 = vpop.permute.xlu0 %3599  ;;  %v15968_v59 = vpop.f32.mrf.mxu0  ;;  %v15996_v50 = vld [vmem:[#allocation3 + $0x10a] sm:$0xff]  ;;  %v4340_v21 = vadd.f32 %v15669_v61, %v15675_v16  ;;  %v5251_v9 = vld [vmem:[#allocation3 + $0x78] sm:$0xff] }
 0x444   : > { %3675 = vst.msk [vmem:[%s14017_s20 + $0xa8] sm:$0xff] %vm3653_vm4, %v3600_v28  ;;  %v4715_v61 = vld [vmem:[#allocation3 + $0x113] sm:$0xff] }
 0x445   : > { %v15972_v14 = vadd.f32 %v4851_v36, %v4664_v25  ;;  %12564 = vmatmul.msk.f32.gmra.mxu0 %vm3837_vm2, %v15974_v3  ;;  %19819 = vst [vmem:[#allocation39_spill] sm:$0xff] %v15996_v50 }
 0x447   : > { %12513 = vmatmul.msk.f32.gmra.mxu2 %vm3837_vm2, %v15976_v43  ;;  %12546 = vmatmul.msk.f32.gmra.mxu3 %vm3837_vm2, %v4713_v10  ;;  %v16116_v43 = vld [vmem:[#allocation3 + $0x152] sm:$0xff] }
 0x448   : > { %v15982_v54 = vpop.f32.mrf.mxu1  ;;  %19831 = vst [vmem:[#allocation47_spill] sm:$0xff] %v16116_v43 }
 0x44a   : > { %v4579_v48 = vpop.f32.mrf.mxu2  ;;  %v4854_v41 = vpop.f32.mrf.mxu3 }
 0x44b   : > { %12598 = vmatmul.msk.f32.gmra.mxu1 %vm3837_vm2, %v5250_v42  ;;  %v4665_v39 = vadd.f32 %v4579_v48, %v4337_v22  ;;  %v3602_v51 = vpop.permute.xlu1 %3601  ;;  %v15988_v34 = vpop.f32.mrf.mxu0  ;;  %v16014_v48 = vld [vmem:[#allocation3 + $0x64] sm:$0xff] }
 0x44c   : > { %3676 = vst.msk [vmem:[%s14017_s20 + $0xb0] sm:$0xff] %vm3653_vm4, %v3602_v51  ;;  %v5252_v51 = vld [vmem:[#allocation3 + $0x80] sm:$0xff] }
 0x44d   : > { %v15992_v24 = vadd.f32 %v4854_v41, %v4665_v39  ;;  %12565 = vmatmul.msk.f32.gmra.mxu0 %vm3837_vm2, %v15994_v12  ;;  %19820 = vst [vmem:[#allocation36_spill] sm:$0xff] %v16014_v48  ;;  %v16016_v39 = vld [vmem:[#allocation3 + $0x112] sm:$0xff]  ;;  %v4343_v41 = vadd.f32 %v15686_v46, %v15692_v29  ;;  %v4716_v46 = vld [vmem:[#allocation3 + $0x123] sm:$0xff] }
 0x44e   : > { %19821 = vst [vmem:[#allocation37_spill] sm:$0xff] %v16016_v39 }
 0x44f   : > { %12514 = vmatmul.msk.f32.gmra.mxu2 %vm3837_vm2, %v15996_v50  ;;  %12547 = vmatmul.msk.f32.gmra.mxu3 %vm3837_vm2, %v4714_v30 }
 0x450   : > { %v16002_v23 = vpop.f32.mrf.mxu1 }
 0x452   : > { %v4582_v25 = vpop.f32.mrf.mxu2  ;;  %v4857_v28 = vpop.f32.mrf.mxu3 }
 0x453   : > { %12599 = vmatmul.msk.f32.gmra.mxu1 %vm3837_vm2, %v5251_v9  ;;  %v4666_v36 = vadd.f32 %v4582_v25, %v4340_v21  ;;  %v3610_v10 = vpop.permute.xlu2 %3609  ;;  %v16008_v22 = vpop.f32.mrf.mxu0 }
 0x454   : > { %3680 = vst.msk [vmem:[%s14017_s20 + $0xd0] sm:$0xff] %vm3653_vm4, %v3610_v10  ;;  %v16034_v10 = vld [vmem:[#allocation3 + $0x6c] sm:$0xff] }
 0x455   : > { %v16012_v42 = vadd.f32 %v4857_v28, %v4666_v36  ;;  %12566 = vmatmul.msk.f32.gmra.mxu0 %vm3837_vm2, %v16014_v48  ;;  %19822 = vst [vmem:[#allocation30_spill] sm:$0xff] %v16034_v10 }
 0x457   : > { %12515 = vmatmul.msk.f32.gmra.mxu2 %vm3837_vm2, %v16016_v39  ;;  %12548 = vmatmul.msk.f32.gmra.mxu3 %vm3837_vm2, %v4715_v61  ;;  %v16036_v61 = vld [vmem:[#allocation3 + $0x122] sm:$0xff] }
 0x458   : > { %v16022_v16 = vpop.f32.mrf.mxu1  ;;  %19823 = vst [vmem:[#allocation33_spill] sm:$0xff] %v16036_v61 }
 0x45a   : > { %v4585_v30 = vpop.f32.mrf.mxu2  ;;  %v4860_v9 = vpop.f32.mrf.mxu3 }
 0x45b   : > { %12600 = vmatmul.msk.f32.gmra.mxu1 %vm3837_vm2, %v5252_v51  ;;  %v4667_v21 = vadd.f32 %v4585_v30, %v4343_v41  ;;  %v3606_v25 = vpop.permute.xlu0 %3605  ;;  %v16028_v36 = vpop.f32.mrf.mxu0  ;;  %v4346_v41 = vadd.f32 %v15703_v2, %v15709_v7  ;;  %v5253_v51 = vld [vmem:[#allocation3 + $0x90] sm:$0xff] }
 0x45c   : > { %3678 = vst.msk [vmem:[%s14017_s20 + $0xc0] sm:$0xff] %vm3653_vm4, %v3606_v25  ;;  %v4717_v2 = vld [vmem:[#allocation3 + $0x12b] sm:$0xff] }
 0x45d   : > { %v16032_v28 = vadd.f32 %v4860_v9, %v4667_v21  ;;  %12567 = vmatmul.msk.f32.gmra.mxu0 %vm3837_vm2, %v16034_v10  ;;  %v16054_v10 = vld [vmem:[#allocation3 + $0x7c] sm:$0xff] }
 0x45e   : > { %19824 = vst [vmem:[#allocation44_spill] sm:$0xff] %v16054_v10 }
 0x45f   : > { %12516 = vmatmul.msk.f32.gmra.mxu2 %vm3837_vm2, %v16036_v61  ;;  %12549 = vmatmul.msk.f32.gmra.mxu3 %vm3837_vm2, %v4716_v46  ;;  %v16056_v46 = vld [vmem:[#allocation3 + $0x12a] sm:$0xff] }
 0x460   : > { %v16042_v29 = vpop.f32.mrf.mxu1  ;;  %19825 = vst [vmem:[#allocation41_spill] sm:$0xff] %v16056_v46 }
 0x462   : > { %v4588_v30 = vpop.f32.mrf.mxu2  ;;  %v4863_v9 = vpop.f32.mrf.mxu3 }
 0x463   : > { %12601 = vmatmul.msk.f32.gmra.mxu1 %vm3837_vm2, %v5253_v51  ;;  %v4668_v21 = vadd.f32 %v4588_v30, %v4346_v41  ;;  %v3608_v25 = vpop.permute.xlu1 %3607  ;;  %v16048_v39 = vpop.f32.mrf.mxu0  ;;  %v4349_v41 = vadd.f32 %v15720_v33, %v15726_v19  ;;  %v5254_v51 = vld [vmem:[#allocation3 + $0x98] sm:$0xff] }
 0x464   : > { %3679 = vst.msk [vmem:[%s14017_s20 + $0xc8] sm:$0xff] %vm3653_vm4, %v3608_v25  ;;  %v4718_v33 = vld [vmem:[#allocation3 + $0x13b] sm:$0xff] }
 0x465   : > { %v16052_v61 = vadd.f32 %v4863_v9, %v4668_v21  ;;  %12568 = vmatmul.msk.f32.gmra.mxu0 %vm3837_vm2, %v16054_v10  ;;  %v16074_v10 = vld [vmem:[#allocation3 + $0x84] sm:$0xff] }
 0x466   : > { %19826 = vst [vmem:[#allocation42_spill] sm:$0xff] %v16074_v10 }
 0x467   : > { %12517 = vmatmul.msk.f32.gmra.mxu2 %vm3837_vm2, %v16056_v46  ;;  %12550 = vmatmul.msk.f32.gmra.mxu3 %vm3837_vm2, %v4717_v2  ;;  %v16076_v2 = vld [vmem:[#allocation3 + $0x13a] sm:$0xff] }
 0x468   : > { %v16062_v7 = vpop.f32.mrf.mxu1  ;;  %19827 = vst [vmem:[#allocation35_spill] sm:$0xff] %v16076_v2 }
 0x46a   : > { %v4591_v30 = vpop.f32.mrf.mxu2  ;;  %v4866_v9 = vpop.f32.mrf.mxu3 }
 0x46b   : > { %12602 = vmatmul.msk.f32.gmra.mxu1 %vm3837_vm2, %v5254_v51  ;;  %v4669_v21 = vadd.f32 %v4591_v30, %v4349_v41  ;;  %v3616_v25 = vpop.permute.xlu2 %3615  ;;  %v16068_v48 = vpop.f32.mrf.mxu0  ;;  %v4352_v41 = vadd.f32 %v15737_v49, %v15743_v37  ;;  %v5255_v51 = vld [vmem:[#allocation3 + $0xa8] sm:$0xff] }
 0x46c   : > { %3683 = vst.msk [vmem:[%s14017_s20 + $0xe8] sm:$0xff] %vm3653_vm4, %v3616_v25  ;;  %v4719_v49 = vld [vmem:[#allocation3 + $0x143] sm:$0xff] }
 0x46d   : > { %v16072_v46 = vadd.f32 %v4866_v9, %v4669_v21  ;;  %12569 = vmatmul.msk.f32.gmra.mxu0 %vm3837_vm2, %v16074_v10  ;;  %v16094_v10 = vld [vmem:[#allocation3 + $0x94] sm:$0xff] }
 0x46e   : > { %19828 = vst [vmem:[#allocation38_spill] sm:$0xff] %v16094_v10 }
 0x46f   : > { %12518 = vmatmul.msk.f32.gmra.mxu2 %vm3837_vm2, %v16076_v2  ;;  %12551 = vmatmul.msk.f32.gmra.mxu3 %vm3837_vm2, %v4718_v33  ;;  %v16096_v33 = vld [vmem:[#allocation3 + $0x142] sm:$0xff] }
 0x470   : > { %v16082_v19 = vpop.f32.mrf.mxu1  ;;  %19829 = vst [vmem:[#allocation49_spill] sm:$0xff] %v16096_v33 }
 0x472   : > { %v4594_v30 = vpop.f32.mrf.mxu2  ;;  %v4869_v9 = vpop.f32.mrf.mxu3 }
 0x473   : > { %12603 = vmatmul.msk.f32.gmra.mxu1 %vm3837_vm2, %v5255_v51  ;;  %v4670_v21 = vadd.f32 %v4594_v30, %v4352_v41  ;;  %v3612_v25 = vpop.permute.xlu0 %3611  ;;  %v16088_v50 = vpop.f32.mrf.mxu0  ;;  %v4355_v41 = vadd.f32 %v15764_v4, %v15770_v32  ;;  %v5256_v51 = vld [vmem:[#allocation3 + $0xb0] sm:$0xff] }
 0x474   : > { %3681 = vst.msk [vmem:[%s14017_s20 + $0xd8] sm:$0xff] %vm3653_vm4, %v3612_v25  ;;  %v4720_v4 = vld [vmem:[#allocation3 + $0x153] sm:$0xff] }
 0x475   : > { %v16092_v2 = vadd.f32 %v4869_v9, %v4670_v21  ;;  %12570 = vmatmul.msk.f32.gmra.mxu0 %vm3837_vm2, %v16094_v10  ;;  %v16114_v10 = vld [vmem:[#allocation3 + $0x9c] sm:$0xff] }
 0x476   : > { %19830 = vst [vmem:[#allocation46_spill] sm:$0xff] %v16114_v10 }
 0x477   : > { %12519 = vmatmul.msk.f32.gmra.mxu2 %vm3837_vm2, %v16096_v33  ;;  %12552 = vmatmul.msk.f32.gmra.mxu3 %vm3837_vm2, %v4719_v49  ;;  %v4358_v49 = vadd.f32 %v15787_v20, %v15793_v6  ;;  %v4721_v20 = vld [vmem:[#allocation3 + $0x15b] sm:$0xff] }
 0x478   : > { %v16102_v37 = vpop.f32.mrf.mxu1 }
 0x47a   : > { %v4597_v30 = vpop.f32.mrf.mxu2  ;;  %v4872_v9 = vpop.f32.mrf.mxu3 }
 0x47b   : > { %12604 = vmatmul.msk.f32.gmra.mxu1 %vm3837_vm2, %v5256_v51  ;;  %v4671_v21 = vadd.f32 %v4597_v30, %v4355_v41  ;;  %v3614_v25 = vpop.permute.xlu1 %3613  ;;  %v16108_v12 = vpop.f32.mrf.mxu0  ;;  %v5257_v41 = vld [vmem:[#allocation3 + $0xc0] sm:$0xff] }
 0x47c   : > { %3682 = vst.msk [vmem:[%s14017_s20 + $0xe0] sm:$0xff] %vm3653_vm4, %v3614_v25 }
 0x47d   : > { %v16112_v33 = vadd.f32 %v4872_v9, %v4671_v21  ;;  %12571 = vmatmul.msk.f32.gmra.mxu0 %vm3837_vm2, %v16114_v10  ;;  %v16134_v10 = vld [vmem:[#allocation3 + $0x15a] sm:$0xff] }
 0x47e   : > { %19833 = vst [vmem:[#allocation43_spill] sm:$0xff] %v16134_v10 }
 0x47f   : > { %12520 = vmatmul.msk.f32.gmra.mxu2 %vm3837_vm2, %v16116_v43  ;;  %12553 = vmatmul.msk.f32.gmra.mxu3 %vm3837_vm2, %v4720_v4  ;;  %v16132_v43 = vld [vmem:[#allocation3 + $0xac] sm:$0xff]  ;;  %v4361_v4 = vadd.f32 %v15804_v56, %v15813_v40 }
 0x480   : > { %v16122_v32 = vpop.f32.mrf.mxu1  ;;  %19832 = vst [vmem:[#allocation40_spill] sm:$0xff] %v16132_v43  ;;  %v4722_v56 = vld [vmem:[#allocation3 + $0x16b] sm:$0xff] }
 0x482   : > { %v4600_v51 = vpop.f32.mrf.mxu2  ;;  %v4875_v21 = vpop.f32.mrf.mxu3 }
 0x483   : > { %12605 = vmatmul.msk.f32.gmra.mxu1 %vm3837_vm2, %v5257_v41  ;;  %v4672_v30 = vadd.f32 %v4600_v51, %v4358_v49  ;;  %v16128_v9 = vpop.f32.mrf.mxu0  ;;  %v5258_v49 = vld [vmem:[#allocation3 + $0xc8] sm:$0xff] }
 0x485   : > { %v16130_v25 = vadd.f32 %v4875_v21, %v4672_v30  ;;  %12572 = vmatmul.msk.f32.gmra.mxu0 %vm3837_vm2, %v16132_v43  ;;  %v16152_v43 = vld [vmem:[#allocation3 + $0xb4] sm:$0xff] }
 0x486   : > { %19834 = vst [vmem:[#allocation54_spill] sm:$0xff] %v16152_v43 }
 0x487   : > { %12521 = vmatmul.msk.f32.gmra.mxu2 %vm3837_vm2, %v16134_v10  ;;  %12554 = vmatmul.msk.f32.gmra.mxu3 %vm3837_vm2, %v4721_v20  ;;  %v16154_v20 = vld [vmem:[#allocation3 + $0x16a] sm:$0xff] }
 0x488   : > { %v16140_v6 = vpop.f32.mrf.mxu1  ;;  %19835 = vst [vmem:[#allocation51_spill] sm:$0xff] %v16154_v20 }
 0x48a   : > { %v4603_v41 = vpop.f32.mrf.mxu2  ;;  %v4878_v30 = vpop.f32.mrf.mxu3 }
 0x48b   : > { %12606 = vmatmul.msk.f32.gmra.mxu1 %vm3837_vm2, %v5258_v49  ;;  %v4673_v51 = vadd.f32 %v4603_v41, %v4361_v4  ;;  %v3618_v21 = vpop.permute.xlu0 %3617  ;;  %v16146_v3 = vpop.f32.mrf.mxu0  ;;  %v4364_v4 = vadd.f32 %v15824_v15, %v15830_v52  ;;  %v5259_v49 = vld [vmem:[#allocation3 + $0xd8] sm:$0xff] }
 0x48c   : > { %3684 = vst.msk [vmem:[%s14017_s20 + $0xf0] sm:$0xff] %vm3653_vm4, %v3618_v21  ;;  %v4723_v15 = vld [vmem:[#allocation3 + $0x173] sm:$0xff] }
 0x48d   : > { %v16150_v10 = vadd.f32 %v4878_v30, %v4673_v51  ;;  %12573 = vmatmul.msk.f32.gmra.mxu0 %vm3837_vm2, %v16152_v43 }
 0x48f   : > { %12522 = vmatmul.msk.f32.gmra.mxu2 %vm3837_vm2, %v16154_v20  ;;  %12555 = vmatmul.msk.f32.gmra.mxu3 %vm3837_vm2, %v4722_v56  ;;  %v16171_v56 = vld [vmem:[#allocation3 + $0x172] sm:$0xff] }
 0x490   : > { %v5390_v40 = vpop.f32.mrf.mxu1  ;;  %19837 = vst [vmem:[#allocation45_spill] sm:$0xff] %v16171_v56 }
 0x492   : > { %v4606_v41 = vpop.f32.mrf.mxu2  ;;  %v4881_v30 = vpop.f32.mrf.mxu3 }
 0x493   : > { %12607 = vmatmul.msk.f32.gmra.mxu1 %vm3837_vm2, %v5259_v49  ;;  %v4674_v51 = vadd.f32 %v4606_v41, %v4364_v4  ;;  %v3620_v21 = vpop.permute.xlu1 %3619  ;;  %v5114_v53 = vpop.f32.mrf.mxu0  ;;  %v5518_v41 = vld [vmem:[#allocation3 + $0x19] sm:$0xff] }
 0x494   : > { %3685 = vst.msk [vmem:[%s14017_s20 + $0xf8] sm:$0xff] %vm3653_vm4, %v3620_v21  ;;  %v5210_v43 = vadd.f32 %v5114_v53, %v15906_v27  ;;  %v4367_v27 = vadd.f32 %v15844_v35, %v15850_v45  ;;  %v5260_v53 = vld [vmem:[#allocation3 + $0xe0] sm:$0xff]  ;;  %v4370_v45 = vadd.f32 %v15861_v47, %v15867_v18  ;;  %v4373_v18 = vadd.f32 %v15878_v63, %v15884_v5  ;;  %v5795_v63 = vld [vmem:[#allocation3 + $0x32] sm:$0xff] }
 0x495   : > { %v16167_v20 = vadd.f32 %v4881_v30, %v4674_v51  ;;  %12574 = vmatmul.msk.f32.gmra.mxu0 %vm3837_vm2, %v16169_v38  ;;  %v5793_v21 = vld [vmem:[#allocation3 + $0x1a] sm:$0xff] }
 0x496   : > { %v16173_v44 = vadd.f32 %v5390_v40, %v5210_v43 }
 0x497   : > { %12523 = vmatmul.msk.f32.gmra.mxu2 %vm3837_vm2, %v16171_v56  ;;  %12556 = vmatmul.msk.f32.gmra.mxu3 %vm3837_vm2, %v4723_v15  ;;  %v16186_v56 = vld [vmem:[#allocation3 + $0xcc] sm:$0xff] }
 0x498   : > { %v5393_v52 = vpop.f32.mrf.mxu1  ;;  %v5261_v15 = vld [vmem:[#allocation3 + $0xf0] sm:$0xff] }
 0x49a   : > { %v4609_v4 = vpop.f32.mrf.mxu2  ;;  %v4884_v43 = vpop.f32.mrf.mxu3 }
 0x49b   : > { %12608 = vmatmul.msk.f32.gmra.mxu1 %vm3837_vm2, %v5260_v53  ;;  %v4675_v49 = vadd.f32 %v4609_v4, %v4367_v27  ;;  %v5117_v40 = vpop.f32.mrf.mxu0 }
 0x49c   : > { %v5211_v51 = vadd.f32 %v5117_v40, %v15923_v0  ;;  %v5794_v40 = vld [vmem:[#allocation3 + $0x22] sm:$0xff] }
 0x49d   : > { %v16184_v30 = vadd.f32 %v4884_v43, %v4675_v49  ;;  %12575 = vmatmul.msk.f32.gmra.mxu0 %vm3837_vm2, %v16186_v56 }
 0x49e   : > { %v16188_v38 = vadd.f32 %v5393_v52, %v5211_v51  ;;  %v5519_v52 = vld [vmem:[#allocation3 + $0x21] sm:$0xff] }
 0x49f   : > { %12624 = vmatmul.msk.f32.vlgmr.msrb.gmra.mxu2 %vm3837_vm2, %v5518_v41  ;;  %12657 = vmatmul.msk.f32.vlgmr.msrb.gmra.mxu3 %vm3837_vm2, %v5793_v21  ;;  %v16200_v41 = vld [vmem:[#allocation3 + $0xdc] sm:$0xff] }
 0x4a0   : > { %v5396_v35 = vpop.f32.mrf.mxu1  ;;  %v5262_v21 = vld [vmem:[#allocation3 + $0xf8] sm:$0xff] }
 0x4a2   : > { %v4612_v0 = vpop.f32.mrf.mxu2  ;;  %v4887_v53 = vpop.f32.mrf.mxu3 }
 0x4a3   : > { %12609 = vmatmul.msk.f32.gmra.mxu1 %vm3837_vm2, %v5261_v15  ;;  %v4676_v27 = vadd.f32 %v4612_v0, %v4370_v45  ;;  %v5120_v4 = vpop.f32.mrf.mxu0 }
 0x4a4   : > { %v5212_v49 = vadd.f32 %v5120_v4, %v15938_v17  ;;  %v16216_v4 = vld [vmem:[#allocation3 + $0x31] sm:$0xff] }
 0x4a5   : > { %v16198_v43 = vadd.f32 %v4887_v53, %v4676_v27  ;;  %12576 = vmatmul.msk.f32.gmra.mxu0 %vm3837_vm2, %v16200_v41  ;;  %v16214_v53 = vld [vmem:[#allocation3 + $0xe4] sm:$0xff] }
 0x4a6   : > { %v16202_v51 = vadd.f32 %v5396_v35, %v5212_v49  ;;  %v5263_v49 = vld [vmem:[#allocation3 + $0x108] sm:$0xff] }
 0x4a7   : > { %12625 = vmatmul.msk.f32.gmra.mxu2 %vm3837_vm2, %v5519_v52  ;;  %12658 = vmatmul.msk.f32.gmra.mxu3 %vm3837_vm2, %v5794_v40 }
 0x4a8   : > { %v5399_v47 = vpop.f32.mrf.mxu1 }
 0x4aa   : > { %v4615_v17 = vpop.f32.mrf.mxu2  ;;  %v4890_v15 = vpop.f32.mrf.mxu3 }
 0x4ab   : > { %12610 = vmatmul.msk.f32.gmra.mxu1 %vm3837_vm2, %v5262_v21  ;;  %v4677_v45 = vadd.f32 %v4615_v17, %v4373_v18  ;;  %v5123_v0 = vpop.f32.mrf.mxu0 }
 0x4ac   : > { %v5213_v35 = vadd.f32 %v5123_v0, %v15955_v13  ;;  %v4376_v13 = vadd.f32 %v15893_v26, %v15900_v8  ;;  %v16233_v0 = vld [vmem:[#allocation3 + $0x39] sm:$0xff] }
 0x4ad   : > { %v16212_v27 = vadd.f32 %v4890_v15, %v4677_v45  ;;  %12577 = vmatmul.msk.f32.gmra.mxu0 %vm3837_vm2, %v16214_v53  ;;  %v16231_v15 = vld [vmem:[#allocation3 + $0xf4] sm:$0xff]  ;;  %19838 = vst [vmem:[#allocation48_spill] sm:$0xff] %v16233_v0 }
 0x4ae   : > { %v16218_v52 = vadd.f32 %v5399_v47, %v5213_v35  ;;  %v5796_v26 = vld [vmem:[#allocation3 + $0x3a] sm:$0xff] }
 0x4af   : > { %12626 = vmatmul.msk.f32.gmra.mxu2 %vm3837_vm2, %v16216_v4  ;;  %12659 = vmatmul.msk.f32.gmra.mxu3 %vm3837_vm2, %v5795_v63  ;;  %v5264_v63 = vld [vmem:[#allocation3 + $0x110] sm:$0xff] }
 0x4b0   : > { %v5402_v5 = vpop.f32.mrf.mxu1 }
 0x4b2   : > { %v4618_v40 = vpop.f32.mrf.mxu2  ;;  %v4893_v47 = vpop.f32.mrf.mxu3 }
 0x4b3   : > { %12611 = vmatmul.msk.f32.gmra.mxu1 %vm3837_vm2, %v5263_v49  ;;  %v4678_v18 = vadd.f32 %v4618_v40, %v4376_v13  ;;  %v5126_v21 = vpop.f32.mrf.mxu0 }
 0x4b4   : > { %v5214_v17 = vadd.f32 %v5126_v21, %v15972_v14  ;;  %v4379_v14 = vadd.f32 %v15911_v57, %v15917_v31  ;;  %v16248_v21 = vld [vmem:[#allocation3 + $0xfc] sm:$0xff]  ;;  %v5797_v57 = vld [vmem:[#allocation3 + $0x4a] sm:$0xff] }
 0x4b5   : > { %v16229_v45 = vadd.f32 %v4893_v47, %v4678_v18  ;;  %12578 = vmatmul.msk.f32.gmra.mxu0 %vm3837_vm2, %v16231_v15 }
 0x4b6   : > { %v16235_v35 = vadd.f32 %v5402_v5, %v5214_v17  ;;  %v16250_v17 = vld [vmem:[#allocation3 + $0x49] sm:$0xff] }
 0x4b7   : > { %12627 = vmatmul.msk.f32.gmra.mxu2 %vm3837_vm2, %v16233_v0  ;;  %12660 = vmatmul.msk.f32.gmra.mxu3 %vm3837_vm2, %v5796_v26  ;;  %19839 = vst [vmem:[#allocation50_spill] sm:$0xff] %v16250_v17  ;;  %v5265_v26 = vld [vmem:[#allocation3 + $0x120] sm:$0xff] }
 0x4b8   : > { %v5405_v8 = vpop.f32.mrf.mxu1 }
 0x4ba   : > { %v4621_v13 = vpop.f32.mrf.mxu2  ;;  %v4896_v5 = vpop.f32.mrf.mxu3 }
 0x4bb   : > { %12612 = vmatmul.msk.f32.gmra.mxu1 %vm3837_vm2, %v5264_v63  ;;  %v4679_v49 = vadd.f32 %v4621_v13, %v4379_v14  ;;  %v5129_v40 = vpop.f32.mrf.mxu0 }
 0x4bc   : > { %v5215_v18 = vadd.f32 %v5129_v40, %v15992_v24  ;;  %v4382_v24 = vadd.f32 %v15928_v55, %v15934_v1  ;;  %v16265_v40 = vld [vmem:[#allocation3 + $0x10c] sm:$0xff] }
 0x4bd   : > { %v16246_v47 = vadd.f32 %v4896_v5, %v4679_v49  ;;  %12579 = vmatmul.msk.f32.gmra.mxu0 %vm3837_vm2, %v16248_v21  ;;  %v5798_v55 = vld [vmem:[#allocation3 + $0x52] sm:$0xff] }
 0x4be   : > { %v16252_v0 = vadd.f32 %v5405_v8, %v5215_v18  ;;  %v16267_v18 = vld [vmem:[#allocation3 + $0x51] sm:$0xff] }
 0x4bf   : > { %12628 = vmatmul.msk.f32.gmra.mxu2 %vm3837_vm2, %v16250_v17  ;;  %12661 = vmatmul.msk.f32.gmra.mxu3 %vm3837_vm2, %v5797_v57  ;;  %19840 = vst [vmem:[#allocation53_spill] sm:$0xff] %v16267_v18  ;;  %v5266_v57 = vld [vmem:[#allocation3 + $0x128] sm:$0xff] }
 0x4c0   : > { %v5408_v31 = vpop.f32.mrf.mxu1 }
 0x4c2   : > { %v4624_v14 = vpop.f32.mrf.mxu2  ;;  %v4899_v8 = vpop.f32.mrf.mxu3 }
 0x4c3   : > { %12613 = vmatmul.msk.f32.gmra.mxu1 %vm3837_vm2, %v5265_v26  ;;  %v4680_v63 = vadd.f32 %v4624_v14, %v4382_v24  ;;  %v5132_v13 = vpop.f32.mrf.mxu0 }
 0x4c4   : > { %v5216_v49 = vadd.f32 %v5132_v13, %v16012_v42  ;;  %v4385_v42 = vadd.f32 %v15945_v62, %v15951_v60  ;;  %v16282_v13 = vld [vmem:[#allocation3 + $0x114] sm:$0xff]  ;;  %v5799_v62 = vld [vmem:[#allocation3 + $0x62] sm:$0xff] }
 0x4c5   : > { %v16263_v5 = vadd.f32 %v4899_v8, %v4680_v63  ;;  %12580 = vmatmul.msk.f32.gmra.mxu0 %vm3837_vm2, %v16265_v40 }
 0x4c6   : > { %v16269_v17 = vadd.f32 %v5408_v31, %v5216_v49  ;;  %v16284_v49 = vld [vmem:[#allocation3 + $0x61] sm:$0xff] }
 0x4c7   : > { %12629 = vmatmul.msk.f32.gmra.mxu2 %vm3837_vm2, %v16267_v18  ;;  %12662 = vmatmul.msk.f32.gmra.mxu3 %vm3837_vm2, %v5798_v55  ;;  %19841 = vst [vmem:[#allocation55_spill] sm:$0xff] %v16284_v49  ;;  %v5267_v55 = vld [vmem:[#allocation3 + $0x138] sm:$0xff] }
 0x4c8   : > { %v5411_v1 = vpop.f32.mrf.mxu1 }
 0x4ca   : > { %v4627_v24 = vpop.f32.mrf.mxu2  ;;  %v4902_v31 = vpop.f32.mrf.mxu3 }
 0x4cb   : > { %12614 = vmatmul.msk.f32.gmra.mxu1 %vm3837_vm2, %v5266_v57  ;;  %v4681_v26 = vadd.f32 %v4627_v24, %v4385_v42  ;;  %v5135_v14 = vpop.f32.mrf.mxu0 }
 0x4cc   : > { %v5217_v63 = vadd.f32 %v5135_v14, %v16032_v28  ;;  %v4388_v28 = vadd.f32 %v15962_v58, %v15968_v59  ;;  %v16299_v14 = vld [vmem:[#allocation3 + $0x124] sm:$0xff] }
 0x4cd   : > { %v16280_v8 = vadd.f32 %v4902_v31, %v4681_v26  ;;  %12581 = vmatmul.msk.f32.gmra.mxu0 %vm3837_vm2, %v16282_v13  ;;  %v5800_v58 = vld [vmem:[#allocation3 + $0x6a] sm:$0xff] }
 0x4ce   : > { %v16286_v18 = vadd.f32 %v5411_v1, %v5217_v63  ;;  %v16301_v63 = vld [vmem:[#allocation3 + $0x69] sm:$0xff] }
 0x4cf   : > { %12630 = vmatmul.msk.f32.gmra.mxu2 %vm3837_vm2, %v16284_v49  ;;  %12663 = vmatmul.msk.f32.gmra.mxu3 %vm3837_vm2, %v5799_v62  ;;  %19842 = vst [vmem:[#allocation56_spill] sm:$0xff] %v16301_v63  ;;  %v5268_v62 = vld [vmem:[#allocation3 + $0x140] sm:$0xff] }
 0x4d0   : > { %v5414_v60 = vpop.f32.mrf.mxu1 }
 0x4d2   : > { %v4630_v42 = vpop.f32.mrf.mxu2  ;;  %v4905_v1 = vpop.f32.mrf.mxu3 }
 0x4d3   : > { %12615 = vmatmul.msk.f32.gmra.mxu1 %vm3837_vm2, %v5267_v55  ;;  %v4682_v57 = vadd.f32 %v4630_v42, %v4388_v28  ;;  %v5138_v24 = vpop.f32.mrf.mxu0 }
 0x4d4   : > { %v5218_v26 = vadd.f32 %v5138_v24, %v16052_v61  ;;  %v4391_v61 = vadd.f32 %v15982_v54, %v15988_v34  ;;  %v16316_v24 = vld [vmem:[#allocation3 + $0x12c] sm:$0xff]  ;;  %v5801_v54 = vld [vmem:[#allocation3 + $0x7a] sm:$0xff] }
 0x4d5   : > { %v16297_v31 = vadd.f32 %v4905_v1, %v4682_v57  ;;  %12582 = vmatmul.msk.f32.gmra.mxu0 %vm3837_vm2, %v16299_v14 }
 0x4d6   : > { %v16303_v49 = vadd.f32 %v5414_v60, %v5218_v26  ;;  %v16318_v26 = vld [vmem:[#allocation3 + $0x79] sm:$0xff] }
 0x4d7   : > { %12631 = vmatmul.msk.f32.gmra.mxu2 %vm3837_vm2, %v16301_v63  ;;  %12664 = vmatmul.msk.f32.gmra.mxu3 %vm3837_vm2, %v5800_v58  ;;  %19843 = vst [vmem:[#allocation60_spill] sm:$0xff] %v16318_v26  ;;  %v5269_v58 = vld [vmem:[#allocation3 + $0x150] sm:$0xff] }
 0x4d8   : > { %v5417_v59 = vpop.f32.mrf.mxu1 }
 0x4da   : > { %v4633_v28 = vpop.f32.mrf.mxu2  ;;  %v4908_v60 = vpop.f32.mrf.mxu3 }
 0x4db   : > { %12616 = vmatmul.msk.f32.gmra.mxu1 %vm3837_vm2, %v5268_v62  ;;  %v4683_v55 = vadd.f32 %v4633_v28, %v4391_v61  ;;  %v5141_v42 = vpop.f32.mrf.mxu0 }
 0x4dc   : > { %v5219_v57 = vadd.f32 %v5141_v42, %v16072_v46  ;;  %v4394_v46 = vadd.f32 %v16002_v23, %v16008_v22  ;;  %v16333_v42 = vld [vmem:[#allocation3 + $0x13c] sm:$0xff] }
 0x4dd   : > { %v16314_v1 = vadd.f32 %v4908_v60, %v4683_v55  ;;  %12583 = vmatmul.msk.f32.gmra.mxu0 %vm3837_vm2, %v16316_v24  ;;  %v5802_v23 = vld [vmem:[#allocation3 + $0x82] sm:$0xff] }
 0x4de   : > { %v16320_v63 = vadd.f32 %v5417_v59, %v5219_v57  ;;  %v16335_v57 = vld [vmem:[#allocation3 + $0x81] sm:$0xff] }
 0x4df   : > { %12632 = vmatmul.msk.f32.gmra.mxu2 %vm3837_vm2, %v16318_v26  ;;  %12665 = vmatmul.msk.f32.gmra.mxu3 %vm3837_vm2, %v5801_v54  ;;  %19844 = vst [vmem:[#allocation57_spill] sm:$0xff] %v16335_v57  ;;  %v5270_v54 = vld [vmem:[#allocation3 + $0x158] sm:$0xff] }
 0x4e0   : > { %v5420_v34 = vpop.f32.mrf.mxu1 }
 0x4e2   : > { %v4636_v61 = vpop.f32.mrf.mxu2  ;;  %v4911_v59 = vpop.f32.mrf.mxu3 }
 0x4e3   : > { %12617 = vmatmul.msk.f32.gmra.mxu1 %vm3837_vm2, %v5269_v58  ;;  %v4684_v62 = vadd.f32 %v4636_v61, %v4394_v46  ;;  %v5144_v28 = vpop.f32.mrf.mxu0 }
 0x4e4   : > { %v5220_v55 = vadd.f32 %v5144_v28, %v16092_v2  ;;  %v4397_v2 = vadd.f32 %v16022_v16, %v16028_v36  ;;  %v16350_v28 = vld [vmem:[#allocation3 + $0x144] sm:$0xff]  ;;  %v5803_v16 = vld [vmem:[#allocation3 + $0x92] sm:$0xff] }
 0x4e5   : > { %v16331_v60 = vadd.f32 %v4911_v59, %v4684_v62  ;;  %12584 = vmatmul.msk.f32.gmra.mxu0 %vm3837_vm2, %v16333_v42  ;;  %19845 = vst [vmem:[#allocation58_spill] sm:$0xff] %v16350_v28  ;;  %v12755_v36 = vld [vmem:[%s19439_s10 + $0x50] sm:$0xff] }
 0x4e6   : > { %v16337_v26 = vadd.f32 %v5420_v34, %v5220_v55  ;;  %v16352_v55 = vld [vmem:[#allocation3 + $0x91] sm:$0xff]  ;;  %6763 = vmatpush.msra.mxu2 %v12755_v36  ;;  %v4403_v36 = vadd.f32 %v16062_v7, %v16068_v48 }
 0x4e7   : > { %12633 = vmatmul.msk.f32.gmra.mxu2 %vm3837_vm2, %v16335_v57  ;;  %12666 = vmatmul.msk.f32.gmra.mxu3 %vm3837_vm2, %v5802_v23  ;;  %19846 = vst [vmem:[#allocation63_spill] sm:$0xff] %v16352_v55  ;;  %v5805_v48 = vld [vmem:[#allocation3 + $0xaa] sm:$0xff] }
 0x4e8   : > { %v5423_v22 = vpop.f32.mrf.mxu1 }
 0x4ea   : > { %v4639_v46 = vpop.f32.mrf.mxu2  ;;  %v4914_v34 = vpop.f32.mrf.mxu3 }
 0x4eb   : > { %12618 = vmatmul.msk.f32.gmra.mxu1 %vm3837_vm2, %v5270_v54  ;;  %v4685_v58 = vadd.f32 %v4639_v46, %v4397_v2  ;;  %v5147_v61 = vpop.f32.mrf.mxu0  ;;  %v5271_v2 = vld [vmem:[#allocation3 + $0x168] sm:$0xff] }
 0x4ec   : > { %v5221_v62 = vadd.f32 %v5147_v61, %v16112_v33  ;;  %v12788_v33 = vld [vmem:[%s19439_s10 + $0x58] sm:$0xff] }
 0x4ed   : > { %v16348_v59 = vadd.f32 %v4914_v34, %v4685_v58  ;;  %12585 = vmatmul.msk.f32.gmra.mxu0 %vm3837_vm2, %v16350_v28  ;;  %7038 = vmatpush.msra.mxu3 %v12788_v33  ;;  %v16375_v28 = vld [vmem:[#allocation3 + $0x99] sm:$0xff]  ;;  %v5272_v33 = vld [vmem:[#allocation3 + $0x170] sm:$0xff] }
 0x4ee   : > { %v16354_v57 = vadd.f32 %v5423_v22, %v5221_v62  ;;  %v4400_v22 = vadd.f32 %v16042_v29, %v16048_v39  ;;  %v5804_v39 = vld [vmem:[#allocation3 + $0x9a] sm:$0xff]  ;;  %v12821_v29 = vld [vmem:[%s19439_s10 + $0x60] sm:$0xff] }
 0x4ef   : > { %12634 = vmatmul.msk.f32.gmra.mxu2 %vm3837_vm2, %v16352_v55  ;;  %12667 = vmatmul.msk.f32.gmra.mxu3 %vm3837_vm2, %v5803_v16  ;;  %v16373_v55 = vld [vmem:[#allocation3 + $0x154] sm:$0xff] }
 0x4f0   : > { %v5426_v23 = vpop.f32.mrf.mxu1  ;;  %7313 = vmatpush.msra.mxu0 %v12821_v29  ;;  %v5273_v29 = vld [vmem:[#allocation3 + $0x180] sm:$0xff] }
 0x4f2   : > { %v4642_v54 = vpop.f32.mrf.mxu2  ;;  %v4917_v58 = vpop.f32.mrf.mxu3 }
 0x4f3   : > { %12619 = vmatmul.msk.f32.gmra.mxu1 %vm3837_vm2, %v5271_v2  ;;  %v4686_v46 = vadd.f32 %v4642_v54, %v4400_v22  ;;  %v5150_v34 = vpop.f32.mrf.mxu0 }
 0x4f4   : > { %v5222_v61 = vadd.f32 %v5150_v34, %v16130_v25  ;;  %v16393_v34 = vld [vmem:[#allocation3 + $0x15c] sm:$0xff] }
 0x4f5   : > { %v16371_v62 = vadd.f32 %v4917_v58, %v4686_v46  ;;  %12586 = vmatmul.msk.f32.gmra.mxu0 %vm3837_vm2, %v16373_v55 }
 0x4f6   : > { %v16377_v16 = vadd.f32 %v5426_v23, %v5222_v61  ;;  %v16395_v61 = vld [vmem:[#allocation3 + $0xa9] sm:$0xff] }
 0x4f7   : > { %12635 = vmatmul.msk.f32.gmra.mxu2 %vm3837_vm2, %v16375_v28  ;;  %12668 = vmatmul.msk.f32.gmra.mxu3 %vm3837_vm2, %v5804_v39  ;;  %19847 = vst [vmem:[#allocation59_spill] sm:$0xff] %v16395_v61 }
 0x4f8   : > { %v5429_v25 = vpop.f32.mrf.mxu1 }
 0x4fa   : > { %v4645_v23 = vpop.f32.mrf.mxu2  ;;  %v4920_v2 = vpop.f32.mrf.mxu3 }
 0x4fb   : > { %12620 = vmatmul.msk.f32.gmra.mxu1 %vm3837_vm2, %v5272_v33  ;;  %v4687_v22 = vadd.f32 %v4645_v23, %v4403_v36  ;;  %v5153_v54 = vpop.f32.mrf.mxu0 }
 0x4fc   : > { %v5223_v46 = vadd.f32 %v5153_v54, %v16150_v10  ;;  %v4406_v10 = vadd.f32 %v16082_v19, %v16088_v50  ;;  %v16410_v54 = vld [vmem:[#allocation3 + $0x16c] sm:$0xff]  ;;  %v12854_v19 = vld [vmem:[%s19439_s10 + $0x68] sm:$0xff] }
 0x4fd   : > { %v16391_v58 = vadd.f32 %v4920_v2, %v4687_v22  ;;  %12587 = vmatmul.msk.f32.gmra.mxu0 %vm3837_vm2, %v16393_v34  ;;  %v5806_v50 = vld [vmem:[#allocation3 + $0xb2] sm:$0xff]  ;;  %7588 = vmatpush.msra.mxu1 %v12854_v19 }
 0x4fe   : > { %v16397_v39 = vadd.f32 %v5429_v25, %v5223_v46  ;;  %v16412_v46 = vld [vmem:[#allocation3 + $0xb1] sm:$0xff] }
 0x4ff   : > { %12636 = vmatmul.msk.f32.gmra.mxu2 %vm3837_vm2, %v16395_v61  ;;  %12669 = vmatmul.msk.f32.gmra.mxu3 %vm3837_vm2, %v5805_v48  ;;  %19848 = vst [vmem:[#allocation61_spill] sm:$0xff] %v16412_v46  ;;  %v4409_v48 = vadd.f32 %v16102_v37, %v16108_v12  ;;  %v13571_v37 = vld [vmem:[#allocation3 + $0xc2] sm:$0xff] }
 0x500   : > { %v5432_v7 = vpop.f32.mrf.mxu1 }
 0x502   : > { %v4648_v36 = vpop.f32.mrf.mxu2  ;;  %v4923_v25 = vpop.f32.mrf.mxu3 }
 0x503   : > { %12621 = vmatmul.msk.f32.gmra.mxu1 %vm3837_vm2, %v5273_v29  ;;  %v4688_v33 = vadd.f32 %v4648_v36, %v4406_v10  ;;  %v5156_v23 = vpop.f32.mrf.mxu0 }
 0x504   : > { %v5224_v22 = vadd.f32 %v5156_v23, %v16167_v20 }
 0x505   : > { %v16408_v2 = vadd.f32 %v4923_v25, %v4688_v33  ;;  %12588 = vmatmul.msk.f32.gmra.mxu0 %vm3837_vm2, %v16410_v54 }
 0x506   : > { %v16414_v61 = vadd.f32 %v5432_v7, %v5224_v22  ;;  %v5274_v7 = vld [vmem:[#allocation3 + $0x188] sm:$0xff]  ;;  %v16430_v22 = vld [vmem:[#allocation3 + $0x174] sm:$0xff] }
 0x507   : > { %12637 = vmatmul.msk.f32.gmra.mxu2 %vm3837_vm2, %v16412_v46  ;;  %12670 = vmatmul.msk.f32.gmra.mxu3 %vm3837_vm2, %v5806_v50  ;;  %v16432_v46 = vld [vmem:[#allocation3 + $0xc1] sm:$0xff] }
 0x508   : > { %v5435_v20 = vpop.f32.mrf.mxu1 }
 0x50a   : > { %v4651_v10 = vpop.f32.mrf.mxu2  ;;  %v4926_v36 = vpop.f32.mrf.mxu3 }
 0x50b   : > { %12622 = vmatmul.msk.f32.gmra.mxu1 %vm3837_vm2, %v5274_v7  ;;  %v4689_v29 = vadd.f32 %v4651_v10, %v4409_v48  ;;  %v5159_v33 = vpop.f32.mrf.mxu0  ;;  %v6068_v10 = vld [vmem:[#allocation3 + $0x1b] sm:$0xff] }
 0x50c   : > { %v5225_v25 = vadd.f32 %v5159_v33, %v16184_v30  ;;  %v4412_v30 = vadd.f32 %v16122_v32, %v16128_v9  ;;  %v16448_v33 = vld [vmem:[#allocation3 + $0xc9] sm:$0xff] }
 0x50d   : > { %v16428_v23 = vadd.f32 %v4926_v36, %v4689_v29  ;;  %12589 = vmatmul.msk.f32.gmra.mxu0 %vm3837_vm2, %v16430_v22  ;;  %v13572_v9 = vld [vmem:[#allocation3 + $0xca] sm:$0xff] }
 0x50e   : > { %v16434_v50 = vadd.f32 %v5435_v20, %v5225_v25 }
 0x50f   : > { %12638 = vmatmul.msk.f32.gmra.mxu2 %vm3837_vm2, %v16432_v46  ;;  %12671 = vmatmul.msk.f32.gmra.mxu3 %vm3837_vm2, %v13571_v37 }
 0x510   : > { %v5438_v12 = vpop.f32.mrf.mxu1 }
 0x512   : > { %v4654_v19 = vpop.f32.mrf.mxu2  ;;  %v4929_v20 = vpop.f32.mrf.mxu3 }
 0x513   : > { %12723 = vmatmul.msk.f32.vlgmr.msrb.gmra.mxu1 %vm3837_vm2, %v15902_v11  ;;  %v4690_v48 = vadd.f32 %v4654_v19, %v4412_v30  ;;  %v5162_v7 = vpop.f32.mrf.mxu0  ;;  %v4415_v11 = vadd.f32 %v16140_v6, %v16146_v3  ;;  %v13573_v6 = vld [vmem:[#allocation3 + $0xda] sm:$0xff] }
 0x514   : > { %v5226_v29 = vadd.f32 %v5162_v7, %v16198_v43  ;;  %v19849_v43 = vld [vmem:[#allocation23_spill] sm:$0xff] }
 0x515   : > { %v16446_v36 = vadd.f32 %v4929_v20, %v4690_v48  ;;  %12690 = vmatmul.msk.f32.vlgmr.msrb.gmra.mxu0 %vm3837_vm2, %v6068_v10  ;;  %v6069_v48 = vld [vmem:[#allocation3 + $0x23] sm:$0xff]  ;;  %v16463_v10 = vld [vmem:[#allocation3 + $0xd9] sm:$0xff] }
 0x516   : > { %v16450_v25 = vadd.f32 %v5438_v12, %v5226_v29 }
 0x517   : > { %12639 = vmatmul.msk.f32.gmra.mxu2 %vm3837_vm2, %v16448_v33  ;;  %12672 = vmatmul.msk.f32.gmra.mxu3 %vm3837_vm2, %v13572_v9 }
 0x518   : > { %v5441_v32 = vpop.f32.mrf.mxu1 }
 0x51a   : > { %v4657_v37 = vpop.f32.mrf.mxu2  ;;  %v4932_v19 = vpop.f32.mrf.mxu3 }
 0x51b   : > { %12724 = vmatmul.msk.f32.gmra.mxu1 %vm3837_vm2, %v19849_v43  ;;  %v4691_v30 = vadd.f32 %v4657_v37, %v4415_v11  ;;  %v5165_v12 = vpop.f32.mrf.mxu0  ;;  %v19850_v11 = vld [vmem:[#allocation34_spill] sm:$0xff] }
 0x51c   : > { %v5227_v20 = vadd.f32 %v5165_v12, %v16212_v27  ;;  %v16479_v12 = vld [vmem:[#allocation3 + $0xe1] sm:$0xff] }
 0x51d   : > { %v16461_v7 = vadd.f32 %v4932_v19, %v4691_v30  ;;  %12691 = vmatmul.msk.f32.gmra.mxu0 %vm3837_vm2, %v6069_v48  ;;  %v16477_v19 = vld [vmem:[#allocation3 + $0x33] sm:$0xff]  ;;  %19851 = vst [vmem:[#allocation65_spill] sm:$0xff] %v16479_v12 }
 0x51e   : > { %v16465_v29 = vadd.f32 %v5441_v32, %v5227_v20 }
 0x51f   : > { %12640 = vmatmul.msk.f32.gmra.mxu2 %vm3837_vm2, %v16463_v10  ;;  %12673 = vmatmul.msk.f32.gmra.mxu3 %vm3837_vm2, %v13573_v6 }
 0x520   : > { %v5444_v3 = vpop.f32.mrf.mxu1 }
 0x522   : > { %v5665_v9 = vpop.f32.mrf.mxu2  ;;  %v5940_v37 = vpop.f32.mrf.mxu3 }
 0x523   : > { %12725 = vmatmul.msk.f32.gmra.mxu1 %vm3837_vm2, %v19850_v11  ;;  %v5761_v27 = vadd.f32 %v5665_v9, %v16173_v44  ;;  %v5168_v43 = vpop.f32.mrf.mxu0  ;;  %v13574_v44 = vld [vmem:[#allocation3 + $0xe2] sm:$0xff] }
 0x524   : > { %v5228_v32 = vadd.f32 %v5168_v43, %v16229_v45  ;;  %v19852_v45 = vld [vmem:[#allocation31_spill] sm:$0xff]  ;;  %v16494_v43 = vld [vmem:[#allocation3 + $0x3b] sm:$0xff] }
 0x525   : > { %v16475_v30 = vadd.f32 %v5940_v37, %v5761_v27  ;;  %12692 = vmatmul.msk.f32.gmra.mxu0 %vm3837_vm2, %v16477_v19  ;;  %19853 = vst [vmem:[#allocation62_spill] sm:$0xff] %v16494_v43 }
 0x526   : > { %v16481_v48 = vadd.f32 %v5444_v3, %v5228_v32  ;;  %v16496_v32 = vld [vmem:[#allocation3 + $0xf1] sm:$0xff] }
 0x527   : > { %12641 = vmatmul.msk.f32.gmra.mxu2 %vm3837_vm2, %v16479_v12  ;;  %12674 = vmatmul.msk.f32.gmra.mxu3 %vm3837_vm2, %v13574_v44  ;;  %19854 = vst [vmem:[#allocation66_spill] sm:$0xff] %v16496_v32 }
 0x528   : > { %v5447_v20 = vpop.f32.mrf.mxu1 }
 0x52a   : > { %v5668_v6 = vpop.f32.mrf.mxu2  ;;  %v5943_v11 = vpop.f32.mrf.mxu3 }
 0x52b   : > { %12726 = vmatmul.msk.f32.gmra.mxu1 %vm3837_vm2, %v19852_v45  ;;  %v5762_v9 = vadd.f32 %v5668_v6, %v16188_v38  ;;  %v5171_v27 = vpop.f32.mrf.mxu0  ;;  %v13575_v38 = vld [vmem:[#allocation3 + $0xf2] sm:$0xff] }
 0x52c   : > { %v5229_v3 = vadd.f32 %v5171_v27, %v16246_v47  ;;  %v19855_v47 = vld [vmem:[#allocation32_spill] sm:$0xff] }
 0x52d   : > { %v16492_v37 = vadd.f32 %v5943_v11, %v5762_v9  ;;  %12693 = vmatmul.msk.f32.gmra.mxu0 %vm3837_vm2, %v16494_v43  ;;  %v16513_v43 = vld [vmem:[#allocation3 + $0xf9] sm:$0xff] }
 0x52e   : > { %v16498_v12 = vadd.f32 %v5447_v20, %v5229_v3  ;;  %v16511_v3 = vld [vmem:[#allocation3 + $0x4b] sm:$0xff]  ;;  %19857 = vst [vmem:[#allocation68_spill] sm:$0xff] %v16513_v43 }
 0x52f   : > { %12642 = vmatmul.msk.f32.gmra.mxu2 %vm3837_vm2, %v16496_v32  ;;  %12675 = vmatmul.msk.f32.gmra.mxu3 %vm3837_vm2, %v13575_v38  ;;  %19856 = vst [vmem:[#allocation64_spill] sm:$0xff] %v16511_v3 }
 0x530   : > { %v5450_v44 = vpop.f32.mrf.mxu1 }
 0x532   : > { %v5671_v6 = vpop.f32.mrf.mxu2  ;;  %v5946_v9 = vpop.f32.mrf.mxu3 }
 0x533   : > { %12727 = vmatmul.msk.f32.gmra.mxu1 %vm3837_vm2, %v19855_v47  ;;  %v5763_v45 = vadd.f32 %v5671_v6, %v16202_v51  ;;  %v5174_v11 = vpop.f32.mrf.mxu0  ;;  %v19858_v51 = vld [vmem:[#allocation25_spill] sm:$0xff] }
 0x534   : > { %v5230_v20 = vadd.f32 %v5174_v11, %v16263_v5  ;;  %v19859_v5 = vld [vmem:[#allocation28_spill] sm:$0xff] }
 0x535   : > { %v16509_v27 = vadd.f32 %v5946_v9, %v5763_v45  ;;  %12694 = vmatmul.msk.f32.gmra.mxu0 %vm3837_vm2, %v16511_v3  ;;  %v16531_v3 = vld [vmem:[#allocation3 + $0x109] sm:$0xff] }
 0x536   : > { %v16515_v32 = vadd.f32 %v5450_v44, %v5230_v20  ;;  %v16529_v20 = vld [vmem:[#allocation3 + $0x53] sm:$0xff]  ;;  %19861 = vst [vmem:[#allocation70_spill] sm:$0xff] %v16531_v3 }
 0x537   : > { %12643 = vmatmul.msk.f32.gmra.mxu2 %vm3837_vm2, %v16513_v43  ;;  %12676 = vmatmul.msk.f32.gmra.mxu3 %vm3837_vm2, %v19858_v51  ;;  %19860 = vst [vmem:[#allocation67_spill] sm:$0xff] %v16529_v20 }
 0x538   : > { %v5453_v38 = vpop.f32.mrf.mxu1 }
 0x53a   : > { %v5674_v6 = vpop.f32.mrf.mxu2  ;;  %v5949_v45 = vpop.f32.mrf.mxu3 }
 0x53b   : > { %12728 = vmatmul.msk.f32.gmra.mxu1 %vm3837_vm2, %v19859_v5  ;;  %v5764_v47 = vadd.f32 %v5674_v6, %v16218_v52  ;;  %v5177_v9 = vpop.f32.mrf.mxu0  ;;  %v19862_v52 = vld [vmem:[#allocation39_spill] sm:$0xff] }
 0x53c   : > { %v5231_v44 = vadd.f32 %v5177_v9, %v16280_v8  ;;  %v19863_v8 = vld [vmem:[#allocation36_spill] sm:$0xff] }
 0x53d   : > { %v16527_v11 = vadd.f32 %v5949_v45, %v5764_v47  ;;  %12695 = vmatmul.msk.f32.gmra.mxu0 %vm3837_vm2, %v16529_v20  ;;  %v16549_v20 = vld [vmem:[#allocation3 + $0x111] sm:$0xff] }
 0x53e   : > { %v16533_v43 = vadd.f32 %v5453_v38, %v5231_v44  ;;  %v16547_v44 = vld [vmem:[#allocation3 + $0x63] sm:$0xff]  ;;  %19865 = vst [vmem:[#allocation12_spill] sm:$0xff] %v16549_v20 }
 0x53f   : > { %12644 = vmatmul.msk.f32.gmra.mxu2 %vm3837_vm2, %v16531_v3  ;;  %12677 = vmatmul.msk.f32.gmra.mxu3 %vm3837_vm2, %v19862_v52  ;;  %19864 = vst [vmem:[#allocation69_spill] sm:$0xff] %v16547_v44 }
 0x540   : > { %v5456_v51 = vpop.f32.mrf.mxu1 }
 0x542   : > { %v5677_v6 = vpop.f32.mrf.mxu2  ;;  %v5952_v47 = vpop.f32.mrf.mxu3 }
 0x543   : > { %12729 = vmatmul.msk.f32.gmra.mxu1 %vm3837_vm2, %v19863_v8  ;;  %v5765_v5 = vadd.f32 %v5677_v6, %v16235_v35  ;;  %v5180_v45 = vpop.f32.mrf.mxu0  ;;  %v19866_v35 = vld [vmem:[#allocation37_spill] sm:$0xff] }
 0x544   : > { %v5232_v38 = vadd.f32 %v5180_v45, %v16297_v31  ;;  %v19867_v31 = vld [vmem:[#allocation30_spill] sm:$0xff] }
 0x545   : > { %v16545_v9 = vadd.f32 %v5952_v47, %v5765_v5  ;;  %12696 = vmatmul.msk.f32.gmra.mxu0 %vm3837_vm2, %v16547_v44  ;;  %v16567_v44 = vld [vmem:[#allocation3 + $0x121] sm:$0xff] }
 0x546   : > { %v16551_v3 = vadd.f32 %v5456_v51, %v5232_v38  ;;  %v16565_v38 = vld [vmem:[#allocation3 + $0x6b] sm:$0xff]  ;;  %19869 = vst [vmem:[#allocation13_spill] sm:$0xff] %v16567_v44 }
 0x547   : > { %12645 = vmatmul.msk.f32.gmra.mxu2 %vm3837_vm2, %v16549_v20  ;;  %12678 = vmatmul.msk.f32.gmra.mxu3 %vm3837_vm2, %v19866_v35  ;;  %19868 = vst [vmem:[#allocation9_spill] sm:$0xff] %v16565_v38 }
 0x548   : > { %v5459_v52 = vpop.f32.mrf.mxu1 }
 0x54a   : > { %v5680_v6 = vpop.f32.mrf.mxu2  ;;  %v5955_v5 = vpop.f32.mrf.mxu3 }
 0x54b   : > { %12730 = vmatmul.msk.f32.gmra.mxu1 %vm3837_vm2, %v19867_v31  ;;  %v5766_v8 = vadd.f32 %v5680_v6, %v16252_v0  ;;  %v5183_v47 = vpop.f32.mrf.mxu0  ;;  %v19870_v0 = vld [vmem:[#allocation33_spill] sm:$0xff] }
 0x54c   : > { %v5233_v51 = vadd.f32 %v5183_v47, %v16314_v1  ;;  %v19871_v1 = vld [vmem:[#allocation44_spill] sm:$0xff] }
 0x54d   : > { %v16563_v45 = vadd.f32 %v5955_v5, %v5766_v8  ;;  %12697 = vmatmul.msk.f32.gmra.mxu0 %vm3837_vm2, %v16565_v38  ;;  %v16585_v38 = vld [vmem:[#allocation3 + $0x129] sm:$0xff] }
 0x54e   : > { %v16569_v20 = vadd.f32 %v5459_v52, %v5233_v51  ;;  %v16583_v51 = vld [vmem:[#allocation3 + $0x7b] sm:$0xff]  ;;  %19873 = vst [vmem:[#allocation10_spill] sm:$0xff] %v16585_v38 }
 0x54f   : > { %12646 = vmatmul.msk.f32.gmra.mxu2 %vm3837_vm2, %v16567_v44  ;;  %12679 = vmatmul.msk.f32.gmra.mxu3 %vm3837_vm2, %v19870_v0  ;;  %19872 = vst [vmem:[#allocation19_spill] sm:$0xff] %v16583_v51 }
 0x550   : > { %v5462_v35 = vpop.f32.mrf.mxu1 }
 0x552   : > { %v5683_v6 = vpop.f32.mrf.mxu2  ;;  %v5958_v8 = vpop.f32.mrf.mxu3 }
 0x553   : > { %12731 = vmatmul.msk.f32.gmra.mxu1 %vm3837_vm2, %v19871_v1  ;;  %v5767_v31 = vadd.f32 %v5683_v6, %v16269_v17  ;;  %v5186_v5 = vpop.f32.mrf.mxu0  ;;  %v19874_v17 = vld [vmem:[#allocation41_spill] sm:$0xff] }
 0x554   : > { %v5234_v52 = vadd.f32 %v5186_v5, %v16331_v60  ;;  %v19875_v60 = vld [vmem:[#allocation42_spill] sm:$0xff] }
 0x555   : > { %v16581_v47 = vadd.f32 %v5958_v8, %v5767_v31  ;;  %12698 = vmatmul.msk.f32.gmra.mxu0 %vm3837_vm2, %v16583_v51  ;;  %v16603_v51 = vld [vmem:[#allocation3 + $0x139] sm:$0xff] }
 0x556   : > { %v16587_v44 = vadd.f32 %v5462_v35, %v5234_v52  ;;  %v16601_v52 = vld [vmem:[#allocation3 + $0x83] sm:$0xff]  ;;  %19877 = vst [vmem:[#allocation17_spill] sm:$0xff] %v16603_v51 }
 0x557   : > { %12647 = vmatmul.msk.f32.gmra.mxu2 %vm3837_vm2, %v16585_v38  ;;  %12680 = vmatmul.msk.f32.gmra.mxu3 %vm3837_vm2, %v19874_v17  ;;  %19876 = vst [vmem:[#allocation16_spill] sm:$0xff] %v16601_v52 }
 0x558   : > { %v5465_v0 = vpop.f32.mrf.mxu1 }
 0x55a   : > { %v5686_v6 = vpop.f32.mrf.mxu2  ;;  %v5961_v31 = vpop.f32.mrf.mxu3 }
 0x55b   : > { %12732 = vmatmul.msk.f32.gmra.mxu1 %vm3837_vm2, %v19875_v60  ;;  %v5768_v1 = vadd.f32 %v5686_v6, %v16286_v18  ;;  %v5189_v8 = vpop.f32.mrf.mxu0  ;;  %v19878_v18 = vld [vmem:[#allocation35_spill] sm:$0xff] }
 0x55c   : > { %v5235_v35 = vadd.f32 %v5189_v8, %v16348_v59  ;;  %v19879_v59 = vld [vmem:[#allocation38_spill] sm:$0xff] }
 0x55d   : > { %v16599_v5 = vadd.f32 %v5961_v31, %v5768_v1  ;;  %12699 = vmatmul.msk.f32.gmra.mxu0 %vm3837_vm2, %v16601_v52  ;;  %v16621_v52 = vld [vmem:[#allocation3 + $0x141] sm:$0xff] }
 0x55e   : > { %v16605_v38 = vadd.f32 %v5465_v0, %v5235_v35  ;;  %v16619_v35 = vld [vmem:[#allocation3 + $0x93] sm:$0xff]  ;;  %19881 = vst [vmem:[#allocation14_spill] sm:$0xff] %v16621_v52 }
 0x55f   : > { %12648 = vmatmul.msk.f32.gmra.mxu2 %vm3837_vm2, %v16603_v51  ;;  %12681 = vmatmul.msk.f32.gmra.mxu3 %vm3837_vm2, %v19878_v18  ;;  %19880 = vst [vmem:[#allocation11_spill] sm:$0xff] %v16619_v35 }
 0x560   : > { %v5468_v17 = vpop.f32.mrf.mxu1 }
 0x562   : > { %v5689_v6 = vpop.f32.mrf.mxu2  ;;  %v5964_v1 = vpop.f32.mrf.mxu3 }
 0x563   : > { %12733 = vmatmul.msk.f32.gmra.mxu1 %vm3837_vm2, %v19879_v59  ;;  %v5769_v60 = vadd.f32 %v5689_v6, %v16303_v49  ;;  %v5192_v31 = vpop.f32.mrf.mxu0  ;;  %v19882_v49 = vld [vmem:[#allocation49_spill] sm:$0xff] }
 0x564   : > { %v5236_v0 = vadd.f32 %v5192_v31, %v16371_v62  ;;  %v19883_v62 = vld [vmem:[#allocation46_spill] sm:$0xff] }
 0x565   : > { %v16617_v8 = vadd.f32 %v5964_v1, %v5769_v60  ;;  %12700 = vmatmul.msk.f32.gmra.mxu0 %vm3837_vm2, %v16619_v35  ;;  %v16639_v35 = vld [vmem:[#allocation3 + $0x151] sm:$0xff] }
 0x566   : > { %v16623_v51 = vadd.f32 %v5468_v17, %v5236_v0  ;;  %v16637_v0 = vld [vmem:[#allocation3 + $0x9b] sm:$0xff]  ;;  %19885 = vst [vmem:[#allocation21_spill] sm:$0xff] %v16639_v35 }
 0x567   : > { %12649 = vmatmul.msk.f32.gmra.mxu2 %vm3837_vm2, %v16621_v52  ;;  %12682 = vmatmul.msk.f32.gmra.mxu3 %vm3837_vm2, %v19882_v49  ;;  %19884 = vst [vmem:[#allocation24_spill] sm:$0xff] %v16637_v0 }
 0x568   : > { %v5471_v18 = vpop.f32.mrf.mxu1 }
 0x56a   : > { %v5692_v6 = vpop.f32.mrf.mxu2  ;;  %v5967_v60 = vpop.f32.mrf.mxu3 }
 0x56b   : > { %12734 = vmatmul.msk.f32.gmra.mxu1 %vm3837_vm2, %v19883_v62  ;;  %v5770_v59 = vadd.f32 %v5692_v6, %v16320_v63  ;;  %v5195_v1 = vpop.f32.mrf.mxu0  ;;  %v19886_v63 = vld [vmem:[#allocation47_spill] sm:$0xff] }
 0x56c   : > { %v5237_v17 = vadd.f32 %v5195_v1, %v16391_v58  ;;  %v19887_v58 = vld [vmem:[#allocation40_spill] sm:$0xff] }
 0x56d   : > { %v16635_v31 = vadd.f32 %v5967_v60, %v5770_v59  ;;  %12701 = vmatmul.msk.f32.gmra.mxu0 %vm3837_vm2, %v16637_v0  ;;  %v16657_v0 = vld [vmem:[#allocation3 + $0x159] sm:$0xff] }
 0x56e   : > { %v16641_v52 = vadd.f32 %v5471_v18, %v5237_v17  ;;  %v16655_v17 = vld [vmem:[#allocation3 + $0xab] sm:$0xff]  ;;  %19889 = vst [vmem:[#allocation15_spill] sm:$0xff] %v16657_v0 }
 0x56f   : > { %12650 = vmatmul.msk.f32.gmra.mxu2 %vm3837_vm2, %v16639_v35  ;;  %12683 = vmatmul.msk.f32.gmra.mxu3 %vm3837_vm2, %v19886_v63  ;;  %19888 = vst [vmem:[#allocation22_spill] sm:$0xff] %v16655_v17 }
 0x570   : > { %v5474_v49 = vpop.f32.mrf.mxu1 }
 0x572   : > { %v5695_v6 = vpop.f32.mrf.mxu2  ;;  %v5970_v59 = vpop.f32.mrf.mxu3 }
 0x573   : > { %12735 = vmatmul.msk.f32.gmra.mxu1 %vm3837_vm2, %v19887_v58  ;;  %v5771_v62 = vadd.f32 %v5695_v6, %v16337_v26  ;;  %v5198_v60 = vpop.f32.mrf.mxu0  ;;  %v19890_v26 = vld [vmem:[#allocation43_spill] sm:$0xff] }
 0x574   : > { %v5238_v18 = vadd.f32 %v5198_v60, %v16408_v2  ;;  %v19891_v2 = vld [vmem:[#allocation54_spill] sm:$0xff] }
 0x575   : > { %v16653_v1 = vadd.f32 %v5970_v59, %v5771_v62  ;;  %12702 = vmatmul.msk.f32.gmra.mxu0 %vm3837_vm2, %v16655_v17  ;;  %v16675_v17 = vld [vmem:[#allocation3 + $0x169] sm:$0xff] }
 0x576   : > { %v16659_v35 = vadd.f32 %v5474_v49, %v5238_v18  ;;  %v16673_v18 = vld [vmem:[#allocation3 + $0xb3] sm:$0xff]  ;;  %19893 = vst [vmem:[#allocation29_spill] sm:$0xff] %v16675_v17 }
 0x577   : > { %12651 = vmatmul.msk.f32.gmra.mxu2 %vm3837_vm2, %v16657_v0  ;;  %12684 = vmatmul.msk.f32.gmra.mxu3 %vm3837_vm2, %v19890_v26  ;;  %19892 = vst [vmem:[#allocation18_spill] sm:$0xff] %v16673_v18 }
 0x578   : > { %v5477_v63 = vpop.f32.mrf.mxu1 }
 0x57a   : > { %v5698_v6 = vpop.f32.mrf.mxu2  ;;  %v5973_v62 = vpop.f32.mrf.mxu3 }
 0x57b   : > { %12736 = vmatmul.msk.f32.gmra.mxu1 %vm3837_vm2, %v19891_v2  ;;  %v5772_v58 = vadd.f32 %v5698_v6, %v16354_v57  ;;  %v5201_v59 = vpop.f32.mrf.mxu0  ;;  %v19894_v57 = vld [vmem:[#allocation51_spill] sm:$0xff] }
 0x57c   : > { %v5239_v49 = vadd.f32 %v5201_v59, %v16428_v23  ;;  %v19895_v23 = vld [vmem:[#allocation52_spill] sm:$0xff] }
 0x57d   : > { %v16671_v60 = vadd.f32 %v5973_v62, %v5772_v58  ;;  %12703 = vmatmul.msk.f32.gmra.mxu0 %vm3837_vm2, %v16673_v18  ;;  %v16693_v18 = vld [vmem:[#allocation3 + $0x171] sm:$0xff] }
 0x57e   : > { %v16677_v0 = vadd.f32 %v5477_v63, %v5239_v49  ;;  %v16691_v49 = vld [vmem:[#allocation3 + $0xc3] sm:$0xff]  ;;  %19896 = vst [vmem:[#allocation26_spill] sm:$0xff] %v16693_v18 }
 0x57f   : > { %12652 = vmatmul.msk.f32.gmra.mxu2 %vm3837_vm2, %v16675_v17  ;;  %12685 = vmatmul.msk.f32.gmra.mxu3 %vm3837_vm2, %v19894_v57 }
 0x580   : > { %v5480_v26 = vpop.f32.mrf.mxu1 }
 0x582   : > { %v5701_v6 = vpop.f32.mrf.mxu2  ;;  %v5976_v58 = vpop.f32.mrf.mxu3 }
 0x583   : > { %12737 = vmatmul.msk.f32.gmra.mxu1 %vm3837_vm2, %v19895_v23  ;;  %v5773_v2 = vadd.f32 %v5701_v6, %v16377_v16  ;;  %v5204_v62 = vpop.f32.mrf.mxu0  ;;  %v19897_v16 = vld [vmem:[#allocation45_spill] sm:$0xff] }
 0x584   : > { %v5240_v63 = vadd.f32 %v5204_v62, %v16446_v36  ;;  %v16709_v62 = vld [vmem:[#allocation3 + $0xcb] sm:$0xff] }
 0x585   : > { %v16689_v59 = vadd.f32 %v5976_v58, %v5773_v2  ;;  %12704 = vmatmul.msk.f32.gmra.mxu0 %vm3837_vm2, %v16691_v49 }
 0x586   : > { %v16695_v17 = vadd.f32 %v5480_v26, %v5240_v63  ;;  %v16711_v63 = vld [vmem:[#allocation3 + $0x181] sm:$0xff] }
 0x587   : > { %12653 = vmatmul.msk.f32.gmra.mxu2 %vm3837_vm2, %v16693_v18  ;;  %12686 = vmatmul.msk.f32.gmra.mxu3 %vm3837_vm2, %v19897_v16  ;;  %19898 = vst [vmem:[#allocation27_spill] sm:$0xff] %v16711_v63 }
 0x588   : > { %v5483_v57 = vpop.f32.mrf.mxu1 }
 0x58a   : > { %v5704_v6 = vpop.f32.mrf.mxu2  ;;  %v5979_v23 = vpop.f32.mrf.mxu3 }
 0x58b   : > { %12738 = vmatmul.msk.f32.gmra.mxu1 %vm3837_vm2, %v16186_v56  ;;  %v5774_v36 = vadd.f32 %v5704_v6, %v16397_v39  ;;  %v5207_v2 = vpop.f32.mrf.mxu0  ;;  %v5823_v56 = vld [vmem:[#allocation3 + $0x182] sm:$0xff] }
 0x58c   : > { %v5241_v26 = vadd.f32 %v5207_v2, %v16461_v7  ;;  %v16726_v2 = vld [vmem:[#allocation3 + $0xdb] sm:$0xff] }
 0x58d   : > { %v16707_v58 = vadd.f32 %v5979_v23, %v5774_v36  ;;  %12705 = vmatmul.msk.f32.gmra.mxu0 %vm3837_vm2, %v16709_v62 }
 0x58e   : > { %v16713_v18 = vadd.f32 %v5483_v57, %v5241_v26  ;;  %v16728_v26 = vld [vmem:[#allocation3 + $0x189] sm:$0xff] }
 0x58f   : > { %12654 = vmatmul.msk.f32.gmra.mxu2 %vm3837_vm2, %v16711_v63  ;;  %12687 = vmatmul.msk.f32.gmra.mxu3 %vm3837_vm2, %v5823_v56  ;;  %19899 = vst [vmem:[#allocation20_spill] sm:$0xff] %v16728_v26 }
 0x590   : > { %v6490_v39 = vpop.f32.mrf.mxu1 }
 0x592   : > { %v5707_v16 = vpop.f32.mrf.mxu2  ;;  %v5982_v6 = vpop.f32.mrf.mxu3 }
 0x593   : > { %12739 = vmatmul.msk.f32.gmra.mxu1 %vm3837_vm2, %v16200_v41  ;;  %v5775_v7 = vadd.f32 %v5707_v16, %v16414_v61  ;;  %v6215_v36 = vpop.f32.mrf.mxu0  ;;  %v5824_v41 = vld [vmem:[#allocation3 + $0x18a] sm:$0xff] }
 0x594   : > { %v6311_v57 = vadd.f32 %v6215_v36, %v16475_v30  ;;  %v16743_v36 = vld [vmem:[#allocation3 + $0xe3] sm:$0xff] }
 0x595   : > { %v16724_v23 = vadd.f32 %v5982_v6, %v5775_v7  ;;  %12706 = vmatmul.msk.f32.gmra.mxu0 %vm3837_vm2, %v16726_v2 }
 0x596   : > { %v16730_v63 = vadd.f32 %v6490_v39, %v6311_v57  ;;  %v6618_v57 = vld [vmem:[#allocation3 + $0x30] sm:$0xff] }
 0x597   : > { %12655 = vmatmul.msk.f32.gmra.mxu2 %vm3837_vm2, %v16728_v26  ;;  %12688 = vmatmul.msk.f32.gmra.mxu3 %vm3837_vm2, %v5824_v41 }
 0x598   : > { %v6493_v61 = vpop.f32.mrf.mxu1 }
 0x59a   : > { %v5710_v56 = vpop.f32.mrf.mxu2  ;;  %v5985_v16 = vpop.f32.mrf.mxu3 }
 0x59b   : > { %12740 = vmatmul.msk.f32.gmra.mxu1 %vm3837_vm2, %v16214_v53  ;;  %v5776_v30 = vadd.f32 %v5710_v56, %v16434_v50  ;;  %v6218_v7 = vpop.f32.mrf.mxu0 }
 0x59c   : > { %v6312_v39 = vadd.f32 %v6218_v7, %v16492_v37  ;;  %v6619_v7 = vld [vmem:[#allocation3 + $0x38] sm:$0xff] }
 0x59d   : > { %v16741_v6 = vadd.f32 %v5985_v16, %v5776_v30  ;;  %12707 = vmatmul.msk.f32.gmra.mxu0 %vm3837_vm2, %v16743_v36  ;;  %v16758_v16 = vld [vmem:[#allocation3 + $0xf3] sm:$0xff] }
 0x59e   : > { %v16745_v26 = vadd.f32 %v6493_v61, %v6312_v39 }
 0x59f   : > { %12756 = vmatmul.msk.f32.vlgmr.msra.gmra.mxu2 %vm3837_vm2, %v6618_v57  ;;  %12789 = vmatmul.msk.f32.vlgmr.msra.gmra.mxu3 %vm3837_vm2, %v16216_v4 }
 0x5a0   : > { %v6496_v41 = vpop.f32.mrf.mxu1 }
 0x5a2   : > { %v5713_v53 = vpop.f32.mrf.mxu2  ;;  %v5988_v37 = vpop.f32.mrf.mxu3 }
 0x5a3   : > { %12741 = vmatmul.msk.f32.gmra.mxu1 %vm3837_vm2, %v16231_v15  ;;  %v5777_v50 = vadd.f32 %v5713_v53, %v16450_v25  ;;  %v6221_v56 = vpop.f32.mrf.mxu0  ;;  %v19900_v15 = vld [vmem:[#allocation48_spill] sm:$0xff] }
 0x5a4   : > { %v6313_v61 = vadd.f32 %v6221_v56, %v16509_v27  ;;  %v16775_v56 = vld [vmem:[#allocation3 + $0x48] sm:$0xff] }
 0x5a5   : > { %v16756_v30 = vadd.f32 %v5988_v37, %v5777_v50  ;;  %12708 = vmatmul.msk.f32.gmra.mxu0 %vm3837_vm2, %v16758_v16  ;;  %v16773_v37 = vld [vmem:[#allocation3 + $0xfb] sm:$0xff] }
 0x5a6   : > { %v16760_v39 = vadd.f32 %v6496_v41, %v6313_v61 }
 0x5a7   : > { %12757 = vmatmul.msk.f32.gmra.mxu2 %vm3837_vm2, %v6619_v7  ;;  %12790 = vmatmul.msk.f32.gmra.mxu3 %vm3837_vm2, %v19900_v15 }
 0x5a8   : > { %v6499_v4 = vpop.f32.mrf.mxu1 }
 0x5aa   : > { %v5716_v25 = vpop.f32.mrf.mxu2  ;;  %v5991_v57 = vpop.f32.mrf.mxu3 }
 0x5ab   : > { %12742 = vmatmul.msk.f32.gmra.mxu1 %vm3837_vm2, %v16248_v21  ;;  %v5778_v27 = vadd.f32 %v5716_v25, %v16465_v29  ;;  %v6224_v53 = vpop.f32.mrf.mxu0  ;;  %v19901_v29 = vld [vmem:[#allocation50_spill] sm:$0xff] }
 0x5ac   : > { %v6314_v41 = vadd.f32 %v6224_v53, %v16527_v11  ;;  %v16793_v53 = vld [vmem:[#allocation3 + $0x50] sm:$0xff] }
 0x5ad   : > { %v16771_v50 = vadd.f32 %v5991_v57, %v5778_v27  ;;  %12709 = vmatmul.msk.f32.gmra.mxu0 %vm3837_vm2, %v16773_v37  ;;  %v16791_v57 = vld [vmem:[#allocation3 + $0x10b] sm:$0xff]  ;;  %19902 = vst [vmem:[#allocation23_spill] sm:$0xff] %v16793_v53 }
 0x5ae   : > { %v16777_v61 = vadd.f32 %v6499_v4, %v6314_v41 }
 0x5af   : > { %12758 = vmatmul.msk.f32.gmra.mxu2 %vm3837_vm2, %v16775_v56  ;;  %12791 = vmatmul.msk.f32.gmra.mxu3 %vm3837_vm2, %v19901_v29 }
 0x5b0   : > { %v6502_v21 = vpop.f32.mrf.mxu1 }
 0x5b2   : > { %v5719_v7 = vpop.f32.mrf.mxu2  ;;  %v5994_v15 = vpop.f32.mrf.mxu3 }
 0x5b3   : > { %12743 = vmatmul.msk.f32.gmra.mxu1 %vm3837_vm2, %v16265_v40  ;;  %v5779_v11 = vadd.f32 %v5719_v7, %v16481_v48  ;;  %v6227_v25 = vpop.f32.mrf.mxu0  ;;  %v19903_v48 = vld [vmem:[#allocation53_spill] sm:$0xff] }
 0x5b4   : > { %v6315_v4 = vadd.f32 %v6227_v25, %v16545_v9  ;;  %v16809_v25 = vld [vmem:[#allocation3 + $0x113] sm:$0xff] }
 0x5b5   : > { %v16789_v27 = vadd.f32 %v5994_v15, %v5779_v11  ;;  %12710 = vmatmul.msk.f32.gmra.mxu0 %vm3837_vm2, %v16791_v57 }
 0x5b6   : > { %v16795_v41 = vadd.f32 %v6502_v21, %v6315_v4  ;;  %v16811_v4 = vld [vmem:[#allocation3 + $0x60] sm:$0xff] }
 0x5b7   : > { %12759 = vmatmul.msk.f32.gmra.mxu2 %vm3837_vm2, %v16793_v53  ;;  %12792 = vmatmul.msk.f32.gmra.mxu3 %vm3837_vm2, %v19903_v48  ;;  %19904 = vst [vmem:[#allocation34_spill] sm:$0xff] %v16811_v4 }
 0x5b8   : > { %v6505_v40 = vpop.f32.mrf.mxu1 }
 0x5ba   : > { %v5722_v29 = vpop.f32.mrf.mxu2  ;;  %v5997_v7 = vpop.f32.mrf.mxu3 }
 0x5bb   : > { %12744 = vmatmul.msk.f32.gmra.mxu1 %vm3837_vm2, %v16282_v13  ;;  %v5780_v9 = vadd.f32 %v5722_v29, %v16498_v12  ;;  %v6230_v11 = vpop.f32.mrf.mxu0  ;;  %v19905_v12 = vld [vmem:[#allocation55_spill] sm:$0xff] }
 0x5bc   : > { %v6316_v21 = vadd.f32 %v6230_v11, %v16563_v45  ;;  %v16827_v11 = vld [vmem:[#allocation3 + $0x123] sm:$0xff] }
 0x5bd   : > { %v16807_v15 = vadd.f32 %v5997_v7, %v5780_v9  ;;  %12711 = vmatmul.msk.f32.gmra.mxu0 %vm3837_vm2, %v16809_v25 }
 0x5be   : > { %v16813_v53 = vadd.f32 %v6505_v40, %v6316_v21  ;;  %v16829_v21 = vld [vmem:[#allocation3 + $0x68] sm:$0xff] }
 0x5bf   : > { %12760 = vmatmul.msk.f32.gmra.mxu2 %vm3837_vm2, %v16811_v4  ;;  %12793 = vmatmul.msk.f32.gmra.mxu3 %vm3837_vm2, %v19905_v12  ;;  %19906 = vst [vmem:[#allocation31_spill] sm:$0xff] %v16829_v21 }
 0x5c0   : > { %v6508_v13 = vpop.f32.mrf.mxu1 }
 0x5c2   : > { %v5725_v48 = vpop.f32.mrf.mxu2  ;;  %v6000_v29 = vpop.f32.mrf.mxu3 }
 0x5c3   : > { %12745 = vmatmul.msk.f32.gmra.mxu1 %vm3837_vm2, %v16299_v14  ;;  %v5781_v45 = vadd.f32 %v5725_v48, %v16515_v32  ;;  %v6233_v9 = vpop.f32.mrf.mxu0  ;;  %v19907_v32 = vld [vmem:[#allocation56_spill] sm:$0xff] }
 0x5c4   : > { %v6317_v40 = vadd.f32 %v6233_v9, %v16581_v47  ;;  %v16845_v9 = vld [vmem:[#allocation3 + $0x12b] sm:$0xff] }
 0x5c5   : > { %v16825_v7 = vadd.f32 %v6000_v29, %v5781_v45  ;;  %12712 = vmatmul.msk.f32.gmra.mxu0 %vm3837_vm2, %v16827_v11 }
 0x5c6   : > { %v16831_v4 = vadd.f32 %v6508_v13, %v6317_v40  ;;  %v16847_v40 = vld [vmem:[#allocation3 + $0x78] sm:$0xff] }
 0x5c7   : > { %12761 = vmatmul.msk.f32.gmra.mxu2 %vm3837_vm2, %v16829_v21  ;;  %12794 = vmatmul.msk.f32.gmra.mxu3 %vm3837_vm2, %v19907_v32  ;;  %19908 = vst [vmem:[#allocation32_spill] sm:$0xff] %v16847_v40 }
 0x5c8   : > { %v6511_v14 = vpop.f32.mrf.mxu1 }
 0x5ca   : > { %v5728_v12 = vpop.f32.mrf.mxu2  ;;  %v6003_v48 = vpop.f32.mrf.mxu3 }
 0x5cb   : > { %12746 = vmatmul.msk.f32.gmra.mxu1 %vm3837_vm2, %v16316_v24  ;;  %v5782_v47 = vadd.f32 %v5728_v12, %v16533_v43  ;;  %v6236_v45 = vpop.f32.mrf.mxu0  ;;  %v19909_v43 = vld [vmem:[#allocation60_spill] sm:$0xff] }
 0x5cc   : > { %v6318_v13 = vadd.f32 %v6236_v45, %v16599_v5  ;;  %v16863_v45 = vld [vmem:[#allocation3 + $0x13b] sm:$0xff] }
 0x5cd   : > { %v16843_v29 = vadd.f32 %v6003_v48, %v5782_v47  ;;  %12713 = vmatmul.msk.f32.gmra.mxu0 %vm3837_vm2, %v16845_v9  ;;  %19910 = vst [vmem:[#allocation25_spill] sm:$0xff] %v16863_v45 }
 0x5ce   : > { %v16849_v21 = vadd.f32 %v6511_v14, %v6318_v13  ;;  %v16865_v13 = vld [vmem:[#allocation3 + $0x80] sm:$0xff] }
 0x5cf   : > { %12762 = vmatmul.msk.f32.gmra.mxu2 %vm3837_vm2, %v16847_v40  ;;  %12795 = vmatmul.msk.f32.gmra.mxu3 %vm3837_vm2, %v19909_v43  ;;  %19911 = vst [vmem:[#allocation28_spill] sm:$0xff] %v16865_v13 }
 0x5d0   : > { %v6514_v24 = vpop.f32.mrf.mxu1 }
 0x5d2   : > { %v5731_v32 = vpop.f32.mrf.mxu2  ;;  %v6006_v12 = vpop.f32.mrf.mxu3 }
 0x5d3   : > { %12747 = vmatmul.msk.f32.gmra.mxu1 %vm3837_vm2, %v16333_v42  ;;  %v5783_v5 = vadd.f32 %v5731_v32, %v16551_v3  ;;  %v6239_v47 = vpop.f32.mrf.mxu0  ;;  %v19912_v3 = vld [vmem:[#allocation57_spill] sm:$0xff] }
 0x5d4   : > { %v6319_v14 = vadd.f32 %v6239_v47, %v16617_v8  ;;  %v19913_v8 = vld [vmem:[#allocation58_spill] sm:$0xff] }
 0x5d5   : > { %v16861_v48 = vadd.f32 %v6006_v12, %v5783_v5  ;;  %12714 = vmatmul.msk.f32.gmra.mxu0 %vm3837_vm2, %v16863_v45  ;;  %v16883_v45 = vld [vmem:[#allocation3 + $0x90] sm:$0xff] }
 0x5d6   : > { %v16867_v40 = vadd.f32 %v6514_v24, %v6319_v14  ;;  %v16881_v14 = vld [vmem:[#allocation3 + $0x143] sm:$0xff]  ;;  %19914 = vst [vmem:[#allocation39_spill] sm:$0xff] %v16883_v45 }
 0x5d7   : > { %12763 = vmatmul.msk.f32.gmra.mxu2 %vm3837_vm2, %v16865_v13  ;;  %12796 = vmatmul.msk.f32.gmra.mxu3 %vm3837_vm2, %v19912_v3 }
 0x5d8   : > { %v6517_v42 = vpop.f32.mrf.mxu1 }
 0x5da   : > { %v5734_v43 = vpop.f32.mrf.mxu2  ;;  %v6009_v5 = vpop.f32.mrf.mxu3 }
 0x5db   : > { %12748 = vmatmul.msk.f32.gmra.mxu1 %vm3837_vm2, %v19913_v8  ;;  %v5784_v32 = vadd.f32 %v5734_v43, %v16569_v20  ;;  %v6242_v12 = vpop.f32.mrf.mxu0  ;;  %v19915_v20 = vld [vmem:[#allocation63_spill] sm:$0xff] }
 0x5dc   : > { %v6320_v24 = vadd.f32 %v6242_v12, %v16635_v31  ;;  %v16899_v12 = vld [vmem:[#allocation3 + $0x153] sm:$0xff] }
 0x5dd   : > { %v16879_v47 = vadd.f32 %v6009_v5, %v5784_v32  ;;  %12715 = vmatmul.msk.f32.gmra.mxu0 %vm3837_vm2, %v16881_v14 }
 0x5de   : > { %v16885_v13 = vadd.f32 %v6517_v42, %v6320_v24  ;;  %v16901_v24 = vld [vmem:[#allocation3 + $0x98] sm:$0xff] }
 0x5df   : > { %12764 = vmatmul.msk.f32.gmra.mxu2 %vm3837_vm2, %v16883_v45  ;;  %12797 = vmatmul.msk.f32.gmra.mxu3 %vm3837_vm2, %v19915_v20  ;;  %19916 = vst [vmem:[#allocation36_spill] sm:$0xff] %v16901_v24 }
 0x5e0   : > { %v6520_v3 = vpop.f32.mrf.mxu1 }
 0x5e2   : > { %v5737_v43 = vpop.f32.mrf.mxu2  ;;  %v6012_v8 = vpop.f32.mrf.mxu3 }
 0x5e3   : > { %12749 = vmatmul.msk.f32.gmra.mxu1 %vm3837_vm2, %v16373_v55  ;;  %v5785_v31 = vadd.f32 %v5737_v43, %v16587_v44  ;;  %v6245_v32 = vpop.f32.mrf.mxu0 }
 0x5e4   : > { %v6321_v42 = vadd.f32 %v6245_v32, %v16653_v1  ;;  %v16919_v32 = vld [vmem:[#allocation3 + $0xa8] sm:$0xff] }
 0x5e5   : > { %v16897_v5 = vadd.f32 %v6012_v8, %v5785_v31  ;;  %12716 = vmatmul.msk.f32.gmra.mxu0 %vm3837_vm2, %v16899_v12  ;;  %v16917_v8 = vld [vmem:[#allocation3 + $0x15b] sm:$0xff]  ;;  %19918 = vst [vmem:[#allocation30_spill] sm:$0xff] %v16919_v32 }
 0x5e6   : > { %v16903_v45 = vadd.f32 %v6520_v3, %v6321_v42  ;;  %19917 = vst [vmem:[#allocation37_spill] sm:$0xff] %v16917_v8 }
 0x5e7   : > { %12765 = vmatmul.msk.f32.gmra.mxu2 %vm3837_vm2, %v16901_v24  ;;  %12798 = vmatmul.msk.f32.gmra.mxu3 %vm3837_vm2, %v16375_v28  ;;  %v12887_v28 = vld [vmem:[%s19439_s10 + $0x70] sm:$0xff] }
 0x5e8   : > { %v6523_v55 = vpop.f32.mrf.mxu1  ;;  %7863 = vmatpush.msrb.mxu2 %v12887_v28 }
 0x5ea   : > { %v5740_v44 = vpop.f32.mrf.mxu2  ;;  %v6015_v20 = vpop.f32.mrf.mxu3 }
 0x5eb   : > { %12750 = vmatmul.msk.f32.gmra.mxu1 %vm3837_vm2, %v16393_v34  ;;  %v5786_v1 = vadd.f32 %v5740_v44, %v16605_v38  ;;  %v6248_v43 = vpop.f32.mrf.mxu0  ;;  %v12920_v34 = vld [vmem:[%s19439_s10 + $0x78] sm:$0xff] }
 0x5ec   : > { %v6322_v3 = vadd.f32 %v6248_v43, %v16671_v60  ;;  %v19919_v60 = vld [vmem:[#allocation59_spill] sm:$0xff]  ;;  %8139 = vmatpush.msrb.mxu3 %v12920_v34 }
 0x5ed   : > { %v16915_v31 = vadd.f32 %v6015_v20, %v5786_v1  ;;  %12717 = vmatmul.msk.f32.gmra.mxu0 %vm3837_vm2, %v16917_v8  ;;  %v16943_v8 = vld [vmem:[#allocation3 + $0xb0] sm:$0xff] }
 0x5ee   : > { %v16921_v42 = vadd.f32 %v6523_v55, %v6322_v3 }
 0x5ef   : > { %12766 = vmatmul.msk.f32.gmra.mxu2 %vm3837_vm2, %v16919_v32  ;;  %12799 = vmatmul.msk.f32.gmra.mxu3 %vm3837_vm2, %v19919_v60  ;;  %v16941_v32 = vld [vmem:[#allocation3 + $0x16b] sm:$0xff] }
 0x5f0   : > { %v6526_v38 = vpop.f32.mrf.mxu1 }
 0x5f2   : > { %v5743_v55 = vpop.f32.mrf.mxu2  ;;  %v6018_v1 = vpop.f32.mrf.mxu3 }
 0x5f3   : > { %12751 = vmatmul.msk.f32.gmra.mxu1 %vm3837_vm2, %v16410_v54  ;;  %v5787_v44 = vadd.f32 %v5743_v55, %v16623_v51  ;;  %v6251_v20 = vpop.f32.mrf.mxu0  ;;  %v12953_v54 = vld [vmem:[%s19439_s10 + $0x80] sm:$0xff] }
 0x5f4   : > { %v6323_v43 = vadd.f32 %v6251_v20, %v16689_v59  ;;  %v19920_v59 = vld [vmem:[#allocation61_spill] sm:$0xff]  ;;  %8414 = vmatpush.msrb.mxu0 %v12953_v54 }
 0x5f5   : > { %v16939_v3 = vadd.f32 %v6018_v1, %v5787_v44  ;;  %12718 = vmatmul.msk.f32.gmra.mxu0 %vm3837_vm2, %v16941_v32  ;;  %v16962_v1 = vld [vmem:[#allocation3 + $0x173] sm:$0xff]  ;;  %v16964_v20 = vld [vmem:[#allocation3 + $0xc0] sm:$0xff] }
 0x5f6   : > { %v16945_v24 = vadd.f32 %v6526_v38, %v6323_v43 }
 0x5f7   : > { %12767 = vmatmul.msk.f32.gmra.mxu2 %vm3837_vm2, %v16943_v8  ;;  %12800 = vmatmul.msk.f32.gmra.mxu3 %vm3837_vm2, %v19920_v59 }
 0x5f8   : > { %v6529_v51 = vpop.f32.mrf.mxu1 }
 0x5fa   : > { %v5746_v28 = vpop.f32.mrf.mxu2  ;;  %v6021_v38 = vpop.f32.mrf.mxu3 }
 0x5fb   : > { %12752 = vmatmul.msk.f32.gmra.mxu1 %vm3837_vm2, %v16430_v22  ;;  %v5788_v34 = vadd.f32 %v5746_v28, %v16641_v52  ;;  %v6254_v60 = vpop.f32.mrf.mxu0  ;;  %v6373_v52 = vld [vmem:[#allocation3 + $0x184] sm:$0xff] }
 0x5fc   : > { %v6324_v55 = vadd.f32 %v6254_v60, %v16707_v58  ;;  %v16981_v60 = vld [vmem:[#allocation3 + $0xc8] sm:$0xff] }
 0x5fd   : > { %v16960_v44 = vadd.f32 %v6021_v38, %v5788_v34  ;;  %12719 = vmatmul.msk.f32.gmra.mxu0 %vm3837_vm2, %v16962_v1  ;;  %v16979_v38 = vld [vmem:[#allocation3 + $0x183] sm:$0xff]  ;;  %19922 = vst [vmem:[#allocation44_spill] sm:$0xff] %v16981_v60 }
 0x5fe   : > { %v16966_v43 = vadd.f32 %v6529_v51, %v6324_v55  ;;  %19921 = vst [vmem:[#allocation33_spill] sm:$0xff] %v16979_v38 }
 0x5ff   : > { %12768 = vmatmul.msk.f32.gmra.mxu2 %vm3837_vm2, %v16964_v20  ;;  %12801 = vmatmul.msk.f32.gmra.mxu3 %vm3837_vm2, %v16432_v46  ;;  %v12986_v46 = vld [vmem:[%s19439_s10 + $0x88] sm:$0xff] }
 0x600   : > { %v6532_v22 = vpop.f32.mrf.mxu1  ;;  %8689 = vmatpush.msrb.mxu1 %v12986_v46 }
 0x602   : > { %v5749_v58 = vpop.f32.mrf.mxu2  ;;  %v6024_v59 = vpop.f32.mrf.mxu3 }
 0x603   : > { %12753 = vmatmul.msk.f32.gmra.mxu1 %vm3837_vm2, %v6373_v52  ;;  %v5789_v54 = vadd.f32 %v5749_v58, %v16659_v35  ;;  %v6257_v28 = vpop.f32.mrf.mxu0 }
 0x604   : > { %v6325_v51 = vadd.f32 %v6257_v28, %v16724_v23  ;;  %v6374_v23 = vld [vmem:[#allocation3 + $0x18c] sm:$0xff] }
 0x605   : > { %v16977_v34 = vadd.f32 %v6024_v59, %v5789_v54  ;;  %12720 = vmatmul.msk.f32.gmra.mxu0 %vm3837_vm2, %v16979_v38 }
 0x606   : > { %v16983_v55 = vadd.f32 %v6532_v22, %v6325_v51  ;;  %v16999_v51 = vld [vmem:[#allocation3 + $0x18b] sm:$0xff] }
 0x607   : > { %12769 = vmatmul.msk.f32.gmra.mxu2 %vm3837_vm2, %v16981_v60  ;;  %12802 = vmatmul.msk.f32.gmra.mxu3 %vm3837_vm2, %v16448_v33  ;;  %v17001_v60 = vld [vmem:[#allocation3 + $0xd8] sm:$0xff] }
 0x608   : > { %v6535_v35 = vpop.f32.mrf.mxu1 }
 0x60a   : > { %v5752_v52 = vpop.f32.mrf.mxu2  ;;  %v6027_v58 = vpop.f32.mrf.mxu3 }
 0x60b   : > { %12754 = vmatmul.msk.f32.gmra.mxu1 %vm3837_vm2, %v6374_v23  ;;  %v5790_v22 = vadd.f32 %v5752_v52, %v16677_v0  ;;  %v6260_v54 = vpop.f32.mrf.mxu0 }
 0x60c   : > { %v6326_v59 = vadd.f32 %v6260_v54, %v16741_v6 }
 0x60d   : > { %v16997_v28 = vadd.f32 %v6027_v58, %v5790_v22  ;;  %12721 = vmatmul.msk.f32.gmra.mxu0 %vm3837_vm2, %v16999_v51  ;;  %v7168_v22 = vld [vmem:[#allocation3 + $0x32] sm:$0xff]  ;;  %v17017_v58 = vld [vmem:[#allocation3 + $0xe0] sm:$0xff] }
 0x60e   : > { %v17003_v38 = vadd.f32 %v6535_v35, %v6326_v59  ;;  %v19924_v59 = vld [vmem:[#allocation62_spill] sm:$0xff] }
 0x60f   : > { %12770 = vmatmul.msk.f32.gmra.mxu2 %vm3837_vm2, %v17001_v60  ;;  %12803 = vmatmul.msk.f32.gmra.mxu3 %vm3837_vm2, %v16463_v10 }
 0x610   : > { %v6538_v33 = vpop.f32.mrf.mxu1 }
 0x612   : > { %v5755_v0 = vpop.f32.mrf.mxu2  ;;  %v6030_v46 = vpop.f32.mrf.mxu3 }
 0x613   : > { %12855 = vmatmul.msk.f32.vlgmr.msra.gmra.mxu1 %vm3837_vm2, %v16477_v19  ;;  %v5791_v6 = vadd.f32 %v5755_v0, %v16695_v17  ;;  %v6263_v23 = vpop.f32.mrf.mxu0  ;;  %v19923_v19 = vld [vmem:[#allocation65_spill] sm:$0xff] }
 0x614   : > { %v6327_v35 = vadd.f32 %v6263_v23, %v16756_v30  ;;  %v7169_v23 = vld [vmem:[#allocation3 + $0x3a] sm:$0xff] }
 0x615   : > { %v17015_v52 = vadd.f32 %v6030_v46, %v5791_v6  ;;  %12822 = vmatmul.msk.f32.vlgmr.msra.gmra.mxu0 %vm3837_vm2, %v7168_v22 }
 0x616   : > { %v17019_v54 = vadd.f32 %v6538_v33, %v6327_v35  ;;  %v17032_v35 = vld [vmem:[#allocation3 + $0xf0] sm:$0xff] }
 0x617   : > { %12771 = vmatmul.msk.f32.gmra.mxu2 %vm3837_vm2, %v17017_v58  ;;  %12804 = vmatmul.msk.f32.gmra.mxu3 %vm3837_vm2, %v19923_v19  ;;  %19925 = vst [vmem:[#allocation41_spill] sm:$0xff] %v17032_v35 }
 0x618   : > { %v6541_v10 = vpop.f32.mrf.mxu1 }
 0x61a   : > { %v5758_v17 = vpop.f32.mrf.mxu2  ;;  %v6033_v0 = vpop.f32.mrf.mxu3 }
 0x61b   : > { %12856 = vmatmul.msk.f32.gmra.mxu1 %vm3837_vm2, %v19924_v59  ;;  %v5792_v30 = vadd.f32 %v5758_v17, %v16713_v18  ;;  %v6266_v6 = vpop.f32.mrf.mxu0  ;;  %v19926_v59 = vld [vmem:[#allocation66_spill] sm:$0xff]  ;;  %v19927_v17 = vld [vmem:[#allocation64_spill] sm:$0xff] }
 0x61c   : > { %v6328_v33 = vadd.f32 %v6266_v6, %v16771_v50 }
 0x61d   : > { %v17030_v46 = vadd.f32 %v6033_v0, %v5792_v30  ;;  %12823 = vmatmul.msk.f32.gmra.mxu0 %vm3837_vm2, %v7169_v23  ;;  %v17049_v23 = vld [vmem:[#allocation3 + $0xf8] sm:$0xff] }
 0x61e   : > { %v17034_v22 = vadd.f32 %v6541_v10, %v6328_v33  ;;  %v17047_v33 = vld [vmem:[#allocation3 + $0x4a] sm:$0xff]  ;;  %19929 = vst [vmem:[#allocation35_spill] sm:$0xff] %v17049_v23 }
 0x61f   : > { %12772 = vmatmul.msk.f32.gmra.mxu2 %vm3837_vm2, %v17032_v35  ;;  %12805 = vmatmul.msk.f32.gmra.mxu3 %vm3837_vm2, %v19926_v59  ;;  %19928 = vst [vmem:[#allocation42_spill] sm:$0xff] %v17047_v33 }
 0x620   : > { %v6544_v19 = vpop.f32.mrf.mxu1 }
 0x622   : > { %v6765_v18 = vpop.f32.mrf.mxu2  ;;  %v7040_v30 = vpop.f32.mrf.mxu3 }
 0x623   : > { %12857 = vmatmul.msk.f32.gmra.mxu1 %vm3837_vm2, %v19927_v17  ;;  %v6861_v50 = vadd.f32 %v6765_v18, %v16730_v63  ;;  %v6269_v0 = vpop.f32.mrf.mxu0  ;;  %v19930_v63 = vld [vmem:[#allocation68_spill] sm:$0xff] }
 0x624   : > { %v6329_v10 = vadd.f32 %v6269_v0, %v16789_v27  ;;  %v19931_v27 = vld [vmem:[#allocation67_spill] sm:$0xff] }
 0x625   : > { %v17045_v6 = vadd.f32 %v7040_v30, %v6861_v50  ;;  %12824 = vmatmul.msk.f32.gmra.mxu0 %vm3837_vm2, %v17047_v33  ;;  %v17067_v33 = vld [vmem:[#allocation3 + $0x108] sm:$0xff] }
 0x626   : > { %v17051_v35 = vadd.f32 %v6544_v19, %v6329_v10  ;;  %v17065_v10 = vld [vmem:[#allocation3 + $0x52] sm:$0xff]  ;;  %19933 = vst [vmem:[#allocation49_spill] sm:$0xff] %v17067_v33 }
 0x627   : > { %12773 = vmatmul.msk.f32.gmra.mxu2 %vm3837_vm2, %v17049_v23  ;;  %12806 = vmatmul.msk.f32.gmra.mxu3 %vm3837_vm2, %v19930_v63  ;;  %19932 = vst [vmem:[#allocation38_spill] sm:$0xff] %v17065_v10 }
 0x628   : > { %v6547_v59 = vpop.f32.mrf.mxu1 }
 0x62a   : > { %v6768_v18 = vpop.f32.mrf.mxu2  ;;  %v7043_v50 = vpop.f32.mrf.mxu3 }
 0x62b   : > { %12858 = vmatmul.msk.f32.gmra.mxu1 %vm3837_vm2, %v19931_v27  ;;  %v6862_v17 = vadd.f32 %v6768_v18, %v16745_v26  ;;  %v6272_v30 = vpop.f32.mrf.mxu0  ;;  %v19934_v26 = vld [vmem:[#allocation70_spill] sm:$0xff] }
 0x62c   : > { %v6330_v19 = vadd.f32 %v6272_v30, %v16807_v15  ;;  %v19935_v15 = vld [vmem:[#allocation69_spill] sm:$0xff] }
 0x62d   : > { %v17063_v0 = vadd.f32 %v7043_v50, %v6862_v17  ;;  %12825 = vmatmul.msk.f32.gmra.mxu0 %vm3837_vm2, %v17065_v10  ;;  %v17085_v10 = vld [vmem:[#allocation3 + $0x110] sm:$0xff] }
 0x62e   : > { %v17069_v23 = vadd.f32 %v6547_v59, %v6330_v19  ;;  %v17083_v19 = vld [vmem:[#allocation3 + $0x62] sm:$0xff]  ;;  %19937 = vst [vmem:[#allocation47_spill] sm:$0xff] %v17085_v10 }
 0x62f   : > { %12774 = vmatmul.msk.f32.gmra.mxu2 %vm3837_vm2, %v17067_v33  ;;  %12807 = vmatmul.msk.f32.gmra.mxu3 %vm3837_vm2, %v19934_v26  ;;  %19936 = vst [vmem:[#allocation46_spill] sm:$0xff] %v17083_v19 }
 0x630   : > { %v6550_v63 = vpop.f32.mrf.mxu1 }
 0x632   : > { %v6771_v18 = vpop.f32.mrf.mxu2  ;;  %v7046_v17 = vpop.f32.mrf.mxu3 }
 0x633   : > { %12859 = vmatmul.msk.f32.gmra.mxu1 %vm3837_vm2, %v19935_v15  ;;  %v6863_v27 = vadd.f32 %v6771_v18, %v16760_v39  ;;  %v6275_v50 = vpop.f32.mrf.mxu0  ;;  %v19938_v39 = vld [vmem:[#allocation12_spill] sm:$0xff] }
 0x634   : > { %v6331_v59 = vadd.f32 %v6275_v50, %v16825_v7  ;;  %v19939_v7 = vld [vmem:[#allocation9_spill] sm:$0xff] }
 0x635   : > { %v17081_v30 = vadd.f32 %v7046_v17, %v6863_v27  ;;  %12826 = vmatmul.msk.f32.gmra.mxu0 %vm3837_vm2, %v17083_v19  ;;  %v17103_v19 = vld [vmem:[#allocation3 + $0x120] sm:$0xff] }
 0x636   : > { %v17087_v33 = vadd.f32 %v6550_v63, %v6331_v59  ;;  %v17101_v59 = vld [vmem:[#allocation3 + $0x6a] sm:$0xff]  ;;  %19941 = vst [vmem:[#allocation43_spill] sm:$0xff] %v17103_v19 }
 0x637   : > { %12775 = vmatmul.msk.f32.gmra.mxu2 %vm3837_vm2, %v17085_v10  ;;  %12808 = vmatmul.msk.f32.gmra.mxu3 %vm3837_vm2, %v19938_v39  ;;  %19940 = vst [vmem:[#allocation40_spill] sm:$0xff] %v17101_v59 }
 0x638   : > { %v6553_v26 = vpop.f32.mrf.mxu1 }
 0x63a   : > { %v6774_v18 = vpop.f32.mrf.mxu2  ;;  %v7049_v27 = vpop.f32.mrf.mxu3 }
 0x63b   : > { %12860 = vmatmul.msk.f32.gmra.mxu1 %vm3837_vm2, %v19939_v7  ;;  %v6864_v15 = vadd.f32 %v6774_v18, %v16777_v61  ;;  %v6278_v17 = vpop.f32.mrf.mxu0  ;;  %v19942_v61 = vld [vmem:[#allocation13_spill] sm:$0xff] }
 0x63c   : > { %v6332_v63 = vadd.f32 %v6278_v17, %v16843_v29  ;;  %v19943_v29 = vld [vmem:[#allocation19_spill] sm:$0xff] }
 0x63d   : > { %v17099_v50 = vadd.f32 %v7049_v27, %v6864_v15  ;;  %12827 = vmatmul.msk.f32.gmra.mxu0 %vm3837_vm2, %v17101_v59  ;;  %v17121_v59 = vld [vmem:[#allocation3 + $0x128] sm:$0xff] }
 0x63e   : > { %v17105_v10 = vadd.f32 %v6553_v26, %v6332_v63  ;;  %v17119_v63 = vld [vmem:[#allocation3 + $0x7a] sm:$0xff]  ;;  %19945 = vst [vmem:[#allocation51_spill] sm:$0xff] %v17121_v59 }
 0x63f   : > { %12776 = vmatmul.msk.f32.gmra.mxu2 %vm3837_vm2, %v17103_v19  ;;  %12809 = vmatmul.msk.f32.gmra.mxu3 %vm3837_vm2, %v19942_v61  ;;  %19944 = vst [vmem:[#allocation54_spill] sm:$0xff] %v17119_v63 }
 0x640   : > { %v6556_v39 = vpop.f32.mrf.mxu1 }
 0x642   : > { %v6777_v18 = vpop.f32.mrf.mxu2  ;;  %v7052_v15 = vpop.f32.mrf.mxu3 }
 0x643   : > { %12861 = vmatmul.msk.f32.gmra.mxu1 %vm3837_vm2, %v19943_v29  ;;  %v6865_v7 = vadd.f32 %v6777_v18, %v16795_v41  ;;  %v6281_v27 = vpop.f32.mrf.mxu0  ;;  %v19946_v41 = vld [vmem:[#allocation10_spill] sm:$0xff] }
 0x644   : > { %v6333_v26 = vadd.f32 %v6281_v27, %v16861_v48  ;;  %v19947_v48 = vld [vmem:[#allocation16_spill] sm:$0xff] }
 0x645   : > { %v17117_v17 = vadd.f32 %v7052_v15, %v6865_v7  ;;  %12828 = vmatmul.msk.f32.gmra.mxu0 %vm3837_vm2, %v17119_v63  ;;  %v17139_v63 = vld [vmem:[#allocation3 + $0x138] sm:$0xff] }
 0x646   : > { %v17123_v19 = vadd.f32 %v6556_v39, %v6333_v26  ;;  %v17137_v26 = vld [vmem:[#allocation3 + $0x82] sm:$0xff]  ;;  %19949 = vst [vmem:[#allocation45_spill] sm:$0xff] %v17139_v63 }
 0x647   : > { %12777 = vmatmul.msk.f32.gmra.mxu2 %vm3837_vm2, %v17121_v59  ;;  %12810 = vmatmul.msk.f32.gmra.mxu3 %vm3837_vm2, %v19946_v41  ;;  %19948 = vst [vmem:[#allocation52_spill] sm:$0xff] %v17137_v26 }
 0x648   : > { %v6559_v61 = vpop.f32.mrf.mxu1 }
 0x64a   : > { %v6780_v18 = vpop.f32.mrf.mxu2  ;;  %v7055_v7 = vpop.f32.mrf.mxu3 }
 0x64b   : > { %12862 = vmatmul.msk.f32.gmra.mxu1 %vm3837_vm2, %v19947_v48  ;;  %v6866_v29 = vadd.f32 %v6780_v18, %v16813_v53  ;;  %v6284_v15 = vpop.f32.mrf.mxu0  ;;  %v19950_v53 = vld [vmem:[#allocation17_spill] sm:$0xff] }
 0x64c   : > { %v6334_v39 = vadd.f32 %v6284_v15, %v16879_v47  ;;  %v19951_v47 = vld [vmem:[#allocation11_spill] sm:$0xff] }
 0x64d   : > { %v17135_v27 = vadd.f32 %v7055_v7, %v6866_v29  ;;  %12829 = vmatmul.msk.f32.gmra.mxu0 %vm3837_vm2, %v17137_v26  ;;  %v17157_v26 = vld [vmem:[#allocation3 + $0x140] sm:$0xff] }
 0x64e   : > { %v17141_v59 = vadd.f32 %v6559_v61, %v6334_v39  ;;  %v17155_v39 = vld [vmem:[#allocation3 + $0x92] sm:$0xff]  ;;  %19953 = vst [vmem:[#allocation50_spill] sm:$0xff] %v17157_v26 }
 0x64f   : > { %12778 = vmatmul.msk.f32.gmra.mxu2 %vm3837_vm2, %v17139_v63  ;;  %12811 = vmatmul.msk.f32.gmra.mxu3 %vm3837_vm2, %v19950_v53  ;;  %19952 = vst [vmem:[#allocation48_spill] sm:$0xff] %v17155_v39 }
 0x650   : > { %v6562_v41 = vpop.f32.mrf.mxu1 }
 0x652   : > { %v6783_v18 = vpop.f32.mrf.mxu2  ;;  %v7058_v29 = vpop.f32.mrf.mxu3 }
 0x653   : > { %12863 = vmatmul.msk.f32.gmra.mxu1 %vm3837_vm2, %v19951_v47  ;;  %v6867_v48 = vadd.f32 %v6783_v18, %v16831_v4  ;;  %v6287_v7 = vpop.f32.mrf.mxu0  ;;  %v19954_v4 = vld [vmem:[#allocation14_spill] sm:$0xff] }
 0x654   : > { %v6335_v61 = vadd.f32 %v6287_v7, %v16897_v5  ;;  %v19955_v5 = vld [vmem:[#allocation24_spill] sm:$0xff] }
 0x655   : > { %v17153_v15 = vadd.f32 %v7058_v29, %v6867_v48  ;;  %12830 = vmatmul.msk.f32.gmra.mxu0 %vm3837_vm2, %v17155_v39  ;;  %v17175_v39 = vld [vmem:[#allocation3 + $0x150] sm:$0xff] }
 0x656   : > { %v17159_v63 = vadd.f32 %v6562_v41, %v6335_v61  ;;  %v17173_v61 = vld [vmem:[#allocation3 + $0x9a] sm:$0xff]  ;;  %19957 = vst [vmem:[#allocation55_spill] sm:$0xff] %v17175_v39 }
 0x657   : > { %12779 = vmatmul.msk.f32.gmra.mxu2 %vm3837_vm2, %v17157_v26  ;;  %12812 = vmatmul.msk.f32.gmra.mxu3 %vm3837_vm2, %v19954_v4  ;;  %19956 = vst [vmem:[#allocation53_spill] sm:$0xff] %v17173_v61 }
 0x658   : > { %v6565_v53 = vpop.f32.mrf.mxu1 }
 0x65a   : > { %v6786_v18 = vpop.f32.mrf.mxu2  ;;  %v7061_v48 = vpop.f32.mrf.mxu3 }
 0x65b   : > { %12864 = vmatmul.msk.f32.gmra.mxu1 %vm3837_vm2, %v19955_v5  ;;  %v6868_v47 = vadd.f32 %v6786_v18, %v16849_v21  ;;  %v6290_v29 = vpop.f32.mrf.mxu0  ;;  %v19958_v21 = vld [vmem:[#allocation21_spill] sm:$0xff] }
 0x65c   : > { %v6336_v41 = vadd.f32 %v6290_v29, %v16915_v31  ;;  %v19959_v31 = vld [vmem:[#allocation22_spill] sm:$0xff] }
 0x65d   : > { %v17171_v7 = vadd.f32 %v7061_v48, %v6868_v47  ;;  %12831 = vmatmul.msk.f32.gmra.mxu0 %vm3837_vm2, %v17173_v61  ;;  %v17193_v61 = vld [vmem:[#allocation3 + $0x158] sm:$0xff] }
 0x65e   : > { %v17177_v26 = vadd.f32 %v6565_v53, %v6336_v41  ;;  %v17191_v41 = vld [vmem:[#allocation3 + $0xaa] sm:$0xff]  ;;  %19961 = vst [vmem:[#allocation60_spill] sm:$0xff] %v17193_v61 }
 0x65f   : > { %12780 = vmatmul.msk.f32.gmra.mxu2 %vm3837_vm2, %v17175_v39  ;;  %12813 = vmatmul.msk.f32.gmra.mxu3 %vm3837_vm2, %v19958_v21  ;;  %19960 = vst [vmem:[#allocation56_spill] sm:$0xff] %v17191_v41 }
 0x660   : > { %v6568_v4 = vpop.f32.mrf.mxu1 }
 0x662   : > { %v6789_v18 = vpop.f32.mrf.mxu2  ;;  %v7064_v47 = vpop.f32.mrf.mxu3 }
 0x663   : > { %12865 = vmatmul.msk.f32.gmra.mxu1 %vm3837_vm2, %v19959_v31  ;;  %v6869_v5 = vadd.f32 %v6789_v18, %v16867_v40  ;;  %v6293_v48 = vpop.f32.mrf.mxu0  ;;  %v19962_v40 = vld [vmem:[#allocation15_spill] sm:$0xff] }
 0x664   : > { %v6337_v53 = vadd.f32 %v6293_v48, %v16939_v3  ;;  %v19963_v3 = vld [vmem:[#allocation18_spill] sm:$0xff] }
 0x665   : > { %v17189_v29 = vadd.f32 %v7064_v47, %v6869_v5  ;;  %12832 = vmatmul.msk.f32.gmra.mxu0 %vm3837_vm2, %v17191_v41  ;;  %v17211_v41 = vld [vmem:[#allocation3 + $0x168] sm:$0xff] }
 0x666   : > { %v17195_v39 = vadd.f32 %v6568_v4, %v6337_v53  ;;  %v17209_v53 = vld [vmem:[#allocation3 + $0xb2] sm:$0xff]  ;;  %19964 = vst [vmem:[#allocation57_spill] sm:$0xff] %v17211_v41 }
 0x667   : > { %12781 = vmatmul.msk.f32.gmra.mxu2 %vm3837_vm2, %v17193_v61  ;;  %12814 = vmatmul.msk.f32.gmra.mxu3 %vm3837_vm2, %v19962_v40 }
 0x668   : > { %v6571_v21 = vpop.f32.mrf.mxu1 }
 0x66a   : > { %v6792_v18 = vpop.f32.mrf.mxu2  ;;  %v7067_v5 = vpop.f32.mrf.mxu3 }
 0x66b   : > { %12866 = vmatmul.msk.f32.gmra.mxu1 %vm3837_vm2, %v19963_v3  ;;  %v6870_v31 = vadd.f32 %v6792_v18, %v16885_v13  ;;  %v6296_v47 = vpop.f32.mrf.mxu0  ;;  %v19965_v13 = vld [vmem:[#allocation29_spill] sm:$0xff] }
 0x66c   : > { %v6338_v4 = vadd.f32 %v6296_v47, %v16960_v44  ;;  %v17227_v47 = vld [vmem:[#allocation3 + $0xc2] sm:$0xff] }
 0x66d   : > { %v17207_v48 = vadd.f32 %v7067_v5, %v6870_v31  ;;  %12833 = vmatmul.msk.f32.gmra.mxu0 %vm3837_vm2, %v17209_v53 }
 0x66e   : > { %v17213_v61 = vadd.f32 %v6571_v21, %v6338_v4  ;;  %v17229_v4 = vld [vmem:[#allocation3 + $0x170] sm:$0xff] }
 0x66f   : > { %12782 = vmatmul.msk.f32.gmra.mxu2 %vm3837_vm2, %v17211_v41  ;;  %12815 = vmatmul.msk.f32.gmra.mxu3 %vm3837_vm2, %v19965_v13  ;;  %19966 = vst [vmem:[#allocation58_spill] sm:$0xff] %v17229_v4 }
 0x670   : > { %v6574_v40 = vpop.f32.mrf.mxu1 }
 0x672   : > { %v6795_v18 = vpop.f32.mrf.mxu2  ;;  %v7070_v3 = vpop.f32.mrf.mxu3 }
 0x673   : > { %12867 = vmatmul.msk.f32.gmra.mxu1 %vm3837_vm2, %v16691_v49  ;;  %v6871_v44 = vadd.f32 %v6795_v18, %v16903_v45  ;;  %v6299_v31 = vpop.f32.mrf.mxu0  ;;  %v19967_v45 = vld [vmem:[#allocation26_spill] sm:$0xff] }
 0x674   : > { %v6339_v21 = vadd.f32 %v6299_v31, %v16977_v34  ;;  %v17245_v31 = vld [vmem:[#allocation3 + $0xca] sm:$0xff] }
 0x675   : > { %v17225_v5 = vadd.f32 %v7070_v3, %v6871_v44  ;;  %12834 = vmatmul.msk.f32.gmra.mxu0 %vm3837_vm2, %v17227_v47 }
 0x676   : > { %v17231_v41 = vadd.f32 %v6574_v40, %v6339_v21  ;;  %v17247_v21 = vld [vmem:[#allocation3 + $0x180] sm:$0xff] }
 0x677   : > { %12783 = vmatmul.msk.f32.gmra.mxu2 %vm3837_vm2, %v17229_v4  ;;  %12816 = vmatmul.msk.f32.gmra.mxu3 %vm3837_vm2, %v19967_v45  ;;  %19968 = vst [vmem:[#allocation63_spill] sm:$0xff] %v17247_v21 }
 0x678   : > { %v6577_v49 = vpop.f32.mrf.mxu1 }
 0x67a   : > { %v6798_v13 = vpop.f32.mrf.mxu2  ;;  %v7073_v18 = vpop.f32.mrf.mxu3 }
 0x67b   : > { %12868 = vmatmul.msk.f32.gmra.mxu1 %vm3837_vm2, %v16709_v62  ;;  %v6872_v34 = vadd.f32 %v6798_v13, %v16921_v42  ;;  %v6302_v44 = vpop.f32.mrf.mxu0  ;;  %v19969_v42 = vld [vmem:[#allocation27_spill] sm:$0xff] }
 0x67c   : > { %v6340_v40 = vadd.f32 %v6302_v44, %v16997_v28  ;;  %v17263_v44 = vld [vmem:[#allocation3 + $0xda] sm:$0xff] }
 0x67d   : > { %v17243_v3 = vadd.f32 %v7073_v18, %v6872_v34  ;;  %12835 = vmatmul.msk.f32.gmra.mxu0 %vm3837_vm2, %v17245_v31 }
 0x67e   : > { %v17249_v4 = vadd.f32 %v6577_v49, %v6340_v40  ;;  %v17265_v40 = vld [vmem:[#allocation3 + $0x188] sm:$0xff] }
 0x67f   : > { %12784 = vmatmul.msk.f32.gmra.mxu2 %vm3837_vm2, %v17247_v21  ;;  %12817 = vmatmul.msk.f32.gmra.mxu3 %vm3837_vm2, %v19969_v42  ;;  %19970 = vst [vmem:[#allocation59_spill] sm:$0xff] %v17265_v40 }
 0x680   : > { %v6580_v62 = vpop.f32.mrf.mxu1 }
 0x682   : > { %v6801_v45 = vpop.f32.mrf.mxu2  ;;  %v7076_v13 = vpop.f32.mrf.mxu3 }
 0x683   : > { %12869 = vmatmul.msk.f32.gmra.mxu1 %vm3837_vm2, %v16726_v2  ;;  %v6873_v28 = vadd.f32 %v6801_v45, %v16945_v24  ;;  %v6305_v34 = vpop.f32.mrf.mxu0  ;;  %v19971_v24 = vld [vmem:[#allocation20_spill] sm:$0xff] }
 0x684   : > { %v6341_v49 = vadd.f32 %v6305_v34, %v17015_v52  ;;  %v17281_v34 = vld [vmem:[#allocation3 + $0xe2] sm:$0xff] }
 0x685   : > { %v17261_v18 = vadd.f32 %v7076_v13, %v6873_v28  ;;  %12836 = vmatmul.msk.f32.gmra.mxu0 %vm3837_vm2, %v17263_v44 }
 0x686   : > { %v17267_v21 = vadd.f32 %v6580_v62, %v6341_v49  ;;  %v17283_v49 = vld [vmem:[#allocation3 + $0x198] sm:$0xff] }
 0x687   : > { %12785 = vmatmul.msk.f32.gmra.mxu2 %vm3837_vm2, %v17265_v40  ;;  %12818 = vmatmul.msk.f32.gmra.mxu3 %vm3837_vm2, %v19971_v24  ;;  %19972 = vst [vmem:[#allocation61_spill] sm:$0xff] %v17283_v49 }
 0x688   : > { %v6583_v2 = vpop.f32.mrf.mxu1 }
 0x68a   : > { %v6804_v42 = vpop.f32.mrf.mxu2  ;;  %v7079_v45 = vpop.f32.mrf.mxu3 }
 0x68b   : > { %12870 = vmatmul.msk.f32.gmra.mxu1 %vm3837_vm2, %v16743_v36  ;;  %v6874_v52 = vadd.f32 %v6804_v42, %v16966_v43  ;;  %v6308_v28 = vpop.f32.mrf.mxu0  ;;  %v6923_v36 = vld [vmem:[#allocation3 + $0x199] sm:$0xff] }
 0x68c   : > { %v6342_v62 = vadd.f32 %v6308_v28, %v17030_v46  ;;  %v17298_v28 = vld [vmem:[#allocation3 + $0xf2] sm:$0xff] }
 0x68d   : > { %v17279_v13 = vadd.f32 %v7079_v45, %v6874_v52  ;;  %12837 = vmatmul.msk.f32.gmra.mxu0 %vm3837_vm2, %v17281_v34 }
 0x68e   : > { %v17285_v40 = vadd.f32 %v6583_v2, %v6342_v62  ;;  %v17300_v62 = vld [vmem:[#allocation3 + $0x1a0] sm:$0xff] }
 0x68f   : > { %12786 = vmatmul.msk.f32.gmra.mxu2 %vm3837_vm2, %v17283_v49  ;;  %12819 = vmatmul.msk.f32.gmra.mxu3 %vm3837_vm2, %v6923_v36  ;;  %19973 = vst [vmem:[#allocation65_spill] sm:$0xff] %v17300_v62 }
 0x690   : > { %v7590_v43 = vpop.f32.mrf.mxu1 }
 0x692   : > { %v6807_v24 = vpop.f32.mrf.mxu2  ;;  %v7082_v42 = vpop.f32.mrf.mxu3 }
 0x693   : > { %12871 = vmatmul.msk.f32.gmra.mxu1 %vm3837_vm2, %v16758_v16  ;;  %v6875_v46 = vadd.f32 %v6807_v24, %v16983_v55  ;;  %v7315_v52 = vpop.f32.mrf.mxu0  ;;  %v6924_v16 = vld [vmem:[#allocation3 + $0x1a1] sm:$0xff] }
 0x694   : > { %v7411_v2 = vadd.f32 %v7315_v52, %v17045_v6  ;;  %v17315_v52 = vld [vmem:[#allocation3 + $0xfa] sm:$0xff] }
 0x695   : > { %v17296_v45 = vadd.f32 %v7082_v42, %v6875_v46  ;;  %12838 = vmatmul.msk.f32.gmra.mxu0 %vm3837_vm2, %v17298_v28 }
 0x696   : > { %v17302_v49 = vadd.f32 %v7590_v43, %v7411_v2  ;;  %v7718_v2 = vld [vmem:[#allocation3 + $0x34] sm:$0xff] }
 0x697   : > { %12787 = vmatmul.msk.f32.gmra.mxu2 %vm3837_vm2, %v17300_v62  ;;  %12820 = vmatmul.msk.f32.gmra.mxu3 %vm3837_vm2, %v6924_v16 }
 0x698   : > { %v7593_v55 = vpop.f32.mrf.mxu1 }
 0x69a   : > { %v6810_v36 = vpop.f32.mrf.mxu2  ;;  %v7085_v24 = vpop.f32.mrf.mxu3 }
 0x69b   : > { %12872 = vmatmul.msk.f32.gmra.mxu1 %vm3837_vm2, %v16773_v37  ;;  %v6876_v6 = vadd.f32 %v6810_v36, %v17003_v38  ;;  %v7318_v46 = vpop.f32.mrf.mxu0 }
 0x69c   : > { %v7412_v43 = vadd.f32 %v7318_v46, %v17063_v0  ;;  %v7719_v46 = vld [vmem:[#allocation3 + $0x3c] sm:$0xff] }
 0x69d   : > { %v17313_v42 = vadd.f32 %v7085_v24, %v6876_v6  ;;  %12839 = vmatmul.msk.f32.gmra.mxu0 %vm3837_vm2, %v17315_v52  ;;  %v17330_v24 = vld [vmem:[#allocation3 + $0x10a] sm:$0xff] }
 0x69e   : > { %v17317_v62 = vadd.f32 %v7593_v55, %v7412_v43 }
 0x69f   : > { %12888 = vmatmul.msk.f32.vlgmr.msrb.gmra.mxu2 %vm3837_vm2, %v7718_v2  ;;  %12921 = vmatmul.msk.f32.vlgmr.msrb.gmra.mxu3 %vm3837_vm2, %v16775_v56 }
 0x6a0   : > { %v7596_v16 = vpop.f32.mrf.mxu1 }
 0x6a2   : > { %v6813_v37 = vpop.f32.mrf.mxu2  ;;  %v7088_v0 = vpop.f32.mrf.mxu3 }
 0x6a3   : > { %12873 = vmatmul.msk.f32.gmra.mxu1 %vm3837_vm2, %v16791_v57  ;;  %v6877_v38 = vadd.f32 %v6813_v37, %v17019_v54  ;;  %v7321_v36 = vpop.f32.mrf.mxu0  ;;  %v19974_v57 = vld [vmem:[#allocation23_spill] sm:$0xff] }
 0x6a4   : > { %v7413_v55 = vadd.f32 %v7321_v36, %v17081_v30  ;;  %v17347_v36 = vld [vmem:[#allocation3 + $0x4c] sm:$0xff] }
 0x6a5   : > { %v17328_v6 = vadd.f32 %v7088_v0, %v6877_v38  ;;  %12840 = vmatmul.msk.f32.gmra.mxu0 %vm3837_vm2, %v17330_v24  ;;  %v17345_v0 = vld [vmem:[#allocation3 + $0x112] sm:$0xff] }
 0x6a6   : > { %v17332_v43 = vadd.f32 %v7596_v16, %v7413_v55 }
 0x6a7   : > { %12889 = vmatmul.msk.f32.gmra.mxu2 %vm3837_vm2, %v7719_v46  ;;  %12922 = vmatmul.msk.f32.gmra.mxu3 %vm3837_vm2, %v19974_v57 }
 0x6a8   : > { %v7599_v56 = vpop.f32.mrf.mxu1 }
 0x6aa   : > { %v6816_v54 = vpop.f32.mrf.mxu2  ;;  %v7091_v2 = vpop.f32.mrf.mxu3 }
 0x6ab   : > { %12874 = vmatmul.msk.f32.gmra.mxu1 %vm3837_vm2, %v16809_v25  ;;  %v6878_v30 = vadd.f32 %v6816_v54, %v17034_v22  ;;  %v7324_v37 = vpop.f32.mrf.mxu0  ;;  %v19975_v22 = vld [vmem:[#allocation34_spill] sm:$0xff] }
 0x6ac   : > { %v7414_v16 = vadd.f32 %v7324_v37, %v17099_v50  ;;  %v17365_v37 = vld [vmem:[#allocation3 + $0x54] sm:$0xff] }
 0x6ad   : > { %v17343_v38 = vadd.f32 %v7091_v2, %v6878_v30  ;;  %12841 = vmatmul.msk.f32.gmra.mxu0 %vm3837_vm2, %v17345_v0  ;;  %v17363_v2 = vld [vmem:[#allocation3 + $0x122] sm:$0xff]  ;;  %19976 = vst [vmem:[#allocation62_spill] sm:$0xff] %v17365_v37 }
 0x6ae   : > { %v17349_v55 = vadd.f32 %v7599_v56, %v7414_v16 }
 0x6af   : > { %12890 = vmatmul.msk.f32.gmra.mxu2 %vm3837_vm2, %v17347_v36  ;;  %12923 = vmatmul.msk.f32.gmra.mxu3 %vm3837_vm2, %v19975_v22 }
 0x6b0   : > { %v7602_v25 = vpop.f32.mrf.mxu1 }
 0x6b2   : > { %v6819_v46 = vpop.f32.mrf.mxu2  ;;  %v7094_v57 = vpop.f32.mrf.mxu3 }
 0x6b3   : > { %12875 = vmatmul.msk.f32.gmra.mxu1 %vm3837_vm2, %v16827_v11  ;;  %v6879_v50 = vadd.f32 %v6819_v46, %v17051_v35  ;;  %v7327_v54 = vpop.f32.mrf.mxu0  ;;  %v19977_v35 = vld [vmem:[#allocation31_spill] sm:$0xff] }
 0x6b4   : > { %v7415_v56 = vadd.f32 %v7327_v54, %v17117_v17  ;;  %v17381_v54 = vld [vmem:[#allocation3 + $0x12a] sm:$0xff] }
 0x6b5   : > { %v17361_v30 = vadd.f32 %v7094_v57, %v6879_v50  ;;  %12842 = vmatmul.msk.f32.gmra.mxu0 %vm3837_vm2, %v17363_v2  ;;  %19978 = vst [vmem:[#allocation66_spill] sm:$0xff] %v17381_v54 }
 0x6b6   : > { %v17367_v16 = vadd.f32 %v7602_v25, %v7415_v56  ;;  %v17383_v56 = vld [vmem:[#allocation3 + $0x64] sm:$0xff] }
 0x6b7   : > { %12891 = vmatmul.msk.f32.gmra.mxu2 %vm3837_vm2, %v17365_v37  ;;  %12924 = vmatmul.msk.f32.gmra.mxu3 %vm3837_vm2, %v19977_v35  ;;  %19979 = vst [vmem:[#allocation64_spill] sm:$0xff] %v17383_v56 }
 0x6b8   : > { %v7605_v11 = vpop.f32.mrf.mxu1 }
 0x6ba   : > { %v6822_v22 = vpop.f32.mrf.mxu2  ;;  %v7097_v46 = vpop.f32.mrf.mxu3 }
 0x6bb   : > { %12876 = vmatmul.msk.f32.gmra.mxu1 %vm3837_vm2, %v16845_v9  ;;  %v6880_v17 = vadd.f32 %v6822_v22, %v17069_v23  ;;  %v7330_v50 = vpop.f32.mrf.mxu0  ;;  %v19980_v23 = vld [vmem:[#allocation32_spill] sm:$0xff] }
 0x6bc   : > { %v7416_v25 = vadd.f32 %v7330_v50, %v17135_v27  ;;  %v19981_v27 = vld [vmem:[#allocation25_spill] sm:$0xff] }
 0x6bd   : > { %v17379_v57 = vadd.f32 %v7097_v46, %v6880_v17  ;;  %12843 = vmatmul.msk.f32.gmra.mxu0 %vm3837_vm2, %v17381_v54  ;;  %v17401_v54 = vld [vmem:[#allocation3 + $0x6c] sm:$0xff] }
 0x6be   : > { %v17385_v37 = vadd.f32 %v7605_v11, %v7416_v25  ;;  %v17399_v25 = vld [vmem:[#allocation3 + $0x13a] sm:$0xff]  ;;  %19982 = vst [vmem:[#allocation68_spill] sm:$0xff] %v17401_v54 }
 0x6bf   : > { %12892 = vmatmul.msk.f32.gmra.mxu2 %vm3837_vm2, %v17383_v56  ;;  %12925 = vmatmul.msk.f32.gmra.mxu3 %vm3837_vm2, %v19980_v23 }
 0x6c0   : > { %v7608_v9 = vpop.f32.mrf.mxu1 }
 0x6c2   : > { %v6825_v35 = vpop.f32.mrf.mxu2  ;;  %v7100_v17 = vpop.f32.mrf.mxu3 }
 0x6c3   : > { %12877 = vmatmul.msk.f32.gmra.mxu1 %vm3837_vm2, %v19981_v27  ;;  %v6881_v22 = vadd.f32 %v6825_v35, %v17087_v33  ;;  %v7333_v46 = vpop.f32.mrf.mxu0  ;;  %v19983_v33 = vld [vmem:[#allocation28_spill] sm:$0xff] }
 0x6c4   : > { %v7417_v11 = vadd.f32 %v7333_v46, %v17153_v15  ;;  %v17417_v46 = vld [vmem:[#allocation3 + $0x142] sm:$0xff] }
 0x6c5   : > { %v17397_v50 = vadd.f32 %v7100_v17, %v6881_v22  ;;  %12844 = vmatmul.msk.f32.gmra.mxu0 %vm3837_vm2, %v17399_v25 }
 0x6c6   : > { %v17403_v56 = vadd.f32 %v7608_v9, %v7417_v11  ;;  %v17419_v11 = vld [vmem:[#allocation3 + $0x7c] sm:$0xff] }
 0x6c7   : > { %12893 = vmatmul.msk.f32.gmra.mxu2 %vm3837_vm2, %v17401_v54  ;;  %12926 = vmatmul.msk.f32.gmra.mxu3 %vm3837_vm2, %v19983_v33  ;;  %19984 = vst [vmem:[#allocation67_spill] sm:$0xff] %v17419_v11 }
 0x6c8   : > { %v7611_v23 = vpop.f32.mrf.mxu1 }
 0x6ca   : > { %v6828_v35 = vpop.f32.mrf.mxu2  ;;  %v7103_v27 = vpop.f32.mrf.mxu3 }
 0x6cb   : > { %12878 = vmatmul.msk.f32.gmra.mxu1 %vm3837_vm2, %v16881_v14  ;;  %v6882_v15 = vadd.f32 %v6828_v35, %v17105_v10  ;;  %v7336_v22 = vpop.f32.mrf.mxu0  ;;  %v19985_v10 = vld [vmem:[#allocation39_spill] sm:$0xff] }
 0x6cc   : > { %v7418_v9 = vadd.f32 %v7336_v22, %v17171_v7  ;;  %v17435_v22 = vld [vmem:[#allocation3 + $0x152] sm:$0xff] }
 0x6cd   : > { %v17415_v17 = vadd.f32 %v7103_v27, %v6882_v15  ;;  %12845 = vmatmul.msk.f32.gmra.mxu0 %vm3837_vm2, %v17417_v46  ;;  %19986 = vst [vmem:[#allocation70_spill] sm:$0xff] %v17435_v22 }
 0x6ce   : > { %v17421_v54 = vadd.f32 %v7611_v23, %v7418_v9  ;;  %v17437_v9 = vld [vmem:[#allocation3 + $0x84] sm:$0xff] }
 0x6cf   : > { %12894 = vmatmul.msk.f32.gmra.mxu2 %vm3837_vm2, %v17419_v11  ;;  %12927 = vmatmul.msk.f32.gmra.mxu3 %vm3837_vm2, %v19985_v10  ;;  %19987 = vst [vmem:[#allocation69_spill] sm:$0xff] %v17437_v9 }
 0x6d0   : > { %v7614_v14 = vpop.f32.mrf.mxu1 }
 0x6d2   : > { %v6831_v33 = vpop.f32.mrf.mxu2  ;;  %v7106_v35 = vpop.f32.mrf.mxu3 }
 0x6d3   : > { %12879 = vmatmul.msk.f32.gmra.mxu1 %vm3837_vm2, %v16899_v12  ;;  %v6883_v7 = vadd.f32 %v6831_v33, %v17123_v19  ;;  %v7339_v15 = vpop.f32.mrf.mxu0  ;;  %v19988_v19 = vld [vmem:[#allocation36_spill] sm:$0xff] }
 0x6d4   : > { %v7419_v23 = vadd.f32 %v7339_v15, %v17189_v29  ;;  %v19989_v29 = vld [vmem:[#allocation37_spill] sm:$0xff] }
 0x6d5   : > { %v17433_v27 = vadd.f32 %v7106_v35, %v6883_v7  ;;  %12846 = vmatmul.msk.f32.gmra.mxu0 %vm3837_vm2, %v17435_v22  ;;  %v17455_v22 = vld [vmem:[#allocation3 + $0x94] sm:$0xff] }
 0x6d6   : > { %v17439_v11 = vadd.f32 %v7614_v14, %v7419_v23  ;;  %v17453_v23 = vld [vmem:[#allocation3 + $0x15a] sm:$0xff]  ;;  %19990 = vst [vmem:[#allocation12_spill] sm:$0xff] %v17455_v22 }
 0x6d7   : > { %12895 = vmatmul.msk.f32.gmra.mxu2 %vm3837_vm2, %v17437_v9  ;;  %12928 = vmatmul.msk.f32.gmra.mxu3 %vm3837_vm2, %v19988_v19 }
 0x6d8   : > { %v7617_v12 = vpop.f32.mrf.mxu1 }
 0x6da   : > { %v6834_v10 = vpop.f32.mrf.mxu2  ;;  %v7109_v7 = vpop.f32.mrf.mxu3 }
 0x6db   : > { %12880 = vmatmul.msk.f32.gmra.mxu1 %vm3837_vm2, %v19989_v29  ;;  %v6884_v33 = vadd.f32 %v6834_v10, %v17141_v59  ;;  %v7342_v35 = vpop.f32.mrf.mxu0  ;;  %v19991_v59 = vld [vmem:[#allocation30_spill] sm:$0xff] }
 0x6dc   : > { %v7420_v14 = vadd.f32 %v7342_v35, %v17207_v48  ;;  %v17471_v35 = vld [vmem:[#allocation3 + $0x16a] sm:$0xff] }
 0x6dd   : > { %v17451_v15 = vadd.f32 %v7109_v7, %v6884_v33  ;;  %12847 = vmatmul.msk.f32.gmra.mxu0 %vm3837_vm2, %v17453_v23 }
 0x6de   : > { %v17457_v9 = vadd.f32 %v7617_v12, %v7420_v14  ;;  %v17473_v14 = vld [vmem:[#allocation3 + $0x9c] sm:$0xff] }
 0x6df   : > { %12896 = vmatmul.msk.f32.gmra.mxu2 %vm3837_vm2, %v17455_v22  ;;  %12929 = vmatmul.msk.f32.gmra.mxu3 %vm3837_vm2, %v19991_v59  ;;  %19992 = vst [vmem:[#allocation9_spill] sm:$0xff] %v17473_v14 }
 0x6e0   : > { %v7620_v19 = vpop.f32.mrf.mxu1 }
 0x6e2   : > { %v6837_v10 = vpop.f32.mrf.mxu2  ;;  %v7112_v29 = vpop.f32.mrf.mxu3 }
 0x6e3   : > { %12881 = vmatmul.msk.f32.gmra.mxu1 %vm3837_vm2, %v16941_v32  ;;  %v6885_v48 = vadd.f32 %v6837_v10, %v17159_v63  ;;  %v7345_v33 = vpop.f32.mrf.mxu0 }
 0x6e4   : > { %v7421_v12 = vadd.f32 %v7345_v33, %v17225_v5  ;;  %v17491_v33 = vld [vmem:[#allocation3 + $0xac] sm:$0xff] }
 0x6e5   : > { %v17469_v7 = vadd.f32 %v7112_v29, %v6885_v48  ;;  %12848 = vmatmul.msk.f32.gmra.mxu0 %vm3837_vm2, %v17471_v35  ;;  %v17489_v29 = vld [vmem:[#allocation3 + $0x172] sm:$0xff]  ;;  %19994 = vst [vmem:[#allocation19_spill] sm:$0xff] %v17491_v33 }
 0x6e6   : > { %v17475_v22 = vadd.f32 %v7620_v19, %v7421_v12  ;;  %19993 = vst [vmem:[#allocation13_spill] sm:$0xff] %v17489_v29 }
 0x6e7   : > { %12897 = vmatmul.msk.f32.gmra.mxu2 %vm3837_vm2, %v17473_v14  ;;  %12930 = vmatmul.msk.f32.gmra.mxu3 %vm3837_vm2, %v16943_v8  ;;  %v13019_v8 = vld [vmem:[%s19439_s10 + $0x90] sm:$0xff] }
 0x6e8   : > { %v7623_v32 = vpop.f32.mrf.mxu1  ;;  %8964 = vmatpush.msra.mxu2 %v13019_v8 }
 0x6ea   : > { %v6840_v63 = vpop.f32.mrf.mxu2  ;;  %v7115_v59 = vpop.f32.mrf.mxu3 }
 0x6eb   : > { %12882 = vmatmul.msk.f32.gmra.mxu1 %vm3837_vm2, %v16962_v1  ;;  %v6886_v5 = vadd.f32 %v6840_v63, %v17177_v26  ;;  %v7348_v10 = vpop.f32.mrf.mxu0  ;;  %v13052_v1 = vld [vmem:[%s19439_s10 + $0x98] sm:$0xff] }
 0x6ec   : > { %v7422_v19 = vadd.f32 %v7348_v10, %v17243_v3  ;;  %9239 = vmatpush.msra.mxu3 %v13052_v1 }
 0x6ed   : > { %v17487_v48 = vadd.f32 %v7115_v59, %v6886_v5  ;;  %12849 = vmatmul.msk.f32.gmra.mxu0 %vm3837_vm2, %v17489_v29  ;;  %v17515_v29 = vld [vmem:[#allocation3 + $0xb4] sm:$0xff] }
 0x6ee   : > { %v17493_v12 = vadd.f32 %v7623_v32, %v7422_v19  ;;  %v19995_v32 = vld [vmem:[#allocation33_spill] sm:$0xff] }
 0x6ef   : > { %12898 = vmatmul.msk.f32.gmra.mxu2 %vm3837_vm2, %v17491_v33  ;;  %12931 = vmatmul.msk.f32.gmra.mxu3 %vm3837_vm2, %v16964_v20  ;;  %v17513_v33 = vld [vmem:[#allocation3 + $0x182] sm:$0xff]  ;;  %v13085_v20 = vld [vmem:[%s19439_s10 + $0xa0] sm:$0xff] }
 0x6f0   : > { %v7626_v26 = vpop.f32.mrf.mxu1  ;;  %9515 = vmatpush.msra.mxu0 %v13085_v20 }
 0x6f2   : > { %v6843_v3 = vpop.f32.mrf.mxu2  ;;  %v7118_v5 = vpop.f32.mrf.mxu3 }
 0x6f3   : > { %12883 = vmatmul.msk.f32.gmra.mxu1 %vm3837_vm2, %v19995_v32  ;;  %v6887_v63 = vadd.f32 %v6843_v3, %v17195_v39  ;;  %v7351_v59 = vpop.f32.mrf.mxu0 }
 0x6f4   : > { %v7423_v10 = vadd.f32 %v7351_v59, %v17261_v18  ;;  %v19996_v18 = vld [vmem:[#allocation44_spill] sm:$0xff]  ;;  %v17536_v59 = vld [vmem:[#allocation3 + $0xc4] sm:$0xff] }
 0x6f5   : > { %v17511_v19 = vadd.f32 %v7118_v5, %v6887_v63  ;;  %12850 = vmatmul.msk.f32.gmra.mxu0 %vm3837_vm2, %v17513_v33  ;;  %v17534_v5 = vld [vmem:[#allocation3 + $0x18a] sm:$0xff] }
 0x6f6   : > { %v17517_v14 = vadd.f32 %v7626_v26, %v7423_v10 }
 0x6f7   : > { %12899 = vmatmul.msk.f32.gmra.mxu2 %vm3837_vm2, %v17515_v29  ;;  %12932 = vmatmul.msk.f32.gmra.mxu3 %vm3837_vm2, %v19996_v18 }
 0x6f8   : > { %v7629_v39 = vpop.f32.mrf.mxu1 }
 0x6fa   : > { %v6846_v8 = vpop.f32.mrf.mxu2  ;;  %v7121_v26 = vpop.f32.mrf.mxu3 }
 0x6fb   : > { %12884 = vmatmul.msk.f32.gmra.mxu1 %vm3837_vm2, %v16999_v51  ;;  %v6888_v1 = vadd.f32 %v6846_v8, %v17213_v61  ;;  %v7354_v3 = vpop.f32.mrf.mxu0  ;;  %v7473_v61 = vld [vmem:[#allocation3 + $0x19b] sm:$0xff] }
 0x6fc   : > { %v7424_v32 = vadd.f32 %v7354_v3, %v17279_v13  ;;  %v17553_v3 = vld [vmem:[#allocation3 + $0xcc] sm:$0xff] }
 0x6fd   : > { %v17532_v63 = vadd.f32 %v7121_v26, %v6888_v1  ;;  %12851 = vmatmul.msk.f32.gmra.mxu0 %vm3837_vm2, %v17534_v5  ;;  %v17551_v26 = vld [vmem:[#allocation3 + $0x19a] sm:$0xff]  ;;  %19998 = vst [vmem:[#allocation16_spill] sm:$0xff] %v17553_v3 }
 0x6fe   : > { %v17538_v10 = vadd.f32 %v7629_v39, %v7424_v32  ;;  %19997 = vst [vmem:[#allocation10_spill] sm:$0xff] %v17551_v26 }
 0x6ff   : > { %12900 = vmatmul.msk.f32.gmra.mxu2 %vm3837_vm2, %v17536_v59  ;;  %12933 = vmatmul.msk.f32.gmra.mxu3 %vm3837_vm2, %v17001_v60  ;;  %v13118_v60 = vld [vmem:[%s19439_s10 + $0xa8] sm:$0xff] }
 0x700   : > { %v7632_v51 = vpop.f32.mrf.mxu1  ;;  %9790 = vmatpush.msra.mxu1 %v13118_v60 }
 0x702   : > { %v6849_v13 = vpop.f32.mrf.mxu2  ;;  %v7124_v18 = vpop.f32.mrf.mxu3 }
 0x703   : > { %12885 = vmatmul.msk.f32.gmra.mxu1 %vm3837_vm2, %v7473_v61  ;;  %v6889_v20 = vadd.f32 %v6849_v13, %v17231_v41  ;;  %v7357_v8 = vpop.f32.mrf.mxu0 }
 0x704   : > { %v7425_v39 = vadd.f32 %v7357_v8, %v17296_v45  ;;  %v7474_v45 = vld [vmem:[#allocation3 + $0x1a3] sm:$0xff] }
 0x705   : > { %v17549_v1 = vadd.f32 %v7124_v18, %v6889_v20  ;;  %12852 = vmatmul.msk.f32.gmra.mxu0 %vm3837_vm2, %v17551_v26 }
 0x706   : > { %v17555_v32 = vadd.f32 %v7632_v51, %v7425_v39  ;;  %v17571_v39 = vld [vmem:[#allocation3 + $0x1a2] sm:$0xff] }
 0x707   : > { %12901 = vmatmul.msk.f32.gmra.mxu2 %vm3837_vm2, %v17553_v3  ;;  %12934 = vmatmul.msk.f32.gmra.mxu3 %vm3837_vm2, %v17017_v58  ;;  %v17573_v3 = vld [vmem:[#allocation3 + $0xdc] sm:$0xff] }
 0x708   : > { %v7635_v41 = vpop.f32.mrf.mxu1  ;;  %19999 = vst [vmem:[#allocation17_spill] sm:$0xff] %v17573_v3 }
 0x70a   : > { %v6852_v61 = vpop.f32.mrf.mxu2  ;;  %v7127_v13 = vpop.f32.mrf.mxu3 }
 0x70b   : > { %12886 = vmatmul.msk.f32.gmra.mxu1 %vm3837_vm2, %v7474_v45  ;;  %v6890_v51 = vadd.f32 %v6852_v61, %v17249_v4  ;;  %v7360_v20 = vpop.f32.mrf.mxu0  ;;  %v20000_v4 = vld [vmem:[#allocation41_spill] sm:$0xff] }
 0x70c   : > { %v7426_v18 = vadd.f32 %v7360_v20, %v17313_v42  ;;  %v20001_v42 = vld [vmem:[#allocation42_spill] sm:$0xff] }
 0x70d   : > { %v17569_v8 = vadd.f32 %v7127_v13, %v6890_v51  ;;  %12853 = vmatmul.msk.f32.gmra.mxu0 %vm3837_vm2, %v17571_v39  ;;  %v8269_v20 = vld [vmem:[#allocation3 + $0x49] sm:$0xff] }
 0x70e   : > { %v17575_v26 = vadd.f32 %v7635_v41, %v7426_v18  ;;  %v17589_v18 = vld [vmem:[#allocation3 + $0xe4] sm:$0xff] }
 0x70f   : > { %12902 = vmatmul.msk.f32.gmra.mxu2 %vm3837_vm2, %v17573_v3  ;;  %12935 = vmatmul.msk.f32.gmra.mxu3 %vm3837_vm2, %v20000_v4  ;;  %20002 = vst [vmem:[#allocation11_spill] sm:$0xff] %v17589_v18 }
 0x710   : > { %v7638_v58 = vpop.f32.mrf.mxu1 }
 0x712   : > { %v6855_v60 = vpop.f32.mrf.mxu2  ;;  %v7130_v61 = vpop.f32.mrf.mxu3 }
 0x713   : > { %12987 = vmatmul.msk.f32.vlgmr.msrb.gmra.mxu1 %vm3837_vm2, %v20001_v42  ;;  %v6891_v45 = vadd.f32 %v6855_v60, %v17267_v21  ;;  %v7363_v51 = vpop.f32.mrf.mxu0  ;;  %v20003_v42 = vld [vmem:[#allocation35_spill] sm:$0xff]  ;;  %v20004_v60 = vld [vmem:[#allocation38_spill] sm:$0xff] }
 0x714   : > { %v7427_v41 = vadd.f32 %v7363_v51, %v17328_v6 }
 0x715   : > { %v17587_v13 = vadd.f32 %v7130_v61, %v6891_v45  ;;  %12954 = vmatmul.msk.f32.vlgmr.msrb.gmra.mxu0 %vm3837_vm2, %v8269_v20  ;;  %v17604_v20 = vld [vmem:[#allocation3 + $0xf4] sm:$0xff] }
 0x716   : > { %v17591_v3 = vadd.f32 %v7638_v58, %v7427_v41  ;;  %v8270_v41 = vld [vmem:[#allocation3 + $0x51] sm:$0xff]  ;;  %20005 = vst [vmem:[#allocation14_spill] sm:$0xff] %v17604_v20 }
 0x717   : > { %12903 = vmatmul.msk.f32.gmra.mxu2 %vm3837_vm2, %v17589_v18  ;;  %12936 = vmatmul.msk.f32.gmra.mxu3 %vm3837_vm2, %v20003_v42 }
 0x718   : > { %v7641_v4 = vpop.f32.mrf.mxu1 }
 0x71a   : > { %v6858_v21 = vpop.f32.mrf.mxu2  ;;  %v7133_v45 = vpop.f32.mrf.mxu3 }
 0x71b   : > { %12988 = vmatmul.msk.f32.gmra.mxu1 %vm3837_vm2, %v20004_v60  ;;  %v6892_v6 = vadd.f32 %v6858_v21, %v17285_v40  ;;  %v7366_v61 = vpop.f32.mrf.mxu0  ;;  %v20006_v60 = vld [vmem:[#allocation49_spill] sm:$0xff]  ;;  %v20007_v21 = vld [vmem:[#allocation46_spill] sm:$0xff] }
 0x71c   : > { %v7428_v58 = vadd.f32 %v7366_v61, %v17343_v38 }
 0x71d   : > { %v17602_v51 = vadd.f32 %v7133_v45, %v6892_v6  ;;  %12955 = vmatmul.msk.f32.gmra.mxu0 %vm3837_vm2, %v8270_v41  ;;  %v17621_v41 = vld [vmem:[#allocation3 + $0xfc] sm:$0xff] }
 0x71e   : > { %v17606_v18 = vadd.f32 %v7641_v4, %v7428_v58  ;;  %v17619_v58 = vld [vmem:[#allocation3 + $0x61] sm:$0xff]  ;;  %20009 = vst [vmem:[#allocation21_spill] sm:$0xff] %v17621_v41 }
 0x71f   : > { %12904 = vmatmul.msk.f32.gmra.mxu2 %vm3837_vm2, %v17604_v20  ;;  %12937 = vmatmul.msk.f32.gmra.mxu3 %vm3837_vm2, %v20006_v60  ;;  %20008 = vst [vmem:[#allocation24_spill] sm:$0xff] %v17619_v58 }
 0x720   : > { %v7644_v42 = vpop.f32.mrf.mxu1 }
 0x722   : > { %v7865_v40 = vpop.f32.mrf.mxu2  ;;  %v8141_v6 = vpop.f32.mrf.mxu3 }
 0x723   : > { %12989 = vmatmul.msk.f32.gmra.mxu1 %vm3837_vm2, %v20007_v21  ;;  %v7961_v38 = vadd.f32 %v7865_v40, %v17302_v49  ;;  %v7369_v45 = vpop.f32.mrf.mxu0  ;;  %v20010_v49 = vld [vmem:[#allocation47_spill] sm:$0xff] }
 0x724   : > { %v7429_v4 = vadd.f32 %v7369_v45, %v17361_v30  ;;  %v20011_v30 = vld [vmem:[#allocation40_spill] sm:$0xff] }
 0x725   : > { %v17617_v61 = vadd.f32 %v8141_v6, %v7961_v38  ;;  %12956 = vmatmul.msk.f32.gmra.mxu0 %vm3837_vm2, %v17619_v58  ;;  %v17639_v58 = vld [vmem:[#allocation3 + $0x10c] sm:$0xff] }
 0x726   : > { %v17623_v20 = vadd.f32 %v7644_v42, %v7429_v4  ;;  %v17637_v4 = vld [vmem:[#allocation3 + $0x69] sm:$0xff]  ;;  %20013 = vst [vmem:[#allocation15_spill] sm:$0xff] %v17639_v58 }
 0x727   : > { %12905 = vmatmul.msk.f32.gmra.mxu2 %vm3837_vm2, %v17621_v41  ;;  %12938 = vmatmul.msk.f32.gmra.mxu3 %vm3837_vm2, %v20010_v49  ;;  %20012 = vst [vmem:[#allocation22_spill] sm:$0xff] %v17637_v4 }
 0x728   : > { %v7647_v60 = vpop.f32.mrf.mxu1 }
 0x72a   : > { %v7868_v40 = vpop.f32.mrf.mxu2  ;;  %v8144_v38 = vpop.f32.mrf.mxu3 }
 0x72b   : > { %12990 = vmatmul.msk.f32.gmra.mxu1 %vm3837_vm2, %v20011_v30  ;;  %v7962_v21 = vadd.f32 %v7868_v40, %v17317_v62  ;;  %v7372_v6 = vpop.f32.mrf.mxu0  ;;  %v20014_v62 = vld [vmem:[#allocation43_spill] sm:$0xff] }
 0x72c   : > { %v7430_v42 = vadd.f32 %v7372_v6, %v17379_v57  ;;  %v20015_v57 = vld [vmem:[#allocation54_spill] sm:$0xff] }
 0x72d   : > { %v17635_v45 = vadd.f32 %v8144_v38, %v7962_v21  ;;  %12957 = vmatmul.msk.f32.gmra.mxu0 %vm3837_vm2, %v17637_v4  ;;  %v17657_v4 = vld [vmem:[#allocation3 + $0x114] sm:$0xff] }
 0x72e   : > { %v17641_v41 = vadd.f32 %v7647_v60, %v7430_v42  ;;  %v17655_v42 = vld [vmem:[#allocation3 + $0x79] sm:$0xff]  ;;  %20017 = vst [vmem:[#allocation29_spill] sm:$0xff] %v17657_v4 }
 0x72f   : > { %12906 = vmatmul.msk.f32.gmra.mxu2 %vm3837_vm2, %v17639_v58  ;;  %12939 = vmatmul.msk.f32.gmra.mxu3 %vm3837_vm2, %v20014_v62  ;;  %20016 = vst [vmem:[#allocation18_spill] sm:$0xff] %v17655_v42 }
 0x730   : > { %v7650_v49 = vpop.f32.mrf.mxu1 }
 0x732   : > { %v7871_v40 = vpop.f32.mrf.mxu2  ;;  %v8147_v21 = vpop.f32.mrf.mxu3 }
 0x733   : > { %12991 = vmatmul.msk.f32.gmra.mxu1 %vm3837_vm2, %v20015_v57  ;;  %v7963_v30 = vadd.f32 %v7871_v40, %v17332_v43  ;;  %v7375_v38 = vpop.f32.mrf.mxu0  ;;  %v20018_v43 = vld [vmem:[#allocation51_spill] sm:$0xff] }
 0x734   : > { %v7431_v60 = vadd.f32 %v7375_v38, %v17397_v50  ;;  %v20019_v50 = vld [vmem:[#allocation52_spill] sm:$0xff] }
 0x735   : > { %v17653_v6 = vadd.f32 %v8147_v21, %v7963_v30  ;;  %12958 = vmatmul.msk.f32.gmra.mxu0 %vm3837_vm2, %v17655_v42  ;;  %v17675_v42 = vld [vmem:[#allocation3 + $0x124] sm:$0xff] }
 0x736   : > { %v17659_v58 = vadd.f32 %v7650_v49, %v7431_v60  ;;  %v17673_v60 = vld [vmem:[#allocation3 + $0x81] sm:$0xff]  ;;  %20021 = vst [vmem:[#allocation27_spill] sm:$0xff] %v17675_v42 }
 0x737   : > { %12907 = vmatmul.msk.f32.gmra.mxu2 %vm3837_vm2, %v17657_v4  ;;  %12940 = vmatmul.msk.f32.gmra.mxu3 %vm3837_vm2, %v20018_v43  ;;  %20020 = vst [vmem:[#allocation26_spill] sm:$0xff] %v17673_v60 }
 0x738   : > { %v7653_v62 = vpop.f32.mrf.mxu1 }
 0x73a   : > { %v7874_v40 = vpop.f32.mrf.mxu2  ;;  %v8150_v30 = vpop.f32.mrf.mxu3 }
 0x73b   : > { %12992 = vmatmul.msk.f32.gmra.mxu1 %vm3837_vm2, %v20019_v50  ;;  %v7964_v57 = vadd.f32 %v7874_v40, %v17349_v55  ;;  %v7378_v21 = vpop.f32.mrf.mxu0  ;;  %v20022_v55 = vld [vmem:[#allocation45_spill] sm:$0xff] }
 0x73c   : > { %v7432_v49 = vadd.f32 %v7378_v21, %v17415_v17  ;;  %v20023_v17 = vld [vmem:[#allocation48_spill] sm:$0xff] }
 0x73d   : > { %v17671_v38 = vadd.f32 %v8150_v30, %v7964_v57  ;;  %12959 = vmatmul.msk.f32.gmra.mxu0 %vm3837_vm2, %v17673_v60  ;;  %v17693_v60 = vld [vmem:[#allocation3 + $0x12c] sm:$0xff] }
 0x73e   : > { %v17677_v4 = vadd.f32 %v7653_v62, %v7432_v49  ;;  %v17691_v49 = vld [vmem:[#allocation3 + $0x91] sm:$0xff]  ;;  %20025 = vst [vmem:[#allocation23_spill] sm:$0xff] %v17693_v60 }
 0x73f   : > { %12908 = vmatmul.msk.f32.gmra.mxu2 %vm3837_vm2, %v17675_v42  ;;  %12941 = vmatmul.msk.f32.gmra.mxu3 %vm3837_vm2, %v20022_v55  ;;  %20024 = vst [vmem:[#allocation20_spill] sm:$0xff] %v17691_v49 }
 0x740   : > { %v7656_v43 = vpop.f32.mrf.mxu1 }
 0x742   : > { %v7877_v40 = vpop.f32.mrf.mxu2  ;;  %v8153_v57 = vpop.f32.mrf.mxu3 }
 0x743   : > { %12993 = vmatmul.msk.f32.gmra.mxu1 %vm3837_vm2, %v20023_v17  ;;  %v7965_v50 = vadd.f32 %v7877_v40, %v17367_v16  ;;  %v7381_v30 = vpop.f32.mrf.mxu0  ;;  %v20026_v16 = vld [vmem:[#allocation50_spill] sm:$0xff] }
 0x744   : > { %v7433_v62 = vadd.f32 %v7381_v30, %v17433_v27  ;;  %v20027_v27 = vld [vmem:[#allocation53_spill] sm:$0xff] }
 0x745   : > { %v17689_v21 = vadd.f32 %v8153_v57, %v7965_v50  ;;  %12960 = vmatmul.msk.f32.gmra.mxu0 %vm3837_vm2, %v17691_v49  ;;  %v17711_v49 = vld [vmem:[#allocation3 + $0x13c] sm:$0xff] }
 0x746   : > { %v17695_v42 = vadd.f32 %v7656_v43, %v7433_v62  ;;  %v17709_v62 = vld [vmem:[#allocation3 + $0x99] sm:$0xff]  ;;  %20029 = vst [vmem:[#allocation31_spill] sm:$0xff] %v17711_v49 }
 0x747   : > { %12909 = vmatmul.msk.f32.gmra.mxu2 %vm3837_vm2, %v17693_v60  ;;  %12942 = vmatmul.msk.f32.gmra.mxu3 %vm3837_vm2, %v20026_v16  ;;  %20028 = vst [vmem:[#allocation34_spill] sm:$0xff] %v17709_v62 }
 0x748   : > { %v7659_v55 = vpop.f32.mrf.mxu1 }
 0x74a   : > { %v7880_v40 = vpop.f32.mrf.mxu2  ;;  %v8156_v50 = vpop.f32.mrf.mxu3 }
 0x74b   : > { %12994 = vmatmul.msk.f32.gmra.mxu1 %vm3837_vm2, %v20027_v27  ;;  %v7966_v17 = vadd.f32 %v7880_v40, %v17385_v37  ;;  %v7384_v57 = vpop.f32.mrf.mxu0  ;;  %v20030_v37 = vld [vmem:[#allocation55_spill] sm:$0xff] }
 0x74c   : > { %v7434_v43 = vadd.f32 %v7384_v57, %v17451_v15  ;;  %v20031_v15 = vld [vmem:[#allocation56_spill] sm:$0xff] }
 0x74d   : > { %v17707_v30 = vadd.f32 %v8156_v50, %v7966_v17  ;;  %12961 = vmatmul.msk.f32.gmra.mxu0 %vm3837_vm2, %v17709_v62  ;;  %v17729_v62 = vld [vmem:[#allocation3 + $0x144] sm:$0xff] }
 0x74e   : > { %v17713_v60 = vadd.f32 %v7659_v55, %v7434_v43  ;;  %v17727_v43 = vld [vmem:[#allocation3 + $0xa9] sm:$0xff]  ;;  %20032 = vst [vmem:[#allocation32_spill] sm:$0xff] %v17729_v62 }
 0x74f   : > { %12910 = vmatmul.msk.f32.gmra.mxu2 %vm3837_vm2, %v17711_v49  ;;  %12943 = vmatmul.msk.f32.gmra.mxu3 %vm3837_vm2, %v20030_v37 }
 0x750   : > { %v7662_v16 = vpop.f32.mrf.mxu1 }
 0x752   : > { %v7883_v40 = vpop.f32.mrf.mxu2  ;;  %v8159_v17 = vpop.f32.mrf.mxu3 }
 0x753   : > { %12995 = vmatmul.msk.f32.gmra.mxu1 %vm3837_vm2, %v20031_v15  ;;  %v7967_v27 = vadd.f32 %v7883_v40, %v17403_v56  ;;  %v7387_v50 = vpop.f32.mrf.mxu0  ;;  %v20033_v56 = vld [vmem:[#allocation60_spill] sm:$0xff] }
 0x754   : > { %v7435_v55 = vadd.f32 %v7387_v50, %v17469_v7  ;;  %v17745_v50 = vld [vmem:[#allocation3 + $0xb1] sm:$0xff] }
 0x755   : > { %v17725_v57 = vadd.f32 %v8159_v17, %v7967_v27  ;;  %12962 = vmatmul.msk.f32.gmra.mxu0 %vm3837_vm2, %v17727_v43 }
 0x756   : > { %v17731_v49 = vadd.f32 %v7662_v16, %v7435_v55  ;;  %v17747_v55 = vld [vmem:[#allocation3 + $0x154] sm:$0xff] }
 0x757   : > { %12911 = vmatmul.msk.f32.gmra.mxu2 %vm3837_vm2, %v17729_v62  ;;  %12944 = vmatmul.msk.f32.gmra.mxu3 %vm3837_vm2, %v20033_v56  ;;  %20034 = vst [vmem:[#allocation25_spill] sm:$0xff] %v17747_v55 }
 0x758   : > { %v7665_v37 = vpop.f32.mrf.mxu1 }
 0x75a   : > { %v7886_v40 = vpop.f32.mrf.mxu2  ;;  %v8162_v15 = vpop.f32.mrf.mxu3 }
 0x75b   : > { %12996 = vmatmul.msk.f32.gmra.mxu1 %vm3837_vm2, %v17209_v53  ;;  %v7968_v7 = vadd.f32 %v7886_v40, %v17421_v54  ;;  %v7390_v27 = vpop.f32.mrf.mxu0  ;;  %v20035_v54 = vld [vmem:[#allocation57_spill] sm:$0xff] }
 0x75c   : > { %v7436_v16 = vadd.f32 %v7390_v27, %v17487_v48  ;;  %v17763_v27 = vld [vmem:[#allocation3 + $0xc1] sm:$0xff] }
 0x75d   : > { %v17743_v17 = vadd.f32 %v8162_v15, %v7968_v7  ;;  %12963 = vmatmul.msk.f32.gmra.mxu0 %vm3837_vm2, %v17745_v50 }
 0x75e   : > { %v17749_v62 = vadd.f32 %v7665_v37, %v7436_v16  ;;  %v17765_v16 = vld [vmem:[#allocation3 + $0x15c] sm:$0xff] }
 0x75f   : > { %12912 = vmatmul.msk.f32.gmra.mxu2 %vm3837_vm2, %v17747_v55  ;;  %12945 = vmatmul.msk.f32.gmra.mxu3 %vm3837_vm2, %v20035_v54  ;;  %20036 = vst [vmem:[#allocation28_spill] sm:$0xff] %v17765_v16 }
 0x760   : > { %v7668_v53 = vpop.f32.mrf.mxu1 }
 0x762   : > { %v7889_v56 = vpop.f32.mrf.mxu2  ;;  %v8165_v40 = vpop.f32.mrf.mxu3 }
 0x763   : > { %12997 = vmatmul.msk.f32.gmra.mxu1 %vm3837_vm2, %v17227_v47  ;;  %v7969_v48 = vadd.f32 %v7889_v56, %v17439_v11  ;;  %v7393_v7 = vpop.f32.mrf.mxu0  ;;  %v20037_v11 = vld [vmem:[#allocation58_spill] sm:$0xff] }
 0x764   : > { %v7437_v37 = vadd.f32 %v7393_v7, %v17511_v19  ;;  %v17781_v7 = vld [vmem:[#allocation3 + $0xc9] sm:$0xff] }
 0x765   : > { %v17761_v15 = vadd.f32 %v8165_v40, %v7969_v48  ;;  %12964 = vmatmul.msk.f32.gmra.mxu0 %vm3837_vm2, %v17763_v27 }
 0x766   : > { %v17767_v55 = vadd.f32 %v7668_v53, %v7437_v37  ;;  %v17783_v37 = vld [vmem:[#allocation3 + $0x16c] sm:$0xff] }
 0x767   : > { %12913 = vmatmul.msk.f32.gmra.mxu2 %vm3837_vm2, %v17765_v16  ;;  %12946 = vmatmul.msk.f32.gmra.mxu3 %vm3837_vm2, %v20037_v11  ;;  %20038 = vst [vmem:[#allocation39_spill] sm:$0xff] %v17783_v37 }
 0x768   : > { %v7671_v47 = vpop.f32.mrf.mxu1 }
 0x76a   : > { %v7892_v54 = vpop.f32.mrf.mxu2  ;;  %v8168_v56 = vpop.f32.mrf.mxu3 }
 0x76b   : > { %12998 = vmatmul.msk.f32.gmra.mxu1 %vm3837_vm2, %v17245_v31  ;;  %v7970_v19 = vadd.f32 %v7892_v54, %v17457_v9  ;;  %v7396_v48 = vpop.f32.mrf.mxu0  ;;  %v20039_v9 = vld [vmem:[#allocation63_spill] sm:$0xff] }
 0x76c   : > { %v7438_v53 = vadd.f32 %v7396_v48, %v17532_v63  ;;  %v17799_v48 = vld [vmem:[#allocation3 + $0xd9] sm:$0xff] }
 0x76d   : > { %v17779_v40 = vadd.f32 %v8168_v56, %v7970_v19  ;;  %12965 = vmatmul.msk.f32.gmra.mxu0 %vm3837_vm2, %v17781_v7 }
 0x76e   : > { %v17785_v16 = vadd.f32 %v7671_v47, %v7438_v53  ;;  %v17801_v53 = vld [vmem:[#allocation3 + $0x174] sm:$0xff] }
 0x76f   : > { %12914 = vmatmul.msk.f32.gmra.mxu2 %vm3837_vm2, %v17783_v37  ;;  %12947 = vmatmul.msk.f32.gmra.mxu3 %vm3837_vm2, %v20039_v9  ;;  %20040 = vst [vmem:[#allocation36_spill] sm:$0xff] %v17801_v53 }
 0x770   : > { %v7674_v31 = vpop.f32.mrf.mxu1 }
 0x772   : > { %v7895_v11 = vpop.f32.mrf.mxu2  ;;  %v8171_v54 = vpop.f32.mrf.mxu3 }
 0x773   : > { %12999 = vmatmul.msk.f32.gmra.mxu1 %vm3837_vm2, %v17263_v44  ;;  %v7971_v63 = vadd.f32 %v7895_v11, %v17475_v22  ;;  %v7399_v19 = vpop.f32.mrf.mxu0  ;;  %v20041_v22 = vld [vmem:[#allocation59_spill] sm:$0xff] }
 0x774   : > { %v7439_v47 = vadd.f32 %v7399_v19, %v17549_v1  ;;  %v17817_v19 = vld [vmem:[#allocation3 + $0xe1] sm:$0xff] }
 0x775   : > { %v17797_v56 = vadd.f32 %v8171_v54, %v7971_v63  ;;  %12966 = vmatmul.msk.f32.gmra.mxu0 %vm3837_vm2, %v17799_v48 }
 0x776   : > { %v17803_v37 = vadd.f32 %v7674_v31, %v7439_v47  ;;  %v17819_v47 = vld [vmem:[#allocation3 + $0x184] sm:$0xff] }
 0x777   : > { %12915 = vmatmul.msk.f32.gmra.mxu2 %vm3837_vm2, %v17801_v53  ;;  %12948 = vmatmul.msk.f32.gmra.mxu3 %vm3837_vm2, %v20041_v22  ;;  %20042 = vst [vmem:[#allocation37_spill] sm:$0xff] %v17819_v47 }
 0x778   : > { %v7677_v44 = vpop.f32.mrf.mxu1 }
 0x77a   : > { %v7898_v9 = vpop.f32.mrf.mxu2  ;;  %v8174_v11 = vpop.f32.mrf.mxu3 }
 0x77b   : > { %13000 = vmatmul.msk.f32.gmra.mxu1 %vm3837_vm2, %v17281_v34  ;;  %v7972_v1 = vadd.f32 %v7898_v9, %v17493_v12  ;;  %v7402_v63 = vpop.f32.mrf.mxu0  ;;  %v20043_v12 = vld [vmem:[#allocation61_spill] sm:$0xff] }
 0x77c   : > { %v7440_v31 = vadd.f32 %v7402_v63, %v17569_v8  ;;  %v17835_v63 = vld [vmem:[#allocation3 + $0xf1] sm:$0xff] }
 0x77d   : > { %v17815_v54 = vadd.f32 %v8174_v11, %v7972_v1  ;;  %12967 = vmatmul.msk.f32.gmra.mxu0 %vm3837_vm2, %v17817_v19  ;;  %20044 = vst [vmem:[#allocation30_spill] sm:$0xff] %v17835_v63 }
 0x77e   : > { %v17821_v53 = vadd.f32 %v7677_v44, %v7440_v31  ;;  %v17837_v31 = vld [vmem:[#allocation3 + $0x18c] sm:$0xff] }
 0x77f   : > { %12916 = vmatmul.msk.f32.gmra.mxu2 %vm3837_vm2, %v17819_v47  ;;  %12949 = vmatmul.msk.f32.gmra.mxu3 %vm3837_vm2, %v20043_v12  ;;  %20045 = vst [vmem:[#allocation33_spill] sm:$0xff] %v17837_v31 }
 0x780   : > { %v7680_v34 = vpop.f32.mrf.mxu1 }
 0x782   : > { %v7901_v22 = vpop.f32.mrf.mxu2  ;;  %v8177_v9 = vpop.f32.mrf.mxu3 }
 0x783   : > { %13001 = vmatmul.msk.f32.gmra.mxu1 %vm3837_vm2, %v17298_v28  ;;  %v7973_v8 = vadd.f32 %v7901_v22, %v17517_v14  ;;  %v7405_v1 = vpop.f32.mrf.mxu0  ;;  %v20046_v14 = vld [vmem:[#allocation65_spill] sm:$0xff] }
 0x784   : > { %v7441_v44 = vadd.f32 %v7405_v1, %v17587_v13  ;;  %v8024_v1 = vld [vmem:[#allocation3 + $0x1b0] sm:$0xff] }
 0x785   : > { %v17833_v11 = vadd.f32 %v8177_v9, %v7973_v8  ;;  %12968 = vmatmul.msk.f32.gmra.mxu0 %vm3837_vm2, %v17835_v63 }
 0x786   : > { %v17839_v47 = vadd.f32 %v7680_v34, %v7441_v44  ;;  %v17853_v44 = vld [vmem:[#allocation3 + $0xf9] sm:$0xff] }
 0x787   : > { %12917 = vmatmul.msk.f32.gmra.mxu2 %vm3837_vm2, %v17837_v31  ;;  %12950 = vmatmul.msk.f32.gmra.mxu3 %vm3837_vm2, %v20046_v14  ;;  %v17855_v31 = vld [vmem:[#allocation3 + $0x19c] sm:$0xff] }
 0x788   : > { %v7683_v28 = vpop.f32.mrf.mxu1  ;;  %20047 = vst [vmem:[#allocation44_spill] sm:$0xff] %v17855_v31 }
 0x78a   : > { %v7904_v12 = vpop.f32.mrf.mxu2  ;;  %v8180_v22 = vpop.f32.mrf.mxu3 }
 0x78b   : > { %13002 = vmatmul.msk.f32.gmra.mxu1 %vm3837_vm2, %v17315_v52  ;;  %v7974_v13 = vadd.f32 %v7904_v12, %v17538_v10  ;;  %v7408_v8 = vpop.f32.mrf.mxu0 }
 0x78c   : > { %v7442_v34 = vadd.f32 %v7408_v8, %v17602_v51  ;;  %v17870_v8 = vld [vmem:[#allocation3 + $0x109] sm:$0xff] }
 0x78d   : > { %v17851_v9 = vadd.f32 %v8180_v22, %v7974_v13  ;;  %12969 = vmatmul.msk.f32.gmra.mxu0 %vm3837_vm2, %v17853_v44  ;;  %v8025_v22 = vld [vmem:[#allocation3 + $0x1b8] sm:$0xff] }
 0x78e   : > { %v17857_v63 = vadd.f32 %v7683_v28, %v7442_v34  ;;  %v17872_v34 = vld [vmem:[#allocation3 + $0x1a4] sm:$0xff] }
 0x78f   : > { %12918 = vmatmul.msk.f32.gmra.mxu2 %vm3837_vm2, %v17855_v31  ;;  %12951 = vmatmul.msk.f32.gmra.mxu3 %vm3837_vm2, %v8024_v1 }
 0x790   : > { %v8691_v52 = vpop.f32.mrf.mxu1 }
 0x792   : > { %v7907_v10 = vpop.f32.mrf.mxu2  ;;  %v8183_v14 = vpop.f32.mrf.mxu3 }
 0x793   : > { %13003 = vmatmul.msk.f32.gmra.mxu1 %vm3837_vm2, %v17330_v24  ;;  %v7975_v51 = vadd.f32 %v7907_v10, %v17555_v32  ;;  %v8416_v12 = vpop.f32.mrf.mxu0 }
 0x794   : > { %v8512_v28 = vadd.f32 %v8416_v12, %v17617_v61  ;;  %v8819_v12 = vld [vmem:[#allocation3 + $0x4b] sm:$0xff] }
 0x795   : > { %v17868_v13 = vadd.f32 %v8183_v14, %v7975_v51  ;;  %12970 = vmatmul.msk.f32.gmra.mxu0 %vm3837_vm2, %v17870_v8  ;;  %v17887_v14 = vld [vmem:[#allocation3 + $0x111] sm:$0xff] }
 0x796   : > { %v17874_v31 = vadd.f32 %v8691_v52, %v8512_v28 }
 0x797   : > { %12919 = vmatmul.msk.f32.gmra.mxu2 %vm3837_vm2, %v17872_v34  ;;  %12952 = vmatmul.msk.f32.gmra.mxu3 %vm3837_vm2, %v8025_v22 }
 0x798   : > { %v8694_v24 = vpop.f32.mrf.mxu1 }
 0x79a   : > { %v7910_v32 = vpop.f32.mrf.mxu2  ;;  %v8186_v1 = vpop.f32.mrf.mxu3 }
 0x79b   : > { %13004 = vmatmul.msk.f32.gmra.mxu1 %vm3837_vm2, %v17345_v0  ;;  %v7976_v61 = vadd.f32 %v7910_v32, %v17575_v26  ;;  %v8419_v10 = vpop.f32.mrf.mxu0 }
 0x79c   : > { %v8513_v52 = vadd.f32 %v8419_v10, %v17635_v45  ;;  %v8820_v10 = vld [vmem:[#allocation3 + $0x53] sm:$0xff] }
 0x79d   : > { %v17885_v51 = vadd.f32 %v8186_v1, %v7976_v61  ;;  %12971 = vmatmul.msk.f32.gmra.mxu0 %vm3837_vm2, %v17887_v14  ;;  %v17902_v1 = vld [vmem:[#allocation3 + $0x121] sm:$0xff] }
 0x79e   : > { %v17889_v28 = vadd.f32 %v8694_v24, %v8513_v52 }
 0x79f   : > { %13020 = vmatmul.msk.f32.vlgmr.msra.gmra.mxu2 %vm3837_vm2, %v8819_v12  ;;  %13053 = vmatmul.msk.f32.vlgmr.msra.gmra.mxu3 %vm3837_vm2, %v17347_v36  ;;  %v20049_v12 = vld [vmem:[#allocation66_spill] sm:$0xff] }
 0x7a0   : > { %v8697_v22 = vpop.f32.mrf.mxu1 }
 0x7a2   : > { %v7913_v0 = vpop.f32.mrf.mxu2  ;;  %v8189_v45 = vpop.f32.mrf.mxu3 }
 0x7a3   : > { %13005 = vmatmul.msk.f32.gmra.mxu1 %vm3837_vm2, %v17363_v2  ;;  %v7977_v26 = vadd.f32 %v7913_v0, %v17591_v3  ;;  %v8422_v32 = vpop.f32.mrf.mxu0  ;;  %v20048_v2 = vld [vmem:[#allocation62_spill] sm:$0xff] }
 0x7a4   : > { %v8514_v24 = vadd.f32 %v8422_v32, %v17653_v6  ;;  %v17917_v32 = vld [vmem:[#allocation3 + $0x129] sm:$0xff] }
 0x7a5   : > { %v17900_v61 = vadd.f32 %v8189_v45, %v7977_v26  ;;  %12972 = vmatmul.msk.f32.gmra.mxu0 %vm3837_vm2, %v17902_v1 }
 0x7a6   : > { %v17904_v52 = vadd.f32 %v8697_v22, %v8514_v24  ;;  %v17919_v24 = vld [vmem:[#allocation3 + $0x63] sm:$0xff] }
 0x7a7   : > { %13021 = vmatmul.msk.f32.gmra.mxu2 %vm3837_vm2, %v8820_v10  ;;  %13054 = vmatmul.msk.f32.gmra.mxu3 %vm3837_vm2, %v20048_v2  ;;  %20050 = vst [vmem:[#allocation41_spill] sm:$0xff] %v17919_v24 }
 0x7a8   : > { %v8700_v36 = vpop.f32.mrf.mxu1 }
 0x7aa   : > { %v7916_v3 = vpop.f32.mrf.mxu2  ;;  %v8192_v0 = vpop.f32.mrf.mxu3 }
 0x7ab   : > { %13006 = vmatmul.msk.f32.gmra.mxu1 %vm3837_vm2, %v20049_v12  ;;  %v7978_v6 = vadd.f32 %v7916_v3, %v17606_v18  ;;  %v8425_v26 = vpop.f32.mrf.mxu0  ;;  %v20051_v18 = vld [vmem:[#allocation64_spill] sm:$0xff] }
 0x7ac   : > { %v8515_v22 = vadd.f32 %v8425_v26, %v17671_v38  ;;  %v17935_v26 = vld [vmem:[#allocation3 + $0x139] sm:$0xff] }
 0x7ad   : > { %v17915_v45 = vadd.f32 %v8192_v0, %v7978_v6  ;;  %12973 = vmatmul.msk.f32.gmra.mxu0 %vm3837_vm2, %v17917_v32 }
 0x7ae   : > { %v17921_v10 = vadd.f32 %v8700_v36, %v8515_v22  ;;  %v17937_v22 = vld [vmem:[#allocation3 + $0x6b] sm:$0xff] }
 0x7af   : > { %13022 = vmatmul.msk.f32.gmra.mxu2 %vm3837_vm2, %v17919_v24  ;;  %13055 = vmatmul.msk.f32.gmra.mxu3 %vm3837_vm2, %v20051_v18  ;;  %20052 = vst [vmem:[#allocation42_spill] sm:$0xff] %v17937_v22 }
 0x7b0   : > { %v8703_v2 = vpop.f32.mrf.mxu1 }
 0x7b2   : > { %v7919_v3 = vpop.f32.mrf.mxu2  ;;  %v8195_v12 = vpop.f32.mrf.mxu3 }
 0x7b3   : > { %13007 = vmatmul.msk.f32.gmra.mxu1 %vm3837_vm2, %v17399_v25  ;;  %v7979_v38 = vadd.f32 %v7919_v3, %v17623_v20  ;;  %v8428_v6 = vpop.f32.mrf.mxu0  ;;  %v20053_v20 = vld [vmem:[#allocation68_spill] sm:$0xff] }
 0x7b4   : > { %v8516_v36 = vadd.f32 %v8428_v6, %v17689_v21  ;;  %v17953_v6 = vld [vmem:[#allocation3 + $0x141] sm:$0xff] }
 0x7b5   : > { %v17933_v0 = vadd.f32 %v8195_v12, %v7979_v38  ;;  %12974 = vmatmul.msk.f32.gmra.mxu0 %vm3837_vm2, %v17935_v26  ;;  %20054 = vst [vmem:[#allocation35_spill] sm:$0xff] %v17953_v6 }
 0x7b6   : > { %v17939_v24 = vadd.f32 %v8703_v2, %v8516_v36  ;;  %v17955_v36 = vld [vmem:[#allocation3 + $0x7b] sm:$0xff] }
 0x7b7   : > { %13023 = vmatmul.msk.f32.gmra.mxu2 %vm3837_vm2, %v17937_v22  ;;  %13056 = vmatmul.msk.f32.gmra.mxu3 %vm3837_vm2, %v20053_v20  ;;  %20055 = vst [vmem:[#allocation38_spill] sm:$0xff] %v17955_v36 }
 0x7b8   : > { %v8706_v25 = vpop.f32.mrf.mxu1 }
 0x7ba   : > { %v7922_v18 = vpop.f32.mrf.mxu2  ;;  %v8198_v3 = vpop.f32.mrf.mxu3 }
 0x7bb   : > { %13008 = vmatmul.msk.f32.gmra.mxu1 %vm3837_vm2, %v17417_v46  ;;  %v7980_v21 = vadd.f32 %v7922_v18, %v17641_v41  ;;  %v8431_v38 = vpop.f32.mrf.mxu0  ;;  %v20056_v41 = vld [vmem:[#allocation67_spill] sm:$0xff] }
 0x7bc   : > { %v8517_v2 = vadd.f32 %v8431_v38, %v17707_v30  ;;  %v20057_v30 = vld [vmem:[#allocation70_spill] sm:$0xff] }
 0x7bd   : > { %v17951_v12 = vadd.f32 %v8198_v3, %v7980_v21  ;;  %12975 = vmatmul.msk.f32.gmra.mxu0 %vm3837_vm2, %v17953_v6  ;;  %v17973_v6 = vld [vmem:[#allocation3 + $0x83] sm:$0xff] }
 0x7be   : > { %v17957_v22 = vadd.f32 %v8706_v25, %v8517_v2  ;;  %v17971_v2 = vld [vmem:[#allocation3 + $0x151] sm:$0xff]  ;;  %20058 = vst [vmem:[#allocation49_spill] sm:$0xff] %v17973_v6 }
 0x7bf   : > { %13024 = vmatmul.msk.f32.gmra.mxu2 %vm3837_vm2, %v17955_v36  ;;  %13057 = vmatmul.msk.f32.gmra.mxu3 %vm3837_vm2, %v20056_v41 }
 0x7c0   : > { %v8709_v46 = vpop.f32.mrf.mxu1 }
 0x7c2   : > { %v7925_v20 = vpop.f32.mrf.mxu2  ;;  %v8201_v21 = vpop.f32.mrf.mxu3 }
 0x7c3   : > { %13009 = vmatmul.msk.f32.gmra.mxu1 %vm3837_vm2, %v20057_v30  ;;  %v7981_v18 = vadd.f32 %v7925_v20, %v17659_v58  ;;  %v8434_v3 = vpop.f32.mrf.mxu0  ;;  %v20059_v58 = vld [vmem:[#allocation69_spill] sm:$0xff] }
 0x7c4   : > { %v8518_v25 = vadd.f32 %v8434_v3, %v17725_v57  ;;  %v17989_v3 = vld [vmem:[#allocation3 + $0x159] sm:$0xff] }
 0x7c5   : > { %v17969_v38 = vadd.f32 %v8201_v21, %v7981_v18  ;;  %12976 = vmatmul.msk.f32.gmra.mxu0 %vm3837_vm2, %v17971_v2 }
 0x7c6   : > { %v17975_v36 = vadd.f32 %v8709_v46, %v8518_v25  ;;  %v17991_v25 = vld [vmem:[#allocation3 + $0x93] sm:$0xff] }
 0x7c7   : > { %13025 = vmatmul.msk.f32.gmra.mxu2 %vm3837_vm2, %v17973_v6  ;;  %13058 = vmatmul.msk.f32.gmra.mxu3 %vm3837_vm2, %v20059_v58  ;;  %20060 = vst [vmem:[#allocation46_spill] sm:$0xff] %v17991_v25 }
 0x7c8   : > { %v8712_v41 = vpop.f32.mrf.mxu1 }
 0x7ca   : > { %v7928_v20 = vpop.f32.mrf.mxu2  ;;  %v8204_v30 = vpop.f32.mrf.mxu3 }
 0x7cb   : > { %13010 = vmatmul.msk.f32.gmra.mxu1 %vm3837_vm2, %v17453_v23  ;;  %v7982_v57 = vadd.f32 %v7928_v20, %v17677_v4  ;;  %v8437_v18 = vpop.f32.mrf.mxu0  ;;  %v20061_v4 = vld [vmem:[#allocation12_spill] sm:$0xff] }
 0x7cc   : > { %v8519_v46 = vadd.f32 %v8437_v18, %v17743_v17  ;;  %v18007_v18 = vld [vmem:[#allocation3 + $0x169] sm:$0xff] }
 0x7cd   : > { %v17987_v21 = vadd.f32 %v8204_v30, %v7982_v57  ;;  %12977 = vmatmul.msk.f32.gmra.mxu0 %vm3837_vm2, %v17989_v3  ;;  %20062 = vst [vmem:[#allocation47_spill] sm:$0xff] %v18007_v18 }
 0x7ce   : > { %v17993_v6 = vadd.f32 %v8712_v41, %v8519_v46  ;;  %v18009_v46 = vld [vmem:[#allocation3 + $0x9b] sm:$0xff] }
 0x7cf   : > { %13026 = vmatmul.msk.f32.gmra.mxu2 %vm3837_vm2, %v17991_v25  ;;  %13059 = vmatmul.msk.f32.gmra.mxu3 %vm3837_vm2, %v20061_v4  ;;  %20063 = vst [vmem:[#allocation40_spill] sm:$0xff] %v18009_v46 }
 0x7d0   : > { %v8715_v23 = vpop.f32.mrf.mxu1 }
 0x7d2   : > { %v7931_v58 = vpop.f32.mrf.mxu2  ;;  %v8207_v20 = vpop.f32.mrf.mxu3 }
 0x7d3   : > { %13011 = vmatmul.msk.f32.gmra.mxu1 %vm3837_vm2, %v17471_v35  ;;  %v7983_v17 = vadd.f32 %v7931_v58, %v17695_v42  ;;  %v8440_v57 = vpop.f32.mrf.mxu0  ;;  %v20064_v42 = vld [vmem:[#allocation9_spill] sm:$0xff] }
 0x7d4   : > { %v8520_v41 = vadd.f32 %v8440_v57, %v17761_v15  ;;  %v20065_v15 = vld [vmem:[#allocation13_spill] sm:$0xff] }
 0x7d5   : > { %v18005_v30 = vadd.f32 %v8207_v20, %v7983_v17  ;;  %12978 = vmatmul.msk.f32.gmra.mxu0 %vm3837_vm2, %v18007_v18  ;;  %v18027_v18 = vld [vmem:[#allocation3 + $0xab] sm:$0xff] }
 0x7d6   : > { %v18011_v25 = vadd.f32 %v8715_v23, %v8520_v41  ;;  %v18025_v41 = vld [vmem:[#allocation3 + $0x171] sm:$0xff]  ;;  %20066 = vst [vmem:[#allocation43_spill] sm:$0xff] %v18027_v18 }
 0x7d7   : > { %13027 = vmatmul.msk.f32.gmra.mxu2 %vm3837_vm2, %v18009_v46  ;;  %13060 = vmatmul.msk.f32.gmra.mxu3 %vm3837_vm2, %v20064_v42 }
 0x7d8   : > { %v8718_v35 = vpop.f32.mrf.mxu1 }
 0x7da   : > { %v7934_v4 = vpop.f32.mrf.mxu2  ;;  %v8210_v17 = vpop.f32.mrf.mxu3 }
 0x7db   : > { %13012 = vmatmul.msk.f32.gmra.mxu1 %vm3837_vm2, %v20065_v15  ;;  %v7984_v58 = vadd.f32 %v7934_v4, %v17713_v60  ;;  %v8443_v20 = vpop.f32.mrf.mxu0  ;;  %v20067_v60 = vld [vmem:[#allocation19_spill] sm:$0xff] }
 0x7dc   : > { %v8521_v23 = vadd.f32 %v8443_v20, %v17779_v40  ;;  %v18043_v20 = vld [vmem:[#allocation3 + $0x181] sm:$0xff] }
 0x7dd   : > { %v18023_v57 = vadd.f32 %v8210_v17, %v7984_v58  ;;  %12979 = vmatmul.msk.f32.gmra.mxu0 %vm3837_vm2, %v18025_v41 }
 0x7de   : > { %v18029_v46 = vadd.f32 %v8718_v35, %v8521_v23  ;;  %v18045_v23 = vld [vmem:[#allocation3 + $0xb3] sm:$0xff] }
 0x7df   : > { %13028 = vmatmul.msk.f32.gmra.mxu2 %vm3837_vm2, %v18027_v18  ;;  %13061 = vmatmul.msk.f32.gmra.mxu3 %vm3837_vm2, %v20067_v60 }
 0x7e0   : > { %v8721_v42 = vpop.f32.mrf.mxu1 }
 0x7e2   : > { %v7937_v4 = vpop.f32.mrf.mxu2  ;;  %v8213_v15 = vpop.f32.mrf.mxu3 }
 0x7e3   : > { %13013 = vmatmul.msk.f32.gmra.mxu1 %vm3837_vm2, %v17513_v33  ;;  %v7985_v40 = vadd.f32 %v7937_v4, %v17731_v49  ;;  %v8446_v58 = vpop.f32.mrf.mxu0 }
 0x7e4   : > { %v8522_v35 = vadd.f32 %v8446_v58, %v17797_v56  ;;  %v18063_v58 = vld [vmem:[#allocation3 + $0xc3] sm:$0xff] }
 0x7e5   : > { %v18041_v17 = vadd.f32 %v8213_v15, %v7985_v40  ;;  %12980 = vmatmul.msk.f32.gmra.mxu0 %vm3837_vm2, %v18043_v20  ;;  %v18061_v15 = vld [vmem:[#allocation3 + $0x189] sm:$0xff]  ;;  %20068 = vst [vmem:[#allocation54_spill] sm:$0xff] %v18063_v58 }
 0x7e6   : > { %v18047_v18 = vadd.f32 %v8721_v42, %v8522_v35 }
 0x7e7   : > { %13029 = vmatmul.msk.f32.gmra.mxu2 %vm3837_vm2, %v18045_v23  ;;  %13062 = vmatmul.msk.f32.gmra.mxu3 %vm3837_vm2, %v17515_v29  ;;  %v13151_v29 = vld [vmem:[%s19439_s10 + $0xb0] sm:$0xff] }
 0x7e8   : > { %v8724_v33 = vpop.f32.mrf.mxu1  ;;  %10065 = vmatpush.msrb.mxu2 %v13151_v29 }
 0x7ea   : > { %v7940_v49 = vpop.f32.mrf.mxu2  ;;  %v8216_v60 = vpop.f32.mrf.mxu3 }
 0x7eb   : > { %13014 = vmatmul.msk.f32.gmra.mxu1 %vm3837_vm2, %v17534_v5  ;;  %v7986_v56 = vadd.f32 %v7940_v49, %v17749_v62  ;;  %v8449_v4 = vpop.f32.mrf.mxu0  ;;  %v13184_v62 = vld [vmem:[%s19439_s10 + $0xb8] sm:$0xff] }
 0x7ec   : > { %v8523_v42 = vadd.f32 %v8449_v4, %v17815_v54  ;;  %10340 = vmatpush.msrb.mxu3 %v13184_v62 }
 0x7ed   : > { %v18059_v40 = vadd.f32 %v8216_v60, %v7986_v56  ;;  %12981 = vmatmul.msk.f32.gmra.mxu0 %vm3837_vm2, %v18061_v15 }
 0x7ee   : > { %v18065_v35 = vadd.f32 %v8724_v33, %v8523_v42  ;;  %v20069_v33 = vld [vmem:[#allocation10_spill] sm:$0xff] }
 0x7ef   : > { %13030 = vmatmul.msk.f32.gmra.mxu2 %vm3837_vm2, %v18063_v58  ;;  %13063 = vmatmul.msk.f32.gmra.mxu3 %vm3837_vm2, %v17536_v59  ;;  %v18085_v58 = vld [vmem:[#allocation3 + $0x199] sm:$0xff]  ;;  %v18087_v59 = vld [vmem:[#allocation3 + $0xcb] sm:$0xff] }
 0x7f0   : > { %v8727_v5 = vpop.f32.mrf.mxu1  ;;  %20070 = vst [vmem:[#allocation51_spill] sm:$0xff] %v18085_v58 }
 0x7f1   : > { %20071 = vst [vmem:[#allocation52_spill] sm:$0xff] %v18087_v59 }
 0x7f2   : > { %v7943_v54 = vpop.f32.mrf.mxu2  ;;  %v8219_v56 = vpop.f32.mrf.mxu3 }
 0x7f3   : > { %13015 = vmatmul.msk.f32.gmra.mxu1 %vm3837_vm2, %v20069_v33  ;;  %v7987_v49 = vadd.f32 %v7943_v54, %v17767_v55  ;;  %v8452_v60 = vpop.f32.mrf.mxu0  ;;  %v13217_v55 = vld [vmem:[%s19439_s10 + $0xc0] sm:$0xff] }
 0x7f4   : > { %v8524_v4 = vadd.f32 %v8452_v60, %v17833_v11  ;;  %v20072_v11 = vld [vmem:[#allocation16_spill] sm:$0xff]  ;;  %10615 = vmatpush.msrb.mxu0 %v13217_v55  ;;  %v20075_v55 = vld [vmem:[#allocation17_spill] sm:$0xff] }
 0x7f5   : > { %v18083_v42 = vadd.f32 %v8219_v56, %v7987_v49  ;;  %12982 = vmatmul.msk.f32.gmra.mxu0 %vm3837_vm2, %v18085_v58 }
 0x7f6   : > { %v18089_v29 = vadd.f32 %v8727_v5, %v8524_v4  ;;  %v18106_v4 = vld [vmem:[#allocation3 + $0x1a1] sm:$0xff] }
 0x7f7   : > { %13031 = vmatmul.msk.f32.gmra.mxu2 %vm3837_vm2, %v18087_v59  ;;  %13064 = vmatmul.msk.f32.gmra.mxu3 %vm3837_vm2, %v20072_v11  ;;  %20073 = vst [vmem:[#allocation45_spill] sm:$0xff] %v18106_v4  ;;  %v18108_v59 = vld [vmem:[#allocation3 + $0xdb] sm:$0xff] }
 0x7f8   : > { %v8730_v62 = vpop.f32.mrf.mxu1  ;;  %20074 = vst [vmem:[#allocation48_spill] sm:$0xff] %v18108_v59 }
 0x7fa   : > { %v7946_v54 = vpop.f32.mrf.mxu2  ;;  %v8222_v33 = vpop.f32.mrf.mxu3 }
 0x7fb   : > { %13016 = vmatmul.msk.f32.gmra.mxu1 %vm3837_vm2, %v17571_v39  ;;  %v7988_v5 = vadd.f32 %v7946_v54, %v17785_v16  ;;  %v8455_v49 = vpop.f32.mrf.mxu0  ;;  %v8574_v16 = vld [vmem:[#allocation3 + $0x1b2] sm:$0xff] }
 0x7fc   : > { %v8525_v56 = vadd.f32 %v8455_v49, %v17851_v9 }
 0x7fd   : > { %v18104_v60 = vadd.f32 %v8222_v33, %v7988_v5  ;;  %12983 = vmatmul.msk.f32.gmra.mxu0 %vm3837_vm2, %v18106_v4 }
 0x7fe   : > { %v18110_v58 = vadd.f32 %v8730_v62, %v8525_v56  ;;  %v18120_v62 = vld [vmem:[#allocation3 + $0x1b1] sm:$0xff]  ;;  %v18125_v56 = vld [vmem:[#allocation3 + $0xe3] sm:$0xff] }
 0x7ff   : > { %13032 = vmatmul.msk.f32.gmra.mxu2 %vm3837_vm2, %v18108_v59  ;;  %13065 = vmatmul.msk.f32.gmra.mxu3 %vm3837_vm2, %v20075_v55  ;;  %20076 = vst [vmem:[#allocation50_spill] sm:$0xff] %v18120_v62  ;;  %v8575_v55 = vld [vmem:[#allocation3 + $0x1ba] sm:$0xff] }
 0x800   : > { %v8733_v39 = vpop.f32.mrf.mxu1  ;;  %20077 = vst [vmem:[#allocation53_spill] sm:$0xff] %v18125_v56 }
 0x802   : > { %v7949_v9 = vpop.f32.mrf.mxu2  ;;  %v8225_v54 = vpop.f32.mrf.mxu3 }
 0x803   : > { %13017 = vmatmul.msk.f32.gmra.mxu1 %vm3837_vm2, %v8574_v16  ;;  %v7989_v11 = vadd.f32 %v7949_v9, %v17803_v37  ;;  %v8458_v5 = vpop.f32.mrf.mxu0  ;;  %v11521_v37 = vld [vmem:[%s19441_s12 + $0x8] sm:$0xff]  ;;  %v20078_v9 = vld [vmem:[#allocation11_spill] sm:$0xff] }
 0x804   : > { %v8526_v33 = vadd.f32 %v8458_v5, %v17868_v13  ;;  %11636 = vmatpush.msrb.mxu1 %v11521_v37  ;;  %v18140_v5 = vld [vmem:[#allocation3 + $0x1b9] sm:$0xff] }
 0x805   : > { %v18123_v49 = vadd.f32 %v8225_v54, %v7989_v11  ;;  %12984 = vmatmul.msk.f32.gmra.mxu0 %vm3837_vm2, %v18120_v62  ;;  %20079 = vst [vmem:[#allocation55_spill] sm:$0xff] %v18140_v5  ;;  %v18145_v62 = vld [vmem:[#allocation3 + $0xf3] sm:$0xff] }
 0x806   : > { %v18127_v59 = vadd.f32 %v8733_v39, %v8526_v33  ;;  %20080 = vst [vmem:[#allocation56_spill] sm:$0xff] %v18145_v62 }
 0x807   : > { %13033 = vmatmul.msk.f32.gmra.mxu2 %vm3837_vm2, %v18125_v56  ;;  %13066 = vmatmul.msk.f32.gmra.mxu3 %vm3837_vm2, %v20078_v9  ;;  %v20082_v9 = vld [vmem:[#allocation24_spill] sm:$0xff] }
 0x808   : > { %v8736_v16 = vpop.f32.mrf.mxu1 }
 0x80a   : > { %v7952_v13 = vpop.f32.mrf.mxu2  ;;  %v8228_v11 = vpop.f32.mrf.mxu3 }
 0x80b   : > { %13018 = vmatmul.msk.f32.gmra.mxu1 %vm3837_vm2, %v8575_v55  ;;  %v7990_v39 = vadd.f32 %v7952_v13, %v17821_v53  ;;  %v8461_v54 = vpop.f32.mrf.mxu0  ;;  %v20081_v53 = vld [vmem:[#allocation14_spill] sm:$0xff] }
 0x80c   : > { %v8527_v33 = vadd.f32 %v8461_v54, %v17885_v51  ;;  %v9370_v54 = vld [vmem:[#allocation3 + $0x60] sm:$0xff] }
 0x80d   : > { %v18143_v56 = vadd.f32 %v8228_v11, %v7990_v39  ;;  %12985 = vmatmul.msk.f32.gmra.mxu0 %vm3837_vm2, %v18140_v5 }
 0x80e   : > { %v18147_v4 = vadd.f32 %v8736_v16, %v8527_v33  ;;  %v18161_v33 = vld [vmem:[#allocation3 + $0xfb] sm:$0xff] }
 0x80f   : > { %13034 = vmatmul.msk.f32.gmra.mxu2 %vm3837_vm2, %v18145_v62  ;;  %13067 = vmatmul.msk.f32.gmra.mxu3 %vm3837_vm2, %v20081_v53  ;;  %20083 = vst [vmem:[#allocation60_spill] sm:$0xff] %v18161_v33 }
 0x810   : > { %v8739_v37 = vpop.f32.mrf.mxu1 }
 0x812   : > { %v7955_v55 = vpop.f32.mrf.mxu2  ;;  %v8231_v13 = vpop.f32.mrf.mxu3 }
 0x813   : > { %13119 = vmatmul.msk.f32.vlgmr.msra.gmra.mxu1 %vm3837_vm2, %v20082_v9  ;;  %v7991_v51 = vadd.f32 %v7955_v55, %v17839_v47  ;;  %v8464_v39 = vpop.f32.mrf.mxu0  ;;  %v20084_v9 = vld [vmem:[#allocation21_spill] sm:$0xff]  ;;  %v20085_v55 = vld [vmem:[#allocation22_spill] sm:$0xff] }
 0x814   : > { %v8528_v16 = vadd.f32 %v8464_v39, %v17900_v61 }
 0x815   : > { %v18159_v11 = vadd.f32 %v8231_v13, %v7991_v51  ;;  %13086 = vmatmul.msk.f32.vlgmr.msra.gmra.mxu0 %vm3837_vm2, %v9370_v54  ;;  %v18176_v54 = vld [vmem:[#allocation3 + $0x10b] sm:$0xff] }
 0x816   : > { %v18163_v62 = vadd.f32 %v8739_v37, %v8528_v16  ;;  %v9371_v16 = vld [vmem:[#allocation3 + $0x68] sm:$0xff]  ;;  %20086 = vst [vmem:[#allocation57_spill] sm:$0xff] %v18176_v54 }
 0x817   : > { %13035 = vmatmul.msk.f32.gmra.mxu2 %vm3837_vm2, %v18161_v33  ;;  %13068 = vmatmul.msk.f32.gmra.mxu3 %vm3837_vm2, %v20084_v9 }
 0x818   : > { %v8742_v53 = vpop.f32.mrf.mxu1 }
 0x81a   : > { %v7958_v47 = vpop.f32.mrf.mxu2  ;;  %v8234_v51 = vpop.f32.mrf.mxu3 }
 0x81b   : > { %13120 = vmatmul.msk.f32.gmra.mxu1 %vm3837_vm2, %v20085_v55  ;;  %v7992_v61 = vadd.f32 %v7958_v47, %v17857_v63  ;;  %v8467_v13 = vpop.f32.mrf.mxu0  ;;  %v20087_v55 = vld [vmem:[#allocation15_spill] sm:$0xff]  ;;  %v20088_v47 = vld [vmem:[#allocation18_spill] sm:$0xff] }
 0x81c   : > { %v8529_v37 = vadd.f32 %v8467_v13, %v17915_v45 }
 0x81d   : > { %v18174_v39 = vadd.f32 %v8234_v51, %v7992_v61  ;;  %13087 = vmatmul.msk.f32.gmra.mxu0 %vm3837_vm2, %v9371_v16  ;;  %v18191_v16 = vld [vmem:[#allocation3 + $0x113] sm:$0xff] }
 0x81e   : > { %v18178_v33 = vadd.f32 %v8742_v53, %v8529_v37  ;;  %v9372_v37 = vld [vmem:[#allocation3 + $0x78] sm:$0xff]  ;;  %20089 = vst [vmem:[#allocation58_spill] sm:$0xff] %v18191_v16 }
 0x81f   : > { %13036 = vmatmul.msk.f32.gmra.mxu2 %vm3837_vm2, %v18176_v54  ;;  %13069 = vmatmul.msk.f32.gmra.mxu3 %vm3837_vm2, %v20087_v55 }
 0x820   : > { %v8745_v9 = vpop.f32.mrf.mxu1 }
 0x822   : > { %v8966_v63 = vpop.f32.mrf.mxu2  ;;  %v9241_v61 = vpop.f32.mrf.mxu3 }
 0x823   : > { %13121 = vmatmul.msk.f32.gmra.mxu1 %vm3837_vm2, %v20088_v47  ;;  %v9062_v45 = vadd.f32 %v8966_v63, %v17874_v31  ;;  %v8470_v51 = vpop.f32.mrf.mxu0  ;;  %v20090_v47 = vld [vmem:[#allocation29_spill] sm:$0xff]  ;;  %v20091_v63 = vld [vmem:[#allocation26_spill] sm:$0xff] }
 0x824   : > { %v8530_v53 = vadd.f32 %v8470_v51, %v17933_v0 }
 0x825   : > { %v18189_v13 = vadd.f32 %v9241_v61, %v9062_v45  ;;  %13088 = vmatmul.msk.f32.gmra.mxu0 %vm3837_vm2, %v9372_v37  ;;  %v18206_v37 = vld [vmem:[#allocation3 + $0x123] sm:$0xff] }
 0x826   : > { %v18193_v54 = vadd.f32 %v8745_v9, %v8530_v53  ;;  %v9373_v53 = vld [vmem:[#allocation3 + $0x80] sm:$0xff]  ;;  %20092 = vst [vmem:[#allocation63_spill] sm:$0xff] %v18206_v37 }
 0x827   : > { %13037 = vmatmul.msk.f32.gmra.mxu2 %vm3837_vm2, %v18191_v16  ;;  %13070 = vmatmul.msk.f32.gmra.mxu3 %vm3837_vm2, %v20090_v47 }
 0x828   : > { %v8748_v55 = vpop.f32.mrf.mxu1 }
 0x82a   : > { %v8969_v31 = vpop.f32.mrf.mxu2  ;;  %v9244_v45 = vpop.f32.mrf.mxu3 }
 0x82b   : > { %13122 = vmatmul.msk.f32.gmra.mxu1 %vm3837_vm2, %v20091_v63  ;;  %v9063_v0 = vadd.f32 %v8969_v31, %v17889_v28  ;;  %v8473_v61 = vpop.f32.mrf.mxu0  ;;  %v20093_v63 = vld [vmem:[#allocation27_spill] sm:$0xff]  ;;  %v20094_v31 = vld [vmem:[#allocation20_spill] sm:$0xff] }
 0x82c   : > { %v8531_v9 = vadd.f32 %v8473_v61, %v17951_v12 }
 0x82d   : > { %v18204_v51 = vadd.f32 %v9244_v45, %v9063_v0  ;;  %13089 = vmatmul.msk.f32.gmra.mxu0 %vm3837_vm2, %v9373_v53  ;;  %v8838_v53 = vld [vmem:[#allocation3 + $0x12b] sm:$0xff] }
 0x82e   : > { %v18208_v16 = vadd.f32 %v8748_v55, %v8531_v9  ;;  %v9374_v9 = vld [vmem:[#allocation3 + $0x90] sm:$0xff] }
 0x82f   : > { %13038 = vmatmul.msk.f32.gmra.mxu2 %vm3837_vm2, %v18206_v37  ;;  %13071 = vmatmul.msk.f32.gmra.mxu3 %vm3837_vm2, %v20093_v63  ;;  %v20095_v37 = vld [vmem:[#allocation23_spill] sm:$0xff] }
 0x830   : > { %v8751_v47 = vpop.f32.mrf.mxu1 }
 0x832   : > { %v8972_v28 = vpop.f32.mrf.mxu2  ;;  %v9247_v0 = vpop.f32.mrf.mxu3 }
 0x833   : > { %13123 = vmatmul.msk.f32.gmra.mxu1 %vm3837_vm2, %v20094_v31  ;;  %v9064_v12 = vadd.f32 %v8972_v28, %v17904_v52  ;;  %v8476_v45 = vpop.f32.mrf.mxu0  ;;  %v20096_v52 = vld [vmem:[#allocation34_spill] sm:$0xff] }
 0x834   : > { %v8532_v55 = vadd.f32 %v8476_v45, %v17969_v38  ;;  %v9375_v45 = vld [vmem:[#allocation3 + $0x98] sm:$0xff] }
 0x835   : > { %v18219_v61 = vadd.f32 %v9247_v0, %v9064_v12  ;;  %13090 = vmatmul.msk.f32.gmra.mxu0 %vm3837_vm2, %v9374_v9 }
 0x836   : > { %v18221_v5 = vadd.f32 %v8751_v47, %v8532_v55  ;;  %v8839_v55 = vld [vmem:[#allocation3 + $0x13b] sm:$0xff] }
 0x837   : > { %13039 = vmatmul.msk.f32.gmra.mxu2 %vm3837_vm2, %v8838_v53  ;;  %13072 = vmatmul.msk.f32.gmra.mxu3 %vm3837_vm2, %v20095_v37  ;;  %v20097_v53 = vld [vmem:[#allocation31_spill] sm:$0xff] }
 0x838   : > { %v8754_v63 = vpop.f32.mrf.mxu1 }
 0x83a   : > { %v8975_v31 = vpop.f32.mrf.mxu2  ;;  %v9250_v28 = vpop.f32.mrf.mxu3 }
 0x83b   : > { %13124 = vmatmul.msk.f32.gmra.mxu1 %vm3837_vm2, %v20096_v52  ;;  %v9065_v38 = vadd.f32 %v8975_v31, %v17921_v10  ;;  %v8479_v12 = vpop.f32.mrf.mxu0 }
 0x83c   : > { %v8533_v0 = vadd.f32 %v8479_v12, %v17987_v21  ;;  %v8840_v12 = vld [vmem:[#allocation3 + $0x143] sm:$0xff] }
 0x83d   : > { %v18231_v47 = vadd.f32 %v9250_v28, %v9065_v38  ;;  %13091 = vmatmul.msk.f32.gmra.mxu0 %vm3837_vm2, %v9375_v45  ;;  %v9376_v28 = vld [vmem:[#allocation3 + $0xa8] sm:$0xff] }
 0x83e   : > { %v18233_v9 = vadd.f32 %v8754_v63, %v8533_v0 }
 0x83f   : > { %13040 = vmatmul.msk.f32.gmra.mxu2 %vm3837_vm2, %v8839_v55  ;;  %13073 = vmatmul.msk.f32.gmra.mxu3 %vm3837_vm2, %v20097_v53  ;;  %v20098_v55 = vld [vmem:[#allocation32_spill] sm:$0xff] }
 0x840   : > { %v8757_v37 = vpop.f32.mrf.mxu1 }
 0x842   : > { %v8978_v52 = vpop.f32.mrf.mxu2  ;;  %v9253_v21 = vpop.f32.mrf.mxu3 }
 0x843   : > { %13125 = vmatmul.msk.f32.gmra.mxu1 %vm3837_vm2, %v17727_v43  ;;  %v9066_v10 = vadd.f32 %v8978_v52, %v17939_v24  ;;  %v8482_v31 = vpop.f32.mrf.mxu0 }
 0x844   : > { %v8534_v38 = vadd.f32 %v8482_v31, %v18005_v30 }
 0x845   : > { %v18243_v63 = vadd.f32 %v9253_v21, %v9066_v10  ;;  %13092 = vmatmul.msk.f32.gmra.mxu0 %vm3837_vm2, %v9376_v28  ;;  %v9377_v10 = vld [vmem:[#allocation3 + $0xb0] sm:$0xff]  ;;  %v20099_v28 = vld [vmem:[#allocation25_spill] sm:$0xff] }
 0x846   : > { %v18245_v0 = vadd.f32 %v8757_v37, %v8534_v38  ;;  %v8841_v21 = vld [vmem:[#allocation3 + $0x153] sm:$0xff] }
 0x847   : > { %13041 = vmatmul.msk.f32.gmra.mxu2 %vm3837_vm2, %v8840_v12  ;;  %13074 = vmatmul.msk.f32.gmra.mxu3 %vm3837_vm2, %v20098_v55 }
 0x848   : > { %v8760_v45 = vpop.f32.mrf.mxu1 }
 0x84a   : > { %v8981_v43 = vpop.f32.mrf.mxu2  ;;  %v9256_v30 = vpop.f32.mrf.mxu3 }
 0x84b   : > { %13126 = vmatmul.msk.f32.gmra.mxu1 %vm3837_vm2, %v17745_v50  ;;  %v9067_v24 = vadd.f32 %v8981_v43, %v17957_v22  ;;  %v8485_v53 = vpop.f32.mrf.mxu0  ;;  %v9378_v43 = vld [vmem:[#allocation3 + $0xc0] sm:$0xff] }
 0x84c   : > { %v8535_v52 = vadd.f32 %v8485_v53, %v18023_v57 }
 0x84d   : > { %v18255_v37 = vadd.f32 %v9256_v30, %v9067_v24  ;;  %13093 = vmatmul.msk.f32.gmra.mxu0 %vm3837_vm2, %v9377_v10  ;;  %v8842_v24 = vld [vmem:[#allocation3 + $0x15b] sm:$0xff] }
 0x84e   : > { %v18257_v31 = vadd.f32 %v8760_v45, %v8535_v52  ;;  %v20100_v52 = vld [vmem:[#allocation28_spill] sm:$0xff] }
 0x84f   : > { %13042 = vmatmul.msk.f32.gmra.mxu2 %vm3837_vm2, %v8841_v21  ;;  %13075 = vmatmul.msk.f32.gmra.mxu3 %vm3837_vm2, %v20099_v28  ;;  %v9379_v28 = vld [vmem:[#allocation3 + $0xc8] sm:$0xff] }
 0x850   : > { %v8763_v38 = vpop.f32.mrf.mxu1 }
 0x852   : > { %v8984_v50 = vpop.f32.mrf.mxu2  ;;  %v9259_v57 = vpop.f32.mrf.mxu3 }
 0x853   : > { %13127 = vmatmul.msk.f32.gmra.mxu1 %vm3837_vm2, %v17763_v27  ;;  %v9068_v22 = vadd.f32 %v8984_v50, %v17975_v36  ;;  %v8488_v12 = vpop.f32.mrf.mxu0  ;;  %v8843_v50 = vld [vmem:[#allocation3 + $0x16b] sm:$0xff] }
 0x854   : > { %v8536_v55 = vadd.f32 %v8488_v12, %v18041_v17  ;;  %v20101_v12 = vld [vmem:[#allocation39_spill] sm:$0xff] }
 0x855   : > { %v18267_v45 = vadd.f32 %v9259_v57, %v9068_v22  ;;  %13094 = vmatmul.msk.f32.gmra.mxu0 %vm3837_vm2, %v9378_v43 }
 0x856   : > { %v18269_v30 = vadd.f32 %v8763_v38, %v8536_v55 }
 0x857   : > { %13043 = vmatmul.msk.f32.gmra.mxu2 %vm3837_vm2, %v8842_v24  ;;  %13076 = vmatmul.msk.f32.gmra.mxu3 %vm3837_vm2, %v20100_v52  ;;  %v8844_v52 = vld [vmem:[#allocation3 + $0x173] sm:$0xff] }
 0x858   : > { %v8766_v53 = vpop.f32.mrf.mxu1 }
 0x85a   : > { %v8987_v27 = vpop.f32.mrf.mxu2  ;;  %v9262_v17 = vpop.f32.mrf.mxu3 }
 0x85b   : > { %13128 = vmatmul.msk.f32.gmra.mxu1 %vm3837_vm2, %v17781_v7  ;;  %v9069_v36 = vadd.f32 %v8987_v27, %v17993_v6  ;;  %v8491_v10 = vpop.f32.mrf.mxu0 }
 0x85c   : > { %v8537_v21 = vadd.f32 %v8491_v10, %v18059_v40 }
 0x85d   : > { %v18279_v38 = vadd.f32 %v9262_v17, %v9069_v36  ;;  %13095 = vmatmul.msk.f32.gmra.mxu0 %vm3837_vm2, %v9379_v28  ;;  %v20102_v17 = vld [vmem:[#allocation36_spill] sm:$0xff] }
 0x85e   : > { %v18281_v22 = vadd.f32 %v8766_v53, %v8537_v21  ;;  %v9380_v53 = vld [vmem:[#allocation3 + $0xd8] sm:$0xff] }
 0x85f   : > { %13044 = vmatmul.msk.f32.gmra.mxu2 %vm3837_vm2, %v8843_v50  ;;  %13077 = vmatmul.msk.f32.gmra.mxu3 %vm3837_vm2, %v20101_v12  ;;  %v9381_v50 = vld [vmem:[#allocation3 + $0xe0] sm:$0xff] }
 0x860   : > { %v8769_v57 = vpop.f32.mrf.mxu1 }
 0x862   : > { %v8990_v7 = vpop.f32.mrf.mxu2  ;;  %v9265_v40 = vpop.f32.mrf.mxu3 }
 0x863   : > { %13129 = vmatmul.msk.f32.gmra.mxu1 %vm3837_vm2, %v17799_v48  ;;  %v9070_v6 = vadd.f32 %v8990_v7, %v18011_v25  ;;  %v8494_v55 = vpop.f32.mrf.mxu0 }
 0x864   : > { %v8538_v43 = vadd.f32 %v8494_v55, %v18083_v42 }
 0x865   : > { %v18291_v24 = vadd.f32 %v9265_v40, %v9070_v6  ;;  %13096 = vmatmul.msk.f32.gmra.mxu0 %vm3837_vm2, %v9380_v53  ;;  %v20103_v6 = vld [vmem:[#allocation37_spill] sm:$0xff] }
 0x866   : > { %v18293_v27 = vadd.f32 %v8769_v57, %v8538_v43  ;;  %v8845_v57 = vld [vmem:[#allocation3 + $0x183] sm:$0xff] }
 0x867   : > { %13045 = vmatmul.msk.f32.gmra.mxu2 %vm3837_vm2, %v8844_v52  ;;  %13078 = vmatmul.msk.f32.gmra.mxu3 %vm3837_vm2, %v20102_v17  ;;  %v9382_v52 = vld [vmem:[#allocation3 + $0xf0] sm:$0xff] }
 0x868   : > { %v8772_v36 = vpop.f32.mrf.mxu1 }
 0x86a   : > { %v8993_v48 = vpop.f32.mrf.mxu2  ;;  %v9268_v42 = vpop.f32.mrf.mxu3 }
 0x86b   : > { %13130 = vmatmul.msk.f32.gmra.mxu1 %vm3837_vm2, %v17817_v19  ;;  %v9071_v25 = vadd.f32 %v8993_v48, %v18029_v46  ;;  %v8497_v10 = vpop.f32.mrf.mxu0  ;;  %v20104_v46 = vld [vmem:[#allocation30_spill] sm:$0xff] }
 0x86c   : > { %v8539_v21 = vadd.f32 %v8497_v10, %v18104_v60 }
 0x86d   : > { %v18303_v28 = vadd.f32 %v9268_v42, %v9071_v25  ;;  %13097 = vmatmul.msk.f32.gmra.mxu0 %vm3837_vm2, %v9381_v50  ;;  %v20105_v25 = vld [vmem:[#allocation33_spill] sm:$0xff] }
 0x86e   : > { %v18305_v12 = vadd.f32 %v8772_v36, %v8539_v21  ;;  %v8846_v36 = vld [vmem:[#allocation3 + $0x18b] sm:$0xff] }
 0x86f   : > { %13046 = vmatmul.msk.f32.gmra.mxu2 %vm3837_vm2, %v8845_v57  ;;  %13079 = vmatmul.msk.f32.gmra.mxu3 %vm3837_vm2, %v20103_v6  ;;  %v9383_v57 = vld [vmem:[#allocation3 + $0xf8] sm:$0xff] }
 0x870   : > { %v8775_v7 = vpop.f32.mrf.mxu1 }
 0x872   : > { %v8996_v19 = vpop.f32.mrf.mxu2  ;;  %v9271_v40 = vpop.f32.mrf.mxu3 }
 0x873   : > { %13131 = vmatmul.msk.f32.gmra.mxu1 %vm3837_vm2, %v20104_v46  ;;  %v9072_v60 = vadd.f32 %v8996_v19, %v18047_v18  ;;  %v8500_v55 = vpop.f32.mrf.mxu0  ;;  %v20106_v46 = vld [vmem:[#allocation44_spill] sm:$0xff] }
 0x874   : > { %v8540_v43 = vadd.f32 %v8500_v55, %v18123_v49 }
 0x875   : > { %v18315_v53 = vadd.f32 %v9271_v40, %v9072_v60  ;;  %13098 = vmatmul.msk.f32.gmra.mxu0 %vm3837_vm2, %v9382_v52  ;;  %v8848_v52 = vld [vmem:[#allocation3 + $0x1a3] sm:$0xff] }
 0x876   : > { %v18317_v17 = vadd.f32 %v8775_v7, %v8540_v43  ;;  %v8847_v7 = vld [vmem:[#allocation3 + $0x19b] sm:$0xff]  ;;  %v9384_v43 = vld [vmem:[#allocation3 + $0x108] sm:$0xff] }
 0x877   : > { %13047 = vmatmul.msk.f32.gmra.mxu2 %vm3837_vm2, %v8846_v36  ;;  %13080 = vmatmul.msk.f32.gmra.mxu3 %vm3837_vm2, %v20105_v25 }
 0x878   : > { %v8778_v48 = vpop.f32.mrf.mxu1 }
 0x87a   : > { %v8999_v42 = vpop.f32.mrf.mxu2  ;;  %v9274_v49 = vpop.f32.mrf.mxu3 }
 0x87b   : > { %13132 = vmatmul.msk.f32.gmra.mxu1 %vm3837_vm2, %v17853_v44  ;;  %v9073_v18 = vadd.f32 %v8999_v42, %v18065_v35  ;;  %v8503_v10 = vpop.f32.mrf.mxu0 }
 0x87c   : > { %v8541_v21 = vadd.f32 %v8503_v10, %v18143_v56 }
 0x87d   : > { %v18327_v50 = vadd.f32 %v9274_v49, %v9073_v18  ;;  %13099 = vmatmul.msk.f32.gmra.mxu0 %vm3837_vm2, %v9383_v57  ;;  %v8849_v18 = vld [vmem:[#allocation3 + $0x1b3] sm:$0xff] }
 0x87e   : > { %v18329_v6 = vadd.f32 %v8778_v48, %v8541_v21  ;;  %v9124_v21 = vld [vmem:[#allocation3 + $0x1b4] sm:$0xff] }
 0x87f   : > { %13048 = vmatmul.msk.f32.gmra.mxu2 %vm3837_vm2, %v8847_v7  ;;  %13081 = vmatmul.msk.f32.gmra.mxu3 %vm3837_vm2, %v20106_v46  ;;  %v9385_v57 = vld [vmem:[#allocation3 + $0x110] sm:$0xff]  ;;  %v8850_v46 = vld [vmem:[#allocation3 + $0x1bb] sm:$0xff] }
 0x880   : > { %v8781_v19 = vpop.f32.mrf.mxu1 }
 0x882   : > { %v9002_v44 = vpop.f32.mrf.mxu2  ;;  %v9277_v56 = vpop.f32.mrf.mxu3 }
 0x883   : > { %13133 = vmatmul.msk.f32.gmra.mxu1 %vm3837_vm2, %v17870_v8  ;;  %v9074_v35 = vadd.f32 %v9002_v44, %v18089_v29  ;;  %v8506_v60 = vpop.f32.mrf.mxu0  ;;  %v11520_v8 = vld [vmem:[%s19441_s12] sm:$0xff] }
 0x884   : > { %v8542_v40 = vadd.f32 %v8506_v60, %v18159_v11  ;;  %11637 = vmatpush.msrb.mxu1 %v11520_v8  ;;  %v9386_v60 = vld [vmem:[#allocation3 + $0x120] sm:$0xff] }
 0x885   : > { %v18339_v55 = vadd.f32 %v9277_v56, %v9074_v35  ;;  %13100 = vmatmul.msk.f32.gmra.mxu0 %vm3837_vm2, %v9384_v43  ;;  %v9125_v56 = vld [vmem:[#allocation3 + $0x1bc] sm:$0xff] }
 0x886   : > { %v18341_v36 = vadd.f32 %v8781_v19, %v8542_v40 }
 0x887   : > { %13049 = vmatmul.msk.f32.gmra.mxu2 %vm3837_vm2, %v8848_v52  ;;  %13082 = vmatmul.msk.f32.gmra.mxu3 %vm3837_vm2, %v17872_v34 }
 0x888   : > { %v8784_v48 = vpop.f32.mrf.mxu1 }
 0x88a   : > { %v9005_v29 = vpop.f32.mrf.mxu2  ;;  %v9280_v25 = vpop.f32.mrf.mxu3 }
 0x88b   : > { %13134 = vmatmul.msk.f32.gmra.mxu1 %vm3837_vm2, %v17887_v14  ;;  %v9075_v11 = vadd.f32 %v9005_v29, %v18110_v58  ;;  %v8509_v42 = vpop.f32.mrf.mxu0  ;;  %v9387_v29 = vld [vmem:[#allocation3 + $0x128] sm:$0xff] }
 0x88c   : > { %v8543_v49 = vadd.f32 %v8509_v42, %v18174_v39 }
 0x88d   : > { %v18354_v10 = vadd.f32 %v9280_v25, %v9075_v11  ;;  %13101 = vmatmul.msk.f32.gmra.mxu0 %vm3837_vm2, %v9385_v57  ;;  %v9920_v11 = vld [vmem:[#allocation3 + $0x62] sm:$0xff] }
 0x88e   : > { %v18356_v7 = vadd.f32 %v8784_v48, %v8543_v49 }
 0x88f   : > { %13050 = vmatmul.msk.f32.gmra.mxu2 %vm3837_vm2, %v8849_v18  ;;  %13083 = vmatmul.msk.f32.gmra.mxu3 %vm3837_vm2, %v9124_v21  ;;  %v20107_v18 = vld [vmem:[#allocation41_spill] sm:$0xff] }
 0x890   : > { %v9792_v34 = vpop.f32.mrf.mxu1 }
 0x892   : > { %v9008_v14 = vpop.f32.mrf.mxu2  ;;  %v9283_v39 = vpop.f32.mrf.mxu3 }
 0x893   : > { %13135 = vmatmul.msk.f32.gmra.mxu1 %vm3837_vm2, %v17902_v1  ;;  %v9076_v58 = vadd.f32 %v9008_v14, %v18127_v59  ;;  %v9517_v19 = vpop.f32.mrf.mxu0  ;;  %v9921_v14 = vld [vmem:[#allocation3 + $0x6a] sm:$0xff] }
 0x894   : > { %v9613_v44 = vadd.f32 %v9517_v19, %v18189_v13  ;;  %v20108_v19 = vld [vmem:[#allocation42_spill] sm:$0xff] }
 0x895   : > { %v18365_v35 = vadd.f32 %v9283_v39, %v9076_v58  ;;  %13102 = vmatmul.msk.f32.gmra.mxu0 %vm3837_vm2, %v9386_v60 }
 0x896   : > { %v18367_v40 = vadd.f32 %v9792_v34, %v9613_v44  ;;  %v9388_v34 = vld [vmem:[#allocation3 + $0x138] sm:$0xff] }
 0x897   : > { %13051 = vmatmul.msk.f32.gmra.mxu2 %vm3837_vm2, %v8850_v46  ;;  %13084 = vmatmul.msk.f32.gmra.mxu3 %vm3837_vm2, %v9125_v56 }
 0x898   : > { %v9795_v43 = vpop.f32.mrf.mxu1 }
 0x89a   : > { %v9011_v1 = vpop.f32.mrf.mxu2  ;;  %v9286_v13 = vpop.f32.mrf.mxu3 }
 0x89b   : > { %13136 = vmatmul.msk.f32.gmra.mxu1 %vm3837_vm2, %v17917_v32  ;;  %v9077_v59 = vadd.f32 %v9011_v1, %v18147_v4  ;;  %v9520_v52 = vpop.f32.mrf.mxu0  ;;  %v9922_v1 = vld [vmem:[#allocation3 + $0x7a] sm:$0xff] }
 0x89c   : > { %v9614_v8 = vadd.f32 %v9520_v52, %v18204_v51  ;;  %v20110_v52 = vld [vmem:[#allocation38_spill] sm:$0xff] }
 0x89d   : > { %v18376_v48 = vadd.f32 %v9286_v13, %v9077_v59  ;;  %13103 = vmatmul.msk.f32.gmra.mxu0 %vm3837_vm2, %v9387_v29 }
 0x89e   : > { %v18378_v25 = vadd.f32 %v9795_v43, %v9614_v8  ;;  %v9389_v43 = vld [vmem:[#allocation3 + $0x140] sm:$0xff] }
 0x89f   : > { %13152 = vmatmul.msk.f32.vlgmr.msrb.gmra.mxu2 %vm3837_vm2, %v9920_v11  ;;  %13185 = vmatmul.msk.f32.vlgmr.msrb.gmra.mxu3 %vm3837_vm2, %v20107_v18  ;;  %v9390_v18 = vld [vmem:[#allocation3 + $0x150] sm:$0xff] }
 0x8a0   : > { %v9798_v42 = vpop.f32.mrf.mxu1 }
 0x8a2   : > { %v9014_v32 = vpop.f32.mrf.mxu2  ;;  %v9289_v51 = vpop.f32.mrf.mxu3 }
 0x8a3   : > { %13137 = vmatmul.msk.f32.gmra.mxu1 %vm3837_vm2, %v17935_v26  ;;  %v9078_v4 = vadd.f32 %v9014_v32, %v18163_v62  ;;  %v9523_v49 = vpop.f32.mrf.mxu0  ;;  %v20109_v62 = vld [vmem:[#allocation35_spill] sm:$0xff]  ;;  %v9923_v32 = vld [vmem:[#allocation3 + $0x82] sm:$0xff] }
 0x8a4   : > { %v9615_v21 = vadd.f32 %v9523_v49, %v18219_v61  ;;  %v20111_v49 = vld [vmem:[#allocation49_spill] sm:$0xff] }
 0x8a5   : > { %v18388_v57 = vadd.f32 %v9289_v51, %v9078_v4  ;;  %13104 = vmatmul.msk.f32.gmra.mxu0 %vm3837_vm2, %v9388_v34 }
 0x8a6   : > { %v18390_v58 = vadd.f32 %v9798_v42, %v9615_v21 }
 0x8a7   : > { %13153 = vmatmul.msk.f32.gmra.mxu2 %vm3837_vm2, %v9921_v14  ;;  %13186 = vmatmul.msk.f32.gmra.mxu3 %vm3837_vm2, %v20108_v19  ;;  %v9924_v19 = vld [vmem:[#allocation3 + $0x92] sm:$0xff] }
 0x8a8   : > { %v9801_v39 = vpop.f32.mrf.mxu1 }
 0x8aa   : > { %v9017_v26 = vpop.f32.mrf.mxu2  ;;  %v9292_v46 = vpop.f32.mrf.mxu3 }
 0x8ab   : > { %13138 = vmatmul.msk.f32.gmra.mxu1 %vm3837_vm2, %v20109_v62  ;;  %v9079_v61 = vadd.f32 %v9017_v26, %v18178_v33  ;;  %v9526_v44 = vpop.f32.mrf.mxu0 }
 0x8ac   : > { %v9616_v56 = vadd.f32 %v9526_v44, %v18231_v47 }
 0x8ad   : > { %v18400_v60 = vadd.f32 %v9292_v46, %v9079_v61  ;;  %13105 = vmatmul.msk.f32.gmra.mxu0 %vm3837_vm2, %v9389_v43  ;;  %v20112_v61 = vld [vmem:[#allocation46_spill] sm:$0xff] }
 0x8ae   : > { %v18402_v59 = vadd.f32 %v9801_v39, %v9616_v56  ;;  %v9391_v39 = vld [vmem:[#allocation3 + $0x158] sm:$0xff] }
 0x8af   : > { %13154 = vmatmul.msk.f32.gmra.mxu2 %vm3837_vm2, %v9922_v1  ;;  %13187 = vmatmul.msk.f32.gmra.mxu3 %vm3837_vm2, %v20110_v52  ;;  %v9392_v1 = vld [vmem:[#allocation3 + $0x168] sm:$0xff] }
 0x8b0   : > { %v9804_v13 = vpop.f32.mrf.mxu1 }
 0x8b2   : > { %v9020_v8 = vpop.f32.mrf.mxu2  ;;  %v9295_v47 = vpop.f32.mrf.mxu3 }
 0x8b3   : > { %13139 = vmatmul.msk.f32.gmra.mxu1 %vm3837_vm2, %v17971_v2  ;;  %v9080_v33 = vadd.f32 %v9020_v8, %v18193_v54  ;;  %v9529_v29 = vpop.f32.mrf.mxu0 }
 0x8b4   : > { %v9617_v11 = vadd.f32 %v9529_v29, %v18243_v63 }
 0x8b5   : > { %v18412_v42 = vadd.f32 %v9295_v47, %v9080_v33  ;;  %13106 = vmatmul.msk.f32.gmra.mxu0 %vm3837_vm2, %v9390_v18  ;;  %v20114_v33 = vld [vmem:[#allocation40_spill] sm:$0xff] }
 0x8b6   : > { %v18414_v4 = vadd.f32 %v9804_v13, %v9617_v11  ;;  %v9925_v13 = vld [vmem:[#allocation3 + $0x9a] sm:$0xff] }
 0x8b7   : > { %13155 = vmatmul.msk.f32.gmra.mxu2 %vm3837_vm2, %v9923_v32  ;;  %13188 = vmatmul.msk.f32.gmra.mxu3 %vm3837_vm2, %v20111_v49  ;;  %v9393_v32 = vld [vmem:[#allocation3 + $0x170] sm:$0xff] }
 0x8b8   : > { %v9807_v51 = vpop.f32.mrf.mxu1 }
 0x8ba   : > { %v9023_v2 = vpop.f32.mrf.mxu2  ;;  %v9298_v63 = vpop.f32.mrf.mxu3 }
 0x8bb   : > { %13140 = vmatmul.msk.f32.gmra.mxu1 %vm3837_vm2, %v17989_v3  ;;  %v9081_v54 = vadd.f32 %v9023_v2, %v18208_v16  ;;  %v9532_v21 = vpop.f32.mrf.mxu0  ;;  %v20113_v16 = vld [vmem:[#allocation47_spill] sm:$0xff] }
 0x8bc   : > { %v9618_v34 = vadd.f32 %v9532_v21, %v18255_v37 }
 0x8bd   : > { %v18424_v14 = vadd.f32 %v9298_v63, %v9081_v54  ;;  %13107 = vmatmul.msk.f32.gmra.mxu0 %vm3837_vm2, %v9391_v39  ;;  %v20115_v54 = vld [vmem:[#allocation43_spill] sm:$0xff]  ;;  %v9394_v39 = vld [vmem:[#allocation3 + $0x180] sm:$0xff] }
 0x8be   : > { %v18426_v26 = vadd.f32 %v9807_v51, %v9618_v34  ;;  %v9926_v51 = vld [vmem:[#allocation3 + $0xaa] sm:$0xff] }
 0x8bf   : > { %13156 = vmatmul.msk.f32.gmra.mxu2 %vm3837_vm2, %v9924_v19  ;;  %13189 = vmatmul.msk.f32.gmra.mxu3 %vm3837_vm2, %v20112_v61  ;;  %v9927_v19 = vld [vmem:[#allocation3 + $0xb2] sm:$0xff] }
 0x8c0   : > { %v9810_v62 = vpop.f32.mrf.mxu1 }
 0x8c2   : > { %v9026_v3 = vpop.f32.mrf.mxu2  ;;  %v9301_v46 = vpop.f32.mrf.mxu3 }
 0x8c3   : > { %13141 = vmatmul.msk.f32.gmra.mxu1 %vm3837_vm2, %v20113_v16  ;;  %v9082_v37 = vadd.f32 %v9026_v3, %v18221_v5  ;;  %v9535_v44 = vpop.f32.mrf.mxu0 }
 0x8c4   : > { %v9619_v56 = vadd.f32 %v9535_v44, %v18267_v45  ;;  %v9928_v44 = vld [vmem:[#allocation3 + $0xc2] sm:$0xff] }
 0x8c5   : > { %v18436_v43 = vadd.f32 %v9301_v46, %v9082_v37  ;;  %13108 = vmatmul.msk.f32.gmra.mxu0 %vm3837_vm2, %v9392_v1  ;;  %v9395_v46 = vld [vmem:[#allocation3 + $0x188] sm:$0xff] }
 0x8c6   : > { %v18438_v52 = vadd.f32 %v9810_v62, %v9619_v56  ;;  %v20116_v1 = vld [vmem:[#allocation54_spill] sm:$0xff] }
 0x8c7   : > { %13157 = vmatmul.msk.f32.gmra.mxu2 %vm3837_vm2, %v9925_v13  ;;  %13190 = vmatmul.msk.f32.gmra.mxu3 %vm3837_vm2, %v20114_v33 }
 0x8c8   : > { %v9813_v8 = vpop.f32.mrf.mxu1 }
 0x8ca   : > { %v9029_v47 = vpop.f32.mrf.mxu2  ;;  %v9304_v45 = vpop.f32.mrf.mxu3 }
 0x8cb   : > { %13142 = vmatmul.msk.f32.gmra.mxu1 %vm3837_vm2, %v18025_v41  ;;  %v9083_v5 = vadd.f32 %v9029_v47, %v18233_v9  ;;  %v9538_v29 = vpop.f32.mrf.mxu0 }
 0x8cc   : > { %v9620_v11 = vadd.f32 %v9538_v29, %v18279_v38 }
 0x8cd   : > { %v18448_v18 = vadd.f32 %v9304_v45, %v9083_v5  ;;  %13109 = vmatmul.msk.f32.gmra.mxu0 %vm3837_vm2, %v9393_v32  ;;  %v9396_v5 = vld [vmem:[#allocation3 + $0x198] sm:$0xff]  ;;  %v9929_v45 = vld [vmem:[#allocation3 + $0xca] sm:$0xff] }
 0x8ce   : > { %v18450_v49 = vadd.f32 %v9813_v8, %v9620_v11  ;;  %v20118_v32 = vld [vmem:[#allocation52_spill] sm:$0xff] }
 0x8cf   : > { %13158 = vmatmul.msk.f32.gmra.mxu2 %vm3837_vm2, %v9926_v51  ;;  %13191 = vmatmul.msk.f32.gmra.mxu3 %vm3837_vm2, %v20115_v54  ;;  %v20119_v51 = vld [vmem:[#allocation45_spill] sm:$0xff] }
 0x8d0   : > { %v9816_v2 = vpop.f32.mrf.mxu1 }
 0x8d2   : > { %v9032_v41 = vpop.f32.mrf.mxu2  ;;  %v9307_v38 = vpop.f32.mrf.mxu3 }
 0x8d3   : > { %13143 = vmatmul.msk.f32.gmra.mxu1 %vm3837_vm2, %v18043_v20  ;;  %v9084_v9 = vadd.f32 %v9032_v41, %v18245_v0  ;;  %v9541_v63 = vpop.f32.mrf.mxu0 }
 0x8d4   : > { %v9621_v21 = vadd.f32 %v9541_v63, %v18291_v24  ;;  %v9930_v63 = vld [vmem:[#allocation3 + $0xda] sm:$0xff] }
 0x8d5   : > { %v18460_v34 = vadd.f32 %v9307_v38, %v9084_v9  ;;  %13110 = vmatmul.msk.f32.gmra.mxu0 %vm3837_vm2, %v9394_v39  ;;  %v9397_v38 = vld [vmem:[#allocation3 + $0x1a0] sm:$0xff]  ;;  %v10974_v39 = vld [vmem:[%s18502_s21] sm:$0xff] }
 0x8d6   : > { %v18462_v62 = vadd.f32 %v9816_v2, %v9621_v21 }
 0x8d7   : > { %13159 = vmatmul.msk.f32.gmra.mxu2 %vm3837_vm2, %v9927_v19  ;;  %13192 = vmatmul.msk.f32.gmra.mxu3 %vm3837_vm2, %v18045_v23  ;;  %v11006_v19 = vld [vmem:[%s18502_s21 + $0x1] sm:$0xff] }
 0x8d8   : > { %v9819_v61 = vpop.f32.mrf.mxu1 }
 0x8da   : > { %v9035_v20 = vpop.f32.mrf.mxu2  ;;  %v9310_v24 = vpop.f32.mrf.mxu3 }
 0x8db   : > { %13144 = vmatmul.msk.f32.gmra.mxu1 %vm3837_vm2, %v18061_v15  ;;  %v9085_v0 = vadd.f32 %v9035_v20, %v18257_v31  ;;  %v9544_v3 = vpop.f32.mrf.mxu0  ;;  %v20117_v31 = vld [vmem:[#allocation51_spill] sm:$0xff]  ;;  %v20122_v20 = vld [vmem:[#allocation50_spill] sm:$0xff] }
 0x8dc   : > { %v9622_v16 = vadd.f32 %v9544_v3, %v18303_v28  ;;  %v11038_v3 = vmax.f32 %v10974_v39, %v11006_v19 }
 0x8dd   : > { %v18472_v37 = vadd.f32 %v9310_v24, %v9085_v0  ;;  %13111 = vmatmul.msk.f32.gmra.mxu0 %vm3837_vm2, %v9395_v46  ;;  %v9398_v46 = vld [vmem:[#allocation3 + $0x1b0] sm:$0xff] }
 0x8de   : > { %v18474_v56 = vadd.f32 %v9819_v61, %v9622_v16 }
 0x8df   : > { %13160 = vmatmul.msk.f32.gmra.mxu2 %vm3837_vm2, %v9928_v44  ;;  %13193 = vmatmul.msk.f32.gmra.mxu3 %vm3837_vm2, %v20116_v1  ;;  %v11070_v44 = vld [vmem:[%s18502_s21 + $0x2] sm:$0xff] }
 0x8e0   : > { %v9822_v23 = vpop.f32.mrf.mxu1 }
 0x8e2   : > { %v9038_v15 = vpop.f32.mrf.mxu2  ;;  %v9313_v13 = vpop.f32.mrf.mxu3 }
 0x8e3   : > { %13145 = vmatmul.msk.f32.gmra.mxu1 %vm3837_vm2, %v20117_v31  ;;  %v9086_v28 = vadd.f32 %v9038_v15, %v18269_v30  ;;  %v9547_v8 = vpop.f32.mrf.mxu0  ;;  %v9931_v15 = vld [vmem:[#allocation3 + $0xe2] sm:$0xff] }
 0x8e4   : > { %v9623_v33 = vadd.f32 %v9547_v8, %v18315_v53  ;;  %v13250_v8 = vld [vmem:[%s18502_s21 + $0x18] sm:$0xff] }
 0x8e5   : > { %v18484_v47 = vadd.f32 %v9313_v13, %v9086_v28  ;;  %13112 = vmatmul.msk.f32.gmra.mxu0 %vm3837_vm2, %v9396_v5  ;;  %v20123_v13 = vld [vmem:[#allocation53_spill] sm:$0xff] }
 0x8e6   : > { %v18486_v29 = vadd.f32 %v9822_v23, %v9623_v33  ;;  %v10975_v33 = vld [vmem:[%s18502_s21 + $0x8] sm:$0xff] }
 0x8e7   : > { %13161 = vmatmul.msk.f32.gmra.mxu2 %vm3837_vm2, %v9929_v45  ;;  %13194 = vmatmul.msk.f32.gmra.mxu3 %vm3837_vm2, %v20118_v32  ;;  %v11007_v5 = vld [vmem:[%s18502_s21 + $0x9] sm:$0xff]  ;;  %v20124_v45 = vld [vmem:[#allocation55_spill] sm:$0xff] }
 0x8e8   : > { %v9825_v11 = vpop.f32.mrf.mxu1 }
 0x8ea   : > { %v9041_v30 = vpop.f32.mrf.mxu2  ;;  %v9316_v2 = vpop.f32.mrf.mxu3 }
 0x8eb   : > { %13146 = vmatmul.msk.f32.gmra.mxu1 %vm3837_vm2, %v20119_v51  ;;  %v9087_v53 = vadd.f32 %v9041_v30, %v18281_v22  ;;  %v9550_v54 = vpop.f32.mrf.mxu0  ;;  %v11039_v51 = vmax.f32 %v10975_v33, %v11007_v5 }
 0x8ec   : > { %v9624_v41 = vadd.f32 %v9550_v54, %v18327_v50  ;;  %v20121_v50 = vld [vmem:[#allocation48_spill] sm:$0xff]  ;;  %v13282_v54 = vld [vmem:[%s18502_s21 + $0x19] sm:$0xff] }
 0x8ed   : > { %v18497_v9 = vadd.f32 %v9316_v2, %v9087_v53  ;;  %13113 = vmatmul.msk.f32.gmra.mxu0 %vm3837_vm2, %v9397_v38  ;;  %v9399_v2 = vld [vmem:[#allocation3 + $0x1b8] sm:$0xff] }
 0x8ee   : > { %v18504_v21 = vadd.f32 %v9825_v11, %v9624_v41  ;;  %v11071_v41 = vld [vmem:[%s18502_s21 + $0xa] sm:$0xff] }
 0x8ef   : > { %13162 = vmatmul.msk.f32.gmra.mxu2 %vm3837_vm2, %v9930_v63  ;;  %13195 = vmatmul.msk.f32.gmra.mxu3 %vm3837_vm2, %v20121_v50  ;;  %v11103_v39 = vmax.f32 %v11039_v51, %v11071_v41  ;;  %v13378_v51 = vld [vmem:[%s18502_s21 + $0x31] sm:$0xff] }
 0x8f0   : > { %v9828_v22 = vpop.f32.mrf.mxu1 }
 0x8f2   : > { %v9044_v61 = vpop.f32.mrf.mxu2  ;;  %v9319_v24 = vpop.f32.mrf.mxu3 }
 0x8f3   : > { %13147 = vmatmul.msk.f32.gmra.mxu1 %vm3837_vm2, %v20122_v20  ;;  %v9088_v0 = vadd.f32 %v9044_v61, %v18293_v27  ;;  %v9553_v16 = vpop.f32.mrf.mxu0  ;;  %v11102_v27 = vmax.f32 %v11038_v3, %v11070_v44  ;;  %v20125_v61 = vld [vmem:[#allocation56_spill] sm:$0xff]  ;;  %v9675_v20 = vld [vmem:[#allocation3 + $0x1c9] sm:$0xff]  ;;  %v11040_v3 = vmax.f32 %v13250_v8, %v13282_v54 }
 0x8f4   : > { %v9625_v23 = vadd.f32 %v9553_v16, %v18339_v55 }
 0x8f5   : > { %v18517_v1 = vadd.f32 %v9319_v24, %v9088_v0  ;;  %13114 = vmatmul.msk.f32.gmra.mxu0 %vm3837_vm2, %v9398_v46  ;;  %v11167_v30 = vmax.f32 %v11102_v27, %v13250_v8  ;;  %v13314_v0 = vld [vmem:[%s18502_s21 + $0x1a] sm:$0xff] }
 0x8f6   : > { %v18519_v31 = vadd.f32 %v9828_v22, %v9625_v23  ;;  %v9932_v22 = vld [vmem:[#allocation3 + $0xf2] sm:$0xff]  ;;  %v9400_v27 = vld [vmem:[#allocation3 + $0x1c8] sm:$0xff]  ;;  %v11104_v8 = vmax.f32 %v11040_v3, %v13314_v0 }
 0x8f7   : > { %13163 = vmatmul.msk.f32.gmra.mxu2 %vm3837_vm2, %v9931_v15  ;;  %13196 = vmatmul.msk.f32.gmra.mxu3 %vm3837_vm2, %v20123_v13  ;;  %v13283_v13 = vld [vmem:[%s18502_s21 + $0x21] sm:$0xff] }
 0x8f8   : > { %v9831_v28 = vpop.f32.mrf.mxu1 }
 0x8fa   : > { %v9047_v55 = vpop.f32.mrf.mxu2  ;;  %v9322_v32 = vpop.f32.mrf.mxu3 }
 0x8fb   : > { %13148 = vmatmul.msk.f32.gmra.mxu1 %vm3837_vm2, %v20124_v45  ;;  %v9089_v11 = vadd.f32 %v9047_v55, %v18305_v12  ;;  %v9556_v53 = vpop.f32.mrf.mxu0  ;;  %v11231_v12 = vmax.f32 %v11167_v30, %v13282_v54  ;;  %v9933_v55 = vld [vmem:[#allocation3 + $0xfa] sm:$0xff] }
 0x8fc   : > { %v9626_v38 = vadd.f32 %v9556_v53, %v18354_v10  ;;  %v13251_v10 = vld [vmem:[%s18502_s21 + $0x20] sm:$0xff]  ;;  %v20126_v30 = vld [vmem:[#allocation60_spill] sm:$0xff] }
 0x8fd   : > { %v18534_v63 = vadd.f32 %v9322_v32, %v9089_v11  ;;  %13115 = vmatmul.msk.f32.gmra.mxu0 %vm3837_vm2, %v9399_v2  ;;  %v11295_v44 = vmax.f32 %v11231_v12, %v13314_v0  ;;  %v11168_v23 = vmax.f32 %v11103_v39, %v13251_v10  ;;  %v13315_v53 = vld [vmem:[%s18502_s21 + $0x22] sm:$0xff]  ;;  %v11041_v41 = vmax.f32 %v13251_v10, %v13283_v13  ;;  %v13347_v0 = vld [vmem:[%s18502_s21 + $0x38] sm:$0xff] }
 0x8fe   : > { %v18536_v50 = vadd.f32 %v9831_v28, %v9626_v38  ;;  %v18547_v28 = vld [vmem:[%s18502_s21 + $0x30] sm:$0xff] }
 0x8ff   : > { %13164 = vmatmul.msk.f32.gmra.mxu2 %vm3837_vm2, %v9932_v22  ;;  %13197 = vmatmul.msk.f32.gmra.mxu3 %vm3837_vm2, %v20125_v61  ;;  %v11232_v11 = vmax.f32 %v11168_v23, %v13283_v13  ;;  %v11169_v54 = vmax.f32 %v11104_v8, %v18547_v28  ;;  %v9401_v61 = vld [vmem:[#allocation3 + $0x1d0] sm:$0xff] }
 0x900   : > { %v9834_v19 = vpop.f32.mrf.mxu1 }
 0x901   : > { %v11296_v39 = vmax.f32 %v11232_v11, %v13315_v53 }
 0x902   : > { %v9050_v24 = vpop.f32.mrf.mxu2  ;;  %v9325_v46 = vpop.f32.mrf.mxu3 }
 0x903   : > { %13149 = vmatmul.msk.f32.gmra.mxu1 %vm3837_vm2, %v9675_v20  ;;  %v9090_v16 = vadd.f32 %v9050_v24, %v18317_v17  ;;  %v9559_v15 = vpop.f32.mrf.mxu0  ;;  %v11360_v17 = vmax.f32 %v11295_v44, %v18547_v28  ;;  %v13410_v20 = vld [vmem:[%s18502_s21 + $0x32] sm:$0xff]  ;;  %v11105_v44 = vmax.f32 %v11041_v41, %v13315_v53  ;;  %v11361_v23 = vmax.f32 %v11296_v39, %v13347_v0  ;;  %v13411_v53 = vld [vmem:[%s18502_s21 + $0x3a] sm:$0xff] }
 0x904   : > { %v9627_v33 = vadd.f32 %v9559_v15, %v18365_v35  ;;  %v9676_v35 = vld [vmem:[#allocation3 + $0x1d1] sm:$0xff]  ;;  %v10470_v41 = vld [vmem:[#allocation3 + $0x64] sm:$0xff] }
 0x905   : > { %v18551_v5 = vadd.f32 %v9325_v46, %v9090_v16  ;;  %13116 = vmatmul.msk.f32.gmra.mxu0 %vm3837_vm2, %v9400_v27  ;;  %v11424_v12 = vmax.f32 %v11360_v17, %v13378_v51  ;;  %v9934_v16 = vld [vmem:[#allocation3 + $0x10a] sm:$0xff]  ;;  %v11233_v46 = vmax.f32 %v11169_v54, %v13378_v51  ;;  %v20127_v27 = vld [vmem:[#allocation57_spill] sm:$0xff] }
 0x906   : > { %v18553_v45 = vadd.f32 %v9834_v19, %v9627_v33 }
 0x907   : > { %13165 = vmatmul.msk.f32.gmra.mxu2 %vm3837_vm2, %v9933_v55  ;;  %13198 = vmatmul.msk.f32.gmra.mxu3 %vm3837_vm2, %v20126_v30  ;;  %v11297_v33 = vmax.f32 %v11233_v46, %v13410_v20  ;;  %v11170_v55 = vmax.f32 %v11105_v44, %v13347_v0  ;;  %v11042_v30 = vmax.f32 %v18547_v28, %v13378_v51  ;;  %v13380_v51 = vld [vmem:[%s18502_s21 + $0x49] sm:$0xff] }
 0x908   : > { %v9837_v32 = vpop.f32.mrf.mxu1  ;;  %v13412_v44 = vld [vmem:[%s18502_s21 + $0x4a] sm:$0xff] }
 0x909   : > { %v11106_v39 = vmax.f32 %v11042_v30, %v13410_v20 }
 0x90a   : > { %v9053_v2 = vpop.f32.mrf.mxu2  ;;  %v9328_v22 = vpop.f32.mrf.mxu3 }
 0x90b   : > { %13150 = vmatmul.msk.f32.gmra.mxu1 %vm3837_vm2, %v9676_v35  ;;  %v9091_v38 = vadd.f32 %v9053_v2, %v18329_v6  ;;  %v9562_v19 = vpop.f32.mrf.mxu0  ;;  %v11488_v6 = vmax.f32 %v11424_v12, %v13410_v20 }
 0x90c   : > { %v9628_v24 = vadd.f32 %v9562_v19, %v18376_v48  ;;  %v13379_v48 = vld [vmem:[%s18502_s21 + $0x39] sm:$0xff] }
 0x90d   : > { %v18568_v3 = vadd.f32 %v9328_v22, %v9091_v38  ;;  %13117 = vmatmul.msk.f32.gmra.mxu0 %vm3837_vm2, %v9401_v61  ;;  %v11425_v11 = vmax.f32 %v11361_v23, %v13379_v48  ;;  %v9935_v38 = vld [vmem:[#allocation3 + $0x112] sm:$0xff]  ;;  %v11234_v22 = vmax.f32 %v11170_v55, %v13379_v48 }
 0x90e   : > { %v18570_v10 = vadd.f32 %v9837_v32, %v9628_v24  ;;  %v18580_v32 = vld [vmem:[%s18502_s21 + $0x48] sm:$0xff]  ;;  %v10471_v55 = vld [vmem:[#allocation3 + $0x6c] sm:$0xff] }
 0x90f   : > { %13166 = vmatmul.msk.f32.gmra.mxu2 %vm3837_vm2, %v9934_v16  ;;  %13199 = vmatmul.msk.f32.gmra.mxu3 %vm3837_vm2, %v20127_v27  ;;  %v11489_v28 = vmax.f32 %v11425_v11, %v13411_v53  ;;  %v11298_v16 = vmax.f32 %v11234_v22, %v13411_v53  ;;  %v11171_v23 = vmax.f32 %v11106_v39, %v18580_v32 }
 0x910   : > { %v9840_v15 = vpop.f32.mrf.mxu1 }
 0x912   : > { %v9056_v13 = vpop.f32.mrf.mxu2  ;;  %v9331_v17 = vpop.f32.mrf.mxu3 }
 0x913   : > { %v9092_v8 = vadd.f32 %v9056_v13, %v18341_v36  ;;  %13442 = vmatmul.msk.f32.vlgmr.msrb.gmra.mxu1 %vm524_vm0, %v11488_v6  ;;  %v9565_v35 = vpop.f32.mrf.mxu0  ;;  %v11362_v36 = vmax.f32 %v11297_v33, %v18580_v32  ;;  %v18599_v6 = vld [vmem:[%s18502_s21 + $0x50] sm:$0xff] }
 0x914   : > { %v9629_v2 = vadd.f32 %v9565_v35, %v18388_v57  ;;  %v20128_v57 = vld [vmem:[#allocation58_spill] sm:$0xff] }
 0x915   : > { %v18585_v54 = vadd.f32 %v9331_v17, %v9092_v8  ;;  %13218 = vmatmul.msk.f32.vlgmr.msrb.gmra.mxu0 %vm3837_vm2, %v10470_v41  ;;  %v11426_v24 = vmax.f32 %v11362_v36, %v13380_v51  ;;  %v9936_v8 = vld [vmem:[#allocation3 + $0x122] sm:$0xff] }
 0x916   : > { %v18588_v12 = vadd.f32 %v9840_v15, %v9629_v2  ;;  %v11043_v15 = vmax.f32 %v13347_v0, %v13379_v48  ;;  %v13381_v0 = vld [vmem:[%s18502_s21 + $0x51] sm:$0xff]  ;;  %v11235_v48 = vmax.f32 %v11171_v23, %v13380_v51 }
 0x917   : > { %13167 = vmatmul.msk.f32.gmra.mxu2 %vm3837_vm2, %v9935_v38  ;;  %13200 = vmatmul.msk.f32.gmra.mxu3 %vm3837_vm2, %v20128_v57  ;;  %v11490_v17 = vmax.f32 %v11426_v24, %v13412_v44  ;;  %v13413_v41 = vld [vmem:[%s18502_s21 + $0x52] sm:$0xff]  ;;  %v9937_v57 = vld [vmem:[#allocation3 + $0x12a] sm:$0xff] }
 0x918   : > { %v9843_v19 = vpop.f32.mrf.mxu1  ;;  %v11107_v30 = vmax.f32 %v11043_v15, %v13411_v53  ;;  %v11299_v38 = vmax.f32 %v11235_v48, %v13412_v44  ;;  %v11044_v53 = vmax.f32 %v18580_v32, %v13380_v51  ;;  %v9938_v48 = vld [vmem:[#allocation3 + $0x13a] sm:$0xff] }
 0x91a   : > { %v9059_v61 = vpop.f32.mrf.mxu2  ;;  %v9334_v20 = vpop.f32.mrf.mxu3  ;;  %v11172_v36 = vmax.f32 %v11107_v30, %v18599_v6 }
 0x91b   : > { %v9093_v46 = vadd.f32 %v9059_v61, %v18356_v7  ;;  %13443 = vmatmul.msk.f32.gmra.mxu1 %vm524_vm0, %v11489_v28  ;;  %v9568_v27 = vpop.f32.mrf.mxu0  ;;  %v11363_v7 = vmax.f32 %v11298_v16, %v18599_v6  ;;  %v13350_v28 = vld [vmem:[%s18502_s21 + $0x60] sm:$0xff] }
 0x91c   : > { %v9630_v13 = vadd.f32 %v9568_v27, %v18400_v60  ;;  %v20129_v60 = vld [vmem:[#allocation63_spill] sm:$0xff]  ;;  %v11236_v23 = vmax.f32 %v11172_v36, %v13381_v0  ;;  %v11108_v27 = vmax.f32 %v11044_v53, %v13412_v44  ;;  %v10213_v44 = vld [vmem:[#allocation3 + $0x13b] sm:$0xff] }
 0x91d   : > { %v18603_v33 = vadd.f32 %v9334_v20, %v9093_v46  ;;  %13219 = vmatmul.msk.f32.gmra.mxu0 %vm3837_vm2, %v10471_v55  ;;  %v11427_v2 = vmax.f32 %v11363_v7, %v13381_v0  ;;  %v10212_v16 = vld [vmem:[#allocation3 + $0x12b] sm:$0xff]  ;;  %v11364_v46 = vmax.f32 %v11299_v38, %v13350_v28 }
 0x91e   : > { %v18606_v11 = vadd.f32 %v9843_v19, %v9630_v13  ;;  %v10472_v19 = vld [vmem:[#allocation3 + $0x7c] sm:$0xff]  ;;  %v11173_v20 = vmax.f32 %v11108_v27, %v13350_v28  ;;  %v11300_v51 = vmax.f32 %v11236_v23, %v13413_v41  ;;  %v13414_v55 = vld [vmem:[%s18502_s21 + $0x62] sm:$0xff]  ;;  %v10473_v7 = vld [vmem:[#allocation3 + $0x84] sm:$0xff] }
 0x91f   : > { %13168 = vmatmul.msk.f32.gmra.mxu2 %vm3837_vm2, %v9936_v8  ;;  %13201 = vmatmul.msk.f32.gmra.mxu3 %vm3837_vm2, %v20129_v60  ;;  %v11491_v61 = vmax.f32 %v11427_v2, %v13413_v41  ;;  %v13351_v8 = vld [vmem:[%s18502_s21 + $0x68] sm:$0xff] }
 0x920   : > { %v9846_v35 = vpop.f32.mrf.mxu1  ;;  %v11365_v38 = vmax.f32 %v11300_v51, %v13351_v8 }
 0x923   : > { %13444 = vmatmul.msk.f32.gmra.mxu1 %vm524_vm0, %v11490_v17  ;;  %v9571_v22 = vpop.f32.mrf.mxu0 }
 0x924   : > { %v9631_v39 = vadd.f32 %v9571_v22, %v18412_v42  ;;  %v13382_v42 = vld [vmem:[%s18502_s21 + $0x61] sm:$0xff] }
 0x925   : > { %13220 = vmatmul.msk.f32.gmra.mxu0 %vm3837_vm2, %v10472_v19  ;;  %v11428_v32 = vmax.f32 %v11364_v46, %v13382_v42  ;;  %v11237_v30 = vmax.f32 %v11173_v20, %v13382_v42  ;;  %v9939_v46 = vld [vmem:[#allocation3 + $0x142] sm:$0xff] }
 0x926   : > { %v18619_v24 = vadd.f32 %v9846_v35, %v9631_v39  ;;  %v11045_v35 = vmax.f32 %v18599_v6, %v13381_v0  ;;  %v18638_v0 = vld [vmem:[%s18502_s21 + $0x78] sm:$0xff] }
 0x927   : > { %13169 = vmatmul.msk.f32.gmra.mxu2 %vm3837_vm2, %v9937_v57  ;;  %13202 = vmatmul.msk.f32.gmra.mxu3 %vm3837_vm2, %v10212_v16  ;;  %v11492_v2 = vmax.f32 %v11428_v32, %v13414_v55  ;;  %v11301_v39 = vmax.f32 %v11237_v30, %v13414_v55  ;;  %v10474_v16 = vld [vmem:[#allocation3 + $0x94] sm:$0xff]  ;;  %v13384_v32 = vld [vmem:[%s18502_s21 + $0x79] sm:$0xff] }
 0x928   : > { %v9849_v15 = vpop.f32.mrf.mxu1  ;;  %v11109_v22 = vmax.f32 %v11045_v35, %v13413_v41  ;;  %v10214_v41 = vld [vmem:[#allocation3 + $0x143] sm:$0xff]  ;;  %v13353_v30 = vld [vmem:[%s18502_s21 + $0x80] sm:$0xff] }
 0x929   : > { %v11366_v23 = vmax.f32 %v11301_v39, %v18638_v0 }
 0x92a   : > { %v11174_v19 = vmax.f32 %v11109_v22, %v13351_v8 }
 0x92b   : > { %13445 = vmatmul.msk.f32.gmra.mxu1 %vm524_vm0, %v11491_v61  ;;  %v9574_v13 = vpop.f32.mrf.mxu0  ;;  %v13415_v61 = vld [vmem:[%s18502_s21 + $0x6a] sm:$0xff] }
 0x92c   : > { %v9632_v17 = vadd.f32 %v9574_v13, %v18424_v14  ;;  %v13383_v14 = vld [vmem:[%s18502_s21 + $0x69] sm:$0xff] }
 0x92d   : > { %13221 = vmatmul.msk.f32.gmra.mxu0 %vm3837_vm2, %v10473_v7  ;;  %v11429_v6 = vmax.f32 %v11365_v38, %v13383_v14  ;;  %v11238_v51 = vmax.f32 %v11174_v19, %v13383_v14  ;;  %v13416_v7 = vld [vmem:[%s18502_s21 + $0x7a] sm:$0xff] }
 0x92e   : > { %v18630_v60 = vadd.f32 %v9849_v15, %v9632_v17  ;;  %v11046_v15 = vmax.f32 %v13350_v28, %v13382_v42  ;;  %v11430_v17 = vmax.f32 %v11366_v23, %v13384_v32  ;;  %v18663_v23 = vld [vmem:[%s18502_s21 + $0x90] sm:$0xff] }
 0x92f   : > { %13170 = vmatmul.msk.f32.gmra.mxu2 %vm3837_vm2, %v9938_v48  ;;  %13203 = vmatmul.msk.f32.gmra.mxu3 %vm3837_vm2, %v10213_v44  ;;  %v11493_v20 = vmax.f32 %v11429_v6, %v13415_v61  ;;  %v11302_v28 = vmax.f32 %v11238_v51, %v13415_v61  ;;  %v10475_v44 = vld [vmem:[#allocation3 + $0x9c] sm:$0xff] }
 0x930   : > { %v9852_v36 = vpop.f32.mrf.mxu1  ;;  %v11494_v38 = vmax.f32 %v11430_v17, %v13416_v7 }
 0x931   : > { %v11367_v39 = vmax.f32 %v11302_v28, %v13353_v30 }
 0x933   : > { %13446 = vmatmul.msk.f32.gmra.mxu1 %vm524_vm0, %v11492_v2  ;;  %v9577_v57 = vpop.f32.mrf.mxu0  ;;  %v9940_v2 = vld [vmem:[#allocation3 + $0x152] sm:$0xff] }
 0x934   : > { %v9633_v53 = vadd.f32 %v9577_v57, %v18436_v43  ;;  %v11110_v43 = vmax.f32 %v11046_v15, %v13414_v55  ;;  %v10215_v55 = vld [vmem:[#allocation3 + $0x153] sm:$0xff] }
 0x935   : > { %13222 = vmatmul.msk.f32.gmra.mxu0 %vm3837_vm2, %v10474_v16  ;;  %v13385_v57 = vld [vmem:[%s18502_s21 + $0x81] sm:$0xff] }
 0x936   : > { %v18643_v27 = vadd.f32 %v9852_v36, %v9633_v53  ;;  %v11175_v42 = vmax.f32 %v11110_v43, %v18638_v0  ;;  %v11047_v36 = vmax.f32 %v13351_v8, %v13383_v14  ;;  %v11431_v8 = vmax.f32 %v11367_v39, %v13385_v57  ;;  %v10477_v39 = vld [vmem:[#allocation3 + $0xb4] sm:$0xff] }
 0x937   : > { %13171 = vmatmul.msk.f32.gmra.mxu2 %vm3837_vm2, %v9939_v46  ;;  %13204 = vmatmul.msk.f32.gmra.mxu3 %vm3837_vm2, %v10214_v41  ;;  %v13417_v46 = vld [vmem:[%s18502_s21 + $0x82] sm:$0xff] }
 0x938   : > { %v9855_v13 = vpop.f32.mrf.mxu1  ;;  %v11239_v6 = vmax.f32 %v11175_v42, %v13384_v32  ;;  %v10476_v41 = vld [vmem:[#allocation3 + $0xac] sm:$0xff]  ;;  %v11495_v17 = vmax.f32 %v11431_v8, %v13417_v46 }
 0x93a   : > { %v11303_v14 = vmax.f32 %v11239_v6, %v13416_v7  ;;  %v9942_v6 = vld [vmem:[#allocation3 + $0x16a] sm:$0xff] }
 0x93b   : > { %13447 = vmatmul.msk.f32.gmra.mxu1 %vm524_vm0, %v11493_v20  ;;  %v9580_v48 = vpop.f32.mrf.mxu0  ;;  %v9941_v20 = vld [vmem:[#allocation3 + $0x15a] sm:$0xff] }
 0x93c   : > { %v9634_v35 = vadd.f32 %v9580_v48, %v18448_v18  ;;  %v11111_v18 = vmax.f32 %v11047_v36, %v13415_v61  ;;  %v10216_v61 = vld [vmem:[#allocation3 + $0x15b] sm:$0xff]  ;;  %v11368_v28 = vmax.f32 %v11303_v14, %v18663_v23  ;;  %v13387_v14 = vld [vmem:[%s18502_s21 + $0x99] sm:$0xff] }
 0x93d   : > { %13223 = vmatmul.msk.f32.gmra.mxu0 %vm3837_vm2, %v10475_v44 }
 0x93e   : > { %v18654_v22 = vadd.f32 %v9855_v13, %v9634_v35  ;;  %v11176_v53 = vmax.f32 %v11111_v18, %v13353_v30  ;;  %v11048_v13 = vmax.f32 %v18638_v0, %v13384_v32  ;;  %v18676_v32 = vld [vmem:[%s18502_s21 + $0x98] sm:$0xff] }
 0x93f   : > { %13172 = vmatmul.msk.f32.gmra.mxu2 %vm3837_vm2, %v9940_v2  ;;  %13205 = vmatmul.msk.f32.gmra.mxu3 %vm3837_vm2, %v10215_v55  ;;  %v18681_v55 = vpop.f32.mrf.mxu2 }
 0x940   : > { %v9858_v19 = vpop.f32.mrf.mxu1  ;;  %v11240_v51 = vmax.f32 %v11176_v53, %v13385_v57  ;;  %v11112_v48 = vmax.f32 %v11048_v13, %v13416_v7  ;;  %v10217_v53 = vld [vmem:[#allocation3 + $0x16b] sm:$0xff] }
 0x942   : > { %v11304_v35 = vmax.f32 %v11240_v51, %v13417_v46  ;;  %v11177_v44 = vmax.f32 %v11112_v48, %v18663_v23 }
 0x943   : > { %13448 = vmatmul.msk.f32.gmra.mxu1 %vm524_vm0, %v11494_v38  ;;  %v9583_v16 = vpop.f32.mrf.mxu0  ;;  %v13418_v38 = vld [vmem:[%s18502_s21 + $0x92] sm:$0xff] }
 0x944   : > { %v9635_v15 = vadd.f32 %v9583_v16, %v18460_v34  ;;  %v13386_v34 = vld [vmem:[%s18502_s21 + $0x91] sm:$0xff]  ;;  %v11369_v7 = vmax.f32 %v11304_v35, %v18676_v32 }
 0x945   : > { %13224 = vmatmul.msk.f32.gmra.mxu0 %vm3837_vm2, %v10476_v41  ;;  %v11432_v0 = vmax.f32 %v11368_v28, %v13386_v34  ;;  %v11241_v16 = vmax.f32 %v11177_v44, %v13386_v34  ;;  %v18690_v41 = vpop.f32.mrf.mxu3  ;;  %v10478_v28 = vld [vmem:[#allocation3 + $0xc4] sm:$0xff] }
 0x946   : > { %v18667_v43 = vadd.f32 %v9858_v19, %v9635_v15  ;;  %v11049_v19 = vmax.f32 %v13353_v30, %v13385_v57  ;;  %v13419_v30 = vld [vmem:[%s18502_s21 + $0x9a] sm:$0xff] }
 0x947   : > { %13173 = vmatmul.msk.f32.gmra.mxu2 %vm3837_vm2, %v9941_v20  ;;  %13206 = vmatmul.msk.f32.gmra.mxu3 %vm3837_vm2, %v10216_v61  ;;  %v11496_v8 = vmax.f32 %v11432_v0, %v13418_v38  ;;  %v11433_v20 = vmax.f32 %v11369_v7, %v13387_v14  ;;  %v11305_v57 = vmax.f32 %v11241_v16, %v13418_v38  ;;  %v18696_v61 = vld [vmem:[%s18502_s21 + $0xa8] sm:$0xff]  ;;  %v18715_v16 = vld [vmem:[%s18502_s21 + $0xb0] sm:$0xff] }
 0x948   : > { %v9861_v42 = vpop.f32.mrf.mxu1  ;;  %v11113_v15 = vmax.f32 %v11049_v19, %v13417_v46  ;;  %v11050_v46 = vmax.f32 %v18663_v23, %v13386_v34  ;;  %v10218_v0 = vld [vmem:[#allocation3 + $0x173] sm:$0xff] }
 0x949   : > { %v11497_v48 = vmax.f32 %v11433_v20, %v13419_v30  ;;  %v11370_v44 = vmax.f32 %v11305_v57, %v18696_v61  ;;  %v9944_v20 = vld [vmem:[#allocation3 + $0x182] sm:$0xff] }
 0x94a   : > { %v11178_v51 = vmax.f32 %v11113_v15, %v18676_v32  ;;  %v10479_v15 = vld [vmem:[#allocation3 + $0xcc] sm:$0xff] }
 0x94b   : > { %13449 = vmatmul.msk.f32.gmra.mxu1 %vm524_vm0, %v11495_v17  ;;  %v9586_v2 = vpop.f32.mrf.mxu0 }
 0x94c   : > { %v9636_v36 = vadd.f32 %v9586_v2, %v18472_v37  ;;  %v11242_v2 = vmax.f32 %v11178_v51, %v13387_v14 }
 0x94d   : > { %13225 = vmatmul.msk.f32.gmra.mxu0 %vm3837_vm2, %v10477_v39  ;;  %v13388_v39 = vld [vmem:[%s18502_s21 + $0xa9] sm:$0xff]  ;;  %v18711_v19 = vpop.f32.mrf.mxu3 }
 0x94e   : > { %v18684_v18 = vadd.f32 %v9861_v42, %v9636_v36  ;;  %v9943_v42 = vld [vmem:[#allocation3 + $0x172] sm:$0xff]  ;;  %v18705_v36 = vpop.f32.mrf.mxu2  ;;  %v11434_v34 = vmax.f32 %v11370_v44, %v13388_v39  ;;  %v11306_v7 = vmax.f32 %v11242_v2, %v13419_v30 }
 0x94f   : > { %13174 = vmatmul.msk.f32.gmra.mxu2 %vm3837_vm2, %v9942_v6  ;;  %13207 = vmatmul.msk.f32.gmra.mxu3 %vm3837_vm2, %v10217_v53  ;;  %v11114_v6 = vmax.f32 %v11050_v46, %v13418_v38  ;;  %v11051_v38 = vmax.f32 %v18676_v32, %v13387_v14  ;;  %v18730_v14 = vld [vmem:[%s18502_s21 + $0xc0] sm:$0xff] }
 0x950   : > { %v9864_v37 = vpop.f32.mrf.mxu1 }
 0x951   : > { %v11179_v23 = vmax.f32 %v11114_v6, %v18696_v61 }
 0x953   : > { %13450 = vmatmul.msk.f32.gmra.mxu1 %vm524_vm0, %v11496_v8  ;;  %v9589_v13 = vpop.f32.mrf.mxu0  ;;  %v13420_v8 = vld [vmem:[%s18502_s21 + $0xaa] sm:$0xff]  ;;  %v11243_v57 = vmax.f32 %v11179_v23, %v13388_v39 }
 0x954   : > { %v9637_v17 = vadd.f32 %v9589_v13, %v18484_v47  ;;  %v10219_v13 = vld [vmem:[#allocation3 + $0x183] sm:$0xff] }
 0x955   : > { %13226 = vmatmul.msk.f32.gmra.mxu0 %vm3837_vm2, %v10478_v28  ;;  %v11371_v28 = vmax.f32 %v11306_v7, %v18715_v16  ;;  %v18735_v23 = vpop.f32.mrf.mxu3 }
 0x956   : > { %v18700_v35 = vadd.f32 %v9864_v37, %v9637_v17  ;;  %v11498_v17 = vmax.f32 %v11434_v34, %v13420_v8  ;;  %v18726_v46 = vpop.f32.mrf.mxu2  ;;  %v10480_v34 = vld [vmem:[#allocation3 + $0xdc] sm:$0xff] }
 0x957   : > { %13175 = vmatmul.msk.f32.gmra.mxu2 %vm3837_vm2, %v9943_v42  ;;  %13208 = vmatmul.msk.f32.gmra.mxu3 %vm3837_vm2, %v10218_v0  ;;  %v11307_v0 = vmax.f32 %v11243_v57, %v13420_v8  ;;  %v13390_v57 = vld [vmem:[%s18502_s21 + $0xc1] sm:$0xff] }
 0x958   : > { %v9867_v47 = vpop.f32.mrf.mxu1 }
 0x959   : > { %v11372_v7 = vmax.f32 %v11307_v0, %v18730_v14  ;;  %v18751_v0 = vld [vmem:[%s18502_s21 + $0xc8] sm:$0xff] }
 0x95b   : > { %13451 = vmatmul.msk.f32.gmra.mxu1 %vm524_vm0, %v11497_v48  ;;  %v9592_v53 = vpop.f32.mrf.mxu0  ;;  %v11115_v48 = vmax.f32 %v11051_v38, %v13419_v30  ;;  %v9945_v30 = vld [vmem:[#allocation3 + $0x18a] sm:$0xff] }
 0x95c   : > { %v9638_v37 = vadd.f32 %v9592_v53, %v18497_v9  ;;  %v13389_v9 = vld [vmem:[%s18502_s21 + $0xb1] sm:$0xff]  ;;  %v11052_v53 = vmax.f32 %v18696_v61, %v13388_v39 }
 0x95d   : > { %13227 = vmatmul.msk.f32.gmra.mxu0 %vm3837_vm2, %v10479_v15  ;;  %v11435_v32 = vmax.f32 %v11371_v28, %v13389_v9  ;;  %v11180_v44 = vmax.f32 %v11115_v48, %v18715_v16  ;;  %v10220_v15 = vld [vmem:[#allocation3 + $0x18b] sm:$0xff] }
 0x95e   : > { %v18719_v51 = vadd.f32 %v9867_v47, %v9638_v37  ;;  %v13421_v47 = vld [vmem:[%s18502_s21 + $0xb2] sm:$0xff]  ;;  %v13422_v28 = vld [vmem:[%s18502_s21 + $0xc2] sm:$0xff] }
 0x95f   : > { %13176 = vmatmul.msk.f32.gmra.mxu2 %vm3837_vm2, %v9944_v20  ;;  %13209 = vmatmul.msk.f32.gmra.mxu3 %vm3837_vm2, %v10219_v13  ;;  %v11499_v20 = vmax.f32 %v11435_v32, %v13421_v47  ;;  %v11116_v13 = vmax.f32 %v11052_v53, %v13420_v8  ;;  %v11053_v8 = vmax.f32 %v18715_v16, %v13389_v9 }
 0x960   : > { %v9870_v42 = vpop.f32.mrf.mxu1 }
 0x961   : > { %v11181_v39 = vmax.f32 %v11116_v13, %v18730_v14 }
 0x963   : > { %13452 = vmatmul.msk.f32.gmra.mxu1 %vm524_vm0, %v11498_v17  ;;  %v9595_v2 = vpop.f32.mrf.mxu0  ;;  %v11436_v17 = vmax.f32 %v11372_v7, %v13390_v57  ;;  %v11245_v53 = vmax.f32 %v11181_v39, %v13390_v57 }
 0x964   : > { %v9639_v6 = vadd.f32 %v9595_v2, %v18517_v1  ;;  %v11244_v1 = vmax.f32 %v11180_v44, %v13389_v9  ;;  %v10481_v44 = vld [vmem:[#allocation3 + $0xe4] sm:$0xff]  ;;  %v9946_v2 = vld [vmem:[#allocation3 + $0x19a] sm:$0xff] }
 0x965   : > { %13228 = vmatmul.msk.f32.gmra.mxu0 %vm3837_vm2, %v10480_v34 }
 0x966   : > { %v18739_v37 = vadd.f32 %v9870_v42, %v9639_v6  ;;  %v11308_v61 = vmax.f32 %v11244_v1, %v13421_v47  ;;  %v18748_v42 = vpop.f32.mrf.mxu2  ;;  %v11500_v6 = vmax.f32 %v11436_v17, %v13422_v28  ;;  %v11117_v1 = vmax.f32 %v11053_v8, %v13421_v47  ;;  %v13423_v17 = vld [vmem:[%s18502_s21 + $0xca] sm:$0xff] }
 0x967   : > { %13177 = vmatmul.msk.f32.gmra.mxu2 %vm3837_vm2, %v9945_v30  ;;  %13210 = vmatmul.msk.f32.gmra.mxu3 %vm3837_vm2, %v10220_v15  ;;  %v10221_v30 = vld [vmem:[#allocation3 + $0x19b] sm:$0xff]  ;;  %v18760_v15 = vpop.f32.mrf.mxu3  ;;  %v11054_v47 = vmax.f32 %v18730_v14, %v13390_v57  ;;  %v18785_v57 = vld [vmem:[%s18502_s21 + $0xe0] sm:$0xff] }
 0x968   : > { %20130 = vst [vmem:[#allocation59_spill] sm:$0xff] %v18739_v37  ;;  %v9873_v38 = vpop.f32.mrf.mxu1  ;;  %v11373_v7 = vmax.f32 %v11308_v61, %v18751_v0  ;;  %v11182_v16 = vmax.f32 %v11117_v1, %v18751_v0 }
 0x969   : > { %v11118_v1 = vmax.f32 %v11054_v47, %v13422_v28 }
 0x96b   : > { %13453 = vmatmul.msk.f32.gmra.mxu1 %vm524_vm0, %v11499_v20  ;;  %v9598_v48 = vpop.f32.mrf.mxu0  ;;  %v13391_v20 = vld [vmem:[%s18502_s21 + $0xc9] sm:$0xff] }
 0x96c   : > { %v9640_v32 = vadd.f32 %v9598_v48, %v18534_v63  ;;  %v11437_v9 = vmax.f32 %v11373_v7, %v13391_v20  ;;  %v18768_v48 = vld [vmem:[%s18502_s21 + $0xd8] sm:$0xff] }
 0x96d   : > { %13229 = vmatmul.msk.f32.gmra.mxu0 %vm3837_vm2, %v10481_v44  ;;  %v9947_v44 = vld [vmem:[#allocation3 + $0x1a2] sm:$0xff] }
 0x96e   : > { %v18755_v34 = vadd.f32 %v9873_v38, %v9640_v32  ;;  %v11309_v38 = vmax.f32 %v11245_v53, %v13422_v28  ;;  %v18771_v39 = vpop.f32.mrf.mxu2  ;;  %v10482_v32 = vld [vmem:[#allocation3 + $0xf4] sm:$0xff]  ;;  %v13392_v53 = vld [vmem:[%s18502_s21 + $0xd9] sm:$0xff] }
 0x96f   : > { %13178 = vmatmul.msk.f32.gmra.mxu2 %vm3837_vm2, %v9946_v2  ;;  %13211 = vmatmul.msk.f32.gmra.mxu3 %vm3837_vm2, %v10221_v30  ;;  %v11246_v2 = vmax.f32 %v11182_v16, %v13391_v20  ;;  %v11501_v30 = vmax.f32 %v11437_v9, %v13423_v17  ;;  %v18781_v16 = vpop.f32.mrf.mxu3  ;;  %v9948_v9 = vld [vmem:[#allocation3 + $0x1b2] sm:$0xff] }
 0x970   : > { %20131 = vst [vmem:[#allocation61_spill] sm:$0xff] %v18755_v34  ;;  %v9876_v63 = vpop.f32.mrf.mxu1  ;;  %v11374_v7 = vmax.f32 %v11309_v38, %v18768_v48 }
 0x972   : > { %v11438_v14 = vmax.f32 %v11374_v7, %v13392_v53  ;;  %v13393_v7 = vld [vmem:[%s18502_s21 + $0xe1] sm:$0xff] }
 0x973   : > { %13454 = vmatmul.msk.f32.gmra.mxu1 %vm524_vm0, %v11500_v6  ;;  %v9601_v13 = vpop.f32.mrf.mxu0  ;;  %v10222_v6 = vld [vmem:[#allocation3 + $0x1a3] sm:$0xff] }
 0x974   : > { %v9641_v61 = vadd.f32 %v9601_v13, %v18551_v5  ;;  %v11310_v13 = vmax.f32 %v11246_v2, %v13423_v17  ;;  %v11055_v2 = vmax.f32 %v18751_v0, %v13391_v20  ;;  %v13425_v0 = vld [vmem:[%s18502_s21 + $0xe2] sm:$0xff] }
 0x975   : > { %13230 = vmatmul.msk.f32.gmra.mxu0 %vm3837_vm2, %v10482_v32  ;;  %v13424_v32 = vld [vmem:[%s18502_s21 + $0xda] sm:$0xff] }
 0x976   : > { %v18774_v8 = vadd.f32 %v9876_v63, %v9641_v61  ;;  %v11183_v63 = vmax.f32 %v11118_v1, %v18768_v48  ;;  %v11375_v28 = vmax.f32 %v11310_v13, %v18785_v57 }
 0x977   : > { %13179 = vmatmul.msk.f32.gmra.mxu2 %vm3837_vm2, %v9947_v44  ;;  %13212 = vmatmul.msk.f32.gmra.mxu3 %vm3837_vm2, %v10222_v6  ;;  %v10223_v44 = vld [vmem:[#allocation3 + $0x1b3] sm:$0xff]  ;;  %v10483_v6 = vld [vmem:[#allocation3 + $0xfc] sm:$0xff]  ;;  %v18803_v13 = vpop.f32.mrf.mxu3 }
 0x978   : > { %20132 = vst [vmem:[#allocation65_spill] sm:$0xff] %v18774_v8  ;;  %v9879_v5 = vpop.f32.mrf.mxu1  ;;  %v11247_v1 = vmax.f32 %v11183_v63, %v13392_v53  ;;  %v18797_v8 = vpop.f32.mrf.mxu2  ;;  %v11439_v34 = vmax.f32 %v11375_v28, %v13393_v7 }
 0x97a   : > { %v11311_v20 = vmax.f32 %v11247_v1, %v13424_v32 }
 0x97b   : > { %13455 = vmatmul.msk.f32.gmra.mxu1 %vm524_vm0, %v11501_v30  ;;  %v9604_v61 = vpop.f32.mrf.mxu0  ;;  %v11502_v30 = vmax.f32 %v11438_v14, %v13424_v32  ;;  %v9949_v14 = vld [vmem:[#allocation3 + $0x1ba] sm:$0xff] }
 0x97c   : > { %v9642_v38 = vadd.f32 %v9604_v61, %v18568_v3  ;;  %v11119_v61 = vmax.f32 %v11055_v2, %v13423_v17  ;;  %v11056_v17 = vmax.f32 %v18768_v48, %v13392_v53 }
 0x97d   : > { %13231 = vmatmul.msk.f32.gmra.mxu0 %vm3837_vm2, %v10483_v6  ;;  %v10224_v6 = vld [vmem:[#allocation3 + $0x1bb] sm:$0xff] }
 0x97e   : > { %v18792_v47 = vadd.f32 %v9879_v5, %v9642_v38  ;;  %v11184_v5 = vmax.f32 %v11119_v61, %v18785_v57  ;;  %v18806_v38 = vld [vmem:[%s18502_s21 + $0xf0] sm:$0xff]  ;;  %v11120_v61 = vmax.f32 %v11056_v17, %v13424_v32  ;;  %v18829_v32 = vld [vmem:[%s19442_s13] ss:$0 sm:$0xff]  ;;  %v10485_v17 = vld [vmem:[#allocation3 + $0x114] sm:$0xff] }
 0x97f   : > { %13180 = vmatmul.msk.f32.gmra.mxu2 %vm3837_vm2, %v9948_v9  ;;  %13213 = vmatmul.msk.f32.gmra.mxu3 %vm3837_vm2, %v10223_v44  ;;  %v11503_v44 = vmax.f32 %v11439_v34, %v13425_v0  ;;  %v11376_v2 = vmax.f32 %v11311_v20, %v18806_v38 }
 0x980   : > { %20133 = vst [vmem:[#allocation62_spill] sm:$0xff] %v18792_v47  ;;  %v9882_v3 = vpop.f32.mrf.mxu1  ;;  %v10484_v47 = vld [vmem:[#allocation3 + $0x10c] sm:$0xff]  ;;  %v11185_v20 = vmax.f32 %v11120_v61, %v18806_v38 }
 0x983   : > { %13456 = vmatmul.msk.f32.gmra.mxu1 %vm524_vm0, %v11502_v30  ;;  %v9607_v9 = vpop.f32.mrf.mxu0  ;;  %v11248_v30 = vmax.f32 %v11184_v5, %v13393_v7 }
 0x984   : > { %v9643_v63 = vadd.f32 %v9607_v9, %v18585_v54  ;;  %v13394_v54 = vld [vmem:[%s18502_s21 + $0xf1] sm:$0xff]  ;;  %v18817_v9 = vpop.f32.mrf.mxu2 }
 0x985   : > { %13232 = vmatmul.msk.f32.gmra.mxu0 %vm3837_vm2, %v10484_v47  ;;  %v11440_v34 = vmax.f32 %v11376_v2, %v13394_v54  ;;  %v11312_v48 = vmax.f32 %v11248_v30, %v13425_v0  ;;  %v18822_v47 = vld [vmem:[%s18502_s21 + $0xf8] sm:$0xff]  ;;  %v11057_v2 = vmax.f32 %v18785_v57, %v13393_v7  ;;  %v18848_v7 = vld [vmem:[%s19440_s11] ss:$0 sm:$0xff] }
 0x986   : > { %v18810_v28 = vadd.f32 %v9882_v3, %v9643_v63  ;;  %v9950_v3 = vld [vmem:[#allocation3 + $0x1ca] sm:$0xff]  ;;  %v13426_v63 = vld [vmem:[%s18502_s21 + $0xf2] sm:$0xff] }
 0x987   : > { %13181 = vmatmul.msk.f32.gmra.mxu2 %vm3837_vm2, %v9949_v14  ;;  %13214 = vmatmul.msk.f32.gmra.mxu3 %vm3837_vm2, %v10224_v6  ;;  %v10225_v14 = vld [vmem:[#allocation3 + $0x1cb] sm:$0xff]  ;;  %v10163_v6 = vadd.f32 %v18681_v55, %v18367_v40  ;;  %v11377_v61 = vmax.f32 %v11312_v48, %v18822_v47  ;;  %v11249_v40 = vmax.f32 %v11185_v20, %v13394_v54 }
 0x988   : > { %20134 = vst [vmem:[#allocation66_spill] sm:$0xff] %v18810_v28  ;;  %v9885_v1 = vpop.f32.mrf.mxu1  ;;  %v13395_v28 = vld [vmem:[%s18502_s21 + $0xf9] sm:$0xff]  ;;  %v11121_v55 = vmax.f32 %v11057_v2, %v13425_v0  ;;  %v10226_v2 = vld [vmem:[#allocation3 + $0x1d3] sm:$0xff] }
 0x989   : > { %v10438_v57 = vadd.f32 %v18690_v41, %v10163_v6  ;;  %v13427_v20 = vld [vmem:[%s18502_s21 + $0xfa] sm:$0xff]  ;;  %v11313_v0 = vmax.f32 %v11249_v40, %v13426_v63  ;;  %v18857_v41 = vld [vmem:[%s18502_s21 + $0x108] sm:$0xff]  ;;  %v11058_v6 = vmax.f32 %v18806_v38, %v13394_v54 }
 0x98b   : > { %13457 = vmatmul.msk.f32.gmra.mxu1 %vm524_vm0, %v11503_v44  ;;  %v9610_v53 = vpop.f32.mrf.mxu0  ;;  %v18833_v44 = vpop.f32.mrf.mxu3  ;;  %v11122_v54 = vmax.f32 %v11058_v6, %v13426_v63  ;;  %v11059_v6 = vmax.f32 %v18822_v47, %v13395_v28 }
 0x98c   : > { %v9644_v5 = vadd.f32 %v9610_v53, %v18603_v33  ;;  %v11504_v33 = vmax.f32 %v11440_v34, %v13426_v63  ;;  %v11441_v34 = vmax.f32 %v11377_v61, %v13395_v28  ;;  %v18851_v48 = vpop.f32.mrf.mxu2  ;;  %v18877_v63 = vld [vmem:[%s18502_s21 + $0x110] sm:$0xff] }
 0x98d   : > { %13233 = vmatmul.msk.f32.gmra.mxu0 %vm3837_vm2, %v10485_v17 }
 0x98e   : > { %v18836_v30 = vadd.f32 %v9885_v1, %v9644_v5  ;;  %v9951_v5 = vld [vmem:[#allocation3 + $0x1d2] sm:$0xff] }
 0x98f   : > { %13182 = vmatmul.msk.f32.gmra.mxu2 %vm3837_vm2, %v9950_v3  ;;  %13215 = vmatmul.msk.f32.gmra.mxu3 %vm3837_vm2, %v10225_v14  ;;  %v11186_v14 = vmax.f32 %v11121_v55, %v18822_v47 }
 0x990   : > { %v11639_v53 = vpop.f32.mrf.mxu1 }
 0x991   : > { %v11640_v37 = vadd.f32 %v18829_v32, %v11639_v53  ;;  %v11505_v53 = vmax.f32 %v11441_v34, %v13427_v20  ;;  %v11250_v38 = vmax.f32 %v11186_v14, %v13395_v28  ;;  %v13428_v14 = vld [vmem:[%s18502_s21 + $0x10a] sm:$0xff] }
 0x993   : > { %v11735_v1 = vmax.f32 %v11640_v37, 0.0  ;;  %13458 = vmatmul.msk.f32.gmra.mxu1 %vm524_vm0, %v11504_v33  ;;  %v10617_v3 = vpop.f32.mrf.mxu0  ;;  %v10486_v37 = vld [vmem:[#allocation3 + $0x124] sm:$0xff]  ;;  %v10164_v33 = vadd.f32 %v18705_v36, %v18378_v25  ;;  %v18865_v40 = vpop.f32.mrf.mxu3  ;;  %v13396_v25 = vld [vmem:[%s18502_s21 + $0x109] sm:$0xff] }
 0x994   : > { %v10713_v17 = vadd.f32 %v10617_v3, %v10438_v57  ;;  %v11378_v57 = vmax.f32 %v11313_v0, %v18857_v41 }
 0x995   : > { %11799 = vrot.lane.b32.xlu1 %v11735_v1, %s13644_s15  ;;  %13234 = vmatmul.msk.f32.gmra.mxu0 %vm3837_vm2, %v10486_v37  ;;  %v10439_v36 = vadd.f32 %v18711_v19, %v10164_v33  ;;  %v18879_v37 = vpop.f32.mrf.mxu2  ;;  %v10487_v19 = vld [vmem:[#allocation3 + $0x12c] sm:$0xff]  ;;  %v10165_v33 = vadd.f32 %v18726_v46, %v18390_v58 }
 0x996   : > { %v10749_v61 = vadd.f32 %v18848_v7, %v10713_v17  ;;  %v11314_v17 = vmax.f32 %v11250_v38, %v13427_v20 }
 0x997   : > { %13183 = vmatmul.msk.f32.gmra.mxu2 %vm3837_vm2, %v9951_v5  ;;  %13216 = vmatmul.msk.f32.gmra.mxu3 %vm3837_vm2, %v10226_v2  ;;  %v11442_v5 = vmax.f32 %v11378_v57, %v13396_v25  ;;  %v11187_v2 = vmax.f32 %v11122_v54, %v18857_v41  ;;  %v10440_v28 = vadd.f32 %v18735_v23, %v10165_v33  ;;  %v10488_v23 = vld [vmem:[#allocation3 + $0x13c] sm:$0xff] }
 0x998   : > { %v11642_v55 = vpop.f32.mrf.mxu1  ;;  %v10781_v1 = vmax.f32 %v10749_v61, 0.0  ;;  %v11379_v38 = vmax.f32 %v11314_v17, %v18877_v63 }
 0x999   : > { %v11643_v34 = vadd.f32 %v18829_v32, %v11642_v55  ;;  %v11506_v57 = vmax.f32 %v11442_v5, %v13428_v14  ;;  %v11251_v54 = vmax.f32 %v11187_v2, %v13396_v25  ;;  %v13429_v2 = vld [vmem:[%s18502_s21 + $0x112] sm:$0xff] }
 0x99a   : > { %10845 = vrot.lane.b32.xlu2 %v10781_v1, %s13645_s18  ;;  %v11123_v1 = vmax.f32 %v11059_v6, %v13427_v20  ;;  %v10166_v6 = vadd.f32 %v18748_v42, %v18402_v59 }
 0x99b   : > { %13459 = vmatmul.msk.f32.gmra.mxu1 %vm524_vm0, %v11505_v53  ;;  %v10620_v3 = vpop.f32.mrf.mxu0  ;;  %v11736_v53 = vmax.f32 %v11643_v34, 0.0  ;;  %v18892_v46 = vpop.f32.mrf.mxu3  ;;  %v11315_v5 = vmax.f32 %v11251_v54, %v13428_v14 }
 0x99c   : > { %v10714_v0 = vadd.f32 %v10620_v3, %v10439_v36  ;;  %v13397_v3 = vld [vmem:[%s18502_s21 + $0x111] sm:$0xff]  ;;  %v11188_v17 = vmax.f32 %v11123_v1, %v18877_v63 }
 0x99d   : > { %13235 = vmatmul.msk.f32.gmra.mxu0 %vm3837_vm2, %v10487_v19  ;;  %v11443_v34 = vmax.f32 %v11379_v38, %v13397_v3  ;;  %v11060_v19 = vmax.f32 %v18857_v41, %v13396_v25  ;;  %v13398_v41 = vld [vmem:[%s18502_s21 + $0x121] sm:$0xff]  ;;  %v10441_v25 = vadd.f32 %v18760_v15, %v10166_v6  ;;  %v10489_v15 = vld [vmem:[#allocation3 + $0x144] sm:$0xff] }
 0x99e   : > { %v10750_v61 = vadd.f32 %v18848_v7, %v10714_v0  ;;  %v18898_v0 = vld [vmem:[%s18502_s21 + $0x120] sm:$0xff]  ;;  %v11252_v54 = vmax.f32 %v11188_v17, %v13397_v3 }
 0x99f   : > { %v11380_v38 = vmax.f32 %v11315_v5, %v18898_v0  ;;  %v11124_v1 = vmax.f32 %v11060_v19, %v13428_v14  ;;  %v13430_v14 = vld [vmem:[%s18502_s21 + $0x122] sm:$0xff] }
 0x9a0   : > { %v11645_v55 = vpop.f32.mrf.mxu1  ;;  %v10782_v36 = vmax.f32 %v10750_v61, 0.0  ;;  %v18917_v5 = vld [vmem:[%s18502_s21 + $0x128] sm:$0xff] }
 0x9a1   : > { %v11646_v58 = vadd.f32 %v18829_v32, %v11645_v55 }
 0x9a2   : > { %10847 = vrot.lane.b32.xlu0 %v10782_v36, %s13645_s18  ;;  %11801 = vrot.lane.b32.xlu2 %v11736_v53, %s13644_s15  ;;  %v18905_v53 = vpop.f32.mrf.mxu2 }
 0x9a3   : > { %v10623_v47 = vpop.f32.mrf.mxu0  ;;  %13460 = vmatmul.msk.f32.gmra.mxu1 %vm524_vm0, %v11506_v57  ;;  %v11737_v61 = vmax.f32 %v11646_v58, 0.0  ;;  %v11507_v57 = vmax.f32 %v11443_v34, %v13429_v2  ;;  %v11316_v58 = vmax.f32 %v11252_v54, %v13429_v2  ;;  %v18919_v17 = vpop.f32.mrf.mxu3 }
 0x9a4   : > { %v10715_v20 = vadd.f32 %v10623_v47, %v10440_v28  ;;  %v11444_v28 = vmax.f32 %v11380_v38, %v13398_v41  ;;  %v11189_v47 = vmax.f32 %v11124_v1, %v18898_v0  ;;  %v13399_v1 = vld [vmem:[%s18502_s21 + $0x129] sm:$0xff] }
 0x9a5   : > { %13236 = vmatmul.msk.f32.gmra.mxu0 %vm3837_vm2, %v10488_v23  ;;  %v10167_v23 = vadd.f32 %v18771_v39, %v18414_v4 }
 0x9a6   : > { %v10751_v33 = vadd.f32 %v18848_v7, %v10715_v20  ;;  %v11061_v20 = vmax.f32 %v18877_v63, %v13397_v3 }
 0x9a7   : > { %v10442_v63 = vadd.f32 %v18781_v16, %v10167_v23  ;;  %v11062_v16 = vmax.f32 %v18898_v0, %v13398_v41  ;;  %v13400_v0 = vld [vmem:[%s18502_s21 + $0x139] sm:$0xff] }
 0x9a8   : > { %v11648_v55 = vpop.f32.mrf.mxu1  ;;  %v10783_v36 = vmax.f32 %v10751_v33, 0.0  ;;  %v11125_v38 = vmax.f32 %v11061_v20, %v13429_v2 }
 0x9a9   : > { %v11649_v59 = vadd.f32 %v18829_v32, %v11648_v55  ;;  %v11381_v55 = vmax.f32 %v11316_v58, %v18917_v5  ;;  %v10490_v58 = vld [vmem:[#allocation3 + $0x154] sm:$0xff] }
 0x9aa   : > { %10849 = vrot.lane.b32.xlu1 %v10783_v36, %s13645_s18  ;;  %11803 = vrot.lane.b32.xlu0 %v11737_v61, %s13644_s15  ;;  %v11508_v61 = vmax.f32 %v11444_v28, %v13430_v14  ;;  %v18928_v36 = vpop.f32.mrf.mxu2  ;;  %v18938_v28 = vld [vmem:[%s18502_s21 + $0x138] sm:$0xff] }
 0x9ab   : > { %v10626_v42 = vpop.f32.mrf.mxu0  ;;  %13461 = vmatmul.msk.f32.gmra.mxu1 %vm524_vm0, %v11507_v57  ;;  %v11738_v6 = vmax.f32 %v11649_v59, 0.0  ;;  %v11253_v57 = vmax.f32 %v11189_v47, %v13398_v41  ;;  %v11445_v3 = vmax.f32 %v11381_v55, %v13399_v1  ;;  %v11190_v59 = vmax.f32 %v11125_v38, %v18917_v5  ;;  %v18945_v20 = vpop.f32.mrf.mxu3 }
 0x9ac   : > { %v10716_v34 = vadd.f32 %v10626_v42, %v10441_v25  ;;  %v13431_v42 = vld [vmem:[%s18502_s21 + $0x12a] sm:$0xff]  ;;  %v10168_v47 = vadd.f32 %v18797_v8, %v18426_v26 }
 0x9ad   : > { %13237 = vmatmul.msk.f32.gmra.mxu0 %vm3837_vm2, %v10489_v15  ;;  %v11317_v25 = vmax.f32 %v11253_v57, %v13430_v14 }
 0x9ae   : > { %v10752_v19 = vadd.f32 %v18848_v7, %v10716_v34  ;;  %v10443_v41 = vadd.f32 %v18803_v13, %v10168_v47  ;;  %v10491_v13 = vld [vmem:[#allocation3 + $0x15c] sm:$0xff] }
 0x9b0   : > { %v11651_v33 = vpop.f32.mrf.mxu1  ;;  %v10784_v54 = vmax.f32 %v10752_v19, 0.0  ;;  %v11509_v19 = vmax.f32 %v11445_v3, %v13431_v42  ;;  %v11063_v3 = vmax.f32 %v18917_v5, %v13399_v1 }
 0x9b1   : > { %v11652_v4 = vadd.f32 %v18829_v32, %v11651_v33  ;;  %v11254_v33 = vmax.f32 %v11190_v59, %v13399_v1 }
 0x9b2   : > { %10851 = vrot.lane.b32.xlu2 %v10784_v54, %s13645_s18  ;;  %11805 = vrot.lane.b32.xlu1 %v11738_v6, %s13644_s15  ;;  %v11382_v6 = vmax.f32 %v11317_v25, %v18938_v28  ;;  %v18953_v8 = vpop.f32.mrf.mxu2  ;;  %v10169_v25 = vadd.f32 %v18817_v9, %v18438_v52 }
 0x9b3   : > { %v10629_v39 = vpop.f32.mrf.mxu0  ;;  %13462 = vmatmul.msk.f32.gmra.mxu1 %vm524_vm0, %v11508_v61  ;;  %v11739_v15 = vmax.f32 %v11652_v4, 0.0  ;;  %v11126_v61 = vmax.f32 %v11062_v16, %v13430_v14  ;;  %v11318_v54 = vmax.f32 %v11254_v33, %v13431_v42  ;;  %v13432_v4 = vld [vmem:[%s18502_s21 + $0x13a] sm:$0xff] }
 0x9b4   : > { %v10717_v2 = vadd.f32 %v10629_v39, %v10442_v63  ;;  %v11446_v38 = vmax.f32 %v11382_v6, %v13400_v0  ;;  %v18959_v39 = vld [vmem:[%s18502_s21 + $0x140] sm:$0xff]  ;;  %v18968_v6 = vpop.f32.mrf.mxu3  ;;  %v10444_v5 = vadd.f32 %v18833_v44, %v10169_v25 }
 0x9b5   : > { %13238 = vmatmul.msk.f32.gmra.mxu0 %vm3837_vm2, %v10490_v58  ;;  %v11191_v63 = vmax.f32 %v11126_v61, %v18938_v28  ;;  %v11383_v47 = vmax.f32 %v11318_v54, %v18959_v39  ;;  %v10492_v44 = vld [vmem:[#allocation3 + $0x16c] sm:$0xff] }
 0x9b6   : > { %v10753_v34 = vadd.f32 %v18848_v7, %v10717_v2  ;;  %v11510_v16 = vmax.f32 %v11446_v38, %v13432_v4  ;;  %v10170_v38 = vadd.f32 %v18851_v48, %v18450_v49 }
 0x9b8   : > { %v11654_v23 = vpop.f32.mrf.mxu1  ;;  %v10785_v55 = vmax.f32 %v10753_v34, 0.0  ;;  %v11255_v34 = vmax.f32 %v11191_v63, %v13400_v0 }
 0x9b9   : > { %v11655_v26 = vadd.f32 %v18829_v32, %v11654_v23 }
 0x9ba   : > { %10853 = vrot.lane.b32.xlu0 %v10785_v55, %s13645_s18  ;;  %11807 = vrot.lane.b32.xlu2 %v11739_v15, %s13644_s15  ;;  %v11127_v15 = vmax.f32 %v11063_v3, %v13431_v42  ;;  %v11319_v33 = vmax.f32 %v11255_v34, %v13432_v4  ;;  %v13433_v55 = vld [vmem:[%s18502_s21 + $0x142] sm:$0xff] }
 0x9bb   : > { %v10632_v57 = vpop.f32.mrf.mxu0  ;;  %13463 = vmatmul.msk.f32.gmra.mxu1 %vm524_vm0, %v11509_v19  ;;  %v11740_v2 = vmax.f32 %v11655_v26, 0.0  ;;  %v13401_v19 = vld [vmem:[%s18502_s21 + $0x141] sm:$0xff]  ;;  %v18980_v26 = vpop.f32.mrf.mxu2 }
 0x9bc   : > { %v10718_v14 = vadd.f32 %v10632_v57, %v10443_v41  ;;  %v11447_v1 = vmax.f32 %v11383_v47, %v13401_v19  ;;  %v11192_v61 = vmax.f32 %v11127_v15, %v18959_v39  ;;  %v18978_v41 = vld [vmem:[%s18502_s21 + $0x150] sm:$0xff]  ;;  %v11064_v57 = vmax.f32 %v18938_v28, %v13400_v0  ;;  %v18993_v48 = vpop.f32.mrf.mxu3 }
 0x9bd   : > { %13239 = vmatmul.msk.f32.gmra.mxu0 %vm3837_vm2, %v10491_v13  ;;  %v11384_v3 = vmax.f32 %v11319_v33, %v18978_v41  ;;  %v10445_v28 = vadd.f32 %v18865_v40, %v10170_v38  ;;  %v13434_v15 = vld [vmem:[%s18502_s21 + $0x152] sm:$0xff]  ;;  %v10493_v40 = vld [vmem:[#allocation3 + $0x174] sm:$0xff] }
 0x9be   : > { %v10754_v59 = vadd.f32 %v18848_v7, %v10718_v14  ;;  %v11511_v13 = vmax.f32 %v11447_v1, %v13433_v55  ;;  %v11256_v25 = vmax.f32 %v11192_v61, %v13401_v19 }
 0x9c0   : > { %v11657_v58 = vpop.f32.mrf.mxu1  ;;  %v10786_v23 = vmax.f32 %v10754_v59, 0.0  ;;  %v11128_v59 = vmax.f32 %v11064_v57, %v13432_v4  ;;  %v11320_v47 = vmax.f32 %v11256_v25, %v13433_v55  ;;  %v19021_v25 = vld [vmem:[%s18502_s21 + $0x168] sm:$0xff] }
 0x9c1   : > { %v11658_v52 = vadd.f32 %v18829_v32, %v11657_v58  ;;  %v13402_v58 = vld [vmem:[%s18502_s21 + $0x151] sm:$0xff] }
 0x9c2   : > { %10855 = vrot.lane.b32.xlu1 %v10786_v23, %s13645_s18  ;;  %11809 = vrot.lane.b32.xlu0 %v11740_v2, %s13644_s15  ;;  %v11193_v34 = vmax.f32 %v11128_v59, %v18978_v41  ;;  %v18999_v23 = vld [vmem:[%s18502_s21 + $0x158] sm:$0xff] }
 0x9c3   : > { %v10635_v9 = vpop.f32.mrf.mxu0  ;;  %13464 = vmatmul.msk.f32.gmra.mxu1 %vm524_vm0, %v11510_v16  ;;  %v11741_v63 = vmax.f32 %v11658_v52, 0.0  ;;  %v11448_v16 = vmax.f32 %v11384_v3, %v13402_v58  ;;  %v10171_v52 = vadd.f32 %v18879_v37, %v18462_v62  ;;  %v19006_v33 = vpop.f32.mrf.mxu2  ;;  %v13435_v3 = vld [vmem:[%s18502_s21 + $0x15a] sm:$0xff] }
 0x9c4   : > { %v10719_v42 = vadd.f32 %v10635_v9, %v10444_v5  ;;  %v11065_v5 = vmax.f32 %v18959_v39, %v13401_v19  ;;  %v11257_v57 = vmax.f32 %v11193_v34, %v13402_v58  ;;  %v19010_v39 = vld [vmem:[%s18502_s21 + $0x159] sm:$0xff] }
 0x9c5   : > { %13240 = vmatmul.msk.f32.gmra.mxu0 %vm3837_vm2, %v10492_v44  ;;  %v11385_v44 = vmax.f32 %v11320_v47, %v18999_v23  ;;  %v10446_v62 = vadd.f32 %v18892_v46, %v10171_v52  ;;  %v19023_v46 = vpop.f32.mrf.mxu3  ;;  %v10494_v59 = vld [vmem:[#allocation3 + $0x184] sm:$0xff]  ;;  %v19033_v52 = vld [vmem:[%s18502_s21 + $0x169] sm:$0xff] }
 0x9c6   : > { %v10755_v54 = vadd.f32 %v18848_v7, %v10719_v42  ;;  %v11512_v42 = vmax.f32 %v11448_v16, %v13434_v15  ;;  %v11129_v38 = vmax.f32 %v11065_v5, %v13433_v55 }
 0x9c8   : > { %v11660_v14 = vpop.f32.mrf.mxu1  ;;  %v10787_v2 = vmax.f32 %v10755_v54, 0.0 }
 0x9c9   : > { %v11661_v49 = vadd.f32 %v18829_v32, %v11660_v14  ;;  %v11321_v14 = vmax.f32 %v11257_v57, %v13434_v15  ;;  %v10173_v57 = vadd.f32 %v18928_v36, %v18486_v29 }
 0x9ca   : > { %10857 = vrot.lane.b32.xlu2 %v10787_v2, %s13645_s18  ;;  %11811 = vrot.lane.b32.xlu1 %v11741_v63, %s13644_s15  ;;  %v11449_v63 = vmax.f32 %v11385_v44, %v19010_v39  ;;  %v11066_v2 = vmax.f32 %v18978_v41, %v13402_v58  ;;  %v19046_v44 = vld [vmem:[%s18502_s21 + $0x170] sm:$0xff] }
 0x9cb   : > { %v10638_v0 = vpop.f32.mrf.mxu0  ;;  %13465 = vmatmul.msk.f32.gmra.mxu1 %vm524_vm0, %v11511_v13  ;;  %v11742_v1 = vmax.f32 %v11661_v49, 0.0  ;;  %v11194_v13 = vmax.f32 %v11129_v38, %v18999_v23  ;;  %v11386_v34 = vmax.f32 %v11321_v14, %v19021_v25  ;;  %v19035_v41 = vpop.f32.mrf.mxu2  ;;  %v10448_v29 = vadd.f32 %v18945_v20, %v10173_v57  ;;  %v10496_v20 = vld [vmem:[#allocation3 + $0x19c] sm:$0xff] }
 0x9cc   : > { %v10720_v4 = vadd.f32 %v10638_v0, %v10445_v28  ;;  %v10172_v28 = vadd.f32 %v18905_v53, %v18474_v56  ;;  %v11513_v47 = vmax.f32 %v11449_v63, %v13435_v3 }
 0x9cd   : > { %13241 = vmatmul.msk.f32.gmra.mxu0 %vm3837_vm2, %v10493_v40  ;;  %v11130_v40 = vmax.f32 %v11066_v2, %v13434_v15 }
 0x9ce   : > { %v10756_v9 = vadd.f32 %v18848_v7, %v10720_v4  ;;  %v11258_v4 = vmax.f32 %v11194_v13, %v19010_v39  ;;  %v10447_v56 = vadd.f32 %v18919_v17, %v10172_v28  ;;  %v10495_v17 = vld [vmem:[#allocation3 + $0x18c] sm:$0xff] }
 0x9cf   : > { %v11195_v15 = vmax.f32 %v11130_v40, %v19021_v25 }
 0x9d0   : > { %v11663_v61 = vpop.f32.mrf.mxu1  ;;  %v10788_v54 = vmax.f32 %v10756_v9, 0.0  ;;  %v11450_v9 = vmax.f32 %v11386_v34, %v19033_v52  ;;  %v11067_v34 = vmax.f32 %v18999_v23, %v19010_v39 }
 0x9d1   : > { %v11664_v37 = vadd.f32 %v18829_v32, %v11663_v61  ;;  %v11259_v14 = vmax.f32 %v11195_v15, %v19033_v52  ;;  %v13406_v15 = vld [vmem:[%s18502_s21 + $0x181] sm:$0xff] }
 0x9d2   : > { %10859 = vrot.lane.b32.xlu0 %v10788_v54, %s13645_s18  ;;  %11813 = vrot.lane.b32.xlu2 %v11742_v1, %s13644_s15  ;;  %v11322_v1 = vmax.f32 %v11258_v4, %v13435_v3  ;;  %v10174_v4 = vadd.f32 %v18953_v8, %v18504_v21 }
 0x9d3   : > { %v10641_v19 = vpop.f32.mrf.mxu0  ;;  %13466 = vmatmul.msk.f32.gmra.mxu1 %vm524_vm0, %v11512_v42  ;;  %v11743_v0 = vmax.f32 %v11664_v37, 0.0  ;;  %v13436_v42 = vld [vmem:[%s18502_s21 + $0x16a] sm:$0xff] }
 0x9d4   : > { %v10721_v55 = vadd.f32 %v10641_v19, %v10446_v62  ;;  %v19052_v62 = vpop.f32.mrf.mxu3  ;;  %v11514_v19 = vmax.f32 %v11450_v9, %v13436_v42  ;;  %v11387_v63 = vmax.f32 %v11322_v1, %v19046_v44  ;;  %v11131_v9 = vmax.f32 %v11067_v34, %v13435_v3 }
 0x9d5   : > { %13242 = vmatmul.msk.f32.gmra.mxu0 %vm3837_vm2, %v10494_v59  ;;  %v19063_v59 = vpop.f32.mrf.mxu2  ;;  %v10449_v39 = vadd.f32 %v18968_v6, %v10174_v4 }
 0x9d6   : > { %v10757_v49 = vadd.f32 %v18848_v7, %v10721_v55  ;;  %v19057_v55 = vld [vmem:[%s18502_s21 + $0x171] sm:$0xff]  ;;  %v11196_v23 = vmax.f32 %v11131_v9, %v19046_v44 }
 0x9d7   : > { %v11451_v28 = vmax.f32 %v11387_v63, %v19057_v55  ;;  %v10175_v63 = vadd.f32 %v18980_v26, %v18519_v31 }
 0x9d8   : > { %v11666_v16 = vpop.f32.mrf.mxu1  ;;  %v10789_v5 = vmax.f32 %v10757_v49, 0.0  ;;  %v11323_v49 = vmax.f32 %v11259_v14, %v13436_v42  ;;  %v11260_v3 = vmax.f32 %v11196_v23, %v19057_v55 }
 0x9d9   : > { %v11667_v53 = vadd.f32 %v18829_v32, %v11666_v16  ;;  %v19068_v16 = vld [vmem:[%s18502_s21 + $0x172] sm:$0xff]  ;;  %v10450_v31 = vadd.f32 %v18993_v48, %v10175_v63  ;;  %v10177_v63 = vadd.f32 %v19035_v41, %v18553_v45 }
 0x9da   : > { %10861 = vrot.lane.b32.xlu1 %v10789_v5, %s13645_s18  ;;  %11815 = vrot.lane.b32.xlu0 %v11743_v0, %s13644_s15  ;;  %v11324_v6 = vmax.f32 %v11260_v3, %v19068_v16 }
 0x9db   : > { %v10644_v58 = vpop.f32.mrf.mxu0  ;;  %13467 = vmatmul.msk.f32.gmra.mxu1 %vm524_vm0, %v11513_v47  ;;  %v11744_v54 = vmax.f32 %v11667_v53, 0.0  ;;  %v13374_v47 = vld [vmem:[%s18502_s21 + $0x180] sm:$0xff]  ;;  %v11515_v53 = vmax.f32 %v11451_v28, %v19068_v16 }
 0x9dc   : > { %v10722_v61 = vadd.f32 %v10644_v58, %v10447_v56  ;;  %v11388_v58 = vmax.f32 %v11323_v49, %v13374_v47 }
 0x9dd   : > { %13243 = vmatmul.msk.f32.gmra.mxu0 %vm3837_vm2, %v10495_v17 }
 0x9de   : > { %v10758_v38 = vadd.f32 %v18848_v7, %v10722_v61  ;;  %v19079_v61 = vpop.f32.mrf.mxu3  ;;  %v11452_v17 = vmax.f32 %v11388_v58, %v13406_v15 }
 0x9e0   : > { %v11669_v37 = vpop.f32.mrf.mxu1  ;;  %v10790_v13 = vmax.f32 %v10758_v38, 0.0  ;;  %v13438_v38 = vld [vmem:[%s18502_s21 + $0x182] sm:$0xff] }
 0x9e1   : > { %v11670_v36 = vadd.f32 %v18829_v32, %v11669_v37  ;;  %v10497_v37 = vld [vmem:[#allocation3 + $0x1a4] sm:$0xff] }
 0x9e2   : > { %10863 = vrot.lane.b32.xlu2 %v10790_v13, %s13645_s18  ;;  %11817 = vrot.lane.b32.xlu1 %v11744_v54, %s13644_s15  ;;  %v19089_v54 = vpop.f32.mrf.mxu2 }
 0x9e3   : > { %v10647_v2 = vpop.f32.mrf.mxu0  ;;  %13468 = vmatmul.msk.f32.gmra.mxu1 %vm524_vm0, %v11514_v19  ;;  %v11745_v5 = vmax.f32 %v11670_v36, 0.0  ;;  %v11068_v19 = vmax.f32 %v19021_v25, %v19033_v52 }
 0x9e4   : > { %v10723_v0 = vadd.f32 %v10647_v2, %v10448_v29  ;;  %v19099_v29 = vld [vmem:[%s18502_s21 + $0x188] sm:$0xff]  ;;  %v11516_v2 = vmax.f32 %v11452_v17, %v13438_v38  ;;  %v13408_v17 = vld [vmem:[%s18502_s21 + $0x199] sm:$0xff] }
 0x9e5   : > { %13244 = vmatmul.msk.f32.gmra.mxu0 %vm3837_vm2, %v10496_v20  ;;  %v11389_v28 = vmax.f32 %v11324_v6, %v19099_v29  ;;  %v11132_v49 = vmax.f32 %v11068_v19, %v13436_v42  ;;  %v19103_v20 = vld [vmem:[%s18502_s21 + $0x189] sm:$0xff]  ;;  %v13440_v6 = vld [vmem:[%s18502_s21 + $0x19a] sm:$0xff] }
 0x9e6   : > { %v10759_v40 = vadd.f32 %v18848_v7, %v10723_v0  ;;  %v19109_v52 = vpop.f32.mrf.mxu3  ;;  %v10498_v42 = vld [vmem:[#allocation3 + $0x1b4] sm:$0xff] }
 0x9e7   : > { %v11197_v25 = vmax.f32 %v11132_v49, %v13374_v47  ;;  %v11453_v4 = vmax.f32 %v11389_v28, %v19103_v20  ;;  %v10452_v49 = vadd.f32 %v19052_v62, %v10177_v63 }
 0x9e8   : > { %v11672_v56 = vpop.f32.mrf.mxu1  ;;  %v10791_v1 = vmax.f32 %v10759_v40, 0.0 }
 0x9e9   : > { %v11673_v21 = vadd.f32 %v18829_v32, %v11672_v56  ;;  %v11261_v40 = vmax.f32 %v11197_v25, %v13406_v15  ;;  %v10500_v25 = vld [vmem:[#allocation3 + $0x1cc] sm:$0xff] }
 0x9ea   : > { %10865 = vrot.lane.b32.xlu0 %v10791_v1, %s13645_s18  ;;  %11819 = vrot.lane.b32.xlu2 %v11745_v5, %s13644_s15  ;;  %v19114_v5 = vld [vmem:[%s18502_s21 + $0x18a] sm:$0xff]  ;;  %v13376_v1 = vld [vmem:[%s18502_s21 + $0x198] sm:$0xff]  ;;  %v19123_v23 = vpop.f32.mrf.mxu2 }
 0x9eb   : > { %v10650_v8 = vpop.f32.mrf.mxu0  ;;  %13469 = vmatmul.msk.f32.gmra.mxu1 %vm524_vm0, %v11515_v53  ;;  %v11746_v13 = vmax.f32 %v11673_v21, 0.0  ;;  %v11325_v56 = vmax.f32 %v11261_v40, %v13438_v38  ;;  %v10176_v53 = vadd.f32 %v19006_v33, %v18536_v50 }
 0x9ec   : > { %v10724_v57 = vadd.f32 %v10650_v8, %v10449_v39  ;;  %v11517_v39 = vmax.f32 %v11453_v4, %v19114_v5 }
 0x9ed   : > { %13245 = vmatmul.msk.f32.gmra.mxu0 %vm3837_vm2, %v10497_v37  ;;  %v11390_v21 = vmax.f32 %v11325_v56, %v13376_v1  ;;  %v10451_v3 = vadd.f32 %v19023_v46, %v10176_v53 }
 0x9ee   : > { %v10760_v14 = vadd.f32 %v18848_v7, %v10724_v57  ;;  %v10499_v57 = vld [vmem:[#allocation3 + $0x1bc] sm:$0xff]  ;;  %v19133_v19 = vpop.f32.mrf.mxu3 }
 0x9ef   : > { %v11454_v38 = vmax.f32 %v11390_v21, %v13408_v17  ;;  %v13377_v21 = vld [vmem:[%s18502_s21 + $0x1a0] sm:$0xff] }
 0x9f0   : > { %v11675_v36 = vpop.f32.mrf.mxu1  ;;  %v10792_v0 = vmax.f32 %v10760_v14, 0.0 }
 0x9f1   : > { %v11676_v26 = vadd.f32 %v18829_v32, %v11675_v36  ;;  %v11518_v36 = vmax.f32 %v11454_v38, %v13440_v6 }
 0x9f2   : > { %10867 = vrot.lane.b32.xlu1 %v10792_v0, %s13645_s18  ;;  %11821 = vrot.lane.b32.xlu0 %v11746_v13, %s13644_s15  ;;  %v19139_v28 = vpop.f32.mrf.mxu2 }
 0x9f3   : > { %v10653_v34 = vpop.f32.mrf.mxu0  ;;  %13470 = vmatmul.msk.f32.gmra.mxu1 %vm524_vm0, %v11516_v2  ;;  %v11747_v9 = vmax.f32 %v11676_v26, 0.0  ;;  %v11069_v26 = vmax.f32 %v19046_v44, %v19057_v55 }
 0x9f4   : > { %v10725_v47 = vadd.f32 %v10653_v34, %v10450_v31  ;;  %v10846_v48 = vpop.permute.xlu2 %10845  ;;  %v10178_v34 = vadd.f32 %v19063_v59, %v18570_v10 }
 0x9f5   : > { %10942 = vst.msk [vmem:[%s14017_s20] sm:$0xff] %vm10941_vm5, %v10846_v48  ;;  %13246 = vmatmul.msk.f32.gmra.mxu0 %vm3837_vm2, %v10498_v42  ;;  %v11133_v48 = vmax.f32 %v11069_v26, %v19068_v16 }
 0x9f6   : > { %v10761_v58 = vadd.f32 %v18848_v7, %v10725_v47  ;;  %v19152_v40 = vpop.f32.mrf.mxu3  ;;  %v10453_v10 = vadd.f32 %v19079_v61, %v10178_v34 }
 0x9f7   : > { %v11198_v44 = vmax.f32 %v11133_v48, %v19099_v29  ;;  %v10179_v29 = vadd.f32 %v19089_v54, %v18588_v12 }
 0x9f8   : > { %v11678_v15 = vpop.f32.mrf.mxu1  ;;  %v10793_v8 = vmax.f32 %v10761_v58, 0.0  ;;  %v10501_v58 = vld [vmem:[#allocation3 + $0x1d4] sm:$0xff] }
 0x9f9   : > { %v11679_v50 = vadd.f32 %v18829_v32, %v11678_v15  ;;  %v11262_v16 = vmax.f32 %v11198_v44, %v19103_v20  ;;  %v13409_v20 = vld [vmem:[%s18502_s21 + $0x1a1] sm:$0xff] }
 0x9fa   : > { %10869 = vrot.lane.b32.xlu2 %v10793_v8, %s13645_s18  ;;  %11823 = vrot.lane.b32.xlu1 %v11747_v9, %s13644_s15  ;;  %v19162_v59 = vpop.f32.mrf.mxu2 }
 0x9fb   : > { %v10656_v33 = vpop.f32.mrf.mxu0  ;;  %13471 = vmatmul.msk.f32.gmra.mxu1 %vm524_vm0, %v11517_v39  ;;  %v11748_v14 = vmax.f32 %v11679_v50, 0.0  ;;  %v11326_v61 = vmax.f32 %v11262_v16, %v19114_v5  ;;  %v13441_v50 = vld [vmem:[%s18502_s21 + $0x1a2] sm:$0xff]  ;;  %v10454_v5 = vadd.f32 %v19109_v52, %v10179_v29  ;;  %s11940_s21 = scalar_lea.hbm %s19443_s14, %s13480_s22 }
 0x9fc   : > { %v10726_v37 = vadd.f32 %v10656_v33, %v10451_v3  ;;  %v11802_v0 = vpop.permute.xlu2 %11801  ;;  %s11943_s26 = sshll.u32 %s11940_s21, 4  ;;  %s11944_s26 = int_to_ptr.hbm [resolvable:$true] %s11943_s26 }
 0x9fd   : > { %13247 = vmatmul.msk.f32.gmra.mxu0 %vm3837_vm2, %v10499_v57  ;;  %v11391_v17 = vmax.f32 %v11326_v61, %v13377_v21  ;;  %s13592_s28 = sshra.s32 %s11944_s26, 4  ;;  %s13593_s28 = int_to_ptr.hbm [resolvable:$true] %s13592_s28 }
 0x9fe   : > { %v10762_v46 = vadd.f32 %v18848_v7, %v10726_v37  ;;  %v10399_v33 = vpop.f32.mrf.mxu3  ;;  %s13594_s0 = scalar_lea.hbm %s13593_s28, 256  ;;  %p13599_p0 = scmp.lt.s32.totalorder %s13593_s28, %s19443_s14 }
 0x9ff   : > { %v11455_v57 = vmax.f32 %v11391_v17, %v13409_v20  ;;  %p13595_p11 = scmp.ne.s32.totalorder %s13593_s28, %s13594_s0 }
 0xa00   : > { %v11681_v13 = vpop.f32.mrf.mxu1  ;;  %v10794_v2 = vmax.f32 %v10762_v46, 0.0  ;;  %v10180_v46 = vadd.f32 %v19123_v23, %v18606_v11 }
 0xa01   : > { %v11682_v45 = vadd.f32 %v18829_v32, %v11681_v13  ;;  %v11519_v38 = vmax.f32 %v11455_v57, %v13441_v50  ;;  %p13596_p12 = pnand %p13595_p11, %p13761_p5 }
 0xa02   : > { %10871 = vrot.lane.b32.xlu0 %v10794_v2, %s13645_s18  ;;  %11825 = vrot.lane.b32.xlu2 %v11748_v14, %s13644_s15  ;;  %v10127_v63 = vpop.f32.mrf.mxu2  ;;  %v10455_v2 = vadd.f32 %v19133_v19, %v10180_v46 }
 0xa03   : > { %v10659_v41 = vpop.f32.mrf.mxu0  ;;  %13472 = vmatmul.msk.f32.gmra.mxu1 %vm524_vm0, %v11518_v36  ;;  %v11749_v42 = vmax.f32 %v11682_v45, 0.0  ;;  %p13597_p13 = pneg %p13596_p12 }
 0xa04   : > { %v10727_v31 = vadd.f32 %v10659_v41, %v10452_v49 }
 0xa05   : > { %13248 = vmatmul.msk.f32.gmra.mxu0 %vm3837_vm2, %v10500_v25 }
 0xa06   : > { %v10763_v62 = vadd.f32 %v18848_v7, %v10727_v31  ;;  %v10402_v41 = vpop.f32.mrf.mxu3  ;;  %v10181_v31 = vadd.f32 %v19139_v28, %v18619_v24 }
 0xa07   : > { %v11800_v4 = vpop.permute.xlu1 %11799 }
 0xa08   : > { %11896 = vst.msk [vmem:[%s14017_s20] sm:$0xff] %vm11895_vm6, %v11800_v4  ;;  %v11684_v47 = vpop.f32.mrf.mxu1  ;;  %v10795_v56 = vmax.f32 %v10763_v62, 0.0  ;;  %v10456_v4 = vadd.f32 %v19152_v40, %v10181_v31 }
 0xa09   : > { %v11685_v55 = vadd.f32 %v18829_v32, %v11684_v47 }
 0xa0a   : > { %10873 = vrot.lane.b32.xlu1 %v10795_v56, %s13645_s18  ;;  %11827 = vrot.lane.b32.xlu0 %v11749_v42, %s13644_s15  ;;  %v10130_v34 = vpop.f32.mrf.mxu2 }
 0xa0b   : > { %v10662_v53 = vpop.f32.mrf.mxu0  ;;  %v11750_v39 = vmax.f32 %v11685_v55, 0.0  ;;  %13473 = vmatmul.msk.f32.gmra.mxu1 %vm524_vm0, %v11519_v38 }
 0xa0c   : > { %v10728_v9 = vadd.f32 %v10662_v53, %v10453_v10  ;;  %v10852_v1 = vpop.permute.xlu2 %10851  ;;  %v10182_v10 = vadd.f32 %v19162_v59, %v18630_v60  ;;  %v10183_v60 = vadd.f32 %v10127_v63, %v18643_v27 }
 0xa0d   : > { %10945 = vst.msk [vmem:[%s14017_s20 + $0x18] sm:$0xff] %vm10941_vm5, %v10852_v1  ;;  %13249 = vmatmul.msk.f32.gmra.mxu0 %vm3837_vm2, %v10501_v58 }
 0xa0e   : > { %v10764_v15 = vadd.f32 %v18848_v7, %v10728_v9  ;;  %v10405_v28 = vpop.f32.mrf.mxu3  ;;  %v10457_v9 = vadd.f32 %v10399_v33, %v10182_v10 }
 0xa10   : > { %v11687_v8 = vpop.f32.mrf.mxu1  ;;  %v10796_v3 = vmax.f32 %v10764_v15, 0.0 }
 0xa11   : > { %v11688_v12 = vadd.f32 %v18829_v32, %v11687_v8 }
 0xa12   : > { %10875 = vrot.lane.b32.xlu2 %v10796_v3, %s13645_s18  ;;  %11829 = vrot.lane.b32.xlu1 %v11750_v39, %s13644_s15  ;;  %v10133_v16 = vpop.f32.mrf.mxu2  ;;  %v10458_v3 = vadd.f32 %v10402_v41, %v10183_v60 }
 0xa13   : > { %v10665_v54 = vpop.f32.mrf.mxu0  ;;  %v11751_v14 = vmax.f32 %v11688_v12, 0.0 }
 0xa14   : > { %v10729_v37 = vadd.f32 %v10665_v54, %v10454_v5  ;;  %v10848_v6 = vpop.permute.xlu0 %10847  ;;  %v11808_v49 = vpop.permute.xlu2 %11807  ;;  %v10184_v54 = vadd.f32 %v10130_v34, %v18654_v22 }
 0xa15   : > { %10943 = vst.msk [vmem:[%s14017_s20 + $0x8] sm:$0xff] %vm10941_vm5, %v10848_v6 }
 0xa16   : > { %v10765_v52 = vadd.f32 %v18848_v7, %v10729_v37  ;;  %11897 = vst.msk [vmem:[%s14017_s20 + $0x8] sm:$0xff] %vm11895_vm6, %v11802_v0  ;;  %v10408_v21 = vpop.f32.mrf.mxu3 }
 0xa18   : > { %v11690_v13 = vpop.f32.mrf.mxu1  ;;  %v10797_v36 = vmax.f32 %v10765_v52, 0.0  ;;  %v19232_v52 = vld [vmem:[%s19442_s13] ss:$0 sm:$0xff] }
 0xa19   : > { %v11691_v45 = vadd.f32 %v18829_v32, %v11690_v13 }
 0xa1a   : > { %10877 = vrot.lane.b32.xlu0 %v10797_v36, %s13645_s18  ;;  %11831 = vrot.lane.b32.xlu2 %v11751_v14, %s13644_s15  ;;  %v10136_v33 = vpop.f32.mrf.mxu2 }
 0xa1b   : > { %v10668_v25 = vpop.f32.mrf.mxu0  ;;  %v11752_v26 = vmax.f32 %v11691_v45, 0.0  ;;  %v10185_v45 = vadd.f32 %v10133_v16, %v18667_v43  ;;  %v10186_v43 = vadd.f32 %v10136_v33, %v18684_v18 }
 0xa1c   : > { %v10730_v11 = vadd.f32 %v10668_v25, %v10455_v2  ;;  %v10850_v23 = vpop.permute.xlu1 %10849  ;;  %v11804_v0 = vpop.permute.xlu0 %11803 }
 0xa1d   : > { %10944 = vst.msk [vmem:[%s14017_s20 + $0x10] sm:$0xff] %vm10941_vm5, %v10850_v23 }
 0xa1e   : > { %v10766_v19 = vadd.f32 %v18848_v7, %v10730_v11  ;;  %11898 = vst.msk [vmem:[%s14017_s20 + $0x10] sm:$0xff] %vm11895_vm6, %v11804_v0  ;;  %v10411_v46 = vpop.f32.mrf.mxu3  ;;  %v10460_v0 = vadd.f32 %v10408_v21, %v10185_v45 }
 0xa20   : > { %v10798_v62 = vmax.f32 %v10766_v19, 0.0  ;;  %v11693_v42 = vpop.f32.mrf.mxu1 }
 0xa21   : > { %v11694_v47 = vadd.f32 %v18829_v32, %v11693_v42 }
 0xa22   : > { %10879 = vrot.lane.b32.xlu1 %v10798_v62, %s13645_s18  ;;  %11833 = vrot.lane.b32.xlu0 %v11752_v26, %s13644_s15  ;;  %v10139_v2 = vpop.f32.mrf.mxu2 }
 0xa23   : > { %v10671_v48 = vpop.f32.mrf.mxu0  ;;  %v11753_v40 = vmax.f32 %v11694_v47, 0.0 }
 0xa24   : > { %v10731_v56 = vadd.f32 %v10671_v48, %v10456_v4  ;;  %v10858_v24 = vpop.permute.xlu2 %10857  ;;  %v11806_v44 = vpop.permute.xlu1 %11805 }
 0xa25   : > { %10948 = vst.msk [vmem:[%s14017_s20 + $0x30] sm:$0xff] %vm10941_vm5, %v10858_v24  ;;  %v10461_v24 = vadd.f32 %v10411_v46, %v10186_v43 }
 0xa26   : > { %v10767_v55 = vadd.f32 %v18848_v7, %v10731_v56  ;;  %11899 = vst.msk [vmem:[%s14017_s20 + $0x18] sm:$0xff] %vm11895_vm6, %v11806_v44  ;;  %v10414_v19 = vpop.f32.mrf.mxu3 }
 0xa28   : > { %v10799_v53 = vmax.f32 %v10767_v55, 0.0  ;;  %v11696_v58 = vpop.f32.mrf.mxu1 }
 0xa29   : > { %v11697_v1 = vadd.f32 %v18829_v32, %v11696_v58  ;;  %v10187_v58 = vadd.f32 %v10139_v2, %v18700_v35 }
 0xa2a   : > { %10881 = vrot.lane.b32.xlu2 %v10799_v53, %s13645_s18  ;;  %11835 = vrot.lane.b32.xlu1 %v11753_v40, %s13644_s15  ;;  %v10142_v47 = vpop.f32.mrf.mxu2 }
 0xa2b   : > { %v10674_v61 = vpop.f32.mrf.mxu0  ;;  %v11754_v39 = vmax.f32 %v11697_v1, 0.0 }
 0xa2c   : > { %v10732_v29 = vadd.f32 %v10674_v61, %v10457_v9  ;;  %v10854_v15 = vpop.permute.xlu0 %10853  ;;  %v11814_v20 = vpop.permute.xlu2 %11813 }
 0xa2d   : > { %10946 = vst.msk [vmem:[%s14017_s20 + $0x20] sm:$0xff] %vm10941_vm5, %v10854_v15  ;;  %v10462_v15 = vadd.f32 %v10414_v19, %v10187_v58 }
 0xa2e   : > { %v10768_v59 = vadd.f32 %v18848_v7, %v10732_v29  ;;  %11900 = vst.msk [vmem:[%s14017_s20 + $0x20] sm:$0xff] %vm11895_vm6, %v11808_v49  ;;  %v10417_v40 = vpop.f32.mrf.mxu3 }
 0xa30   : > { %v10800_v8 = vmax.f32 %v10768_v59, 0.0  ;;  %v11699_v17 = vpop.f32.mrf.mxu1 }
 0xa31   : > { %v11700_v50 = vadd.f32 %v18829_v32, %v11699_v17  ;;  %v10459_v32 = vadd.f32 %v10405_v28, %v10184_v54 }
 0xa32   : > { %10883 = vrot.lane.b32.xlu0 %v10800_v8, %s13645_s18  ;;  %11837 = vrot.lane.b32.xlu2 %v11754_v39, %s13644_s15  ;;  %v10145_v29 = vpop.f32.mrf.mxu2  ;;  %v10188_v8 = vadd.f32 %v10142_v47, %v18719_v51 }
 0xa33   : > { %v10677_v27 = vpop.f32.mrf.mxu0  ;;  %v11755_v37 = vmax.f32 %v11700_v50, 0.0 }
 0xa34   : > { %v10733_v57 = vadd.f32 %v10677_v27, %v10458_v3  ;;  %v10856_v5 = vpop.permute.xlu1 %10855  ;;  %v11810_v12 = vpop.permute.xlu0 %11809  ;;  %v10463_v27 = vadd.f32 %v10417_v40, %v10188_v8 }
 0xa35   : > { %10947 = vst.msk [vmem:[%s14017_s20 + $0x28] sm:$0xff] %vm10941_vm5, %v10856_v5 }
 0xa36   : > { %v10769_v38 = vadd.f32 %v18848_v7, %v10733_v57  ;;  %11901 = vst.msk [vmem:[%s14017_s20 + $0x28] sm:$0xff] %vm11895_vm6, %v11810_v12 }
 0xa38   : > { %v10801_v6 = vmax.f32 %v10769_v38, 0.0  ;;  %v11702_v63 = vpop.f32.mrf.mxu1  ;;  %v20135_v38 = vld [vmem:[#allocation59_spill] sm:$0xff] }
 0xa39   : > { %v11703_v22 = vadd.f32 %v19232_v52, %v11702_v63 }
 0xa3a   : > { %10885 = vrot.lane.b32.xlu1 %v10801_v6, %s13645_s18  ;;  %11839 = vrot.lane.b32.xlu0 %v11755_v37, %s13644_s15  ;;  %v10148_v5 = vpop.f32.mrf.mxu2  ;;  %v10189_v37 = vadd.f32 %v10145_v29, %v20135_v38 }
 0xa3b   : > { %v10680_v14 = vpop.f32.mrf.mxu0  ;;  %v11756_v25 = vmax.f32 %v11703_v22, 0.0 }
 0xa3c   : > { %v10734_v13 = vadd.f32 %v10680_v14, %v10459_v32  ;;  %v10864_v36 = vpop.permute.xlu2 %10863  ;;  %v11812_v49 = vpop.permute.xlu1 %11811 }
 0xa3d   : > { %10951 = vst.msk [vmem:[%s14017_s20 + $0x48] sm:$0xff] %vm10941_vm5, %v10864_v36 }
 0xa3e   : > { %v10770_v41 = vadd.f32 %v18848_v7, %v10734_v13  ;;  %11902 = vst.msk [vmem:[%s14017_s20 + $0x30] sm:$0xff] %vm11895_vm6, %v11812_v49  ;;  %v19250_v7 = vld [vmem:[%s19440_s11] ss:$0 sm:$0xff] }
 0xa40   : > { %v10802_v11 = vmax.f32 %v10770_v41, 0.0  ;;  %v11705_v23 = vpop.f32.mrf.mxu1 }
 0xa41   : > { %v11706_v31 = vadd.f32 %v19232_v52, %v11705_v23 }
 0xa42   : > { %10887 = vrot.lane.b32.xlu2 %v10802_v11, %s13645_s18  ;;  %11841 = vrot.lane.b32.xlu1 %v11756_v25, %s13644_s15  ;;  %v10151_v41 = vpop.f32.mrf.mxu2  ;;  %v20136_v11 = vld [vmem:[#allocation61_spill] sm:$0xff] }
 0xa43   : > { %v10683_v26 = vpop.f32.mrf.mxu0  ;;  %v11757_v4 = vmax.f32 %v11706_v31, 0.0  ;;  %v10190_v23 = vadd.f32 %v10148_v5, %v20136_v11 }
 0xa44   : > { %v10735_v34 = vadd.f32 %v10683_v26, %v10460_v0  ;;  %v10860_v62 = vpop.permute.xlu0 %10859  ;;  %v11820_v28 = vpop.permute.xlu2 %11819 }
 0xa45   : > { %10949 = vst.msk [vmem:[%s14017_s20 + $0x38] sm:$0xff] %vm10941_vm5, %v10860_v62 }
 0xa46   : > { %v10771_v42 = vadd.f32 %v19250_v7, %v10735_v34  ;;  %11903 = vst.msk [vmem:[%s14017_s20 + $0x38] sm:$0xff] %vm11895_vm6, %v11814_v20  ;;  %v10420_v20 = vpop.f32.mrf.mxu3 }
 0xa47   : > { %v10464_v14 = vadd.f32 %v10420_v20, %v10189_v37 }
 0xa48   : > { %v10803_v48 = vmax.f32 %v10771_v42, 0.0  ;;  %v11708_v56 = vpop.f32.mrf.mxu1 }
 0xa49   : > { %v11709_v18 = vadd.f32 %v19232_v52, %v11708_v56  ;;  %v20137_v56 = vld [vmem:[#allocation65_spill] sm:$0xff] }
 0xa4a   : > { %10889 = vrot.lane.b32.xlu0 %v10803_v48, %s13645_s18  ;;  %11843 = vrot.lane.b32.xlu2 %v11757_v4, %s13644_s15 }
 0xa4b   : > { %v10686_v44 = vpop.f32.mrf.mxu0  ;;  %v11758_v9 = vmax.f32 %v11709_v18, 0.0 }
 0xa4c   : > { %v10736_v10 = vadd.f32 %v10686_v44, %v10461_v24  ;;  %v10862_v55 = vpop.permute.xlu1 %10861  ;;  %v11816_v53 = vpop.permute.xlu0 %11815  ;;  %v10191_v24 = vadd.f32 %v10151_v41, %v20137_v56 }
 0xa4d   : > { %10950 = vst.msk [vmem:[%s14017_s20 + $0x40] sm:$0xff] %vm10941_vm5, %v10862_v55  ;;  %v10154_v44 = vpop.f32.mrf.mxu2 }
 0xa4e   : > { %v10772_v16 = vadd.f32 %v19250_v7, %v10736_v10  ;;  %11904 = vst.msk [vmem:[%s14017_s20 + $0x40] sm:$0xff] %vm11895_vm6, %v11816_v53  ;;  %v10423_v22 = vpop.f32.mrf.mxu3 }
 0xa4f   : > { %v10465_v62 = vadd.f32 %v10423_v22, %v10190_v23 }
 0xa50   : > { %v10804_v1 = vmax.f32 %v10772_v16, 0.0  ;;  %v11711_v61 = vpop.f32.mrf.mxu1 }
 0xa51   : > { %v11712_v60 = vadd.f32 %v19232_v52, %v11711_v61  ;;  %v20138_v61 = vld [vmem:[#allocation62_spill] sm:$0xff] }
 0xa52   : > { %10891 = vrot.lane.b32.xlu1 %v10804_v1, %s13645_s18  ;;  %11845 = vrot.lane.b32.xlu0 %v11758_v9, %s13644_s15  ;;  %v10192_v29 = vadd.f32 %v10154_v44, %v20138_v61 }
 0xa53   : > { %v10689_v59 = vpop.f32.mrf.mxu0  ;;  %v11759_v3 = vmax.f32 %v11712_v60, 0.0 }
 0xa54   : > { %v10737_v39 = vadd.f32 %v10689_v59, %v10462_v15  ;;  %v10870_v21 = vpop.permute.xlu2 %10869  ;;  %v11818_v35 = vpop.permute.xlu1 %11817 }
 0xa55   : > { %10954 = vst.msk [vmem:[%s14017_s20 + $0x60] sm:$0xff] %vm10941_vm5, %v10870_v21  ;;  %v10157_v21 = vpop.f32.mrf.mxu2 }
 0xa56   : > { %v10773_v17 = vadd.f32 %v19250_v7, %v10737_v39  ;;  %11905 = vst.msk [vmem:[%s14017_s20 + $0x48] sm:$0xff] %vm11895_vm6, %v11818_v35  ;;  %v10426_v34 = vpop.f32.mrf.mxu3 }
 0xa57   : > { %v10466_v40 = vadd.f32 %v10426_v34, %v10191_v24 }
 0xa58   : > { %v10805_v50 = vmax.f32 %v10773_v17, 0.0  ;;  %v11714_v33 = vpop.f32.mrf.mxu1 }
 0xa59   : > { %v11715_v57 = vadd.f32 %v19232_v52, %v11714_v33 }
 0xa5a   : > { %10893 = vrot.lane.b32.xlu2 %v10805_v50, %s13645_s18  ;;  %11847 = vrot.lane.b32.xlu1 %v11759_v3, %s13644_s15 }
 0xa5b   : > { %v10692_v12 = vpop.f32.mrf.mxu0  ;;  %v11760_v63 = vmax.f32 %v11715_v57, 0.0 }
 0xa5c   : > { %v10738_v54 = vadd.f32 %v10692_v12, %v10463_v27  ;;  %v10866_v51 = vpop.permute.xlu0 %10865  ;;  %v11826_v13 = vpop.permute.xlu2 %11825  ;;  %v20139_v27 = vld [vmem:[#allocation66_spill] sm:$0xff] }
 0xa5d   : > { %10952 = vst.msk [vmem:[%s14017_s20 + $0x50] sm:$0xff] %vm10941_vm5, %v10866_v51  ;;  %v10193_v57 = vadd.f32 %v10157_v21, %v20139_v27  ;;  %v10160_v37 = vpop.f32.mrf.mxu2 }
 0xa5e   : > { %v10774_v6 = vadd.f32 %v19250_v7, %v10738_v54  ;;  %11906 = vst.msk [vmem:[%s14017_s20 + $0x50] sm:$0xff] %vm11895_vm6, %v11820_v28  ;;  %v10429_v58 = vpop.f32.mrf.mxu3  ;;  %v10194_v22 = vadd.f32 %v10160_v37, %v18836_v30 }
 0xa5f   : > { %v10467_v35 = vadd.f32 %v10429_v58, %v10192_v29 }
 0xa60   : > { %v10806_v46 = vmax.f32 %v10774_v6, 0.0  ;;  %v11717_v32 = vpop.f32.mrf.mxu1 }
 0xa61   : > { %v11718_v36 = vadd.f32 %v19232_v52, %v11717_v32 }
 0xa62   : > { %10895 = vrot.lane.b32.xlu0 %v10806_v46, %s13645_s18  ;;  %11849 = vrot.lane.b32.xlu2 %v11760_v63, %s13644_s15 }
 0xa63   : > { %v10695_v2 = vpop.f32.mrf.mxu0  ;;  %v11761_v31 = vmax.f32 %v11718_v36, 0.0 }
 0xa64   : > { %v10739_v49 = vadd.f32 %v10695_v2, %v10464_v14  ;;  %v10868_v45 = vpop.permute.xlu1 %10867  ;;  %v11822_v25 = vpop.permute.xlu0 %11821 }
 0xa65   : > { %10953 = vst.msk [vmem:[%s14017_s20 + $0x58] sm:$0xff] %vm10941_vm5, %v10868_v45 }
 0xa66   : > { %v10775_v0 = vadd.f32 %v19250_v7, %v10739_v49  ;;  %11907 = vst.msk [vmem:[%s14017_s20 + $0x58] sm:$0xff] %vm11895_vm6, %v11822_v25  ;;  %v10432_v50 = vpop.f32.mrf.mxu3 }
 0xa67   : > { %v10468_v51 = vadd.f32 %v10432_v50, %v10193_v57 }
 0xa68   : > { %v10807_v19 = vmax.f32 %v10775_v0, 0.0  ;;  %v11720_v26 = vpop.f32.mrf.mxu1 }
 0xa69   : > { %v11721_v43 = vadd.f32 %v19232_v52, %v11720_v26 }
 0xa6a   : > { %10897 = vrot.lane.b32.xlu1 %v10807_v19, %s13645_s18  ;;  %11851 = vrot.lane.b32.xlu0 %v11761_v31, %s13644_s15 }
 0xa6b   : > { %v10698_v42 = vpop.f32.mrf.mxu0  ;;  %v11762_v18 = vmax.f32 %v11721_v43, 0.0 }
 0xa6c   : > { %v10740_v4 = vadd.f32 %v10698_v42, %v10465_v62  ;;  %v10876_v47 = vpop.permute.xlu2 %10875  ;;  %v11824_v48 = vpop.permute.xlu1 %11823 }
 0xa6d   : > { %10957 = vst.msk [vmem:[%s14017_s20 + $0x78] sm:$0xff] %vm10941_vm5, %v10876_v47 }
 0xa6e   : > { %v10776_v28 = vadd.f32 %v19250_v7, %v10740_v4  ;;  %11908 = vst.msk [vmem:[%s14017_s20 + $0x60] sm:$0xff] %vm11895_vm6, %v11824_v48  ;;  %v10435_v36 = vpop.f32.mrf.mxu3 }
 0xa6f   : > { %v10469_v49 = vadd.f32 %v10435_v36, %v10194_v22 }
 0xa70   : > { %v10808_v10 = vmax.f32 %v10776_v28, 0.0  ;;  %v11723_v55 = vpop.f32.mrf.mxu1 }
 0xa71   : > { %v11724_v53 = vadd.f32 %v19232_v52, %v11723_v55 }
 0xa72   : > { %10899 = vrot.lane.b32.xlu2 %v10808_v10, %s13645_s18  ;;  %11853 = vrot.lane.b32.xlu1 %v11762_v18, %s13644_s15 }
 0xa73   : > { %v10701_v16 = vpop.f32.mrf.mxu0  ;;  %v11763_v60 = vmax.f32 %v11724_v53, 0.0 }
 0xa74   : > { %v10741_v9 = vadd.f32 %v10701_v16, %v10466_v40  ;;  %v10872_v1 = vpop.permute.xlu0 %10871  ;;  %v11832_v8 = vpop.permute.xlu2 %11831 }
 0xa75   : > { %10955 = vst.msk [vmem:[%s14017_s20 + $0x68] sm:$0xff] %vm10941_vm5, %v10872_v1 }
 0xa76   : > { %v10777_v15 = vadd.f32 %v19250_v7, %v10741_v9  ;;  %11909 = vst.msk [vmem:[%s14017_s20 + $0x68] sm:$0xff] %vm11895_vm6, %v11826_v13 }
 0xa78   : > { %v10809_v59 = vmax.f32 %v10777_v15, 0.0  ;;  %v11726_v39 = vpop.f32.mrf.mxu1 }
 0xa79   : > { %v11727_v19 = vadd.f32 %v19232_v52, %v11726_v39 }
 0xa7a   : > { %10901 = vrot.lane.b32.xlu0 %v10809_v59, %s13645_s18  ;;  %11855 = vrot.lane.b32.xlu2 %v11763_v60, %s13644_s15 }
 0xa7b   : > { %v10704_v17 = vpop.f32.mrf.mxu0  ;;  %v11764_v62 = vmax.f32 %v11727_v19, 0.0 }
 0xa7c   : > { %v10742_v3 = vadd.f32 %v10704_v17, %v10467_v35  ;;  %v10874_v20 = vpop.permute.xlu1 %10873  ;;  %v11828_v33 = vpop.permute.xlu0 %11827 }
 0xa7d   : > { %10956 = vst.msk [vmem:[%s14017_s20 + $0x70] sm:$0xff] %vm10941_vm5, %v10874_v20 }
 0xa7e   : > { %v10778_v5 = vadd.f32 %v19250_v7, %v10742_v3  ;;  %11910 = vst.msk [vmem:[%s14017_s20 + $0x70] sm:$0xff] %vm11895_vm6, %v11828_v33 }
 0xa80   : > { %v10810_v12 = vmax.f32 %v10778_v5, 0.0  ;;  %v11729_v54 = vpop.f32.mrf.mxu1 }
 0xa81   : > { %v11730_v38 = vadd.f32 %v19232_v52, %v11729_v54 }
 0xa82   : > { %10903 = vrot.lane.b32.xlu1 %v10810_v12, %s13645_s18 }
 0xa83   : > { %v10707_v6 = vpop.f32.mrf.mxu0  ;;  %v11765_v13 = vmax.f32 %v11730_v38, 0.0 }
 0xa84   : > { %v10743_v63 = vadd.f32 %v10707_v6, %v10468_v51  ;;  %v10882_v46 = vpop.permute.xlu2 %10881  ;;  %v11830_v32 = vpop.permute.xlu1 %11829 }
 0xa85   : > { %10960 = vst.msk [vmem:[%s14017_s20 + $0x90] sm:$0xff] %vm10941_vm5, %v10882_v46 }
 0xa86   : > { %v10779_v14 = vadd.f32 %v19250_v7, %v10743_v63  ;;  %11911 = vst.msk [vmem:[%s14017_s20 + $0x78] sm:$0xff] %vm11895_vm6, %v11830_v32 }
 0xa88   : > { %v10811_v2 = vmax.f32 %v10779_v14, 0.0  ;;  %v11732_v0 = vpop.f32.mrf.mxu1 }
 0xa89   : > { %v11733_v31 = vadd.f32 %v19232_v52, %v11732_v0 }
 0xa8a   : > { %10905 = vrot.lane.b32.xlu2 %v10811_v2, %s13645_s18  ;;  %11859 = vrot.lane.b32.xlu1 %v11765_v13, %s13644_s15 }
 0xa8b   : > { %v10710_v45 = vpop.f32.mrf.mxu0  ;;  %v11766_v34 = vmax.f32 %v11733_v31, 0.0 }
 0xa8c   : > { %v10744_v41 = vadd.f32 %v10710_v45, %v10469_v49  ;;  %v10878_v25 = vpop.permute.xlu0 %10877  ;;  %v11838_v23 = vpop.permute.xlu2 %11837 }
 0xa8d   : > { %10958 = vst.msk [vmem:[%s14017_s20 + $0x80] sm:$0xff] %vm10941_vm5, %v10878_v25 }
 0xa8e   : > { %v10780_v30 = vadd.f32 %v19250_v7, %v10744_v41  ;;  %11912 = vst.msk [vmem:[%s14017_s20 + $0x80] sm:$0xff] %vm11895_vm6, %v11832_v8 }
 0xa90   : > { %v10812_v11 = vmax.f32 %v10780_v30, 0.0 }
 0xa92   : > { %10907 = vrot.lane.b32.xlu0 %v10812_v11, %s13645_s18  ;;  %11861 = vrot.lane.b32.xlu2 %v11766_v34, %s13644_s15  ;;  %s13598_s18 = scalar_lea.hbm %s19443_s14, 512 }
 0xa93   : > { %p13600_p1 = scmp.lt.s32.totalorder %s13598_s18, %s13594_s0 }
 0xa94   : > { %v10880_v26 = vpop.permute.xlu1 %10879  ;;  %v11834_v7 = vpop.permute.xlu0 %11833 }
 0xa95   : > { %10959 = vst.msk [vmem:[%s14017_s20 + $0x88] sm:$0xff] %vm10941_vm5, %v10880_v26  ;;  %p13601_p2 = por %p13600_p1, %p13599_p0 }
 0xa96   : > { %11913 = vst.msk [vmem:[%s14017_s20 + $0x88] sm:$0xff] %vm11895_vm6, %v11834_v7 }
 0xa97   : > { %p13602_p3 = pnand %p13601_p2, %p13597_p13 }
 0xa9a   : > { %11857 = vrot.lane.b32.xlu0 %v11764_v62, %s13644_s15 }
 0xa9c   : > { %v10888_v43 = vpop.permute.xlu2 %10887  ;;  %v11836_v52 = vpop.permute.xlu1 %11835 }
 0xa9d   : > { %10963 = vst.msk [vmem:[%s14017_s20 + $0xa8] sm:$0xff] %vm10941_vm5, %v10888_v43 }
 0xa9e   : > { %11914 = vst.msk [vmem:[%s14017_s20 + $0x90] sm:$0xff] %vm11895_vm6, %v11836_v52 }
 0xaa4   : > { %v10884_v42 = vpop.permute.xlu0 %10883  ;;  %v11844_v4 = vpop.permute.xlu2 %11843 }
 0xaa5   : > { %10961 = vst.msk [vmem:[%s14017_s20 + $0x98] sm:$0xff] %vm10941_vm5, %v10884_v42 }
 0xaa6   : > { %11915 = vst.msk [vmem:[%s14017_s20 + $0x98] sm:$0xff] %vm11895_vm6, %v11838_v23 }
 0xaac   : > { %v10886_v47 = vpop.permute.xlu1 %10885  ;;  %v11840_v48 = vpop.permute.xlu0 %11839 }
 0xaad   : > { %10962 = vst.msk [vmem:[%s14017_s20 + $0xa0] sm:$0xff] %vm10941_vm5, %v10886_v47 }
 0xaae   : > { %11916 = vst.msk [vmem:[%s14017_s20 + $0xa0] sm:$0xff] %vm11895_vm6, %v11840_v48 }
 0xab4   : > { %v10894_v56 = vpop.permute.xlu2 %10893  ;;  %v11842_v24 = vpop.permute.xlu1 %11841 }
 0xab5   : > { %10966 = vst.msk [vmem:[%s14017_s20 + $0xc0] sm:$0xff] %vm10941_vm5, %v10894_v56 }
 0xab6   : > { %11917 = vst.msk [vmem:[%s14017_s20 + $0xa8] sm:$0xff] %vm11895_vm6, %v11842_v24 }
 0xabc   : > { %v10890_v28 = vpop.permute.xlu0 %10889  ;;  %v11850_v18 = vpop.permute.xlu2 %11849 }
 0xabd   : > { %10964 = vst.msk [vmem:[%s14017_s20 + $0xb0] sm:$0xff] %vm10941_vm5, %v10890_v28 }
 0xabe   : > { %11918 = vst.msk [vmem:[%s14017_s20 + $0xb0] sm:$0xff] %vm11895_vm6, %v11844_v4 }
 0xac4   : > { %v10892_v44 = vpop.permute.xlu1 %10891  ;;  %v11846_v10 = vpop.permute.xlu0 %11845 }
 0xac5   : > { %10965 = vst.msk [vmem:[%s14017_s20 + $0xb8] sm:$0xff] %vm10941_vm5, %v10892_v44 }
 0xac6   : > { %11919 = vst.msk [vmem:[%s14017_s20 + $0xb8] sm:$0xff] %vm11895_vm6, %v11846_v10 }
 0xacc   : > { %v10900_v55 = vpop.permute.xlu2 %10899  ;;  %v11848_v40 = vpop.permute.xlu1 %11847 }
 0xacd   : > { %10969 = vst.msk [vmem:[%s14017_s20 + $0xd8] sm:$0xff] %vm10941_vm5, %v10900_v55 }
 0xace   : > { %11920 = vst.msk [vmem:[%s14017_s20 + $0xc0] sm:$0xff] %vm11895_vm6, %v11848_v40 }
 0xad4   : > { %v10896_v53 = vpop.permute.xlu0 %10895  ;;  %v11856_v58 = vpop.permute.xlu2 %11855 }
 0xad5   : > { %10967 = vst.msk [vmem:[%s14017_s20 + $0xc8] sm:$0xff] %vm10941_vm5, %v10896_v53 }
 0xad6   : > { %11921 = vst.msk [vmem:[%s14017_s20 + $0xc8] sm:$0xff] %vm11895_vm6, %v11850_v18 }
 0xadc   : > { %v10898_v16 = vpop.permute.xlu1 %10897  ;;  %v11852_v9 = vpop.permute.xlu0 %11851 }
 0xadd   : > { %10968 = vst.msk [vmem:[%s14017_s20 + $0xd0] sm:$0xff] %vm10941_vm5, %v10898_v16 }
 0xade   : > { %11922 = vst.msk [vmem:[%s14017_s20 + $0xd0] sm:$0xff] %vm11895_vm6, %v11852_v9 }
 0xae4   : > { %v10906_v1 = vpop.permute.xlu2 %10905  ;;  %v11854_v61 = vpop.permute.xlu1 %11853 }
 0xae5   : > { %10972 = vst.msk [vmem:[%s14017_s20 + $0xf0] sm:$0xff] %vm10941_vm5, %v10906_v1 }
 0xae6   : > { %11923 = vst.msk [vmem:[%s14017_s20 + $0xd8] sm:$0xff] %vm11895_vm6, %v11854_v61 }
 0xaec   : > { %v10902_v29 = vpop.permute.xlu0 %10901  ;;  %v11862_v59 = vpop.permute.xlu2 %11861 }
 0xaed   : > { %10970 = vst.msk [vmem:[%s14017_s20 + $0xe0] sm:$0xff] %vm10941_vm5, %v10902_v29 }
 0xaee   : > { %11924 = vst.msk [vmem:[%s14017_s20 + $0xe0] sm:$0xff] %vm11895_vm6, %v11856_v58 }
 0xaf4   : > { %v10904_v15 = vpop.permute.xlu1 %10903 }
 0xaf5   : > { %10971 = vst.msk [vmem:[%s14017_s20 + $0xe8] sm:$0xff] %vm10941_vm5, %v10904_v15 }
 0xafc   : > { %v11860_v60 = vpop.permute.xlu1 %11859 }
 0xafd   : > { %11926 = vst.msk [vmem:[%s14017_s20 + $0xf0] sm:$0xff] %vm11895_vm6, %v11860_v60 }
 0xb04   : > { %v10908_v39 = vpop.permute.xlu0 %10907 }
 0xb05   : > { %10973 = vst.msk [vmem:[%s14017_s20 + $0xf8] sm:$0xff] %vm10941_vm5, %v10908_v39 }
 0xb06   : > { %11927 = vst.msk [vmem:[%s14017_s20 + $0xf8] sm:$0xff] %vm11895_vm6, %v11862_v59 }
 0xb0c   : > { %v11858_v21 = vpop.permute.xlu0 %11857 }
 0xb0d   : > { %11925 = vst.msk [vmem:[%s14017_s20 + $0xe8] sm:$0xff] %vm11895_vm6, %v11858_v21 }
 0xb0e   : > { %13605 = shalt.err (!%p13602_p3)
}
 0xb0f   : > { %s13646_s27 = smov 128   ;;  %s13647_s20 = smov 8  }
 0xb10   : > { %13486 = dma.vmem_to_hbm [thread:$0]  (%p13761_p5), %s11942_s25, 4096, %s11944_s26, %s11929_s17, %s13646_s27, %s13646_s27, %s13647_s20  }
 0xb11 PF: > { %p13492_p4 = scmp.ge.s32.totalorder %s13640_s16, 2  ;;  %s11958_s22 = sand.u32 1, %s13628_s29  }
 0xb12   : > { %s11959_s1 = scalar_lea.sflag [#allocation5], %s11958_s22 }
 0xb13   : > { %p13489_p7 = pnand %p13492_p4, %p13765_p6 }
 0xb15   : > { %p13490_p8 = pneg %p13489_p7 }
 0xb17   : > { %13623 = dma.done.wait (%p13490_p8), %s11959_s1, 4096  }
 0xb18   : > { %13625 = vsyncadd (%p13490_p8), %s11959_s1, 4294963200  ;;  %s20140_s0 = sld [smem:[#allocation7_spill]]  ;;  %p24_p9 = scmp.ge.s32.totalorder %s13748_s19, 4  }
 0xb19   : > { %s20141_s15 = sld [smem:[#allocation8_spill]]  ;;  %s20142_s29 = smov %s13632_s30 }
 0xb1a   : > { %s20144_s16 = smov %s13748_s19  ;;  %26 = sbr.rel (!%p24_p9) target bundleno = 6 (0x6), region = 154 }
 0xb1e   : > { %s20143_s30 = smov %s20140_s0 }
 0xb1f   :  { %11965 = vsyncpa [#allocation5], 1 }
 0xb20   :  { %11967 = vsyncpa [#allocation5 + $0x1], 1 }

</bundles_post_ra>
